<compile_context>
chip_gen: v5e
topology: v5e:2x2
jax: 0.10.0
libtpu: 0.0.40
codegen_flags: <defaults>
</compile_context>

<pallas_src>
import numpy as np

import jax
import jax.numpy as jnp
from jax.experimental import pallas as pl
from jax.experimental.pallas import tpu as pltpu


KSIZE = 5      # Conv3d kernel size
C1 = 6         # conv1 out channels
C2 = 16        # conv2 out channels
NH1 = 120      # fc1 out features
NH2 = 84       # fc2 out features


# ------------------------------------------------------------------
# static shape bookkeeping
# ------------------------------------------------------------------
def _dims(c_in, vox):
    d1 = vox - (KSIZE - 1)          # conv1 output spatial extent
    p1 = d1 // 2                    # after pool1
    d2 = p1 - (KSIZE - 1)           # conv2 output spatial extent
    p2 = d2 // 2                    # after pool2
    return dict(
        c_in=c_in, vox=vox, d1=d1, p1=p1, d2=d2, p2=p2,
        l_in=vox * c_in,            # input lanes      (w * c_in + c)
        l1=d1 * C1,                 # conv1 out lanes  (w * C1 + oc)
        l2=d2 * C2,                 # conv2 out lanes  (w * C2 + oc)
        ls1=(d1 - 1) * (vox + 1) + 1,   # conv1 shifted-slab rows
        ls2=(d2 - 1) * (p1 + 1) + 1,    # conv2 shifted-slab rows
        rp1=p1 * p1, rp2=p2 * p2,
        flat=C2 * p2 ** 3,
    )


# ------------------------------------------------------------------
# one-off weight packing (host side, outside the jitted forward)
# ------------------------------------------------------------------
def prepare_params(params, c_in, vox):
    dm = _dims(c_in, vox)
    d1, p1, d2, p2 = dm["d1"], dm["p1"], dm["d2"], dm["p2"]
    l_in, l1, l2 = dm["l_in"], dm["l1"], dm["l2"]
    ls1, ls2 = dm["ls1"], dm["ls2"]

    w1 = np.asarray(params["conv1_w"], np.float32)   # [C1, c_in, 5,5,5]
    w2 = np.asarray(params["conv2_w"], np.float32)   # [C2, C1, 5,5,5]
    fc1w = np.asarray(params["fc1_w"], np.float32)   # [NH1, flat]
    fc2w = np.asarray(params["fc2_w"], np.float32)   # [NH2, NH1]
    fc3w = np.asarray(params["fc3_w"], np.float32)   # [1,  NH2]

    # conv1: Toeplitz slab (w_in, c_in) -> (w_out, oc), one per (kd, kh) tap.
    wb1 = np.zeros((KSIZE * KSIZE, l_in, l1), np.float32)
    for kd in range(KSIZE):
        for kh in range(KSIZE):
            t = kd * KSIZE + kh
            for wo in range(d1):
                for kw in range(KSIZE):
                    wi = wo + kw
                    wb1[t, wi * c_in:(wi + 1) * c_in,
                        wo * C1:(wo + 1) * C1] = w1[:, :, kd, kh, kw].T
    b1l = np.tile(np.asarray(params["conv1_b"], np.float32), d1).reshape(1, l1)

    # conv2: same trick; its input lanes are (2*w_in)*C1 + c (uncompacted
    # pool1 output -- the "garbage" odd lanes hit all-zero weight rows).
    wb2 = np.zeros((KSIZE * KSIZE, l1, l2), np.float32)
    for kd in range(KSIZE):
        for kh in range(KSIZE):
            t = kd * KSIZE + kh
            for wo in range(d2):
                for kw in range(KSIZE):
                    wi = wo + kw
                    wb2[t, 2 * wi * C1:2 * wi * C1 + C1,
                        wo * C2:(wo + 1) * C2] = w2[:, :, kd, kh, kw].T
    b2l = np.tile(np.asarray(params["conv2_b"], np.float32), d2).reshape(1, l2)

    # pool1/pool2 depth-height max: 4 one-hot row-selection matrices that also
    # fold in the conv output row gather; width max: lane-shift matrices.
    s1t = np.zeros((4, p1 * p1, ls1), np.float32)
    for k in range(4):
        d0, h0 = k // 2, k % 2
        for da in range(p1):
            for ha in range(p1):
                s1t[k, da * p1 + ha, (2 * da + d0) * vox + (2 * ha + h0)] = 1.0
    pw1 = np.zeros((l1, l1), np.float32)
    for wq in range(p1):
        for o in range(C1):
            pw1[(2 * wq + 1) * C1 + o, 2 * wq * C1 + o] = 1.0

    s2t = np.zeros((4, p2 * p2, ls2), np.float32)
    for k in range(4):
        d0, h0 = k // 2, k % 2
        for da in range(p2):
            for ha in range(p2):
                s2t[k, da * p2 + ha, (2 * da + d0) * p1 + (2 * ha + h0)] = 1.0
    pw2 = np.zeros((l2, l2), np.float32)
    for wq in range(p2):
        for o in range(C2):
            pw2[(2 * wq + 1) * C2 + o, 2 * wq * C2 + o] = 1.0

    # fc1 with torch.flatten(NCDHW) ordering folded in:
    # pooled conv2 value (d,h,w,oc) sits at row d*p2+h, lane 2*w*C2+oc and its
    # torch feature index is ((oc*p2+d)*p2+h)*p2+w.
    g1 = np.zeros((p2 * p2, l2, NH1), np.float32)
    for dd in range(p2):
        for hh in range(p2):
            for wq in range(p2):
                for oc in range(C2):
                    f = ((oc * p2 + dd) * p2 + hh) * p2 + wq
                    g1[dd * p2 + hh, 2 * wq * C2 + oc, :] = fc1w[:, f]

    j = jnp.asarray
    return {
        "wb1": j(wb1), "b1l": j(b1l), "s1t": j(s1t), "pw1": j(pw1),
        "wb2": j(wb2), "b2l": j(b2l), "s2t": j(s2t), "pw2": j(pw2),
        "g1": j(g1),
        "fc1b": j(np.asarray(params["fc1_b"], np.float32).reshape(1, NH1)),
        "fc2w": j(np.ascontiguousarray(fc2w.T)),
        "fc2b": j(np.asarray(params["fc2_b"], np.float32).reshape(1, NH2)),
        "fc3w": j(np.ascontiguousarray(fc3w.T)),
        "fc3b": j(np.asarray(params["fc3_b"], np.float32).reshape(1, 1)),
    }


# ------------------------------------------------------------------
# the fused Pallas kernel (one grid step == one batch element)
# ------------------------------------------------------------------
def _build_kernel(dm):
    vox, p1 = dm["vox"], dm["p1"]
    ls1, ls2 = dm["ls1"], dm["ls2"]
    l1, l2 = dm["l1"], dm["l2"]
    rp2 = dm["rp2"]

    def kernel(x_ref, wb1_ref, b1l_ref, s1t_ref, pw1_ref,
               wb2_ref, b2l_ref, s2t_ref, pw2_ref,
               g1_ref, fc1b_ref, fc2w_ref, fc2b_ref, fc3w_ref, fc3b_ref,
               out_ref):
        f32 = jnp.float32

        # ---- conv1: 25 Toeplitz taps over shifted row-slabs of x ----------
        z1 = jnp.zeros((ls1, l1), f32)
        for kd in range(KSIZE):
            for kh in range(KSIZE):
                off = kd * vox + kh
                a = x_ref[0, off:off + ls1, :]                 # [ls1, l_in]
                z1 = z1 + jnp.dot(a, wb1_ref[kd * KSIZE + kh],
                                  preferred_element_type=f32)
        z1 = jnp.maximum(z1 + b1l_ref[...], 0.0)               # bias + ReLU

        # ---- pool1 (2x2x2): d/h via one-hot matmuls, w within lanes --------
        dh = jnp.dot(s1t_ref[0], z1, preferred_element_type=f32)
        for k in range(1, 4):
            dh = jnp.maximum(dh, jnp.dot(s1t_ref[k], z1,
                                         preferred_element_type=f32))
        x2 = jnp.maximum(dh, jnp.dot(dh, pw1_ref[...],
                                     preferred_element_type=f32))  # [p1*p1,l1]

        # ---- conv2 ----------------------------------------------------------
        z2 = jnp.zeros((ls2, l2), f32)
        for kd in range(KSIZE):
            for kh in range(KSIZE):
                off = kd * p1 + kh
                a = x2[off:off + ls2, :]                        # [ls2, l1]
                z2 = z2 + jnp.dot(a, wb2_ref[kd * KSIZE + kh],
                                  preferred_element_type=f32)
        z2 = jnp.maximum(z2 + b2l_ref[...], 0.0)

        # ---- pool2 ----------------------------------------------------------
        dh2 = jnp.dot(s2t_ref[0], z2, preferred_element_type=f32)
        for k in range(1, 4):
            dh2 = jnp.maximum(dh2, jnp.dot(s2t_ref[k], z2,
                                           preferred_element_type=f32))
        m2 = jnp.maximum(dh2, jnp.dot(dh2, pw2_ref[...],
                                      preferred_element_type=f32))  # [rp2, l2]

        # ---- fc1 (flatten order folded into g1) + fc2 + fc3 -----------------
        h = jnp.dot(m2[0:1, :], g1_ref[0], preferred_element_type=f32)
        for r in range(1, rp2):
            h = h + jnp.dot(m2[r:r + 1, :], g1_ref[r],
                            preferred_element_type=f32)
        h = jnp.maximum(h + fc1b_ref[...], 0.0)
        h = jnp.maximum(jnp.dot(h, fc2w_ref[...],
                                preferred_element_type=f32) + fc2b_ref[...],
                        0.0)
        h = jnp.dot(h, fc3w_ref[...],
                    preferred_element_type=f32) + fc3b_ref[...]
        out_ref[0] = h                                          # [1, 1]

    return kernel


# ------------------------------------------------------------------
# forward wrapper (single pallas_call, batch-parallel grid)
# ------------------------------------------------------------------
def net_forward(x_ncdhw, prep):
    b, c_in, dd, hh, ww = x_ncdhw.shape
    assert dd == hh == ww, "expects cubic voxel grids"
    dm = _dims(c_in, dd)
    vox, l_in, l1, l2 = dm["vox"], dm["l_in"], dm["l1"], dm["l2"]
    ls1, ls2, rp1, rp2 = dm["ls1"], dm["ls2"], dm["rp1"], dm["rp2"]
    nt = KSIZE * KSIZE

    # NCDHW -> rows (d*vox + h), lanes (w*c_in + c): one cheap relayout in XLA.
    x = jnp.transpose(x_ncdhw, (0, 2, 3, 4, 1)).astype(jnp.float32)
    x = x.reshape(b, vox * vox, l_in)

    def const_spec(shape):
        zeros = (0,) * len(shape)
        return pl.BlockSpec(shape, lambda i, _z=zeros: _z)

    out = pl.pallas_call(
        _build_kernel(dm),
        out_shape=jax.ShapeDtypeStruct((b, 1, 1), jnp.float32),
        grid_spec=pltpu.PrefetchScalarGridSpec(
            num_scalar_prefetch=0,
            grid=(b,),
            in_specs=[
                pl.BlockSpec((1, vox * vox, l_in), lambda i: (i, 0, 0)),  # x
                const_spec((nt, l_in, l1)),      # wb1
                const_spec((1, l1)),             # b1l
                const_spec((4, rp1, ls1)),       # s1t
                const_spec((l1, l1)),            # pw1
                const_spec((nt, l1, l2)),        # wb2
                const_spec((1, l2)),             # b2l
                const_spec((4, rp2, ls2)),       # s2t
                const_spec((l2, l2)),            # pw2
                const_spec((rp2, l2, NH1)),      # g1
                const_spec((1, NH1)),            # fc1b
                const_spec((NH1, NH2)),          # fc2w (pre-transposed)
                const_spec((1, NH2)),            # fc2b
                const_spec((NH2, 1)),            # fc3w (pre-transposed)
                const_spec((1, 1)),              # fc3b
            ],
            out_specs=pl.BlockSpec((1, 1, 1), lambda i: (i, 0, 0)),
        ),
        compiler_params=pltpu.CompilerParams(
            dimension_semantics=("parallel",)),
    )(x, prep["wb1"], prep["b1l"], prep["s1t"], prep["pw1"],
      prep["wb2"], prep["b2l"], prep["s2t"], prep["pw2"], prep["g1"],
      prep["fc1b"], prep["fc2w"], prep["fc2b"], prep["fc3w"], prep["fc3b"])
    return out.reshape(b, 1)


# ------------------------------------------------------------------
# pure-JAX reference (for in-script verification only)
# ------------------------------------------------------------------
def _conv3d_ref(x, w, bias):
    co, ci, k, _, _ = w.shape
    bb, _, d, h, ww = x.shape
    do, ho, wo = d - k + 1, h - k + 1, ww - k + 1
    y = jnp.zeros((bb, co, do, ho, wo), jnp.float32)
    for kd in range(k):
        for kh in range(k):
            for kw in range(k):
                xs = x[:, :, kd:kd + do, kh:kh + ho, kw:kw + wo]
                y = y + jnp.einsum("bidhw,oi->bodhw", xs, w[:, :, kd, kh, kw])
    return y + bias.reshape(1, co, 1, 1, 1)


def _pool3d_ref(x):
    bb, c, d, h, w = x.shape
    return x.reshape(bb, c, d // 2, 2, h // 2, 2, w // 2, 2).max(axis=(3, 5, 7))


def net_forward_reference(x, params):
    x = x.astype(jnp.float32)
    y = _pool3d_ref(jax.nn.relu(
        _conv3d_ref(x, params["conv1_w"], params["conv1_b"])))
    y = _pool3d_ref(jax.nn.relu(
        _conv3d_ref(y, params["conv2_w"], params["conv2_b"])))
    y = y.reshape(y.shape[0], -1)
    y = jax.nn.relu(y @ params["fc1_w"].T + params["fc1_b"])
    y = jax.nn.relu(y @ params["fc2_w"].T + params["fc2_b"])
    return y @ params["fc3_w"].T + params["fc3_b"]


# ------------------------------------------------------------------
# deterministic parameter construction + run
# ------------------------------------------------------------------
def make_params(key, c_in, vox):
    flat = _dims(c_in, vox)["flat"]
    ks = jax.random.split(key, 10)

    def init(k, shape, fan_in):
        return (jax.random.normal(k, shape, jnp.float32) /
                jnp.sqrt(jnp.float32(fan_in))).astype(jnp.float32)

    return {
        "conv1_w": init(ks[0], (C1, c_in, KSIZE, KSIZE, KSIZE), c_in * KSIZE ** 3),
        "conv1_b": init(ks[1], (C1,), c_in * KSIZE ** 3),
        "conv2_w": init(ks[2], (C2, C1, KSIZE, KSIZE, KSIZE), C1 * KSIZE ** 3),
        "conv2_b": init(ks[3], (C2,), C1 * KSIZE ** 3),
        "fc1_w": init(ks[4], (NH1, flat), flat),
        "fc1_b": init(ks[5], (NH1,), flat),
        "fc2_w": init(ks[6], (NH2, NH1), NH1),
        "fc2_b": init(ks[7], (NH2,), NH1),
        "fc3_w": init(ks[8], (1, NH2), NH2),
        "fc3_b": init(ks[9], (1,), NH2),
    }


if __name__ == "__main__":
    B = 2          # batch
    C_IN = 4       # len(ONE_HOT_DICT)
    VOX = 20       # VOX_SIZE: ((20-4)/2 - 4)/2 = 2  ->  fc1 in = 16*8 = 128

    root = jax.random.PRNGKey(0)
    pkey, xkey = jax.random.split(root)
    params = make_params(pkey, C_IN, VOX)
    prep = prepare_params(params, C_IN, VOX)   # one-off weight packing
    x = jax.random.normal(xkey, (B, C_IN, VOX, VOX, VOX), jnp.float32)

    fwd = jax.jit(net_forward)
    out = jax.block_until_ready(fwd(x, prep))
    assert out.shape == (B, 1), out.shape
    assert bool(jnp.all(jnp.isfinite(out)))

    ref = jax.block_until_ready(jax.jit(net_forward_reference)(x, params))
    np.testing.assert_allclose(np.asarray(out), np.asarray(ref),
                               rtol=2e-2, atol=2e-2)

    print("KERNEL_OK")
</pallas_src>

<mosaic_0001>
module attributes {stable_mosaic.version = 11 : i64} {
  func.func @kernel(%arg0: i32, %arg1: memref<1x400x80xf32, #tpu.memory_space<vmem>>, %arg2: memref<25x80x96xf32, #tpu.memory_space<vmem>>, %arg3: memref<1x96xf32, #tpu.memory_space<vmem>>, %arg4: memref<4x64x316xf32, #tpu.memory_space<vmem>>, %arg5: memref<96x96xf32, #tpu.memory_space<vmem>>, %arg6: memref<25x96x64xf32, #tpu.memory_space<vmem>>, %arg7: memref<1x64xf32, #tpu.memory_space<vmem>>, %arg8: memref<4x4x28xf32, #tpu.memory_space<vmem>>, %arg9: memref<64x64xf32, #tpu.memory_space<vmem>>, %arg10: memref<4x64x120xf32, #tpu.memory_space<vmem>>, %arg11: memref<1x120xf32, #tpu.memory_space<vmem>>, %arg12: memref<120x84xf32, #tpu.memory_space<vmem>>, %arg13: memref<1x84xf32, #tpu.memory_space<vmem>>, %arg14: memref<84x1xf32, #tpu.memory_space<vmem>>, %arg15: memref<1x1xf32, #tpu.memory_space<vmem>>, %arg16: memref<1x1x1xf32, #tpu.memory_space<vmem>>) attributes {dimension_semantics = [#tpu.dimension_semantics<parallel>], iteration_bounds = array<i64: 2>, scalar_prefetch = 0 : i64, scratch_operands = 0 : i64, tpu.core_type = #tpu.core_type<tc>, window_params = [{transform_indices = @transform_0, window_bounds = array<i64: 1, 400, 80>}, {pipeline_mode = #tpu.pipeline_mode<synchronous>, transform_indices = @transform_1, window_bounds = array<i64: 25, 80, 96>}, {pipeline_mode = #tpu.pipeline_mode<synchronous>, transform_indices = @transform_2, window_bounds = array<i64: 1, 96>}, {pipeline_mode = #tpu.pipeline_mode<synchronous>, transform_indices = @transform_3, window_bounds = array<i64: 4, 64, 316>}, {pipeline_mode = #tpu.pipeline_mode<synchronous>, transform_indices = @transform_4, window_bounds = array<i64: 96, 96>}, {pipeline_mode = #tpu.pipeline_mode<synchronous>, transform_indices = @transform_5, window_bounds = array<i64: 25, 96, 64>}, {pipeline_mode = #tpu.pipeline_mode<synchronous>, transform_indices = @transform_6, window_bounds = array<i64: 1, 64>}, {pipeline_mode = #tpu.pipeline_mode<synchronous>, transform_indices = @transform_7, window_bounds = array<i64: 4, 4, 28>}, {pipeline_mode = #tpu.pipeline_mode<synchronous>, transform_indices = @transform_8, window_bounds = array<i64: 64, 64>}, {pipeline_mode = #tpu.pipeline_mode<synchronous>, transform_indices = @transform_9, window_bounds = array<i64: 4, 64, 120>}, {pipeline_mode = #tpu.pipeline_mode<synchronous>, transform_indices = @transform_10, window_bounds = array<i64: 1, 120>}, {pipeline_mode = #tpu.pipeline_mode<synchronous>, transform_indices = @transform_11, window_bounds = array<i64: 120, 84>}, {pipeline_mode = #tpu.pipeline_mode<synchronous>, transform_indices = @transform_12, window_bounds = array<i64: 1, 84>}, {pipeline_mode = #tpu.pipeline_mode<synchronous>, transform_indices = @transform_13, window_bounds = array<i64: 84, 1>}, {pipeline_mode = #tpu.pipeline_mode<synchronous>, transform_indices = @transform_14, window_bounds = array<i64: 1, 1>}, {transform_indices = @transform_15, window_bounds = array<i64: 1, 1, 1>}]} {
    %cst = arith.constant 0.000000e+00 : f32
    %0 = vector.broadcast %cst : f32 to vector<316x96xf32>
    %c0 = arith.constant 0 : index
    %c0_0 = arith.constant 0 : index
    %c0_1 = arith.constant 0 : index
    %1 = vector.load %arg1[%c0, %c0_0, %c0_1] : memref<1x400x80xf32, #tpu.memory_space<vmem>>, vector<1x316x80xf32>
    %2 = vector.shape_cast %1 : vector<1x316x80xf32> to vector<316x80xf32>
    %c0_2 = arith.constant 0 : index
    %c0_3 = arith.constant 0 : index
    %c0_4 = arith.constant 0 : index
    %3 = vector.load %arg2[%c0_2, %c0_3, %c0_4] : memref<25x80x96xf32, #tpu.memory_space<vmem>>, vector<1x80x96xf32>
    %4 = vector.shape_cast %3 : vector<1x80x96xf32> to vector<80x96xf32>
    %cst_5 = arith.constant dense<0.000000e+00> : vector<316x96xf32>
    %5 = tpu.matmul %2, %4, %cst_5 {dimension_numbers = #tpu.dot_dimension_numbers<[1], [0], [0], [1], [0, 0, 1, 1], [], []>} : vector<316x80xf32>, vector<80x96xf32>, vector<316x96xf32> -> vector<316x96xf32>
    %6 = arith.addf %0, %5 : vector<316x96xf32>
    %c0_6 = arith.constant 0 : index
    %c1 = arith.constant 1 : index
    %c0_7 = arith.constant 0 : index
    %7 = vector.load %arg1[%c0_6, %c1, %c0_7] : memref<1x400x80xf32, #tpu.memory_space<vmem>>, vector<1x316x80xf32>
    %8 = vector.shape_cast %7 : vector<1x316x80xf32> to vector<316x80xf32>
    %c1_8 = arith.constant 1 : index
    %c0_9 = arith.constant 0 : index
    %c0_10 = arith.constant 0 : index
    %9 = vector.load %arg2[%c1_8, %c0_9, %c0_10] : memref<25x80x96xf32, #tpu.memory_space<vmem>>, vector<1x80x96xf32>
    %10 = vector.shape_cast %9 : vector<1x80x96xf32> to vector<80x96xf32>
    %cst_11 = arith.constant dense<0.000000e+00> : vector<316x96xf32>
    %11 = tpu.matmul %8, %10, %cst_11 {dimension_numbers = #tpu.dot_dimension_numbers<[1], [0], [0], [1], [0, 0, 1, 1], [], []>} : vector<316x80xf32>, vector<80x96xf32>, vector<316x96xf32> -> vector<316x96xf32>
    %12 = arith.addf %6, %11 : vector<316x96xf32>
    %c0_12 = arith.constant 0 : index
    %c2 = arith.constant 2 : index
    %c0_13 = arith.constant 0 : index
    %13 = vector.load %arg1[%c0_12, %c2, %c0_13] : memref<1x400x80xf32, #tpu.memory_space<vmem>>, vector<1x316x80xf32>
    %14 = vector.shape_cast %13 : vector<1x316x80xf32> to vector<316x80xf32>
    %c2_14 = arith.constant 2 : index
    %c0_15 = arith.constant 0 : index
    %c0_16 = arith.constant 0 : index
    %15 = vector.load %arg2[%c2_14, %c0_15, %c0_16] : memref<25x80x96xf32, #tpu.memory_space<vmem>>, vector<1x80x96xf32>
    %16 = vector.shape_cast %15 : vector<1x80x96xf32> to vector<80x96xf32>
    %cst_17 = arith.constant dense<0.000000e+00> : vector<316x96xf32>
    %17 = tpu.matmul %14, %16, %cst_17 {dimension_numbers = #tpu.dot_dimension_numbers<[1], [0], [0], [1], [0, 0, 1, 1], [], []>} : vector<316x80xf32>, vector<80x96xf32>, vector<316x96xf32> -> vector<316x96xf32>
    %18 = arith.addf %12, %17 : vector<316x96xf32>
    %c0_18 = arith.constant 0 : index
    %c3 = arith.constant 3 : index
    %c0_19 = arith.constant 0 : index
    %19 = vector.load %arg1[%c0_18, %c3, %c0_19] : memref<1x400x80xf32, #tpu.memory_space<vmem>>, vector<1x316x80xf32>
    %20 = vector.shape_cast %19 : vector<1x316x80xf32> to vector<316x80xf32>
    %c3_20 = arith.constant 3 : index
    %c0_21 = arith.constant 0 : index
    %c0_22 = arith.constant 0 : index
    %21 = vector.load %arg2[%c3_20, %c0_21, %c0_22] : memref<25x80x96xf32, #tpu.memory_space<vmem>>, vector<1x80x96xf32>
    %22 = vector.shape_cast %21 : vector<1x80x96xf32> to vector<80x96xf32>
    %cst_23 = arith.constant dense<0.000000e+00> : vector<316x96xf32>
    %23 = tpu.matmul %20, %22, %cst_23 {dimension_numbers = #tpu.dot_dimension_numbers<[1], [0], [0], [1], [0, 0, 1, 1], [], []>} : vector<316x80xf32>, vector<80x96xf32>, vector<316x96xf32> -> vector<316x96xf32>
    %24 = arith.addf %18, %23 : vector<316x96xf32>
    %c0_24 = arith.constant 0 : index
    %c4 = arith.constant 4 : index
    %c0_25 = arith.constant 0 : index
    %25 = vector.load %arg1[%c0_24, %c4, %c0_25] : memref<1x400x80xf32, #tpu.memory_space<vmem>>, vector<1x316x80xf32>
    %26 = vector.shape_cast %25 : vector<1x316x80xf32> to vector<316x80xf32>
    %c4_26 = arith.constant 4 : index
    %c0_27 = arith.constant 0 : index
    %c0_28 = arith.constant 0 : index
    %27 = vector.load %arg2[%c4_26, %c0_27, %c0_28] : memref<25x80x96xf32, #tpu.memory_space<vmem>>, vector<1x80x96xf32>
    %28 = vector.shape_cast %27 : vector<1x80x96xf32> to vector<80x96xf32>
    %cst_29 = arith.constant dense<0.000000e+00> : vector<316x96xf32>
    %29 = tpu.matmul %26, %28, %cst_29 {dimension_numbers = #tpu.dot_dimension_numbers<[1], [0], [0], [1], [0, 0, 1, 1], [], []>} : vector<316x80xf32>, vector<80x96xf32>, vector<316x96xf32> -> vector<316x96xf32>
    %30 = arith.addf %24, %29 : vector<316x96xf32>
    %c0_30 = arith.constant 0 : index
    %c20 = arith.constant 20 : index
    %c0_31 = arith.constant 0 : index
    %31 = vector.load %arg1[%c0_30, %c20, %c0_31] : memref<1x400x80xf32, #tpu.memory_space<vmem>>, vector<1x316x80xf32>
    %32 = vector.shape_cast %31 : vector<1x316x80xf32> to vector<316x80xf32>
    %c5 = arith.constant 5 : index
    %c0_32 = arith.constant 0 : index
    %c0_33 = arith.constant 0 : index
    %33 = vector.load %arg2[%c5, %c0_32, %c0_33] : memref<25x80x96xf32, #tpu.memory_space<vmem>>, vector<1x80x96xf32>
    %34 = vector.shape_cast %33 : vector<1x80x96xf32> to vector<80x96xf32>
    %cst_34 = arith.constant dense<0.000000e+00> : vector<316x96xf32>
    %35 = tpu.matmul %32, %34, %cst_34 {dimension_numbers = #tpu.dot_dimension_numbers<[1], [0], [0], [1], [0, 0, 1, 1], [], []>} : vector<316x80xf32>, vector<80x96xf32>, vector<316x96xf32> -> vector<316x96xf32>
    %36 = arith.addf %30, %35 : vector<316x96xf32>
    %c0_35 = arith.constant 0 : index
    %c21 = arith.constant 21 : index
    %c0_36 = arith.constant 0 : index
    %37 = vector.load %arg1[%c0_35, %c21, %c0_36] : memref<1x400x80xf32, #tpu.memory_space<vmem>>, vector<1x316x80xf32>
    %38 = vector.shape_cast %37 : vector<1x316x80xf32> to vector<316x80xf32>
    %c6 = arith.constant 6 : index
    %c0_37 = arith.constant 0 : index
    %c0_38 = arith.constant 0 : index
    %39 = vector.load %arg2[%c6, %c0_37, %c0_38] : memref<25x80x96xf32, #tpu.memory_space<vmem>>, vector<1x80x96xf32>
    %40 = vector.shape_cast %39 : vector<1x80x96xf32> to vector<80x96xf32>
    %cst_39 = arith.constant dense<0.000000e+00> : vector<316x96xf32>
    %41 = tpu.matmul %38, %40, %cst_39 {dimension_numbers = #tpu.dot_dimension_numbers<[1], [0], [0], [1], [0, 0, 1, 1], [], []>} : vector<316x80xf32>, vector<80x96xf32>, vector<316x96xf32> -> vector<316x96xf32>
    %42 = arith.addf %36, %41 : vector<316x96xf32>
    %c0_40 = arith.constant 0 : index
    %c22 = arith.constant 22 : index
    %c0_41 = arith.constant 0 : index
    %43 = vector.load %arg1[%c0_40, %c22, %c0_41] : memref<1x400x80xf32, #tpu.memory_space<vmem>>, vector<1x316x80xf32>
    %44 = vector.shape_cast %43 : vector<1x316x80xf32> to vector<316x80xf32>
    %c7 = arith.constant 7 : index
    %c0_42 = arith.constant 0 : index
    %c0_43 = arith.constant 0 : index
    %45 = vector.load %arg2[%c7, %c0_42, %c0_43] : memref<25x80x96xf32, #tpu.memory_space<vmem>>, vector<1x80x96xf32>
    %46 = vector.shape_cast %45 : vector<1x80x96xf32> to vector<80x96xf32>
    %cst_44 = arith.constant dense<0.000000e+00> : vector<316x96xf32>
    %47 = tpu.matmul %44, %46, %cst_44 {dimension_numbers = #tpu.dot_dimension_numbers<[1], [0], [0], [1], [0, 0, 1, 1], [], []>} : vector<316x80xf32>, vector<80x96xf32>, vector<316x96xf32> -> vector<316x96xf32>
    %48 = arith.addf %42, %47 : vector<316x96xf32>
    %c0_45 = arith.constant 0 : index
    %c23 = arith.constant 23 : index
    %c0_46 = arith.constant 0 : index
    %49 = vector.load %arg1[%c0_45, %c23, %c0_46] : memref<1x400x80xf32, #tpu.memory_space<vmem>>, vector<1x316x80xf32>
    %50 = vector.shape_cast %49 : vector<1x316x80xf32> to vector<316x80xf32>
    %c8 = arith.constant 8 : index
    %c0_47 = arith.constant 0 : index
    %c0_48 = arith.constant 0 : index
    %51 = vector.load %arg2[%c8, %c0_47, %c0_48] : memref<25x80x96xf32, #tpu.memory_space<vmem>>, vector<1x80x96xf32>
    %52 = vector.shape_cast %51 : vector<1x80x96xf32> to vector<80x96xf32>
    %cst_49 = arith.constant dense<0.000000e+00> : vector<316x96xf32>
    %53 = tpu.matmul %50, %52, %cst_49 {dimension_numbers = #tpu.dot_dimension_numbers<[1], [0], [0], [1], [0, 0, 1, 1], [], []>} : vector<316x80xf32>, vector<80x96xf32>, vector<316x96xf32> -> vector<316x96xf32>
    %54 = arith.addf %48, %53 : vector<316x96xf32>
    %c0_50 = arith.constant 0 : index
    %c24 = arith.constant 24 : index
    %c0_51 = arith.constant 0 : index
    %55 = vector.load %arg1[%c0_50, %c24, %c0_51] : memref<1x400x80xf32, #tpu.memory_space<vmem>>, vector<1x316x80xf32>
    %56 = vector.shape_cast %55 : vector<1x316x80xf32> to vector<316x80xf32>
    %c9 = arith.constant 9 : index
    %c0_52 = arith.constant 0 : index
    %c0_53 = arith.constant 0 : index
    %57 = vector.load %arg2[%c9, %c0_52, %c0_53] : memref<25x80x96xf32, #tpu.memory_space<vmem>>, vector<1x80x96xf32>
    %58 = vector.shape_cast %57 : vector<1x80x96xf32> to vector<80x96xf32>
    %cst_54 = arith.constant dense<0.000000e+00> : vector<316x96xf32>
    %59 = tpu.matmul %56, %58, %cst_54 {dimension_numbers = #tpu.dot_dimension_numbers<[1], [0], [0], [1], [0, 0, 1, 1], [], []>} : vector<316x80xf32>, vector<80x96xf32>, vector<316x96xf32> -> vector<316x96xf32>
    %60 = arith.addf %54, %59 : vector<316x96xf32>
    %c0_55 = arith.constant 0 : index
    %c40 = arith.constant 40 : index
    %c0_56 = arith.constant 0 : index
    %61 = vector.load %arg1[%c0_55, %c40, %c0_56] : memref<1x400x80xf32, #tpu.memory_space<vmem>>, vector<1x316x80xf32>
    %62 = vector.shape_cast %61 : vector<1x316x80xf32> to vector<316x80xf32>
    %c10 = arith.constant 10 : index
    %c0_57 = arith.constant 0 : index
    %c0_58 = arith.constant 0 : index
    %63 = vector.load %arg2[%c10, %c0_57, %c0_58] : memref<25x80x96xf32, #tpu.memory_space<vmem>>, vector<1x80x96xf32>
    %64 = vector.shape_cast %63 : vector<1x80x96xf32> to vector<80x96xf32>
    %cst_59 = arith.constant dense<0.000000e+00> : vector<316x96xf32>
    %65 = tpu.matmul %62, %64, %cst_59 {dimension_numbers = #tpu.dot_dimension_numbers<[1], [0], [0], [1], [0, 0, 1, 1], [], []>} : vector<316x80xf32>, vector<80x96xf32>, vector<316x96xf32> -> vector<316x96xf32>
    %66 = arith.addf %60, %65 : vector<316x96xf32>
    %c0_60 = arith.constant 0 : index
    %c41 = arith.constant 41 : index
    %c0_61 = arith.constant 0 : index
    %67 = vector.load %arg1[%c0_60, %c41, %c0_61] : memref<1x400x80xf32, #tpu.memory_space<vmem>>, vector<1x316x80xf32>
    %68 = vector.shape_cast %67 : vector<1x316x80xf32> to vector<316x80xf32>
    %c11 = arith.constant 11 : index
    %c0_62 = arith.constant 0 : index
    %c0_63 = arith.constant 0 : index
    %69 = vector.load %arg2[%c11, %c0_62, %c0_63] : memref<25x80x96xf32, #tpu.memory_space<vmem>>, vector<1x80x96xf32>
    %70 = vector.shape_cast %69 : vector<1x80x96xf32> to vector<80x96xf32>
    %cst_64 = arith.constant dense<0.000000e+00> : vector<316x96xf32>
    %71 = tpu.matmul %68, %70, %cst_64 {dimension_numbers = #tpu.dot_dimension_numbers<[1], [0], [0], [1], [0, 0, 1, 1], [], []>} : vector<316x80xf32>, vector<80x96xf32>, vector<316x96xf32> -> vector<316x96xf32>
    %72 = arith.addf %66, %71 : vector<316x96xf32>
    %c0_65 = arith.constant 0 : index
    %c42 = arith.constant 42 : index
    %c0_66 = arith.constant 0 : index
    %73 = vector.load %arg1[%c0_65, %c42, %c0_66] : memref<1x400x80xf32, #tpu.memory_space<vmem>>, vector<1x316x80xf32>
    %74 = vector.shape_cast %73 : vector<1x316x80xf32> to vector<316x80xf32>
    %c12 = arith.constant 12 : index
    %c0_67 = arith.constant 0 : index
    %c0_68 = arith.constant 0 : index
    %75 = vector.load %arg2[%c12, %c0_67, %c0_68] : memref<25x80x96xf32, #tpu.memory_space<vmem>>, vector<1x80x96xf32>
    %76 = vector.shape_cast %75 : vector<1x80x96xf32> to vector<80x96xf32>
    %cst_69 = arith.constant dense<0.000000e+00> : vector<316x96xf32>
    %77 = tpu.matmul %74, %76, %cst_69 {dimension_numbers = #tpu.dot_dimension_numbers<[1], [0], [0], [1], [0, 0, 1, 1], [], []>} : vector<316x80xf32>, vector<80x96xf32>, vector<316x96xf32> -> vector<316x96xf32>
    %78 = arith.addf %72, %77 : vector<316x96xf32>
    %c0_70 = arith.constant 0 : index
    %c43 = arith.constant 43 : index
    %c0_71 = arith.constant 0 : index
    %79 = vector.load %arg1[%c0_70, %c43, %c0_71] : memref<1x400x80xf32, #tpu.memory_space<vmem>>, vector<1x316x80xf32>
    %80 = vector.shape_cast %79 : vector<1x316x80xf32> to vector<316x80xf32>
    %c13 = arith.constant 13 : index
    %c0_72 = arith.constant 0 : index
    %c0_73 = arith.constant 0 : index
    %81 = vector.load %arg2[%c13, %c0_72, %c0_73] : memref<25x80x96xf32, #tpu.memory_space<vmem>>, vector<1x80x96xf32>
    %82 = vector.shape_cast %81 : vector<1x80x96xf32> to vector<80x96xf32>
    %cst_74 = arith.constant dense<0.000000e+00> : vector<316x96xf32>
    %83 = tpu.matmul %80, %82, %cst_74 {dimension_numbers = #tpu.dot_dimension_numbers<[1], [0], [0], [1], [0, 0, 1, 1], [], []>} : vector<316x80xf32>, vector<80x96xf32>, vector<316x96xf32> -> vector<316x96xf32>
    %84 = arith.addf %78, %83 : vector<316x96xf32>
    %c0_75 = arith.constant 0 : index
    %c44 = arith.constant 44 : index
    %c0_76 = arith.constant 0 : index
    %85 = vector.load %arg1[%c0_75, %c44, %c0_76] : memref<1x400x80xf32, #tpu.memory_space<vmem>>, vector<1x316x80xf32>
    %86 = vector.shape_cast %85 : vector<1x316x80xf32> to vector<316x80xf32>
    %c14 = arith.constant 14 : index
    %c0_77 = arith.constant 0 : index
    %c0_78 = arith.constant 0 : index
    %87 = vector.load %arg2[%c14, %c0_77, %c0_78] : memref<25x80x96xf32, #tpu.memory_space<vmem>>, vector<1x80x96xf32>
    %88 = vector.shape_cast %87 : vector<1x80x96xf32> to vector<80x96xf32>
    %cst_79 = arith.constant dense<0.000000e+00> : vector<316x96xf32>
    %89 = tpu.matmul %86, %88, %cst_79 {dimension_numbers = #tpu.dot_dimension_numbers<[1], [0], [0], [1], [0, 0, 1, 1], [], []>} : vector<316x80xf32>, vector<80x96xf32>, vector<316x96xf32> -> vector<316x96xf32>
    %90 = arith.addf %84, %89 : vector<316x96xf32>
    %c0_80 = arith.constant 0 : index
    %c60 = arith.constant 60 : index
    %c0_81 = arith.constant 0 : index
    %91 = vector.load %arg1[%c0_80, %c60, %c0_81] : memref<1x400x80xf32, #tpu.memory_space<vmem>>, vector<1x316x80xf32>
    %92 = vector.shape_cast %91 : vector<1x316x80xf32> to vector<316x80xf32>
    %c15 = arith.constant 15 : index
    %c0_82 = arith.constant 0 : index
    %c0_83 = arith.constant 0 : index
    %93 = vector.load %arg2[%c15, %c0_82, %c0_83] : memref<25x80x96xf32, #tpu.memory_space<vmem>>, vector<1x80x96xf32>
    %94 = vector.shape_cast %93 : vector<1x80x96xf32> to vector<80x96xf32>
    %cst_84 = arith.constant dense<0.000000e+00> : vector<316x96xf32>
    %95 = tpu.matmul %92, %94, %cst_84 {dimension_numbers = #tpu.dot_dimension_numbers<[1], [0], [0], [1], [0, 0, 1, 1], [], []>} : vector<316x80xf32>, vector<80x96xf32>, vector<316x96xf32> -> vector<316x96xf32>
    %96 = arith.addf %90, %95 : vector<316x96xf32>
    %c0_85 = arith.constant 0 : index
    %c61 = arith.constant 61 : index
    %c0_86 = arith.constant 0 : index
    %97 = vector.load %arg1[%c0_85, %c61, %c0_86] : memref<1x400x80xf32, #tpu.memory_space<vmem>>, vector<1x316x80xf32>
    %98 = vector.shape_cast %97 : vector<1x316x80xf32> to vector<316x80xf32>
    %c16 = arith.constant 16 : index
    %c0_87 = arith.constant 0 : index
    %c0_88 = arith.constant 0 : index
    %99 = vector.load %arg2[%c16, %c0_87, %c0_88] : memref<25x80x96xf32, #tpu.memory_space<vmem>>, vector<1x80x96xf32>
    %100 = vector.shape_cast %99 : vector<1x80x96xf32> to vector<80x96xf32>
    %cst_89 = arith.constant dense<0.000000e+00> : vector<316x96xf32>
    %101 = tpu.matmul %98, %100, %cst_89 {dimension_numbers = #tpu.dot_dimension_numbers<[1], [0], [0], [1], [0, 0, 1, 1], [], []>} : vector<316x80xf32>, vector<80x96xf32>, vector<316x96xf32> -> vector<316x96xf32>
    %102 = arith.addf %96, %101 : vector<316x96xf32>
    %c0_90 = arith.constant 0 : index
    %c62 = arith.constant 62 : index
    %c0_91 = arith.constant 0 : index
    %103 = vector.load %arg1[%c0_90, %c62, %c0_91] : memref<1x400x80xf32, #tpu.memory_space<vmem>>, vector<1x316x80xf32>
    %104 = vector.shape_cast %103 : vector<1x316x80xf32> to vector<316x80xf32>
    %c17 = arith.constant 17 : index
    %c0_92 = arith.constant 0 : index
    %c0_93 = arith.constant 0 : index
    %105 = vector.load %arg2[%c17, %c0_92, %c0_93] : memref<25x80x96xf32, #tpu.memory_space<vmem>>, vector<1x80x96xf32>
    %106 = vector.shape_cast %105 : vector<1x80x96xf32> to vector<80x96xf32>
    %cst_94 = arith.constant dense<0.000000e+00> : vector<316x96xf32>
    %107 = tpu.matmul %104, %106, %cst_94 {dimension_numbers = #tpu.dot_dimension_numbers<[1], [0], [0], [1], [0, 0, 1, 1], [], []>} : vector<316x80xf32>, vector<80x96xf32>, vector<316x96xf32> -> vector<316x96xf32>
    %108 = arith.addf %102, %107 : vector<316x96xf32>
    %c0_95 = arith.constant 0 : index
    %c63 = arith.constant 63 : index
    %c0_96 = arith.constant 0 : index
    %109 = vector.load %arg1[%c0_95, %c63, %c0_96] : memref<1x400x80xf32, #tpu.memory_space<vmem>>, vector<1x316x80xf32>
    %110 = vector.shape_cast %109 : vector<1x316x80xf32> to vector<316x80xf32>
    %c18 = arith.constant 18 : index
    %c0_97 = arith.constant 0 : index
    %c0_98 = arith.constant 0 : index
    %111 = vector.load %arg2[%c18, %c0_97, %c0_98] : memref<25x80x96xf32, #tpu.memory_space<vmem>>, vector<1x80x96xf32>
    %112 = vector.shape_cast %111 : vector<1x80x96xf32> to vector<80x96xf32>
    %cst_99 = arith.constant dense<0.000000e+00> : vector<316x96xf32>
    %113 = tpu.matmul %110, %112, %cst_99 {dimension_numbers = #tpu.dot_dimension_numbers<[1], [0], [0], [1], [0, 0, 1, 1], [], []>} : vector<316x80xf32>, vector<80x96xf32>, vector<316x96xf32> -> vector<316x96xf32>
    %114 = arith.addf %108, %113 : vector<316x96xf32>
    %c0_100 = arith.constant 0 : index
    %c64 = arith.constant 64 : index
    %c0_101 = arith.constant 0 : index
    %115 = vector.load %arg1[%c0_100, %c64, %c0_101] : memref<1x400x80xf32, #tpu.memory_space<vmem>>, vector<1x316x80xf32>
    %116 = vector.shape_cast %115 : vector<1x316x80xf32> to vector<316x80xf32>
    %c19 = arith.constant 19 : index
    %c0_102 = arith.constant 0 : index
    %c0_103 = arith.constant 0 : index
    %117 = vector.load %arg2[%c19, %c0_102, %c0_103] : memref<25x80x96xf32, #tpu.memory_space<vmem>>, vector<1x80x96xf32>
    %118 = vector.shape_cast %117 : vector<1x80x96xf32> to vector<80x96xf32>
    %cst_104 = arith.constant dense<0.000000e+00> : vector<316x96xf32>
    %119 = tpu.matmul %116, %118, %cst_104 {dimension_numbers = #tpu.dot_dimension_numbers<[1], [0], [0], [1], [0, 0, 1, 1], [], []>} : vector<316x80xf32>, vector<80x96xf32>, vector<316x96xf32> -> vector<316x96xf32>
    %120 = arith.addf %114, %119 : vector<316x96xf32>
    %c0_105 = arith.constant 0 : index
    %c80 = arith.constant 80 : index
    %c0_106 = arith.constant 0 : index
    %121 = vector.load %arg1[%c0_105, %c80, %c0_106] : memref<1x400x80xf32, #tpu.memory_space<vmem>>, vector<1x316x80xf32>
    %122 = vector.shape_cast %121 : vector<1x316x80xf32> to vector<316x80xf32>
    %c20_107 = arith.constant 20 : index
    %c0_108 = arith.constant 0 : index
    %c0_109 = arith.constant 0 : index
    %123 = vector.load %arg2[%c20_107, %c0_108, %c0_109] : memref<25x80x96xf32, #tpu.memory_space<vmem>>, vector<1x80x96xf32>
    %124 = vector.shape_cast %123 : vector<1x80x96xf32> to vector<80x96xf32>
    %cst_110 = arith.constant dense<0.000000e+00> : vector<316x96xf32>
    %125 = tpu.matmul %122, %124, %cst_110 {dimension_numbers = #tpu.dot_dimension_numbers<[1], [0], [0], [1], [0, 0, 1, 1], [], []>} : vector<316x80xf32>, vector<80x96xf32>, vector<316x96xf32> -> vector<316x96xf32>
    %126 = arith.addf %120, %125 : vector<316x96xf32>
    %c0_111 = arith.constant 0 : index
    %c81 = arith.constant 81 : index
    %c0_112 = arith.constant 0 : index
    %127 = vector.load %arg1[%c0_111, %c81, %c0_112] : memref<1x400x80xf32, #tpu.memory_space<vmem>>, vector<1x316x80xf32>
    %128 = vector.shape_cast %127 : vector<1x316x80xf32> to vector<316x80xf32>
    %c21_113 = arith.constant 21 : index
    %c0_114 = arith.constant 0 : index
    %c0_115 = arith.constant 0 : index
    %129 = vector.load %arg2[%c21_113, %c0_114, %c0_115] : memref<25x80x96xf32, #tpu.memory_space<vmem>>, vector<1x80x96xf32>
    %130 = vector.shape_cast %129 : vector<1x80x96xf32> to vector<80x96xf32>
    %cst_116 = arith.constant dense<0.000000e+00> : vector<316x96xf32>
    %131 = tpu.matmul %128, %130, %cst_116 {dimension_numbers = #tpu.dot_dimension_numbers<[1], [0], [0], [1], [0, 0, 1, 1], [], []>} : vector<316x80xf32>, vector<80x96xf32>, vector<316x96xf32> -> vector<316x96xf32>
    %132 = arith.addf %126, %131 : vector<316x96xf32>
    %c0_117 = arith.constant 0 : index
    %c82 = arith.constant 82 : index
    %c0_118 = arith.constant 0 : index
    %133 = vector.load %arg1[%c0_117, %c82, %c0_118] : memref<1x400x80xf32, #tpu.memory_space<vmem>>, vector<1x316x80xf32>
    %134 = vector.shape_cast %133 : vector<1x316x80xf32> to vector<316x80xf32>
    %c22_119 = arith.constant 22 : index
    %c0_120 = arith.constant 0 : index
    %c0_121 = arith.constant 0 : index
    %135 = vector.load %arg2[%c22_119, %c0_120, %c0_121] : memref<25x80x96xf32, #tpu.memory_space<vmem>>, vector<1x80x96xf32>
    %136 = vector.shape_cast %135 : vector<1x80x96xf32> to vector<80x96xf32>
    %cst_122 = arith.constant dense<0.000000e+00> : vector<316x96xf32>
    %137 = tpu.matmul %134, %136, %cst_122 {dimension_numbers = #tpu.dot_dimension_numbers<[1], [0], [0], [1], [0, 0, 1, 1], [], []>} : vector<316x80xf32>, vector<80x96xf32>, vector<316x96xf32> -> vector<316x96xf32>
    %138 = arith.addf %132, %137 : vector<316x96xf32>
    %c0_123 = arith.constant 0 : index
    %c83 = arith.constant 83 : index
    %c0_124 = arith.constant 0 : index
    %139 = vector.load %arg1[%c0_123, %c83, %c0_124] : memref<1x400x80xf32, #tpu.memory_space<vmem>>, vector<1x316x80xf32>
    %140 = vector.shape_cast %139 : vector<1x316x80xf32> to vector<316x80xf32>
    %c23_125 = arith.constant 23 : index
    %c0_126 = arith.constant 0 : index
    %c0_127 = arith.constant 0 : index
    %141 = vector.load %arg2[%c23_125, %c0_126, %c0_127] : memref<25x80x96xf32, #tpu.memory_space<vmem>>, vector<1x80x96xf32>
    %142 = vector.shape_cast %141 : vector<1x80x96xf32> to vector<80x96xf32>
    %cst_128 = arith.constant dense<0.000000e+00> : vector<316x96xf32>
    %143 = tpu.matmul %140, %142, %cst_128 {dimension_numbers = #tpu.dot_dimension_numbers<[1], [0], [0], [1], [0, 0, 1, 1], [], []>} : vector<316x80xf32>, vector<80x96xf32>, vector<316x96xf32> -> vector<316x96xf32>
    %144 = arith.addf %138, %143 : vector<316x96xf32>
    %c0_129 = arith.constant 0 : index
    %c84 = arith.constant 84 : index
    %c0_130 = arith.constant 0 : index
    %145 = vector.load %arg1[%c0_129, %c84, %c0_130] : memref<1x400x80xf32, #tpu.memory_space<vmem>>, vector<1x316x80xf32>
    %146 = vector.shape_cast %145 : vector<1x316x80xf32> to vector<316x80xf32>
    %c24_131 = arith.constant 24 : index
    %c0_132 = arith.constant 0 : index
    %c0_133 = arith.constant 0 : index
    %147 = vector.load %arg2[%c24_131, %c0_132, %c0_133] : memref<25x80x96xf32, #tpu.memory_space<vmem>>, vector<1x80x96xf32>
    %148 = vector.shape_cast %147 : vector<1x80x96xf32> to vector<80x96xf32>
    %cst_134 = arith.constant dense<0.000000e+00> : vector<316x96xf32>
    %149 = tpu.matmul %146, %148, %cst_134 {dimension_numbers = #tpu.dot_dimension_numbers<[1], [0], [0], [1], [0, 0, 1, 1], [], []>} : vector<316x80xf32>, vector<80x96xf32>, vector<316x96xf32> -> vector<316x96xf32>
    %150 = arith.addf %144, %149 : vector<316x96xf32>
    %c0_135 = arith.constant 0 : index
    %c0_136 = arith.constant 0 : index
    %151 = vector.load %arg3[%c0_135, %c0_136] : memref<1x96xf32, #tpu.memory_space<vmem>>, vector<1x96xf32>
    %152 = vector.broadcast %151 : vector<1x96xf32> to vector<316x96xf32>
    %153 = arith.addf %150, %152 : vector<316x96xf32>
    %cst_137 = arith.constant 0.000000e+00 : f32
    %154 = vector.broadcast %cst_137 : f32 to vector<316x96xf32>
    %155 = arith.maximumf %153, %154 : vector<316x96xf32>
    %c0_138 = arith.constant 0 : index
    %c0_139 = arith.constant 0 : index
    %c0_140 = arith.constant 0 : index
    %156 = vector.load %arg4[%c0_138, %c0_139, %c0_140] : memref<4x64x316xf32, #tpu.memory_space<vmem>>, vector<1x64x316xf32>
    %157 = vector.shape_cast %156 : vector<1x64x316xf32> to vector<64x316xf32>
    %cst_141 = arith.constant dense<0.000000e+00> : vector<64x96xf32>
    %158 = tpu.matmul %157, %155, %cst_141 {dimension_numbers = #tpu.dot_dimension_numbers<[1], [0], [0], [1], [0, 0, 1, 1], [], []>} : vector<64x316xf32>, vector<316x96xf32>, vector<64x96xf32> -> vector<64x96xf32>
    %c1_142 = arith.constant 1 : index
    %c0_143 = arith.constant 0 : index
    %c0_144 = arith.constant 0 : index
    %159 = vector.load %arg4[%c1_142, %c0_143, %c0_144] : memref<4x64x316xf32, #tpu.memory_space<vmem>>, vector<1x64x316xf32>
    %160 = vector.shape_cast %159 : vector<1x64x316xf32> to vector<64x316xf32>
    %cst_145 = arith.constant dense<0.000000e+00> : vector<64x96xf32>
    %161 = tpu.matmul %160, %155, %cst_145 {dimension_numbers = #tpu.dot_dimension_numbers<[1], [0], [0], [1], [0, 0, 1, 1], [], []>} : vector<64x316xf32>, vector<316x96xf32>, vector<64x96xf32> -> vector<64x96xf32>
    %162 = arith.maximumf %158, %161 : vector<64x96xf32>
    %c2_146 = arith.constant 2 : index
    %c0_147 = arith.constant 0 : index
    %c0_148 = arith.constant 0 : index
    %163 = vector.load %arg4[%c2_146, %c0_147, %c0_148] : memref<4x64x316xf32, #tpu.memory_space<vmem>>, vector<1x64x316xf32>
    %164 = vector.shape_cast %163 : vector<1x64x316xf32> to vector<64x316xf32>
    %cst_149 = arith.constant dense<0.000000e+00> : vector<64x96xf32>
    %165 = tpu.matmul %164, %155, %cst_149 {dimension_numbers = #tpu.dot_dimension_numbers<[1], [0], [0], [1], [0, 0, 1, 1], [], []>} : vector<64x316xf32>, vector<316x96xf32>, vector<64x96xf32> -> vector<64x96xf32>
    %166 = arith.maximumf %162, %165 : vector<64x96xf32>
    %c3_150 = arith.constant 3 : index
    %c0_151 = arith.constant 0 : index
    %c0_152 = arith.constant 0 : index
    %167 = vector.load %arg4[%c3_150, %c0_151, %c0_152] : memref<4x64x316xf32, #tpu.memory_space<vmem>>, vector<1x64x316xf32>
    %168 = vector.shape_cast %167 : vector<1x64x316xf32> to vector<64x316xf32>
    %cst_153 = arith.constant dense<0.000000e+00> : vector<64x96xf32>
    %169 = tpu.matmul %168, %155, %cst_153 {dimension_numbers = #tpu.dot_dimension_numbers<[1], [0], [0], [1], [0, 0, 1, 1], [], []>} : vector<64x316xf32>, vector<316x96xf32>, vector<64x96xf32> -> vector<64x96xf32>
    %170 = arith.maximumf %166, %169 : vector<64x96xf32>
    %c0_154 = arith.constant 0 : index
    %c0_155 = arith.constant 0 : index
    %171 = vector.load %arg5[%c0_154, %c0_155] : memref<96x96xf32, #tpu.memory_space<vmem>>, vector<96x96xf32>
    %cst_156 = arith.constant dense<0.000000e+00> : vector<64x96xf32>
    %172 = tpu.matmul %170, %171, %cst_156 {dimension_numbers = #tpu.dot_dimension_numbers<[1], [0], [0], [1], [0, 0, 1, 1], [], []>} : vector<64x96xf32>, vector<96x96xf32>, vector<64x96xf32> -> vector<64x96xf32>
    %173 = arith.maximumf %170, %172 : vector<64x96xf32>
    %cst_157 = arith.constant 0.000000e+00 : f32
    %174 = vector.broadcast %cst_157 : f32 to vector<28x64xf32>
    %175 = vector.extract_strided_slice %173 {offsets = [0, 0], sizes = [28, 96], strides = [1, 1]} : vector<64x96xf32> to vector<28x96xf32>
    %c0_158 = arith.constant 0 : index
    %c0_159 = arith.constant 0 : index
    %c0_160 = arith.constant 0 : index
    %176 = vector.load %arg6[%c0_158, %c0_159, %c0_160] : memref<25x96x64xf32, #tpu.memory_space<vmem>>, vector<1x96x64xf32>
    %177 = vector.shape_cast %176 : vector<1x96x64xf32> to vector<96x64xf32>
    %cst_161 = arith.constant dense<0.000000e+00> : vector<28x64xf32>
    %178 = tpu.matmul %175, %177, %cst_161 {dimension_numbers = #tpu.dot_dimension_numbers<[1], [0], [0], [1], [0, 0, 1, 1], [], []>} : vector<28x96xf32>, vector<96x64xf32>, vector<28x64xf32> -> vector<28x64xf32>
    %179 = arith.addf %174, %178 : vector<28x64xf32>
    %180 = vector.extract_strided_slice %173 {offsets = [1, 0], sizes = [28, 96], strides = [1, 1]} : vector<64x96xf32> to vector<28x96xf32>
    %c1_162 = arith.constant 1 : index
    %c0_163 = arith.constant 0 : index
    %c0_164 = arith.constant 0 : index
    %181 = vector.load %arg6[%c1_162, %c0_163, %c0_164] : memref<25x96x64xf32, #tpu.memory_space<vmem>>, vector<1x96x64xf32>
    %182 = vector.shape_cast %181 : vector<1x96x64xf32> to vector<96x64xf32>
    %cst_165 = arith.constant dense<0.000000e+00> : vector<28x64xf32>
    %183 = tpu.matmul %180, %182, %cst_165 {dimension_numbers = #tpu.dot_dimension_numbers<[1], [0], [0], [1], [0, 0, 1, 1], [], []>} : vector<28x96xf32>, vector<96x64xf32>, vector<28x64xf32> -> vector<28x64xf32>
    %184 = arith.addf %179, %183 : vector<28x64xf32>
    %185 = vector.extract_strided_slice %173 {offsets = [2, 0], sizes = [28, 96], strides = [1, 1]} : vector<64x96xf32> to vector<28x96xf32>
    %c2_166 = arith.constant 2 : index
    %c0_167 = arith.constant 0 : index
    %c0_168 = arith.constant 0 : index
    %186 = vector.load %arg6[%c2_166, %c0_167, %c0_168] : memref<25x96x64xf32, #tpu.memory_space<vmem>>, vector<1x96x64xf32>
    %187 = vector.shape_cast %186 : vector<1x96x64xf32> to vector<96x64xf32>
    %cst_169 = arith.constant dense<0.000000e+00> : vector<28x64xf32>
    %188 = tpu.matmul %185, %187, %cst_169 {dimension_numbers = #tpu.dot_dimension_numbers<[1], [0], [0], [1], [0, 0, 1, 1], [], []>} : vector<28x96xf32>, vector<96x64xf32>, vector<28x64xf32> -> vector<28x64xf32>
    %189 = arith.addf %184, %188 : vector<28x64xf32>
    %190 = vector.extract_strided_slice %173 {offsets = [3, 0], sizes = [28, 96], strides = [1, 1]} : vector<64x96xf32> to vector<28x96xf32>
    %c3_170 = arith.constant 3 : index
    %c0_171 = arith.constant 0 : index
    %c0_172 = arith.constant 0 : index
    %191 = vector.load %arg6[%c3_170, %c0_171, %c0_172] : memref<25x96x64xf32, #tpu.memory_space<vmem>>, vector<1x96x64xf32>
    %192 = vector.shape_cast %191 : vector<1x96x64xf32> to vector<96x64xf32>
    %cst_173 = arith.constant dense<0.000000e+00> : vector<28x64xf32>
    %193 = tpu.matmul %190, %192, %cst_173 {dimension_numbers = #tpu.dot_dimension_numbers<[1], [0], [0], [1], [0, 0, 1, 1], [], []>} : vector<28x96xf32>, vector<96x64xf32>, vector<28x64xf32> -> vector<28x64xf32>
    %194 = arith.addf %189, %193 : vector<28x64xf32>
    %195 = vector.extract_strided_slice %173 {offsets = [4, 0], sizes = [28, 96], strides = [1, 1]} : vector<64x96xf32> to vector<28x96xf32>
    %c4_174 = arith.constant 4 : index
    %c0_175 = arith.constant 0 : index
    %c0_176 = arith.constant 0 : index
    %196 = vector.load %arg6[%c4_174, %c0_175, %c0_176] : memref<25x96x64xf32, #tpu.memory_space<vmem>>, vector<1x96x64xf32>
    %197 = vector.shape_cast %196 : vector<1x96x64xf32> to vector<96x64xf32>
    %cst_177 = arith.constant dense<0.000000e+00> : vector<28x64xf32>
    %198 = tpu.matmul %195, %197, %cst_177 {dimension_numbers = #tpu.dot_dimension_numbers<[1], [0], [0], [1], [0, 0, 1, 1], [], []>} : vector<28x96xf32>, vector<96x64xf32>, vector<28x64xf32> -> vector<28x64xf32>
    %199 = arith.addf %194, %198 : vector<28x64xf32>
    %200 = vector.extract_strided_slice %173 {offsets = [8, 0], sizes = [28, 96], strides = [1, 1]} : vector<64x96xf32> to vector<28x96xf32>
    %c5_178 = arith.constant 5 : index
    %c0_179 = arith.constant 0 : index
    %c0_180 = arith.constant 0 : index
    %201 = vector.load %arg6[%c5_178, %c0_179, %c0_180] : memref<25x96x64xf32, #tpu.memory_space<vmem>>, vector<1x96x64xf32>
    %202 = vector.shape_cast %201 : vector<1x96x64xf32> to vector<96x64xf32>
    %cst_181 = arith.constant dense<0.000000e+00> : vector<28x64xf32>
    %203 = tpu.matmul %200, %202, %cst_181 {dimension_numbers = #tpu.dot_dimension_numbers<[1], [0], [0], [1], [0, 0, 1, 1], [], []>} : vector<28x96xf32>, vector<96x64xf32>, vector<28x64xf32> -> vector<28x64xf32>
    %204 = arith.addf %199, %203 : vector<28x64xf32>
    %205 = vector.extract_strided_slice %173 {offsets = [9, 0], sizes = [28, 96], strides = [1, 1]} : vector<64x96xf32> to vector<28x96xf32>
    %c6_182 = arith.constant 6 : index
    %c0_183 = arith.constant 0 : index
    %c0_184 = arith.constant 0 : index
    %206 = vector.load %arg6[%c6_182, %c0_183, %c0_184] : memref<25x96x64xf32, #tpu.memory_space<vmem>>, vector<1x96x64xf32>
    %207 = vector.shape_cast %206 : vector<1x96x64xf32> to vector<96x64xf32>
    %cst_185 = arith.constant dense<0.000000e+00> : vector<28x64xf32>
    %208 = tpu.matmul %205, %207, %cst_185 {dimension_numbers = #tpu.dot_dimension_numbers<[1], [0], [0], [1], [0, 0, 1, 1], [], []>} : vector<28x96xf32>, vector<96x64xf32>, vector<28x64xf32> -> vector<28x64xf32>
    %209 = arith.addf %204, %208 : vector<28x64xf32>
    %210 = vector.extract_strided_slice %173 {offsets = [10, 0], sizes = [28, 96], strides = [1, 1]} : vector<64x96xf32> to vector<28x96xf32>
    %c7_186 = arith.constant 7 : index
    %c0_187 = arith.constant 0 : index
    %c0_188 = arith.constant 0 : index
    %211 = vector.load %arg6[%c7_186, %c0_187, %c0_188] : memref<25x96x64xf32, #tpu.memory_space<vmem>>, vector<1x96x64xf32>
    %212 = vector.shape_cast %211 : vector<1x96x64xf32> to vector<96x64xf32>
    %cst_189 = arith.constant dense<0.000000e+00> : vector<28x64xf32>
    %213 = tpu.matmul %210, %212, %cst_189 {dimension_numbers = #tpu.dot_dimension_numbers<[1], [0], [0], [1], [0, 0, 1, 1], [], []>} : vector<28x96xf32>, vector<96x64xf32>, vector<28x64xf32> -> vector<28x64xf32>
    %214 = arith.addf %209, %213 : vector<28x64xf32>
    %215 = vector.extract_strided_slice %173 {offsets = [11, 0], sizes = [28, 96], strides = [1, 1]} : vector<64x96xf32> to vector<28x96xf32>
    %c8_190 = arith.constant 8 : index
    %c0_191 = arith.constant 0 : index
    %c0_192 = arith.constant 0 : index
    %216 = vector.load %arg6[%c8_190, %c0_191, %c0_192] : memref<25x96x64xf32, #tpu.memory_space<vmem>>, vector<1x96x64xf32>
    %217 = vector.shape_cast %216 : vector<1x96x64xf32> to vector<96x64xf32>
    %cst_193 = arith.constant dense<0.000000e+00> : vector<28x64xf32>
    %218 = tpu.matmul %215, %217, %cst_193 {dimension_numbers = #tpu.dot_dimension_numbers<[1], [0], [0], [1], [0, 0, 1, 1], [], []>} : vector<28x96xf32>, vector<96x64xf32>, vector<28x64xf32> -> vector<28x64xf32>
    %219 = arith.addf %214, %218 : vector<28x64xf32>
    %220 = vector.extract_strided_slice %173 {offsets = [12, 0], sizes = [28, 96], strides = [1, 1]} : vector<64x96xf32> to vector<28x96xf32>
    %c9_194 = arith.constant 9 : index
    %c0_195 = arith.constant 0 : index
    %c0_196 = arith.constant 0 : index
    %221 = vector.load %arg6[%c9_194, %c0_195, %c0_196] : memref<25x96x64xf32, #tpu.memory_space<vmem>>, vector<1x96x64xf32>
    %222 = vector.shape_cast %221 : vector<1x96x64xf32> to vector<96x64xf32>
    %cst_197 = arith.constant dense<0.000000e+00> : vector<28x64xf32>
    %223 = tpu.matmul %220, %222, %cst_197 {dimension_numbers = #tpu.dot_dimension_numbers<[1], [0], [0], [1], [0, 0, 1, 1], [], []>} : vector<28x96xf32>, vector<96x64xf32>, vector<28x64xf32> -> vector<28x64xf32>
    %224 = arith.addf %219, %223 : vector<28x64xf32>
    %225 = vector.extract_strided_slice %173 {offsets = [16, 0], sizes = [28, 96], strides = [1, 1]} : vector<64x96xf32> to vector<28x96xf32>
    %c10_198 = arith.constant 10 : index
    %c0_199 = arith.constant 0 : index
    %c0_200 = arith.constant 0 : index
    %226 = vector.load %arg6[%c10_198, %c0_199, %c0_200] : memref<25x96x64xf32, #tpu.memory_space<vmem>>, vector<1x96x64xf32>
    %227 = vector.shape_cast %226 : vector<1x96x64xf32> to vector<96x64xf32>
    %cst_201 = arith.constant dense<0.000000e+00> : vector<28x64xf32>
    %228 = tpu.matmul %225, %227, %cst_201 {dimension_numbers = #tpu.dot_dimension_numbers<[1], [0], [0], [1], [0, 0, 1, 1], [], []>} : vector<28x96xf32>, vector<96x64xf32>, vector<28x64xf32> -> vector<28x64xf32>
    %229 = arith.addf %224, %228 : vector<28x64xf32>
    %230 = vector.extract_strided_slice %173 {offsets = [17, 0], sizes = [28, 96], strides = [1, 1]} : vector<64x96xf32> to vector<28x96xf32>
    %c11_202 = arith.constant 11 : index
    %c0_203 = arith.constant 0 : index
    %c0_204 = arith.constant 0 : index
    %231 = vector.load %arg6[%c11_202, %c0_203, %c0_204] : memref<25x96x64xf32, #tpu.memory_space<vmem>>, vector<1x96x64xf32>
    %232 = vector.shape_cast %231 : vector<1x96x64xf32> to vector<96x64xf32>
    %cst_205 = arith.constant dense<0.000000e+00> : vector<28x64xf32>
    %233 = tpu.matmul %230, %232, %cst_205 {dimension_numbers = #tpu.dot_dimension_numbers<[1], [0], [0], [1], [0, 0, 1, 1], [], []>} : vector<28x96xf32>, vector<96x64xf32>, vector<28x64xf32> -> vector<28x64xf32>
    %234 = arith.addf %229, %233 : vector<28x64xf32>
    %235 = vector.extract_strided_slice %173 {offsets = [18, 0], sizes = [28, 96], strides = [1, 1]} : vector<64x96xf32> to vector<28x96xf32>
    %c12_206 = arith.constant 12 : index
    %c0_207 = arith.constant 0 : index
    %c0_208 = arith.constant 0 : index
    %236 = vector.load %arg6[%c12_206, %c0_207, %c0_208] : memref<25x96x64xf32, #tpu.memory_space<vmem>>, vector<1x96x64xf32>
    %237 = vector.shape_cast %236 : vector<1x96x64xf32> to vector<96x64xf32>
    %cst_209 = arith.constant dense<0.000000e+00> : vector<28x64xf32>
    %238 = tpu.matmul %235, %237, %cst_209 {dimension_numbers = #tpu.dot_dimension_numbers<[1], [0], [0], [1], [0, 0, 1, 1], [], []>} : vector<28x96xf32>, vector<96x64xf32>, vector<28x64xf32> -> vector<28x64xf32>
    %239 = arith.addf %234, %238 : vector<28x64xf32>
    %240 = vector.extract_strided_slice %173 {offsets = [19, 0], sizes = [28, 96], strides = [1, 1]} : vector<64x96xf32> to vector<28x96xf32>
    %c13_210 = arith.constant 13 : index
    %c0_211 = arith.constant 0 : index
    %c0_212 = arith.constant 0 : index
    %241 = vector.load %arg6[%c13_210, %c0_211, %c0_212] : memref<25x96x64xf32, #tpu.memory_space<vmem>>, vector<1x96x64xf32>
    %242 = vector.shape_cast %241 : vector<1x96x64xf32> to vector<96x64xf32>
    %cst_213 = arith.constant dense<0.000000e+00> : vector<28x64xf32>
    %243 = tpu.matmul %240, %242, %cst_213 {dimension_numbers = #tpu.dot_dimension_numbers<[1], [0], [0], [1], [0, 0, 1, 1], [], []>} : vector<28x96xf32>, vector<96x64xf32>, vector<28x64xf32> -> vector<28x64xf32>
    %244 = arith.addf %239, %243 : vector<28x64xf32>
    %245 = vector.extract_strided_slice %173 {offsets = [20, 0], sizes = [28, 96], strides = [1, 1]} : vector<64x96xf32> to vector<28x96xf32>
    %c14_214 = arith.constant 14 : index
    %c0_215 = arith.constant 0 : index
    %c0_216 = arith.constant 0 : index
    %246 = vector.load %arg6[%c14_214, %c0_215, %c0_216] : memref<25x96x64xf32, #tpu.memory_space<vmem>>, vector<1x96x64xf32>
    %247 = vector.shape_cast %246 : vector<1x96x64xf32> to vector<96x64xf32>
    %cst_217 = arith.constant dense<0.000000e+00> : vector<28x64xf32>
    %248 = tpu.matmul %245, %247, %cst_217 {dimension_numbers = #tpu.dot_dimension_numbers<[1], [0], [0], [1], [0, 0, 1, 1], [], []>} : vector<28x96xf32>, vector<96x64xf32>, vector<28x64xf32> -> vector<28x64xf32>
    %249 = arith.addf %244, %248 : vector<28x64xf32>
    %250 = vector.extract_strided_slice %173 {offsets = [24, 0], sizes = [28, 96], strides = [1, 1]} : vector<64x96xf32> to vector<28x96xf32>
    %c15_218 = arith.constant 15 : index
    %c0_219 = arith.constant 0 : index
    %c0_220 = arith.constant 0 : index
    %251 = vector.load %arg6[%c15_218, %c0_219, %c0_220] : memref<25x96x64xf32, #tpu.memory_space<vmem>>, vector<1x96x64xf32>
    %252 = vector.shape_cast %251 : vector<1x96x64xf32> to vector<96x64xf32>
    %cst_221 = arith.constant dense<0.000000e+00> : vector<28x64xf32>
    %253 = tpu.matmul %250, %252, %cst_221 {dimension_numbers = #tpu.dot_dimension_numbers<[1], [0], [0], [1], [0, 0, 1, 1], [], []>} : vector<28x96xf32>, vector<96x64xf32>, vector<28x64xf32> -> vector<28x64xf32>
    %254 = arith.addf %249, %253 : vector<28x64xf32>
    %255 = vector.extract_strided_slice %173 {offsets = [25, 0], sizes = [28, 96], strides = [1, 1]} : vector<64x96xf32> to vector<28x96xf32>
    %c16_222 = arith.constant 16 : index
    %c0_223 = arith.constant 0 : index
    %c0_224 = arith.constant 0 : index
    %256 = vector.load %arg6[%c16_222, %c0_223, %c0_224] : memref<25x96x64xf32, #tpu.memory_space<vmem>>, vector<1x96x64xf32>
    %257 = vector.shape_cast %256 : vector<1x96x64xf32> to vector<96x64xf32>
    %cst_225 = arith.constant dense<0.000000e+00> : vector<28x64xf32>
    %258 = tpu.matmul %255, %257, %cst_225 {dimension_numbers = #tpu.dot_dimension_numbers<[1], [0], [0], [1], [0, 0, 1, 1], [], []>} : vector<28x96xf32>, vector<96x64xf32>, vector<28x64xf32> -> vector<28x64xf32>
    %259 = arith.addf %254, %258 : vector<28x64xf32>
    %260 = vector.extract_strided_slice %173 {offsets = [26, 0], sizes = [28, 96], strides = [1, 1]} : vector<64x96xf32> to vector<28x96xf32>
    %c17_226 = arith.constant 17 : index
    %c0_227 = arith.constant 0 : index
    %c0_228 = arith.constant 0 : index
    %261 = vector.load %arg6[%c17_226, %c0_227, %c0_228] : memref<25x96x64xf32, #tpu.memory_space<vmem>>, vector<1x96x64xf32>
    %262 = vector.shape_cast %261 : vector<1x96x64xf32> to vector<96x64xf32>
    %cst_229 = arith.constant dense<0.000000e+00> : vector<28x64xf32>
    %263 = tpu.matmul %260, %262, %cst_229 {dimension_numbers = #tpu.dot_dimension_numbers<[1], [0], [0], [1], [0, 0, 1, 1], [], []>} : vector<28x96xf32>, vector<96x64xf32>, vector<28x64xf32> -> vector<28x64xf32>
    %264 = arith.addf %259, %263 : vector<28x64xf32>
    %265 = vector.extract_strided_slice %173 {offsets = [27, 0], sizes = [28, 96], strides = [1, 1]} : vector<64x96xf32> to vector<28x96xf32>
    %c18_230 = arith.constant 18 : index
    %c0_231 = arith.constant 0 : index
    %c0_232 = arith.constant 0 : index
    %266 = vector.load %arg6[%c18_230, %c0_231, %c0_232] : memref<25x96x64xf32, #tpu.memory_space<vmem>>, vector<1x96x64xf32>
    %267 = vector.shape_cast %266 : vector<1x96x64xf32> to vector<96x64xf32>
    %cst_233 = arith.constant dense<0.000000e+00> : vector<28x64xf32>
    %268 = tpu.matmul %265, %267, %cst_233 {dimension_numbers = #tpu.dot_dimension_numbers<[1], [0], [0], [1], [0, 0, 1, 1], [], []>} : vector<28x96xf32>, vector<96x64xf32>, vector<28x64xf32> -> vector<28x64xf32>
    %269 = arith.addf %264, %268 : vector<28x64xf32>
    %270 = vector.extract_strided_slice %173 {offsets = [28, 0], sizes = [28, 96], strides = [1, 1]} : vector<64x96xf32> to vector<28x96xf32>
    %c19_234 = arith.constant 19 : index
    %c0_235 = arith.constant 0 : index
    %c0_236 = arith.constant 0 : index
    %271 = vector.load %arg6[%c19_234, %c0_235, %c0_236] : memref<25x96x64xf32, #tpu.memory_space<vmem>>, vector<1x96x64xf32>
    %272 = vector.shape_cast %271 : vector<1x96x64xf32> to vector<96x64xf32>
    %cst_237 = arith.constant dense<0.000000e+00> : vector<28x64xf32>
    %273 = tpu.matmul %270, %272, %cst_237 {dimension_numbers = #tpu.dot_dimension_numbers<[1], [0], [0], [1], [0, 0, 1, 1], [], []>} : vector<28x96xf32>, vector<96x64xf32>, vector<28x64xf32> -> vector<28x64xf32>
    %274 = arith.addf %269, %273 : vector<28x64xf32>
    %275 = vector.extract_strided_slice %173 {offsets = [32, 0], sizes = [28, 96], strides = [1, 1]} : vector<64x96xf32> to vector<28x96xf32>
    %c20_238 = arith.constant 20 : index
    %c0_239 = arith.constant 0 : index
    %c0_240 = arith.constant 0 : index
    %276 = vector.load %arg6[%c20_238, %c0_239, %c0_240] : memref<25x96x64xf32, #tpu.memory_space<vmem>>, vector<1x96x64xf32>
    %277 = vector.shape_cast %276 : vector<1x96x64xf32> to vector<96x64xf32>
    %cst_241 = arith.constant dense<0.000000e+00> : vector<28x64xf32>
    %278 = tpu.matmul %275, %277, %cst_241 {dimension_numbers = #tpu.dot_dimension_numbers<[1], [0], [0], [1], [0, 0, 1, 1], [], []>} : vector<28x96xf32>, vector<96x64xf32>, vector<28x64xf32> -> vector<28x64xf32>
    %279 = arith.addf %274, %278 : vector<28x64xf32>
    %280 = vector.extract_strided_slice %173 {offsets = [33, 0], sizes = [28, 96], strides = [1, 1]} : vector<64x96xf32> to vector<28x96xf32>
    %c21_242 = arith.constant 21 : index
    %c0_243 = arith.constant 0 : index
    %c0_244 = arith.constant 0 : index
    %281 = vector.load %arg6[%c21_242, %c0_243, %c0_244] : memref<25x96x64xf32, #tpu.memory_space<vmem>>, vector<1x96x64xf32>
    %282 = vector.shape_cast %281 : vector<1x96x64xf32> to vector<96x64xf32>
    %cst_245 = arith.constant dense<0.000000e+00> : vector<28x64xf32>
    %283 = tpu.matmul %280, %282, %cst_245 {dimension_numbers = #tpu.dot_dimension_numbers<[1], [0], [0], [1], [0, 0, 1, 1], [], []>} : vector<28x96xf32>, vector<96x64xf32>, vector<28x64xf32> -> vector<28x64xf32>
    %284 = arith.addf %279, %283 : vector<28x64xf32>
    %285 = vector.extract_strided_slice %173 {offsets = [34, 0], sizes = [28, 96], strides = [1, 1]} : vector<64x96xf32> to vector<28x96xf32>
    %c22_246 = arith.constant 22 : index
    %c0_247 = arith.constant 0 : index
    %c0_248 = arith.constant 0 : index
    %286 = vector.load %arg6[%c22_246, %c0_247, %c0_248] : memref<25x96x64xf32, #tpu.memory_space<vmem>>, vector<1x96x64xf32>
    %287 = vector.shape_cast %286 : vector<1x96x64xf32> to vector<96x64xf32>
    %cst_249 = arith.constant dense<0.000000e+00> : vector<28x64xf32>
    %288 = tpu.matmul %285, %287, %cst_249 {dimension_numbers = #tpu.dot_dimension_numbers<[1], [0], [0], [1], [0, 0, 1, 1], [], []>} : vector<28x96xf32>, vector<96x64xf32>, vector<28x64xf32> -> vector<28x64xf32>
    %289 = arith.addf %284, %288 : vector<28x64xf32>
    %290 = vector.extract_strided_slice %173 {offsets = [35, 0], sizes = [28, 96], strides = [1, 1]} : vector<64x96xf32> to vector<28x96xf32>
    %c23_250 = arith.constant 23 : index
    %c0_251 = arith.constant 0 : index
    %c0_252 = arith.constant 0 : index
    %291 = vector.load %arg6[%c23_250, %c0_251, %c0_252] : memref<25x96x64xf32, #tpu.memory_space<vmem>>, vector<1x96x64xf32>
    %292 = vector.shape_cast %291 : vector<1x96x64xf32> to vector<96x64xf32>
    %cst_253 = arith.constant dense<0.000000e+00> : vector<28x64xf32>
    %293 = tpu.matmul %290, %292, %cst_253 {dimension_numbers = #tpu.dot_dimension_numbers<[1], [0], [0], [1], [0, 0, 1, 1], [], []>} : vector<28x96xf32>, vector<96x64xf32>, vector<28x64xf32> -> vector<28x64xf32>
    %294 = arith.addf %289, %293 : vector<28x64xf32>
    %295 = vector.extract_strided_slice %173 {offsets = [36, 0], sizes = [28, 96], strides = [1, 1]} : vector<64x96xf32> to vector<28x96xf32>
    %c24_254 = arith.constant 24 : index
    %c0_255 = arith.constant 0 : index
    %c0_256 = arith.constant 0 : index
    %296 = vector.load %arg6[%c24_254, %c0_255, %c0_256] : memref<25x96x64xf32, #tpu.memory_space<vmem>>, vector<1x96x64xf32>
    %297 = vector.shape_cast %296 : vector<1x96x64xf32> to vector<96x64xf32>
    %cst_257 = arith.constant dense<0.000000e+00> : vector<28x64xf32>
    %298 = tpu.matmul %295, %297, %cst_257 {dimension_numbers = #tpu.dot_dimension_numbers<[1], [0], [0], [1], [0, 0, 1, 1], [], []>} : vector<28x96xf32>, vector<96x64xf32>, vector<28x64xf32> -> vector<28x64xf32>
    %299 = arith.addf %294, %298 : vector<28x64xf32>
    %c0_258 = arith.constant 0 : index
    %c0_259 = arith.constant 0 : index
    %300 = vector.load %arg7[%c0_258, %c0_259] : memref<1x64xf32, #tpu.memory_space<vmem>>, vector<1x64xf32>
    %301 = vector.broadcast %300 : vector<1x64xf32> to vector<28x64xf32>
    %302 = arith.addf %299, %301 : vector<28x64xf32>
    %cst_260 = arith.constant 0.000000e+00 : f32
    %303 = vector.broadcast %cst_260 : f32 to vector<28x64xf32>
    %304 = arith.maximumf %302, %303 : vector<28x64xf32>
    %c0_261 = arith.constant 0 : index
    %c0_262 = arith.constant 0 : index
    %c0_263 = arith.constant 0 : index
    %305 = vector.load %arg8[%c0_261, %c0_262, %c0_263] : memref<4x4x28xf32, #tpu.memory_space<vmem>>, vector<1x4x28xf32>
    %306 = vector.shape_cast %305 : vector<1x4x28xf32> to vector<4x28xf32>
    %cst_264 = arith.constant dense<0.000000e+00> : vector<4x64xf32>
    %307 = tpu.matmul %306, %304, %cst_264 {dimension_numbers = #tpu.dot_dimension_numbers<[1], [0], [0], [1], [0, 0, 1, 1], [], []>} : vector<4x28xf32>, vector<28x64xf32>, vector<4x64xf32> -> vector<4x64xf32>
    %c1_265 = arith.constant 1 : index
    %c0_266 = arith.constant 0 : index
    %c0_267 = arith.constant 0 : index
    %308 = vector.load %arg8[%c1_265, %c0_266, %c0_267] : memref<4x4x28xf32, #tpu.memory_space<vmem>>, vector<1x4x28xf32>
    %309 = vector.shape_cast %308 : vector<1x4x28xf32> to vector<4x28xf32>
    %cst_268 = arith.constant dense<0.000000e+00> : vector<4x64xf32>
    %310 = tpu.matmul %309, %304, %cst_268 {dimension_numbers = #tpu.dot_dimension_numbers<[1], [0], [0], [1], [0, 0, 1, 1], [], []>} : vector<4x28xf32>, vector<28x64xf32>, vector<4x64xf32> -> vector<4x64xf32>
    %311 = arith.maximumf %307, %310 : vector<4x64xf32>
    %c2_269 = arith.constant 2 : index
    %c0_270 = arith.constant 0 : index
    %c0_271 = arith.constant 0 : index
    %312 = vector.load %arg8[%c2_269, %c0_270, %c0_271] : memref<4x4x28xf32, #tpu.memory_space<vmem>>, vector<1x4x28xf32>
    %313 = vector.shape_cast %312 : vector<1x4x28xf32> to vector<4x28xf32>
    %cst_272 = arith.constant dense<0.000000e+00> : vector<4x64xf32>
    %314 = tpu.matmul %313, %304, %cst_272 {dimension_numbers = #tpu.dot_dimension_numbers<[1], [0], [0], [1], [0, 0, 1, 1], [], []>} : vector<4x28xf32>, vector<28x64xf32>, vector<4x64xf32> -> vector<4x64xf32>
    %315 = arith.maximumf %311, %314 : vector<4x64xf32>
    %c3_273 = arith.constant 3 : index
    %c0_274 = arith.constant 0 : index
    %c0_275 = arith.constant 0 : index
    %316 = vector.load %arg8[%c3_273, %c0_274, %c0_275] : memref<4x4x28xf32, #tpu.memory_space<vmem>>, vector<1x4x28xf32>
    %317 = vector.shape_cast %316 : vector<1x4x28xf32> to vector<4x28xf32>
    %cst_276 = arith.constant dense<0.000000e+00> : vector<4x64xf32>
    %318 = tpu.matmul %317, %304, %cst_276 {dimension_numbers = #tpu.dot_dimension_numbers<[1], [0], [0], [1], [0, 0, 1, 1], [], []>} : vector<4x28xf32>, vector<28x64xf32>, vector<4x64xf32> -> vector<4x64xf32>
    %319 = arith.maximumf %315, %318 : vector<4x64xf32>
    %c0_277 = arith.constant 0 : index
    %c0_278 = arith.constant 0 : index
    %320 = vector.load %arg9[%c0_277, %c0_278] : memref<64x64xf32, #tpu.memory_space<vmem>>, vector<64x64xf32>
    %cst_279 = arith.constant dense<0.000000e+00> : vector<4x64xf32>
    %321 = tpu.matmul %319, %320, %cst_279 {dimension_numbers = #tpu.dot_dimension_numbers<[1], [0], [0], [1], [0, 0, 1, 1], [], []>} : vector<4x64xf32>, vector<64x64xf32>, vector<4x64xf32> -> vector<4x64xf32>
    %322 = arith.maximumf %319, %321 : vector<4x64xf32>
    %323 = vector.extract_strided_slice %322 {offsets = [0, 0], sizes = [1, 64], strides = [1, 1]} : vector<4x64xf32> to vector<1x64xf32>
    %c0_280 = arith.constant 0 : index
    %c0_281 = arith.constant 0 : index
    %c0_282 = arith.constant 0 : index
    %324 = vector.load %arg10[%c0_280, %c0_281, %c0_282] : memref<4x64x120xf32, #tpu.memory_space<vmem>>, vector<1x64x120xf32>
    %325 = vector.shape_cast %324 : vector<1x64x120xf32> to vector<64x120xf32>
    %cst_283 = arith.constant dense<0.000000e+00> : vector<1x120xf32>
    %326 = tpu.matmul %323, %325, %cst_283 {dimension_numbers = #tpu.dot_dimension_numbers<[1], [0], [0], [1], [0, 0, 1, 1], [], []>} : vector<1x64xf32>, vector<64x120xf32>, vector<1x120xf32> -> vector<1x120xf32>
    %327 = vector.extract_strided_slice %322 {offsets = [1, 0], sizes = [1, 64], strides = [1, 1]} : vector<4x64xf32> to vector<1x64xf32>
    %c1_284 = arith.constant 1 : index
    %c0_285 = arith.constant 0 : index
    %c0_286 = arith.constant 0 : index
    %328 = vector.load %arg10[%c1_284, %c0_285, %c0_286] : memref<4x64x120xf32, #tpu.memory_space<vmem>>, vector<1x64x120xf32>
    %329 = vector.shape_cast %328 : vector<1x64x120xf32> to vector<64x120xf32>
    %cst_287 = arith.constant dense<0.000000e+00> : vector<1x120xf32>
    %330 = tpu.matmul %327, %329, %cst_287 {dimension_numbers = #tpu.dot_dimension_numbers<[1], [0], [0], [1], [0, 0, 1, 1], [], []>} : vector<1x64xf32>, vector<64x120xf32>, vector<1x120xf32> -> vector<1x120xf32>
    %331 = arith.addf %326, %330 : vector<1x120xf32>
    %332 = vector.extract_strided_slice %322 {offsets = [2, 0], sizes = [1, 64], strides = [1, 1]} : vector<4x64xf32> to vector<1x64xf32>
    %c2_288 = arith.constant 2 : index
    %c0_289 = arith.constant 0 : index
    %c0_290 = arith.constant 0 : index
    %333 = vector.load %arg10[%c2_288, %c0_289, %c0_290] : memref<4x64x120xf32, #tpu.memory_space<vmem>>, vector<1x64x120xf32>
    %334 = vector.shape_cast %333 : vector<1x64x120xf32> to vector<64x120xf32>
    %cst_291 = arith.constant dense<0.000000e+00> : vector<1x120xf32>
    %335 = tpu.matmul %332, %334, %cst_291 {dimension_numbers = #tpu.dot_dimension_numbers<[1], [0], [0], [1], [0, 0, 1, 1], [], []>} : vector<1x64xf32>, vector<64x120xf32>, vector<1x120xf32> -> vector<1x120xf32>
    %336 = arith.addf %331, %335 : vector<1x120xf32>
    %337 = vector.extract_strided_slice %322 {offsets = [3, 0], sizes = [1, 64], strides = [1, 1]} : vector<4x64xf32> to vector<1x64xf32>
    %c3_292 = arith.constant 3 : index
    %c0_293 = arith.constant 0 : index
    %c0_294 = arith.constant 0 : index
    %338 = vector.load %arg10[%c3_292, %c0_293, %c0_294] : memref<4x64x120xf32, #tpu.memory_space<vmem>>, vector<1x64x120xf32>
    %339 = vector.shape_cast %338 : vector<1x64x120xf32> to vector<64x120xf32>
    %cst_295 = arith.constant dense<0.000000e+00> : vector<1x120xf32>
    %340 = tpu.matmul %337, %339, %cst_295 {dimension_numbers = #tpu.dot_dimension_numbers<[1], [0], [0], [1], [0, 0, 1, 1], [], []>} : vector<1x64xf32>, vector<64x120xf32>, vector<1x120xf32> -> vector<1x120xf32>
    %341 = arith.addf %336, %340 : vector<1x120xf32>
    %c0_296 = arith.constant 0 : index
    %c0_297 = arith.constant 0 : index
    %342 = vector.load %arg11[%c0_296, %c0_297] : memref<1x120xf32, #tpu.memory_space<vmem>>, vector<1x120xf32>
    %343 = arith.addf %341, %342 : vector<1x120xf32>
    %cst_298 = arith.constant 0.000000e+00 : f32
    %344 = vector.broadcast %cst_298 : f32 to vector<1x120xf32>
    %345 = arith.maximumf %343, %344 : vector<1x120xf32>
    %c0_299 = arith.constant 0 : index
    %c0_300 = arith.constant 0 : index
    %346 = vector.load %arg12[%c0_299, %c0_300] : memref<120x84xf32, #tpu.memory_space<vmem>>, vector<120x84xf32>
    %cst_301 = arith.constant dense<0.000000e+00> : vector<1x84xf32>
    %347 = tpu.matmul %345, %346, %cst_301 {dimension_numbers = #tpu.dot_dimension_numbers<[1], [0], [0], [1], [0, 0, 1, 1], [], []>} : vector<1x120xf32>, vector<120x84xf32>, vector<1x84xf32> -> vector<1x84xf32>
    %c0_302 = arith.constant 0 : index
    %c0_303 = arith.constant 0 : index
    %348 = vector.load %arg13[%c0_302, %c0_303] : memref<1x84xf32, #tpu.memory_space<vmem>>, vector<1x84xf32>
    %349 = arith.addf %347, %348 : vector<1x84xf32>
    %cst_304 = arith.constant 0.000000e+00 : f32
    %350 = vector.broadcast %cst_304 : f32 to vector<1x84xf32>
    %351 = arith.maximumf %349, %350 : vector<1x84xf32>
    %c0_305 = arith.constant 0 : index
    %c0_306 = arith.constant 0 : index
    %352 = vector.load %arg14[%c0_305, %c0_306] : memref<84x1xf32, #tpu.memory_space<vmem>>, vector<84x1xf32>
    %cst_307 = arith.constant dense<0.000000e+00> : vector<1x1xf32>
    %353 = tpu.matmul %351, %352, %cst_307 {dimension_numbers = #tpu.dot_dimension_numbers<[1], [0], [0], [1], [0, 0, 1, 1], [], []>} : vector<1x84xf32>, vector<84x1xf32>, vector<1x1xf32> -> vector<1x1xf32>
    %c0_308 = arith.constant 0 : index
    %c0_309 = arith.constant 0 : index
    %354 = vector.load %arg15[%c0_308, %c0_309] : memref<1x1xf32, #tpu.memory_space<vmem>>, vector<1x1xf32>
    %355 = arith.addf %353, %354 : vector<1x1xf32>
    %c0_310 = arith.constant 0 : index
    %c0_311 = arith.constant 0 : index
    %c0_312 = arith.constant 0 : index
    %356 = vector.load %arg16[%c0_310, %c0_311, %c0_312] : memref<1x1x1xf32, #tpu.memory_space<vmem>>, vector<1x1x1xf32>
    %357 = vector.shape_cast %356 : vector<1x1x1xf32> to vector<1x1xf32>
    %358 = vector.shape_cast %355 : vector<1x1xf32> to vector<1x1x1xf32>
    tpu.vector_store %arg16[%c0_310, %c0_311, %c0_312], %358 {strides = array<i32>} : memref<1x1x1xf32, #tpu.memory_space<vmem>>, vector<1x1x1xf32>,
    return
  }
  func.func @transform_0(%arg0: i32) -> (i32, i32, i32) {
    %c0_i32 = arith.constant 0 : i32
    %c0_i32_0 = arith.constant 0 : i32
    %c0_i32_1 = arith.constant 0 : i32
    return %arg0, %c0_i32, %c0_i32_0 : i32, i32, i32
  }
  func.func @transform_1(%arg0: i32) -> (i32, i32, i32) {
    %c0_i32 = arith.constant 0 : i32
    %c0_i32_0 = arith.constant 0 : i32
    %c0_i32_1 = arith.constant 0 : i32
    %c0_i32_2 = arith.constant 0 : i32
    return %c0_i32, %c0_i32_0, %c0_i32_1 : i32, i32, i32
  }
  func.func @transform_2(%arg0: i32) -> (i32, i32) {
    %c0_i32 = arith.constant 0 : i32
    %c0_i32_0 = arith.constant 0 : i32
    %c0_i32_1 = arith.constant 0 : i32
    return %c0_i32, %c0_i32_0 : i32, i32
  }
  func.func @transform_3(%arg0: i32) -> (i32, i32, i32) {
    %c0_i32 = arith.constant 0 : i32
    %c0_i32_0 = arith.constant 0 : i32
    %c0_i32_1 = arith.constant 0 : i32
    %c0_i32_2 = arith.constant 0 : i32
    return %c0_i32, %c0_i32_0, %c0_i32_1 : i32, i32, i32
  }
  func.func @transform_4(%arg0: i32) -> (i32, i32) {
    %c0_i32 = arith.constant 0 : i32
    %c0_i32_0 = arith.constant 0 : i32
    %c0_i32_1 = arith.constant 0 : i32
    return %c0_i32, %c0_i32_0 : i32, i32
  }
  func.func @transform_5(%arg0: i32) -> (i32, i32, i32) {
    %c0_i32 = arith.constant 0 : i32
    %c0_i32_0 = arith.constant 0 : i32
    %c0_i32_1 = arith.constant 0 : i32
    %c0_i32_2 = arith.constant 0 : i32
    return %c0_i32, %c0_i32_0, %c0_i32_1 : i32, i32, i32
  }
  func.func @transform_6(%arg0: i32) -> (i32, i32) {
    %c0_i32 = arith.constant 0 : i32
    %c0_i32_0 = arith.constant 0 : i32
    %c0_i32_1 = arith.constant 0 : i32
    return %c0_i32, %c0_i32_0 : i32, i32
  }
  func.func @transform_7(%arg0: i32) -> (i32, i32, i32) {
    %c0_i32 = arith.constant 0 : i32
    %c0_i32_0 = arith.constant 0 : i32
    %c0_i32_1 = arith.constant 0 : i32
    %c0_i32_2 = arith.constant 0 : i32
    return %c0_i32, %c0_i32_0, %c0_i32_1 : i32, i32, i32
  }
  func.func @transform_8(%arg0: i32) -> (i32, i32) {
    %c0_i32 = arith.constant 0 : i32
    %c0_i32_0 = arith.constant 0 : i32
    %c0_i32_1 = arith.constant 0 : i32
    return %c0_i32, %c0_i32_0 : i32, i32
  }
  func.func @transform_9(%arg0: i32) -> (i32, i32, i32) {
    %c0_i32 = arith.constant 0 : i32
    %c0_i32_0 = arith.constant 0 : i32
    %c0_i32_1 = arith.constant 0 : i32
    %c0_i32_2 = arith.constant 0 : i32
    return %c0_i32, %c0_i32_0, %c0_i32_1 : i32, i32, i32
  }
  func.func @transform_10(%arg0: i32) -> (i32, i32) {
    %c0_i32 = arith.constant 0 : i32
    %c0_i32_0 = arith.constant 0 : i32
    %c0_i32_1 = arith.constant 0 : i32
    return %c0_i32, %c0_i32_0 : i32, i32
  }
  func.func @transform_11(%arg0: i32) -> (i32, i32) {
    %c0_i32 = arith.constant 0 : i32
    %c0_i32_0 = arith.constant 0 : i32
    %c0_i32_1 = arith.constant 0 : i32
    return %c0_i32, %c0_i32_0 : i32, i32
  }
  func.func @transform_12(%arg0: i32) -> (i32, i32) {
    %c0_i32 = arith.constant 0 : i32
    %c0_i32_0 = arith.constant 0 : i32
    %c0_i32_1 = arith.constant 0 : i32
    return %c0_i32, %c0_i32_0 : i32, i32
  }
  func.func @transform_13(%arg0: i32) -> (i32, i32) {
    %c0_i32 = arith.constant 0 : i32
    %c0_i32_0 = arith.constant 0 : i32
    %c0_i32_1 = arith.constant 0 : i32
    return %c0_i32, %c0_i32_0 : i32, i32
  }
  func.func @transform_14(%arg0: i32) -> (i32, i32) {
    %c0_i32 = arith.constant 0 : i32
    %c0_i32_0 = arith.constant 0 : i32
    %c0_i32_1 = arith.constant 0 : i32
    return %c0_i32, %c0_i32_0 : i32, i32
  }
  func.func @transform_15(%arg0: i32) -> (i32, i32, i32) {
    %c0_i32 = arith.constant 0 : i32
    %c0_i32_0 = arith.constant 0 : i32
    %c0_i32_1 = arith.constant 0 : i32
    return %arg0, %c0_i32, %c0_i32_0 : i32, i32, i32
  }
}

</mosaic_0001>

<bundles_post_ra>
// kernel: net_forward.1
= control target key start
LH: loop header
LB: loop body
LE: loop exit
PB: predicated region body
PF: predicated region fallthrough
CT: control target
= control target key end

     0   :  { %s13632_s20 = smov 0   ;;  %s19628_s0 = inlined_call_operand.vmem [shape: f32[2,400,80], index: 0, kind: input, shape index: {}]   ;;  %s19629_s1 = inlined_call_operand.vmem [shape: f32[25,80,96], index: 1, kind: input, shape index: {}]   ;;  %s19630_s2 = inlined_call_operand.vmem [shape: f32[1,96], index: 2, kind: input, shape index: {}]   ;;  %s19631_s3 = inlined_call_operand.vmem [shape: f32[4,64,316], index: 3, kind: input, shape index: {}]   ;;  %s19632_s4 = inlined_call_operand.vmem [shape: f32[96,96], index: 4, kind: input, shape index: {}]   ;;  %s19633_s5 = inlined_call_operand.vmem [shape: f32[25,96,64], index: 5, kind: input, shape index: {}]   ;;  %s19634_s6 = inlined_call_operand.vmem [shape: f32[1,64], index: 6, kind: input, shape index: {}]   ;;  %s19635_s7 = inlined_call_operand.vmem [shape: f32[4,4,28], index: 7, kind: input, shape index: {}]   ;;  %s19636_s8 = inlined_call_operand.vmem [shape: f32[64,64], index: 8, kind: input, shape index: {}]   ;;  %s19637_s9 = inlined_call_operand.vmem [shape: f32[4,64,120], index: 9, kind: input, shape index: {}]   ;;  %s19638_s10 = inlined_call_operand.vmem [shape: f32[1,120], index: 10, kind: input, shape index: {}]   ;;  %s19639_s11 = inlined_call_operand.vmem [shape: f32[120,84], index: 11, kind: input, shape index: {}]   ;;  %s19640_s12 = inlined_call_operand.vmem [shape: f32[1,84], index: 12, kind: input, shape index: {}]   ;;  %s19641_s13 = inlined_call_operand.vmem [shape: f32[84,1], index: 13, kind: input, shape index: {}]   ;;  %s19642_s14 = inlined_call_operand.<no memory space> [shape: f32[1,1], index: 14, kind: input, shape index: {}]   ;;  %s19643_s15 = inlined_call_operand.vmem [shape: f32[2,1,1], index: 15, kind: output, shape index: {}]  }
   0x1   :  { %v20_v0 = vstv %s19642_s14 }
   0x2   :  { %21 = vst [vmem:[#allocation2] sm:$0x1] %v20_v0 }
   0x3 LB: > { %s11735_s21 = sadd.s32 4294967295, %s13547_s20   ;;  %p11739_p0 = scmp.ge.s32.totalorder %s13547_s20, 1  ;;  %s13547_s20 = sphi %s13632_s20, %s27_s20  }
   0x4   : > { %p439_p1 = scmp.lt.s32.totalorder %s13547_s20, 3 }
   0x6   : > { %p440_p2 = pnand %p11739_p0, %p439_p1 }
   0x8   : > { %443 = sbr.rel (%p440_p2) target bundleno = 3925 (0xf55), region = 80 }
   0xd   : > { %v11750_v1 = vld [vmem:[%s19629_s1 + $0x98] sm:$0xff]  ;;  %v542_v2 = vld [vmem:[%s19629_s1 + $0x48] sm:$0xff]  ;;  %v11749_v4 = vld [vmem:[%s19629_s1 + $0x90] sm:$0xff]  ;;  %p13675_p3 = scmp.lt.s32.totalorder %s11735_s21, 1  ;;  %vm594_vm0 = vcmask 654336   ;;  %vm9246_vm1 = vcmask 1043456  }
   0xe   : > { %v11840_v3 = vld [vmem:[%s19629_s1 + $0xe8] sm:$0xff]  ;;  %721 = vmatpush.msra.mxu0 %v11750_v1  ;;  %978 = vmatpush.msra.mxu1 %v542_v2  ;;  %v541_v5 = vld [vmem:[%s19629_s1 + $0x40] sm:$0xff]  ;;  %v11890_v7 = vld [vmem:[%s19629_s1 + $0x138] sm:$0xff]  ;;  %vm9221_vm2 = vcmask 490496   ;;  %vm9925_vm3 = vcmask 785408   ;;  %vm10028_vm4 = vcmask 1046528  }
   0xf   : > { %v11839_v6 = vld [vmem:[%s19629_s1 + $0xe0] sm:$0xff]  ;;  %1286 = vmatpush.msra.mxu2 %v11840_v3  ;;  %v11748_v8 = vld [vmem:[%s19629_s1 + $0x88] sm:$0xff]  ;;  %v540_v9 = vld [vmem:[%s19629_s1 + $0x38] sm:$0xff]  ;;  %1634 = vmatpush.msra.mxu3 %v11890_v7  ;;  %s19797_s21 = smov (!%p13675_p3, %s11735_s21), 1  ;;  %vm10185_vm5 = vcmask 1044480   ;;  %vm10123_vm6 = vcmask 1045504  }
  0x10   : > { %722 = vmatpush.msra.mxu0 %v11749_v4  ;;  %979 = vmatpush.msra.mxu1 %v541_v5  ;;  %v11838_v10 = vld [vmem:[%s19629_s1 + $0xd8] sm:$0xff]  ;;  %v11889_v11 = vld [vmem:[%s19629_s1 + $0x130] sm:$0xff]  ;;  %v11747_v12 = vld [vmem:[%s19629_s1 + $0x80] sm:$0xff]  ;;  %s13530_s22 = smul.u32 400, %s19797_s21  ;;  %vm11336_vm7 = vcmask 228352   ;;  %vm11449_vm8 = vcmask 523264   ;;  %s492_s28 = scalar_lea.vmem %s19643_s15, %s19797_s21 }
  0x11   : > { %1287 = vmatpush.msra.mxu2 %v11839_v6  ;;  %v539_v13 = vld [vmem:[%s19629_s1 + $0x30] sm:$0xff]  ;;  %v11888_v15 = vld [vmem:[%s19629_s1 + $0x128] sm:$0xff]  ;;  %1635 = vmatpush.msra.mxu3 %v11889_v11  ;;  %v11746_v16 = vld [vmem:[%s19629_s1 + $0x78] sm:$0xff]  ;;  %vm11622_vm9 = vcmask 982016   ;;  %vm11659_vm10 = vcmask 687104   ;;  %vm11686_vm11 = vcmask 0  }
  0x12   : > { %723 = vmatpush.msra.mxu0 %v11748_v8  ;;  %980 = vmatpush.msra.mxu1 %v540_v9  ;;  %v11837_v14 = vld [vmem:[%s19629_s1 + $0xd0] sm:$0xff]  ;;  %v538_v17 = vld [vmem:[%s19629_s1 + $0x28] sm:$0xff]  ;;  %v11887_v19 = vld [vmem:[%s19629_s1 + $0x120] sm:$0xff]  ;;  %s13761_s26 = scalar_lea.vmem %s19628_s0, %s13530_s22 }
  0x13   : > { %1288 = vmatpush.msra.mxu2 %v11838_v10  ;;  %v11836_v18 = vld [vmem:[%s19629_s1 + $0xc8] sm:$0xff]  ;;  %1636 = vmatpush.msra.mxu3 %v11888_v15  ;;  %v11745_v20 = vld [vmem:[%s19629_s1 + $0x70] sm:$0xff]  ;;  %v537_v21 = vld [vmem:[%s19629_s1 + $0x20] sm:$0xff] }
  0x14   : > { %724 = vmatpush.msra.mxu0 %v11747_v12  ;;  %981 = vmatpush.msra.mxu1 %v539_v13  ;;  %v11835_v22 = vld [vmem:[%s19629_s1 + $0xc0] sm:$0xff]  ;;  %v11886_v23 = vld [vmem:[%s19629_s1 + $0x118] sm:$0xff]  ;;  %v11744_v24 = vld [vmem:[%s19629_s1 + $0x68] sm:$0xff] }
  0x15   : > { %1289 = vmatpush.msra.mxu2 %v11837_v14  ;;  %1637 = vmatpush.msra.mxu3 %v11887_v19  ;;  %v536_v25 = vld [vmem:[%s19629_s1 + $0x18] sm:$0xff]  ;;  %v11885_v27 = vld [vmem:[%s19629_s1 + $0x110] sm:$0xff]  ;;  %v11743_v28 = vld [vmem:[%s19629_s1 + $0x60] sm:$0xff] }
  0x16   : > { %725 = vmatpush.msra.mxu0 %v11746_v16  ;;  %982 = vmatpush.msra.mxu1 %v538_v17  ;;  %v11834_v26 = vld [vmem:[%s19629_s1 + $0xb8] sm:$0xff]  ;;  %v535_v29 = vld [vmem:[%s19629_s1 + $0x10] sm:$0xff]  ;;  %v11884_v31 = vld [vmem:[%s19629_s1 + $0x108] sm:$0xff] }
  0x17   : > { %1290 = vmatpush.msra.mxu2 %v11836_v18  ;;  %1638 = vmatpush.msra.mxu3 %v11886_v23  ;;  %v11833_v30 = vld [vmem:[%s19629_s1 + $0xb0] sm:$0xff]  ;;  %v11742_v32 = vld [vmem:[%s19629_s1 + $0x58] sm:$0xff]  ;;  %v534_v33 = vld [vmem:[%s19629_s1 + $0x8] sm:$0xff] }
  0x18   : > { %726 = vmatpush.msra.mxu0 %v11745_v20  ;;  %983 = vmatpush.msra.mxu1 %v537_v21  ;;  %v11832_v34 = vld [vmem:[%s19629_s1 + $0xa8] sm:$0xff]  ;;  %v11883_v35 = vld [vmem:[%s19629_s1 + $0x100] sm:$0xff]  ;;  %v11741_v36 = vld [vmem:[%s19629_s1 + $0x50] sm:$0xff] }
  0x19   : > { %1291 = vmatpush.msra.mxu2 %v11835_v22  ;;  %1639 = vmatpush.msra.mxu3 %v11885_v27  ;;  %v533_v37 = vld [vmem:[%s19629_s1] sm:$0xff]  ;;  %v11882_v39 = vld [vmem:[%s19629_s1 + $0xf8] sm:$0xff]  ;;  %v11881_v43 = vld [vmem:[%s19629_s1 + $0xf0] sm:$0xff] }
  0x1a   : > { %727 = vmatpush.msra.mxu0 %v11744_v24  ;;  %984 = vmatpush.msra.mxu1 %v536_v25  ;;  %v11831_v38 = vld [vmem:[%s19629_s1 + $0xa0] sm:$0xff]  ;;  %v544_v45 = vld [vmem:[%s13761_s26 + $0x9] sm:$0xff]  ;;  %v545_v49 = vld [vmem:[%s13761_s26 + $0x11] sm:$0xff] }
  0x1b   : > { %1292 = vmatpush.msra.mxu2 %v11834_v26  ;;  %1640 = vmatpush.msra.mxu3 %v11884_v31  ;;  %v543_v40 = vld [vmem:[%s13761_s26 + $0x1] sm:$0xff]  ;;  %v1110_v47 = vld [vmem:[%s13761_s26 + $0xa] sm:$0xff]  ;;  %v1111_v51 = vld [vmem:[%s13761_s26 + $0x12] sm:$0xff] }
  0x1c   : > { %728 = vmatpush.msra.mxu0 %v11743_v28  ;;  %985 = vmatpush.msra.mxu1 %v535_v29  ;;  %v493_v41 = vld [vmem:[%s13761_s26] sm:$0xff]  ;;  %v494_v46 = vld [vmem:[%s13761_s26 + $0x8] sm:$0xff]  ;;  %v495_v50 = vld [vmem:[%s13761_s26 + $0x10] sm:$0xff] }
  0x1d   : > { %1293 = vmatpush.msra.mxu2 %v11833_v30  ;;  %1641 = vmatpush.msra.mxu3 %v11883_v35  ;;  %v1109_v42 = vld [vmem:[%s13761_s26 + $0x2] sm:$0xff]  ;;  %v1458_v48 = vld [vmem:[%s13761_s26 + $0xb] sm:$0xff]  ;;  %v1459_v52 = vld [vmem:[%s13761_s26 + $0x13] sm:$0xff] }
  0x1e   : > { %729 = vmatpush.msra.mxu0 %v11742_v32  ;;  %986 = vmatpush.msra.mxu1 %v534_v33  ;;  %v1457_v44 = vld [vmem:[%s13761_s26 + $0x3] sm:$0xff]  ;;  %v546_v53 = vld [vmem:[%s13761_s26 + $0x19] sm:$0xff]  ;;  %v1462_v0 = vld [vmem:[%s13761_s26 + $0x2b] sm:$0xff] }
  0x1f   : > { %1294 = vmatpush.msra.mxu2 %v11832_v34  ;;  %1642 = vmatpush.msra.mxu3 %v11882_v39  ;;  %v496_v54 = vld [vmem:[%s13761_s26 + $0x18] sm:$0xff]  ;;  %v547_v57 = vld [vmem:[%s13761_s26 + $0x21] sm:$0xff]  ;;  %v548_v61 = vld [vmem:[%s13761_s26 + $0x29] sm:$0xff] }
  0x20   : > { %730 = vmatpush.msra.mxu0 %v11741_v36  ;;  %987 = vmatpush.msra.mxu1 %v533_v37  ;;  %v1112_v55 = vld [vmem:[%s13761_s26 + $0x1a] sm:$0xff]  ;;  %v1113_v59 = vld [vmem:[%s13761_s26 + $0x22] sm:$0xff]  ;;  %v1114_v63 = vld [vmem:[%s13761_s26 + $0x2a] sm:$0xff] }
  0x21   : > { %1295 = vmatpush.msra.mxu2 %v11831_v38  ;;  %11751 = vmatmul.msk.f32.vlgmr.msra.gmra.mxu0 %vm594_vm0, %v543_v40  ;;  %v1460_v56 = vld [vmem:[%s13761_s26 + $0x1b] sm:$0xff]  ;;  %v1461_v60 = vld [vmem:[%s13761_s26 + $0x23] sm:$0xff]  ;;  %v549_v1 = vld [vmem:[%s13761_s26 + $0x31] sm:$0xff] }
  0x22   : > { %11791 = vmatmul.msk.f32.vlgmr.msra.gmra.mxu1 %vm594_vm0, %v493_v41  ;;  %11841 = vmatmul.msk.f32.vlgmr.msra.gmra.mxu2 %vm594_vm0, %v1109_v42  ;;  %v497_v58 = vld [vmem:[%s13761_s26 + $0x20] sm:$0xff]  ;;  %v498_v62 = vld [vmem:[%s13761_s26 + $0x28] sm:$0xff]  ;;  %v499_v2 = vld [vmem:[%s13761_s26 + $0x30] sm:$0xff] }
  0x23   : > { %1643 = vmatpush.msra.mxu3 %v11881_v43  ;;  %v1115_v3 = vld [vmem:[%s13761_s26 + $0x32] sm:$0xff]  ;;  %v1116_v7 = vld [vmem:[%s13761_s26 + $0x3a] sm:$0xff]  ;;  %v1117_v11 = vld [vmem:[%s13761_s26 + $0x42] sm:$0xff] }
  0x24   : > { %11891 = vmatmul.msk.f32.vlgmr.msra.gmra.mxu3 %vm594_vm0, %v1457_v44  ;;  %v1463_v4 = vld [vmem:[%s13761_s26 + $0x33] sm:$0xff]  ;;  %v1464_v8 = vld [vmem:[%s13761_s26 + $0x3b] sm:$0xff]  ;;  %v1465_v12 = vld [vmem:[%s13761_s26 + $0x43] sm:$0xff] }
  0x25   : > { %v550_v5 = vld [vmem:[%s13761_s26 + $0x39] sm:$0xff]  ;;  %v551_v9 = vld [vmem:[%s13761_s26 + $0x41] sm:$0xff]  ;;  %v552_v13 = vld [vmem:[%s13761_s26 + $0x49] sm:$0xff] }
  0x26   : > { %v500_v6 = vld [vmem:[%s13761_s26 + $0x38] sm:$0xff]  ;;  %v501_v10 = vld [vmem:[%s13761_s26 + $0x40] sm:$0xff]  ;;  %v502_v14 = vld [vmem:[%s13761_s26 + $0x48] sm:$0xff] }
  0x27   : > { %v1118_v15 = vld [vmem:[%s13761_s26 + $0x4a] sm:$0xff]  ;;  %v1119_v19 = vld [vmem:[%s13761_s26 + $0x52] sm:$0xff]  ;;  %v1120_v23 = vld [vmem:[%s13761_s26 + $0x5a] sm:$0xff] }
  0x28   : > { %v1466_v16 = vld [vmem:[%s13761_s26 + $0x4b] sm:$0xff]  ;;  %v1467_v20 = vld [vmem:[%s13761_s26 + $0x53] sm:$0xff]  ;;  %v1468_v24 = vld [vmem:[%s13761_s26 + $0x5b] sm:$0xff] }
  0x29   : > { %11752 = vmatmul.msk.f32.gmra.mxu0 %vm594_vm0, %v544_v45  ;;  %v553_v17 = vld [vmem:[%s13761_s26 + $0x51] sm:$0xff]  ;;  %v554_v21 = vld [vmem:[%s13761_s26 + $0x59] sm:$0xff]  ;;  %v555_v25 = vld [vmem:[%s13761_s26 + $0x61] sm:$0xff] }
  0x2a   : > { %11792 = vmatmul.msk.f32.gmra.mxu1 %vm594_vm0, %v494_v46  ;;  %11842 = vmatmul.msk.f32.gmra.mxu2 %vm594_vm0, %v1110_v47  ;;  %v503_v18 = vld [vmem:[%s13761_s26 + $0x50] sm:$0xff]  ;;  %v504_v22 = vld [vmem:[%s13761_s26 + $0x58] sm:$0xff]  ;;  %v505_v26 = vld [vmem:[%s13761_s26 + $0x60] sm:$0xff] }
  0x2b   : > { %v1121_v27 = vld [vmem:[%s13761_s26 + $0x62] sm:$0xff]  ;;  %v1122_v31 = vld [vmem:[%s13761_s26 + $0x6a] sm:$0xff]  ;;  %v1123_v35 = vld [vmem:[%s13761_s26 + $0x72] sm:$0xff] }
  0x2c   : > { %11892 = vmatmul.msk.f32.gmra.mxu3 %vm594_vm0, %v1458_v48  ;;  %v1469_v28 = vld [vmem:[%s13761_s26 + $0x63] sm:$0xff]  ;;  %v1470_v32 = vld [vmem:[%s13761_s26 + $0x6b] sm:$0xff]  ;;  %v1471_v36 = vld [vmem:[%s13761_s26 + $0x73] sm:$0xff] }
  0x2d   : > { %v556_v29 = vld [vmem:[%s13761_s26 + $0x69] sm:$0xff]  ;;  %v557_v33 = vld [vmem:[%s13761_s26 + $0x71] sm:$0xff]  ;;  %v558_v37 = vld [vmem:[%s13761_s26 + $0x79] sm:$0xff] }
  0x2e   : > { %v506_v30 = vld [vmem:[%s13761_s26 + $0x68] sm:$0xff]  ;;  %v507_v34 = vld [vmem:[%s13761_s26 + $0x70] sm:$0xff]  ;;  %v508_v38 = vld [vmem:[%s13761_s26 + $0x78] sm:$0xff] }
  0x2f   : > { %v1124_v39 = vld [vmem:[%s13761_s26 + $0x7a] sm:$0xff]  ;;  %v1125_v45 = vld [vmem:[%s13761_s26 + $0x82] sm:$0xff] }
  0x30   : > { %v1472_v40 = vld [vmem:[%s13761_s26 + $0x7b] sm:$0xff]  ;;  %v1473_v46 = vld [vmem:[%s13761_s26 + $0x83] sm:$0xff] }
  0x31   : > { %11753 = vmatmul.msk.f32.gmra.mxu0 %vm594_vm0, %v545_v49  ;;  %v559_v43 = vld [vmem:[%s13761_s26 + $0x81] sm:$0xff] }
  0x32   : > { %11793 = vmatmul.msk.f32.gmra.mxu1 %vm594_vm0, %v495_v50  ;;  %11843 = vmatmul.msk.f32.gmra.mxu2 %vm594_vm0, %v1111_v51  ;;  %v509_v44 = vld [vmem:[%s13761_s26 + $0x80] sm:$0xff] }
  0x34   : > { %11893 = vmatmul.msk.f32.gmra.mxu3 %vm594_vm0, %v1459_v52  ;;  %v560_v52 = vld [vmem:[%s13761_s26 + $0x89] sm:$0xff] }
  0x39   : > { %11754 = vmatmul.msk.f32.gmra.mxu0 %vm594_vm0, %v546_v53  ;;  %v510_v53 = vld [vmem:[%s13761_s26 + $0x88] sm:$0xff] }
  0x3a   : > { %11794 = vmatmul.msk.f32.gmra.mxu1 %vm594_vm0, %v496_v54  ;;  %11844 = vmatmul.msk.f32.gmra.mxu2 %vm594_vm0, %v1112_v55  ;;  %v1126_v55 = vld [vmem:[%s13761_s26 + $0x8a] sm:$0xff] }
  0x3c   : > { %11894 = vmatmul.msk.f32.gmra.mxu3 %vm594_vm0, %v1460_v56 }
  0x41   : > { %11755 = vmatmul.msk.f32.gmra.mxu0 %vm594_vm0, %v547_v57  ;;  %v1474_v57 = vld [vmem:[%s13761_s26 + $0x8b] sm:$0xff] }
  0x42   : > { %11795 = vmatmul.msk.f32.gmra.mxu1 %vm594_vm0, %v497_v58  ;;  %11845 = vmatmul.msk.f32.gmra.mxu2 %vm594_vm0, %v1113_v59 }
  0x44   : > { %11895 = vmatmul.msk.f32.gmra.mxu3 %vm594_vm0, %v1461_v60 }
  0x49   : > { %11756 = vmatmul.msk.f32.gmra.mxu0 %vm594_vm0, %v548_v61 }
  0x4a   : > { %11796 = vmatmul.msk.f32.gmra.mxu1 %vm594_vm0, %v498_v62  ;;  %11846 = vmatmul.msk.f32.gmra.mxu2 %vm594_vm0, %v1114_v63  ;;  %v561_v63 = vld [vmem:[%s13761_s26 + $0x91] sm:$0xff] }
  0x4c   : > { %11896 = vmatmul.msk.f32.gmra.mxu3 %vm594_vm0, %v1462_v0  ;;  %v511_v0 = vld [vmem:[%s13761_s26 + $0x90] sm:$0xff] }
  0x51   : > { %11757 = vmatmul.msk.f32.gmra.mxu0 %vm594_vm0, %v549_v1 }
  0x52   : > { %11797 = vmatmul.msk.f32.gmra.mxu1 %vm594_vm0, %v499_v2  ;;  %11847 = vmatmul.msk.f32.gmra.mxu2 %vm594_vm0, %v1115_v3  ;;  %v1127_v2 = vld [vmem:[%s13761_s26 + $0x92] sm:$0xff] }
  0x54   : > { %11897 = vmatmul.msk.f32.gmra.mxu3 %vm594_vm0, %v1463_v4  ;;  %v1475_v4 = vld [vmem:[%s13761_s26 + $0x93] sm:$0xff] }
  0x59   : > { %11758 = vmatmul.msk.f32.gmra.mxu0 %vm594_vm0, %v550_v5 }
  0x5a   : > { %11798 = vmatmul.msk.f32.gmra.mxu1 %vm594_vm0, %v500_v6  ;;  %11848 = vmatmul.msk.f32.gmra.mxu2 %vm594_vm0, %v1116_v7 }
  0x5c   : > { %11898 = vmatmul.msk.f32.gmra.mxu3 %vm594_vm0, %v1464_v8 }
  0x61   : > { %11759 = vmatmul.msk.f32.gmra.mxu0 %vm594_vm0, %v551_v9 }
  0x62   : > { %11799 = vmatmul.msk.f32.gmra.mxu1 %vm594_vm0, %v501_v10  ;;  %11849 = vmatmul.msk.f32.gmra.mxu2 %vm594_vm0, %v1117_v11  ;;  %v562_v10 = vld [vmem:[%s13761_s26 + $0x99] sm:$0xff] }
  0x63   : > { %v512_v11 = vld [vmem:[%s13761_s26 + $0x98] sm:$0xff] }
  0x64   : > { %11899 = vmatmul.msk.f32.gmra.mxu3 %vm594_vm0, %v1465_v12 }
  0x69   : > { %11760 = vmatmul.msk.f32.gmra.mxu0 %vm594_vm0, %v552_v13  ;;  %v1128_v13 = vld [vmem:[%s13761_s26 + $0x9a] sm:$0xff] }
  0x6a   : > { %11800 = vmatmul.msk.f32.gmra.mxu1 %vm594_vm0, %v502_v14  ;;  %11850 = vmatmul.msk.f32.gmra.mxu2 %vm594_vm0, %v1118_v15  ;;  %v1476_v15 = vld [vmem:[%s13761_s26 + $0x9b] sm:$0xff] }
  0x6c   : > { %11900 = vmatmul.msk.f32.gmra.mxu3 %vm594_vm0, %v1466_v16 }
  0x71   : > { %11761 = vmatmul.msk.f32.gmra.mxu0 %vm594_vm0, %v553_v17 }
  0x72   : > { %11801 = vmatmul.msk.f32.gmra.mxu1 %vm594_vm0, %v503_v18  ;;  %11851 = vmatmul.msk.f32.gmra.mxu2 %vm594_vm0, %v1119_v19 }
  0x74   : > { %11901 = vmatmul.msk.f32.gmra.mxu3 %vm594_vm0, %v1467_v20 }
  0x79   : > { %11762 = vmatmul.msk.f32.gmra.mxu0 %vm594_vm0, %v554_v21  ;;  %v563_v21 = vld [vmem:[%s13761_s26 + $0xa1] sm:$0xff] }
  0x7a   : > { %11802 = vmatmul.msk.f32.gmra.mxu1 %vm594_vm0, %v504_v22  ;;  %11852 = vmatmul.msk.f32.gmra.mxu2 %vm594_vm0, %v1120_v23  ;;  %v513_v22 = vld [vmem:[%s13761_s26 + $0xa0] sm:$0xff] }
  0x7c   : > { %11902 = vmatmul.msk.f32.gmra.mxu3 %vm594_vm0, %v1468_v24  ;;  %v1129_v24 = vld [vmem:[%s13761_s26 + $0xa2] sm:$0xff] }
  0x81   : > { %11763 = vmatmul.msk.f32.gmra.mxu0 %vm594_vm0, %v555_v25 }
  0x82   : > { %11803 = vmatmul.msk.f32.gmra.mxu1 %vm594_vm0, %v505_v26  ;;  %11853 = vmatmul.msk.f32.gmra.mxu2 %vm594_vm0, %v1121_v27  ;;  %v1477_v26 = vld [vmem:[%s13761_s26 + $0xa3] sm:$0xff] }
  0x84   : > { %11903 = vmatmul.msk.f32.gmra.mxu3 %vm594_vm0, %v1469_v28 }
  0x89   : > { %11764 = vmatmul.msk.f32.gmra.mxu0 %vm594_vm0, %v556_v29 }
  0x8a   : > { %11804 = vmatmul.msk.f32.gmra.mxu1 %vm594_vm0, %v506_v30  ;;  %11854 = vmatmul.msk.f32.gmra.mxu2 %vm594_vm0, %v1122_v31 }
  0x8c   : > { %11904 = vmatmul.msk.f32.gmra.mxu3 %vm594_vm0, %v1470_v32  ;;  %v564_v32 = vld [vmem:[%s13761_s26 + $0xa9] sm:$0xff] }
  0x91   : > { %11765 = vmatmul.msk.f32.gmra.mxu0 %vm594_vm0, %v557_v33  ;;  %v514_v33 = vld [vmem:[%s13761_s26 + $0xa8] sm:$0xff] }
  0x92   : > { %11805 = vmatmul.msk.f32.gmra.mxu1 %vm594_vm0, %v507_v34  ;;  %11855 = vmatmul.msk.f32.gmra.mxu2 %vm594_vm0, %v1123_v35  ;;  %v1130_v35 = vld [vmem:[%s13761_s26 + $0xaa] sm:$0xff] }
  0x94   : > { %11905 = vmatmul.msk.f32.gmra.mxu3 %vm594_vm0, %v1471_v36 }
  0x99   : > { %11766 = vmatmul.msk.f32.gmra.mxu0 %vm594_vm0, %v558_v37  ;;  %v1478_v37 = vld [vmem:[%s13761_s26 + $0xab] sm:$0xff] }
  0x9a   : > { %11806 = vmatmul.msk.f32.gmra.mxu1 %vm594_vm0, %v508_v38  ;;  %11856 = vmatmul.msk.f32.gmra.mxu2 %vm594_vm0, %v1124_v39 }
  0x9c   : > { %11906 = vmatmul.msk.f32.gmra.mxu3 %vm594_vm0, %v1472_v40 }
  0x9e   : > { %v732_v41 = vpop.f32.mrf.mxu0 }
  0x9f   : > { %v989_v42 = vpop.f32.mrf.mxu1 }
  0xa0   : > { %v990_v47 = vadd.f32 %v989_v42, %v732_v41 }
  0xa1   : > { %11767 = vmatmul.msk.f32.gmra.mxu0 %vm594_vm0, %v559_v43  ;;  %v565_v43 = vld [vmem:[%s13761_s26 + $0xb1] sm:$0xff] }
  0xa2   : > { %11807 = vmatmul.msk.f32.gmra.mxu1 %vm594_vm0, %v509_v44  ;;  %11857 = vmatmul.msk.f32.gmra.mxu2 %vm594_vm0, %v1125_v45  ;;  %v515_v44 = vld [vmem:[%s13761_s26 + $0xb0] sm:$0xff] }
  0xa4   : > { %11907 = vmatmul.msk.f32.gmra.mxu3 %vm594_vm0, %v1473_v46  ;;  %v1131_v46 = vld [vmem:[%s13761_s26 + $0xb2] sm:$0xff] }
  0xa5   : > { %v1297_v48 = vpop.f32.mrf.mxu2 }
  0xa6   : > { %v1417_v49 = vadd.f32 %v1297_v48, %v990_v47  ;;  %v735_v50 = vpop.f32.mrf.mxu0  ;;  %v1479_v48 = vld [vmem:[%s13761_s26 + $0xb3] sm:$0xff] }
  0xa7   : > { %v992_v51 = vpop.f32.mrf.mxu1  ;;  %v1645_v54 = vpop.f32.mrf.mxu3 }
  0xa8   : > { %v13917_v56 = vadd.f32 %v1645_v54, %v1417_v49  ;;  %v993_v58 = vadd.f32 %v992_v51, %v735_v50  ;;  %v566_v54 = vld [vmem:[%s13761_s26 + $0xb9] sm:$0xff] }
  0xa9   : > { %11768 = vmatmul.msk.f32.gmra.mxu0 %vm594_vm0, %v560_v52 }
  0xaa   : > { %11808 = vmatmul.msk.f32.gmra.mxu1 %vm594_vm0, %v510_v53  ;;  %11858 = vmatmul.msk.f32.gmra.mxu2 %vm594_vm0, %v1126_v55  ;;  %v516_v55 = vld [vmem:[%s13761_s26 + $0xb8] sm:$0xff] }
  0xac   : > { %11908 = vmatmul.msk.f32.gmra.mxu3 %vm594_vm0, %v1474_v57 }
  0xad   : > { %v1300_v59 = vpop.f32.mrf.mxu2 }
  0xae   : > { %v1418_v60 = vadd.f32 %v1300_v59, %v993_v58  ;;  %v738_v61 = vpop.f32.mrf.mxu0  ;;  %v1132_v58 = vld [vmem:[%s13761_s26 + $0xba] sm:$0xff] }
  0xaf   : > { %v995_v62 = vpop.f32.mrf.mxu1  ;;  %v1648_v1 = vpop.f32.mrf.mxu3 }
  0xb0   : > { %v13927_v3 = vadd.f32 %v1648_v1, %v1418_v60  ;;  %v996_v5 = vadd.f32 %v995_v62, %v738_v61  ;;  %v1480_v60 = vld [vmem:[%s13761_s26 + $0xbb] sm:$0xff] }
  0xb1   : > { %11769 = vmatmul.msk.f32.gmra.mxu0 %vm594_vm0, %v561_v63 }
  0xb2   : > { %11809 = vmatmul.msk.f32.gmra.mxu1 %vm594_vm0, %v511_v0  ;;  %11859 = vmatmul.msk.f32.gmra.mxu2 %vm594_vm0, %v1127_v2  ;;  %v567_v2 = vld [vmem:[%s13761_s26 + $0xc1] sm:$0xff] }
  0xb4   : > { %11909 = vmatmul.msk.f32.gmra.mxu3 %vm594_vm0, %v1475_v4  ;;  %v517_v4 = vld [vmem:[%s13761_s26 + $0xc0] sm:$0xff] }
  0xb5   : > { %v1303_v6 = vpop.f32.mrf.mxu2 }
  0xb6   : > { %v1419_v7 = vadd.f32 %v1303_v6, %v996_v5  ;;  %v741_v8 = vpop.f32.mrf.mxu0  ;;  %v1133_v6 = vld [vmem:[%s13761_s26 + $0xc2] sm:$0xff] }
  0xb7   : > { %v998_v9 = vpop.f32.mrf.mxu1  ;;  %v1651_v12 = vpop.f32.mrf.mxu3 }
  0xb8   : > { %v13937_v14 = vadd.f32 %v1651_v12, %v1419_v7  ;;  %v999_v16 = vadd.f32 %v998_v9, %v741_v8  ;;  %v1481_v8 = vld [vmem:[%s13761_s26 + $0xc3] sm:$0xff] }
  0xb9   : > { %11770 = vmatmul.msk.f32.gmra.mxu0 %vm594_vm0, %v562_v10 }
  0xba   : > { %11810 = vmatmul.msk.f32.gmra.mxu1 %vm594_vm0, %v512_v11  ;;  %11860 = vmatmul.msk.f32.gmra.mxu2 %vm594_vm0, %v1128_v13 }
  0xbc   : > { %11910 = vmatmul.msk.f32.gmra.mxu3 %vm594_vm0, %v1476_v15  ;;  %v568_v15 = vld [vmem:[%s13761_s26 + $0xc9] sm:$0xff] }
  0xbd   : > { %v1306_v17 = vpop.f32.mrf.mxu2 }
  0xbe   : > { %v1420_v18 = vadd.f32 %v1306_v17, %v999_v16  ;;  %v744_v19 = vpop.f32.mrf.mxu0  ;;  %v518_v16 = vld [vmem:[%s13761_s26 + $0xc8] sm:$0xff] }
  0xbf   : > { %v1001_v20 = vpop.f32.mrf.mxu1  ;;  %v1654_v23 = vpop.f32.mrf.mxu3 }
  0xc0   : > { %v13947_v25 = vadd.f32 %v1654_v23, %v1420_v18  ;;  %v1002_v27 = vadd.f32 %v1001_v20, %v744_v19  ;;  %v1134_v18 = vld [vmem:[%s13761_s26 + $0xca] sm:$0xff] }
  0xc1   : > { %11771 = vmatmul.msk.f32.gmra.mxu0 %vm594_vm0, %v563_v21  ;;  %v1482_v20 = vld [vmem:[%s13761_s26 + $0xcb] sm:$0xff] }
  0xc2   : > { %11811 = vmatmul.msk.f32.gmra.mxu1 %vm594_vm0, %v513_v22  ;;  %11861 = vmatmul.msk.f32.gmra.mxu2 %vm594_vm0, %v1129_v24 }
  0xc4   : > { %11911 = vmatmul.msk.f32.gmra.mxu3 %vm594_vm0, %v1477_v26 }
  0xc5   : > { %v1309_v28 = vpop.f32.mrf.mxu2 }
  0xc6   : > { %v1421_v29 = vadd.f32 %v1309_v28, %v1002_v27  ;;  %v747_v30 = vpop.f32.mrf.mxu0  ;;  %v569_v27 = vld [vmem:[%s13761_s26 + $0xd1] sm:$0xff] }
  0xc7   : > { %v1004_v31 = vpop.f32.mrf.mxu1  ;;  %v1657_v34 = vpop.f32.mrf.mxu3  ;;  %v519_v28 = vld [vmem:[%s13761_s26 + $0xd0] sm:$0xff] }
  0xc8   : > { %v13957_v36 = vadd.f32 %v1657_v34, %v1421_v29  ;;  %v1005_v38 = vadd.f32 %v1004_v31, %v747_v30  ;;  %v1135_v30 = vld [vmem:[%s13761_s26 + $0xd2] sm:$0xff] }
  0xc9   : > { %11772 = vmatmul.msk.f32.gmra.mxu0 %vm594_vm0, %v564_v32  ;;  %v1483_v32 = vld [vmem:[%s13761_s26 + $0xd3] sm:$0xff] }
  0xca   : > { %11812 = vmatmul.msk.f32.gmra.mxu1 %vm594_vm0, %v514_v33  ;;  %11862 = vmatmul.msk.f32.gmra.mxu2 %vm594_vm0, %v1130_v35 }
  0xcc   : > { %11912 = vmatmul.msk.f32.gmra.mxu3 %vm594_vm0, %v1478_v37 }
  0xcd   : > { %v1312_v39 = vpop.f32.mrf.mxu2 }
  0xce   : > { %v1422_v40 = vadd.f32 %v1312_v39, %v1005_v38  ;;  %v750_v41 = vpop.f32.mrf.mxu0  ;;  %v570_v39 = vld [vmem:[%s13761_s26 + $0xd9] sm:$0xff] }
  0xcf   : > { %v1007_v42 = vpop.f32.mrf.mxu1  ;;  %v1660_v45 = vpop.f32.mrf.mxu3 }
  0xd0   : > { %v13967_v47 = vadd.f32 %v1660_v45, %v1422_v40  ;;  %v1008_v49 = vadd.f32 %v1007_v42, %v750_v41  ;;  %v520_v40 = vld [vmem:[%s13761_s26 + $0xd8] sm:$0xff] }
  0xd1   : > { %11773 = vmatmul.msk.f32.gmra.mxu0 %vm594_vm0, %v565_v43  ;;  %v1136_v42 = vld [vmem:[%s13761_s26 + $0xda] sm:$0xff] }
  0xd2   : > { %11813 = vmatmul.msk.f32.gmra.mxu1 %vm594_vm0, %v515_v44  ;;  %11863 = vmatmul.msk.f32.gmra.mxu2 %vm594_vm0, %v1131_v46  ;;  %v1484_v44 = vld [vmem:[%s13761_s26 + $0xdb] sm:$0xff] }
  0xd4   : > { %11913 = vmatmul.msk.f32.gmra.mxu3 %vm594_vm0, %v1479_v48 }
  0xd5   : > { %v1315_v50 = vpop.f32.mrf.mxu2 }
  0xd6   : > { %v1423_v51 = vadd.f32 %v1315_v50, %v1008_v49  ;;  %v753_v52 = vpop.f32.mrf.mxu0 }
  0xd7   : > { %v1010_v53 = vpop.f32.mrf.mxu1  ;;  %v1663_v57 = vpop.f32.mrf.mxu3 }
  0xd8   : > { %v13977_v59 = vadd.f32 %v1663_v57, %v1423_v51  ;;  %v1011_v61 = vadd.f32 %v1010_v53, %v753_v52  ;;  %v571_v51 = vld [vmem:[%s13761_s26 + $0xe1] sm:$0xff] }
  0xd9   : > { %11774 = vmatmul.msk.f32.gmra.mxu0 %vm594_vm0, %v566_v54  ;;  %v521_v52 = vld [vmem:[%s13761_s26 + $0xe0] sm:$0xff] }
  0xda   : > { %11814 = vmatmul.msk.f32.gmra.mxu1 %vm594_vm0, %v516_v55  ;;  %11864 = vmatmul.msk.f32.gmra.mxu2 %vm594_vm0, %v1132_v58  ;;  %v1137_v54 = vld [vmem:[%s13761_s26 + $0xe2] sm:$0xff] }
  0xdb   : > { %v1485_v57 = vld [vmem:[%s13761_s26 + $0xe3] sm:$0xff] }
  0xdc   : > { %11914 = vmatmul.msk.f32.gmra.mxu3 %vm594_vm0, %v1480_v60 }
  0xdd   : > { %v1318_v62 = vpop.f32.mrf.mxu2 }
  0xde   : > { %v1424_v63 = vadd.f32 %v1318_v62, %v1011_v61  ;;  %v756_v0 = vpop.f32.mrf.mxu0 }
  0xdf   : > { %v1013_v1 = vpop.f32.mrf.mxu1  ;;  %v1666_v5 = vpop.f32.mrf.mxu3 }
  0xe0   : > { %v13987_v7 = vadd.f32 %v1666_v5, %v1424_v63  ;;  %v1014_v9 = vadd.f32 %v1013_v1, %v756_v0  ;;  %v572_v0 = vld [vmem:[%s13761_s26 + $0xe9] sm:$0xff] }
  0xe1   : > { %11775 = vmatmul.msk.f32.gmra.mxu0 %vm594_vm0, %v567_v2  ;;  %v522_v1 = vld [vmem:[%s13761_s26 + $0xe8] sm:$0xff] }
  0xe2   : > { %11815 = vmatmul.msk.f32.gmra.mxu1 %vm594_vm0, %v517_v4  ;;  %11865 = vmatmul.msk.f32.gmra.mxu2 %vm594_vm0, %v1133_v6  ;;  %v1138_v4 = vld [vmem:[%s13761_s26 + $0xea] sm:$0xff] }
  0xe3   : > { %v1486_v6 = vld [vmem:[%s13761_s26 + $0xeb] sm:$0xff] }
  0xe4   : > { %11915 = vmatmul.msk.f32.gmra.mxu3 %vm594_vm0, %v1481_v8 }
  0xe5   : > { %v1321_v10 = vpop.f32.mrf.mxu2 }
  0xe6   : > { %v1425_v11 = vadd.f32 %v1321_v10, %v1014_v9  ;;  %v759_v12 = vpop.f32.mrf.mxu0 }
  0xe7   : > { %v1016_v13 = vpop.f32.mrf.mxu1  ;;  %v1669_v17 = vpop.f32.mrf.mxu3 }
  0xe8   : > { %v13997_v19 = vadd.f32 %v1669_v17, %v1425_v11  ;;  %v1017_v21 = vadd.f32 %v1016_v13, %v759_v12  ;;  %v573_v13 = vld [vmem:[%s13761_s26 + $0xf1] sm:$0xff] }
  0xe9   : > { %11776 = vmatmul.msk.f32.gmra.mxu0 %vm594_vm0, %v568_v15  ;;  %v523_v15 = vld [vmem:[%s13761_s26 + $0xf0] sm:$0xff] }
  0xea   : > { %11816 = vmatmul.msk.f32.gmra.mxu1 %vm594_vm0, %v518_v16  ;;  %11866 = vmatmul.msk.f32.gmra.mxu2 %vm594_vm0, %v1134_v18  ;;  %v1139_v17 = vld [vmem:[%s13761_s26 + $0xf2] sm:$0xff] }
  0xec   : > { %11916 = vmatmul.msk.f32.gmra.mxu3 %vm594_vm0, %v1482_v20  ;;  %v1487_v20 = vld [vmem:[%s13761_s26 + $0xf3] sm:$0xff] }
  0xed   : > { %v1324_v22 = vpop.f32.mrf.mxu2 }
  0xee   : > { %v1426_v23 = vadd.f32 %v1324_v22, %v1017_v21  ;;  %v762_v24 = vpop.f32.mrf.mxu0 }
  0xef   : > { %v1019_v26 = vpop.f32.mrf.mxu1  ;;  %v1672_v29 = vpop.f32.mrf.mxu3 }
  0xf0   : > { %v14007_v31 = vadd.f32 %v1672_v29, %v1426_v23  ;;  %v1020_v33 = vadd.f32 %v1019_v26, %v762_v24 }
  0xf1   : > { %11777 = vmatmul.msk.f32.gmra.mxu0 %vm594_vm0, %v569_v27  ;;  %v574_v27 = vld [vmem:[%s13761_s26 + $0xf9] sm:$0xff] }
  0xf2   : > { %11817 = vmatmul.msk.f32.gmra.mxu1 %vm594_vm0, %v519_v28  ;;  %11867 = vmatmul.msk.f32.gmra.mxu2 %vm594_vm0, %v1135_v30  ;;  %v524_v28 = vld [vmem:[%s13761_s26 + $0xf8] sm:$0xff] }
  0xf3   : > { %v1140_v30 = vld [vmem:[%s13761_s26 + $0xfa] sm:$0xff] }
  0xf4   : > { %11917 = vmatmul.msk.f32.gmra.mxu3 %vm594_vm0, %v1483_v32 }
  0xf5   : > { %v1327_v34 = vpop.f32.mrf.mxu2 }
  0xf6   : > { %v1427_v35 = vadd.f32 %v1327_v34, %v1020_v33  ;;  %v765_v37 = vpop.f32.mrf.mxu0  ;;  %v1488_v33 = vld [vmem:[%s13761_s26 + $0xfb] sm:$0xff] }
  0xf7   : > { %v1022_v38 = vpop.f32.mrf.mxu1  ;;  %v1675_v41 = vpop.f32.mrf.mxu3 }
  0xf8   : > { %v14017_v43 = vadd.f32 %v1675_v41, %v1427_v35  ;;  %v1023_v45 = vadd.f32 %v1022_v38, %v765_v37  ;;  %v525_v41 = vld [vmem:[%s13761_s26 + $0x100] sm:$0xff] }
  0xf9   : > { %11778 = vmatmul.msk.f32.gmra.mxu0 %vm594_vm0, %v570_v39 }
  0xfa   : > { %11818 = vmatmul.msk.f32.gmra.mxu1 %vm594_vm0, %v520_v40  ;;  %11868 = vmatmul.msk.f32.gmra.mxu2 %vm594_vm0, %v1136_v42  ;;  %v575_v40 = vld [vmem:[%s13761_s26 + $0x101] sm:$0xff] }
  0xfc   : > { %11918 = vmatmul.msk.f32.gmra.mxu3 %vm594_vm0, %v1484_v44  ;;  %v1141_v44 = vld [vmem:[%s13761_s26 + $0x102] sm:$0xff] }
  0xfd   : > { %v1330_v46 = vpop.f32.mrf.mxu2 }
  0xfe   : > { %v1428_v48 = vadd.f32 %v1330_v46, %v1023_v45  ;;  %v768_v49 = vpop.f32.mrf.mxu0  ;;  %v1489_v46 = vld [vmem:[%s13761_s26 + $0x103] sm:$0xff] }
  0xff   : > { %v1025_v50 = vpop.f32.mrf.mxu1  ;;  %v1678_v53 = vpop.f32.mrf.mxu3 }
 0x100   : > { %v14027_v55 = vadd.f32 %v1678_v53, %v1428_v48  ;;  %v1026_v58 = vadd.f32 %v1025_v50, %v768_v49  ;;  %v576_v53 = vld [vmem:[%s13761_s26 + $0x109] sm:$0xff] }
 0x101   : > { %11779 = vmatmul.msk.f32.gmra.mxu0 %vm594_vm0, %v571_v51 }
 0x102   : > { %11819 = vmatmul.msk.f32.gmra.mxu1 %vm594_vm0, %v521_v52  ;;  %11869 = vmatmul.msk.f32.gmra.mxu2 %vm594_vm0, %v1137_v54  ;;  %v526_v54 = vld [vmem:[%s13761_s26 + $0x108] sm:$0xff] }
 0x104   : > { %11919 = vmatmul.msk.f32.gmra.mxu3 %vm594_vm0, %v1485_v57 }
 0x105   : > { %v1333_v60 = vpop.f32.mrf.mxu2 }
 0x106   : > { %v1429_v61 = vadd.f32 %v1333_v60, %v1026_v58  ;;  %v771_v62 = vpop.f32.mrf.mxu0  ;;  %v1142_v58 = vld [vmem:[%s13761_s26 + $0x10a] sm:$0xff] }
 0x107   : > { %v1028_v63 = vpop.f32.mrf.mxu1  ;;  %v1681_v2 = vpop.f32.mrf.mxu3 }
 0x108   : > { %v14037_v5 = vadd.f32 %v1681_v2, %v1429_v61  ;;  %v1029_v8 = vadd.f32 %v1028_v63, %v771_v62  ;;  %v1490_v61 = vld [vmem:[%s13761_s26 + $0x10b] sm:$0xff] }
 0x109   : > { %11780 = vmatmul.msk.f32.gmra.mxu0 %vm594_vm0, %v572_v0  ;;  %v577_v0 = vld [vmem:[%s13761_s26 + $0x111] sm:$0xff] }
 0x10a   : > { %11820 = vmatmul.msk.f32.gmra.mxu1 %vm594_vm0, %v522_v1  ;;  %11870 = vmatmul.msk.f32.gmra.mxu2 %vm594_vm0, %v1138_v4 }
 0x10c   : > { %11920 = vmatmul.msk.f32.gmra.mxu3 %vm594_vm0, %v1486_v6  ;;  %v527_v6 = vld [vmem:[%s13761_s26 + $0x110] sm:$0xff] }
 0x10d   : > { %v1336_v9 = vpop.f32.mrf.mxu2 }
 0x10e   : > { %v1430_v10 = vadd.f32 %v1336_v9, %v1029_v8  ;;  %v774_v11 = vpop.f32.mrf.mxu0  ;;  %v11940_v8 = vld [vmem:[%s19629_s1 + $0x188] sm:$0xff] }
 0x10f   : > { %v1031_v12 = vpop.f32.mrf.mxu1  ;;  %v1684_v16 = vpop.f32.mrf.mxu3  ;;  %v12040_v9 = vld [vmem:[%s19629_s1 + $0x228] sm:$0xff]  ;;  %1982 = vmatpush.msrb.mxu0 %v11940_v8  ;;  %v529_v8 = vld [vmem:[%s13761_s26 + $0x120] sm:$0xff] }
 0x110   : > { %v14047_v18 = vadd.f32 %v1684_v16, %v1430_v10  ;;  %v1032_v21 = vadd.f32 %v1031_v12, %v774_v11  ;;  %v1143_v11 = vld [vmem:[%s13761_s26 + $0x112] sm:$0xff]  ;;  %2678 = vmatpush.msrb.mxu2 %v12040_v9 }
 0x111   : > { %11781 = vmatmul.msk.f32.gmra.mxu0 %vm594_vm0, %v573_v13  ;;  %v1491_v13 = vld [vmem:[%s13761_s26 + $0x113] sm:$0xff] }
 0x112   : > { %11821 = vmatmul.msk.f32.gmra.mxu1 %vm594_vm0, %v523_v15  ;;  %11871 = vmatmul.msk.f32.gmra.mxu2 %vm594_vm0, %v1139_v17  ;;  %v11939_v15 = vld [vmem:[%s19629_s1 + $0x180] sm:$0xff]  ;;  %v11990_v16 = vld [vmem:[%s19629_s1 + $0x1d8] sm:$0xff] }
 0x113   : > { %v12039_v17 = vld [vmem:[%s19629_s1 + $0x220] sm:$0xff]  ;;  %1983 = vmatpush.msrb.mxu0 %v11939_v15  ;;  %2330 = vmatpush.msrb.mxu1 %v11990_v16  ;;  %v11984_v16 = vld [vmem:[%s19629_s1 + $0x1a8] sm:$0xff] }
 0x114   : > { %11921 = vmatmul.msk.f32.gmra.mxu3 %vm594_vm0, %v1487_v20  ;;  %v12090_v20 = vld [vmem:[%s19629_s1 + $0x278] sm:$0xff]  ;;  %2679 = vmatpush.msrb.mxu2 %v12039_v17  ;;  %v1493_v15 = vld [vmem:[%s13761_s26 + $0x123] sm:$0xff]  ;;  %v12033_v17 = vld [vmem:[%s19629_s1 + $0x1f0] sm:$0xff] }
 0x115   : > { %v1339_v22 = vpop.f32.mrf.mxu2  ;;  %3026 = vmatpush.msrb.mxu3 %v12090_v20  ;;  %v12084_v20 = vld [vmem:[%s19629_s1 + $0x248] sm:$0xff] }
 0x116   : > { %v1431_v23 = vadd.f32 %v1339_v22, %v1032_v21  ;;  %v777_v24 = vpop.f32.mrf.mxu0  ;;  %v11938_v21 = vld [vmem:[%s19629_s1 + $0x178] sm:$0xff]  ;;  %v11989_v22 = vld [vmem:[%s19629_s1 + $0x1d0] sm:$0xff] }
 0x117   : > { %v1034_v26 = vpop.f32.mrf.mxu1  ;;  %v1687_v29 = vpop.f32.mrf.mxu3  ;;  %1984 = vmatpush.msrb.mxu0 %v11938_v21  ;;  %2331 = vmatpush.msrb.mxu1 %v11989_v22  ;;  %v11932_v21 = vld [vmem:[%s19629_s1 + $0x148] sm:$0xff]  ;;  %v11983_v22 = vld [vmem:[%s19629_s1 + $0x1a0] sm:$0xff] }
 0x118   : > { %v14057_v32 = vadd.f32 %v1687_v29, %v1431_v23  ;;  %v1035_v34 = vadd.f32 %v1034_v26, %v777_v24  ;;  %v12038_v23 = vld [vmem:[%s19629_s1 + $0x218] sm:$0xff]  ;;  %v12089_v24 = vld [vmem:[%s19629_s1 + $0x270] sm:$0xff] }
 0x119   : > { %11782 = vmatmul.msk.f32.gmra.mxu0 %vm594_vm0, %v574_v27  ;;  %v11937_v27 = vld [vmem:[%s19629_s1 + $0x170] sm:$0xff]  ;;  %2680 = vmatpush.msrb.mxu2 %v12038_v23  ;;  %v12032_v23 = vld [vmem:[%s19629_s1 + $0x1e8] sm:$0xff] }
 0x11a   : > { %11822 = vmatmul.msk.f32.gmra.mxu1 %vm594_vm0, %v524_v28  ;;  %11872 = vmatmul.msk.f32.gmra.mxu2 %vm594_vm0, %v1140_v30  ;;  %v11988_v28 = vld [vmem:[%s19629_s1 + $0x1c8] sm:$0xff]  ;;  %v12037_v30 = vld [vmem:[%s19629_s1 + $0x210] sm:$0xff] }
 0x11b   : > { %3027 = vmatpush.msrb.mxu3 %v12089_v24  ;;  %1985 = vmatpush.msrb.mxu0 %v11937_v27  ;;  %v12083_v24 = vld [vmem:[%s19629_s1 + $0x240] sm:$0xff] }
 0x11c   : > { %11922 = vmatmul.msk.f32.gmra.mxu3 %vm594_vm0, %v1488_v33  ;;  %v12088_v33 = vld [vmem:[%s19629_s1 + $0x268] sm:$0xff]  ;;  %2332 = vmatpush.msrb.mxu1 %v11988_v28  ;;  %v11931_v27 = vld [vmem:[%s19629_s1 + $0x140] sm:$0xff]  ;;  %v11982_v28 = vld [vmem:[%s19629_s1 + $0x198] sm:$0xff] }
 0x11d   : > { %v1342_v35 = vpop.f32.mrf.mxu2  ;;  %2681 = vmatpush.msrb.mxu2 %v12037_v30  ;;  %3028 = vmatpush.msrb.mxu3 %v12088_v33  ;;  %v12031_v30 = vld [vmem:[%s19629_s1 + $0x1e0] sm:$0xff]  ;;  %v12082_v33 = vld [vmem:[%s19629_s1 + $0x238] sm:$0xff] }
 0x11e   : > { %v1432_v37 = vadd.f32 %v1342_v35, %v1035_v34  ;;  %v780_v38 = vpop.f32.mrf.mxu0 }
 0x11f   : > { %v1037_v39 = vpop.f32.mrf.mxu1  ;;  %v1690_v42 = vpop.f32.mrf.mxu3 }
 0x120   : > { %v14067_v45 = vadd.f32 %v1690_v42, %v1432_v37  ;;  %v1038_v48 = vadd.f32 %v1037_v39, %v780_v38  ;;  %v578_v38 = vld [vmem:[%s13761_s26 + $0x119] sm:$0xff]  ;;  %v11936_v42 = vld [vmem:[%s19629_s1 + $0x168] sm:$0xff] }
 0x121   : > { %11783 = vmatmul.msk.f32.gmra.mxu0 %vm594_vm0, %v575_v40  ;;  %v528_v39 = vld [vmem:[%s13761_s26 + $0x118] sm:$0xff] }
 0x122   : > { %11823 = vmatmul.msk.f32.gmra.mxu1 %vm594_vm0, %v525_v41  ;;  %11873 = vmatmul.msk.f32.gmra.mxu2 %vm594_vm0, %v1141_v44  ;;  %v1144_v41 = vld [vmem:[%s13761_s26 + $0x11a] sm:$0xff] }
 0x123   : > { %1986 = vmatpush.msrb.mxu0 %v11936_v42  ;;  %v11981_v42 = vld [vmem:[%s19629_s1 + $0x190] sm:$0xff] }
 0x124   : > { %11923 = vmatmul.msk.f32.gmra.mxu3 %vm594_vm0, %v1489_v46  ;;  %v1492_v46 = vld [vmem:[%s13761_s26 + $0x11b] sm:$0xff] }
 0x125   : > { %v1345_v49 = vpop.f32.mrf.mxu2 }
 0x126   : > { %v1433_v50 = vadd.f32 %v1345_v49, %v1038_v48  ;;  %v783_v51 = vpop.f32.mrf.mxu0  ;;  %v11987_v48 = vld [vmem:[%s19629_s1 + $0x1c0] sm:$0xff]  ;;  %v12036_v49 = vld [vmem:[%s19629_s1 + $0x208] sm:$0xff] }
 0x127   : > { %v1040_v52 = vpop.f32.mrf.mxu1  ;;  %v1693_v57 = vpop.f32.mrf.mxu3  ;;  %2333 = vmatpush.msrb.mxu1 %v11987_v48  ;;  %2682 = vmatpush.msrb.mxu2 %v12036_v49  ;;  %v1494_v48 = vld [vmem:[%s13761_s26 + $0x12b] sm:$0xff] }
 0x128   : > { %v14077_v60 = vadd.f32 %v1693_v57, %v1433_v50  ;;  %v1041_v62 = vadd.f32 %v1040_v52, %v783_v51  ;;  %v12087_v50 = vld [vmem:[%s19629_s1 + $0x260] sm:$0xff]  ;;  %v11986_v52 = vld [vmem:[%s19629_s1 + $0x1b8] sm:$0xff]  ;;  %v12081_v49 = vld [vmem:[%s19629_s1 + $0x230] sm:$0xff] }
 0x129   : > { %11784 = vmatmul.msk.f32.gmra.mxu0 %vm594_vm0, %v576_v53  ;;  %v11935_v51 = vld [vmem:[%s19629_s1 + $0x160] sm:$0xff]  ;;  %3029 = vmatpush.msrb.mxu3 %v12087_v50 }
 0x12a   : > { %11824 = vmatmul.msk.f32.gmra.mxu1 %vm594_vm0, %v526_v54  ;;  %11874 = vmatmul.msk.f32.gmra.mxu2 %vm594_vm0, %v1142_v58  ;;  %v12035_v53 = vld [vmem:[%s19629_s1 + $0x200] sm:$0xff]  ;;  %v12086_v54 = vld [vmem:[%s19629_s1 + $0x258] sm:$0xff] }
 0x12b   : > { %v11934_v58 = vld [vmem:[%s19629_s1 + $0x158] sm:$0xff]  ;;  %1987 = vmatpush.msrb.mxu0 %v11935_v51  ;;  %2334 = vmatpush.msrb.mxu1 %v11986_v52 }
 0x12c   : > { %11924 = vmatmul.msk.f32.gmra.mxu3 %vm594_vm0, %v1490_v61  ;;  %v11985_v61 = vld [vmem:[%s19629_s1 + $0x1b0] sm:$0xff]  ;;  %2683 = vmatpush.msrb.mxu2 %v12035_v53 }
 0x12d   : > { %v1348_v63 = vpop.f32.mrf.mxu2  ;;  %3030 = vmatpush.msrb.mxu3 %v12086_v54  ;;  %1988 = vmatpush.msrb.mxu0 %v11934_v58  ;;  %v531_v58 = vld [vmem:[%s13761_s26 + $0x130] sm:$0xff] }
 0x12e   : > { %v1434_v1 = vadd.f32 %v1348_v63, %v1041_v62  ;;  %v786_v2 = vpop.f32.mrf.mxu0  ;;  %v12034_v63 = vld [vmem:[%s19629_s1 + $0x1f8] sm:$0xff]  ;;  %2335 = vmatpush.msrb.mxu1 %v11985_v61 }
 0x12f   : > { %v1043_v4 = vpop.f32.mrf.mxu1  ;;  %v1696_v10 = vpop.f32.mrf.mxu3  ;;  %2684 = vmatpush.msrb.mxu2 %v12034_v63 }
 0x130   : > { %v14093_v12 = vadd.f32 %v1696_v10, %v1434_v1  ;;  %v1044_v26 = vadd.f32 %v1043_v4, %v786_v2  ;;  %v1145_v10 = vld [vmem:[%s13761_s26 + $0x122] sm:$0xff]  ;;  %2336 = vmatpush.msrb.mxu1 %v11984_v16 }
 0x131   : > { %11785 = vmatmul.msk.f32.gmra.mxu0 %vm594_vm0, %v577_v0  ;;  %v12085_v0 = vld [vmem:[%s19629_s1 + $0x250] sm:$0xff]  ;;  %2685 = vmatpush.msrb.mxu2 %v12033_v17  ;;  %v1496_v17 = vld [vmem:[%s13761_s26 + $0x13b] sm:$0xf] }
 0x132   : > { %11825 = vmatmul.msk.f32.gmra.mxu1 %vm594_vm0, %v527_v6  ;;  %11875 = vmatmul.msk.f32.gmra.mxu2 %vm594_vm0, %v1143_v11  ;;  %v579_v6 = vld [vmem:[%s13761_s26 + $0x121] sm:$0xff]  ;;  %v11933_v11 = vld [vmem:[%s19629_s1 + $0x150] sm:$0xff] }
 0x133   : > { %3031 = vmatpush.msrb.mxu3 %v12085_v0  ;;  %1989 = vmatpush.msrb.mxu0 %v11933_v11  ;;  %v1495_v0 = vld [vmem:[%s13761_s26 + $0x133] sm:$0xff] }
 0x134   : > { %11925 = vmatmul.msk.f32.gmra.mxu3 %vm594_vm0, %v1491_v13  ;;  %2337 = vmatpush.msrb.mxu1 %v11983_v22 }
 0x135   : > { %v1351_v29 = vpop.f32.mrf.mxu2  ;;  %3032 = vmatpush.msrb.mxu3 %v12084_v20  ;;  %1990 = vmatpush.msrb.mxu0 %v11932_v21 }
 0x136   : > { %v1435_v34 = vadd.f32 %v1351_v29, %v1044_v26  ;;  %v789_v35 = vpop.f32.mrf.mxu0  ;;  %2686 = vmatpush.msrb.mxu2 %v12032_v23  ;;  %2338 = vmatpush.msrb.mxu1 %v11982_v28 }
 0x137   : > { %v1046_v37 = vpop.f32.mrf.mxu1  ;;  %v1699_v40 = vpop.f32.mrf.mxu3  ;;  %3033 = vmatpush.msrb.mxu3 %v12083_v24  ;;  %1991 = vmatpush.msrb.mxu0 %v11931_v27  ;;  %v2153_v27 = vld [vmem:[%s13761_s26 + $0x14] sm:$0xff] }
 0x138   : > { %v14142_v44 = vadd.f32 %v1699_v40, %v1435_v34  ;;  %v1047_v57 = vadd.f32 %v1046_v37, %v789_v35  ;;  %2687 = vmatpush.msrb.mxu2 %v12031_v30  ;;  %2339 = vmatpush.msrb.mxu1 %v11981_v42 }
 0x139   : > { %11786 = vmatmul.msk.f32.gmra.mxu0 %vm594_vm0, %v578_v38  ;;  %v580_v38 = vld [vmem:[%s13761_s26 + $0x129] sm:$0xff]  ;;  %3034 = vmatpush.msrb.mxu3 %v12082_v33  ;;  %v2849_v33 = vld [vmem:[%s13761_s26 + $0x16] sm:$0xff] }
 0x13a   : > { %11826 = vmatmul.msk.f32.gmra.mxu1 %vm594_vm0, %v528_v39  ;;  %11876 = vmatmul.msk.f32.gmra.mxu2 %vm594_vm0, %v1144_v41  ;;  %v530_v39 = vld [vmem:[%s13761_s26 + $0x128] sm:$0xff] }
 0x13b   : > { %v1146_v41 = vld [vmem:[%s13761_s26 + $0x12a] sm:$0xff]  ;;  %3035 = vmatpush.msrb.mxu3 %v12081_v49 }
 0x13c   : > { %11926 = vmatmul.msk.f32.gmra.mxu3 %vm594_vm0, %v1492_v46 }
 0x13d   : > { %v1354_v62 = vpop.f32.mrf.mxu2 }
 0x13e   : > { %v1436_v1 = vadd.f32 %v1354_v62, %v1047_v57  ;;  %v792_v2 = vpop.f32.mrf.mxu0  ;;  %v581_v57 = vld [vmem:[%s13761_s26 + $0x131] sm:$0xff] }
 0x13f   : > { %v1049_v4 = vpop.f32.mrf.mxu1  ;;  %v1702_v9 = vpop.f32.mrf.mxu3  ;;  %v1147_v62 = vld [vmem:[%s13761_s26 + $0x132] sm:$0xff] }
 0x140   : > { %v14188_v13 = vadd.f32 %v1702_v9, %v1436_v1  ;;  %v1050_v26 = vadd.f32 %v1049_v4, %v792_v2  ;;  %v582_v9 = vld [vmem:[%s13761_s26 + $0x139] sm:$0xf] }
 0x141   : > { %11787 = vmatmul.msk.f32.gmra.mxu0 %vm594_vm0, %v579_v6 }
 0x142   : > { %11827 = vmatmul.msk.f32.gmra.mxu1 %vm594_vm0, %v529_v8  ;;  %11877 = vmatmul.msk.f32.gmra.mxu2 %vm594_vm0, %v1145_v10  ;;  %v532_v10 = vld [vmem:[%s13761_s26 + $0x138] sm:$0xf] }
 0x144   : > { %11927 = vmatmul.msk.f32.gmra.mxu3 %vm594_vm0, %v1493_v15  ;;  %v1148_v15 = vld [vmem:[%s13761_s26 + $0x13a] sm:$0xf] }
 0x145   : > { %v1357_v29 = vpop.f32.mrf.mxu2 }
 0x146   : > { %v1437_v34 = vadd.f32 %v1357_v29, %v1050_v26  ;;  %v795_v35 = vpop.f32.mrf.mxu0  ;;  %v1805_v26 = vld [vmem:[%s13761_s26 + $0x4] sm:$0xff]  ;;  %v2501_v29 = vld [vmem:[%s13761_s26 + $0x15] sm:$0xff] }
 0x147   : > { %v1052_v37 = vpop.f32.mrf.mxu1  ;;  %v1705_v40 = vpop.f32.mrf.mxu3 }
 0x148   : > { %v14234_v46 = vadd.f32 %v1705_v40, %v1437_v34  ;;  %v1053_v50 = vadd.f32 %v1052_v37, %v795_v35  ;;  %v1806_v40 = vld [vmem:[%s13761_s26 + $0xc] sm:$0xff] }
 0x149   : > { %11788 = vmatmul.msk.f32.gmra.mxu0 %vm594_vm0, %v580_v38 }
 0x14a   : > { %11828 = vmatmul.msk.f32.gmra.mxu1 %vm594_vm0, %v530_v39  ;;  %11878 = vmatmul.msk.f32.gmra.mxu2 %vm594_vm0, %v1146_v41  ;;  %v2154_v41 = vld [vmem:[%s13761_s26 + $0x1c] sm:$0xff] }
 0x14c   : > { %11928 = vmatmul.msk.f32.gmra.mxu3 %vm594_vm0, %v1494_v48  ;;  %v2502_v48 = vld [vmem:[%s13761_s26 + $0x1d] sm:$0xff] }
 0x14d   : > { %v1360_v51 = vpop.f32.mrf.mxu2 }
 0x14e   : > { %v1438_v52 = vadd.f32 %v1360_v51, %v1053_v50  ;;  %v798_v53 = vpop.f32.mrf.mxu0  ;;  %v2850_v50 = vld [vmem:[%s13761_s26 + $0x1e] sm:$0xff] }
 0x14f   : > { %v1055_v54 = vpop.f32.mrf.mxu1  ;;  %v1708_v61 = vpop.f32.mrf.mxu3 }
 0x150   : > { %v14247_v63 = vadd.f32 %v1708_v61, %v1438_v52  ;;  %v1056_v1 = vadd.f32 %v1055_v54, %v798_v53 }
 0x151   : > { %11789 = vmatmul.msk.f32.gmra.mxu0 %vm594_vm0, %v581_v57 }
 0x152   : > { %11829 = vmatmul.msk.f32.gmra.mxu1 %vm594_vm0, %v531_v58  ;;  %11879 = vmatmul.msk.f32.gmra.mxu2 %vm594_vm0, %v1147_v62  ;;  %v2155_v58 = vld [vmem:[%s13761_s26 + $0x24] sm:$0xff] }
 0x153   : > { %v2503_v62 = vld [vmem:[%s13761_s26 + $0x25] sm:$0xff] }
 0x154   : > { %11929 = vmatmul.msk.f32.gmra.mxu3 %vm594_vm0, %v1495_v0 }
 0x155   : > { %v1363_v2 = vpop.f32.mrf.mxu2 }
 0x156   : > { %v1439_v4 = vadd.f32 %v1363_v2, %v1056_v1  ;;  %v801_v6 = vpop.f32.mrf.mxu0  ;;  %v2851_v1 = vld [vmem:[%s13761_s26 + $0x26] sm:$0xff] }
 0x157   : > { %v1058_v8 = vpop.f32.mrf.mxu1  ;;  %v1711_v11 = vpop.f32.mrf.mxu3 }
 0x158   : > { %v14257_v16 = vadd.f32 %v1711_v11, %v1439_v4  ;;  %v1059_v20 = vadd.f32 %v1058_v8, %v801_v6 }
 0x159   : > { %11790 = vmatmul.msk.f32.gmra.mxu0 %vm594_vm0, %v582_v9 }
 0x15a   : > { %11830 = vmatmul.msk.f32.gmra.mxu1 %vm594_vm0, %v532_v10  ;;  %11880 = vmatmul.msk.f32.gmra.mxu2 %vm594_vm0, %v1148_v15  ;;  %v2156_v10 = vld [vmem:[%s13761_s26 + $0x2c] sm:$0xff] }
 0x15b   : > { %v2504_v15 = vld [vmem:[%s13761_s26 + $0x2d] sm:$0xff] }
 0x15c   : > { %11930 = vmatmul.msk.f32.gmra.mxu3 %vm594_vm0, %v1496_v17 }
 0x15d   : > { %v1366_v21 = vpop.f32.mrf.mxu2 }
 0x15e   : > { %v1440_v22 = vadd.f32 %v1366_v21, %v1059_v20  ;;  %v804_v23 = vpop.f32.mrf.mxu0  ;;  %v2852_v20 = vld [vmem:[%s13761_s26 + $0x2e] sm:$0xff] }
 0x15f   : > { %v1061_v24 = vpop.f32.mrf.mxu1  ;;  %v1714_v28 = vpop.f32.mrf.mxu3 }
 0x160   : > { %v14267_v30 = vadd.f32 %v1714_v28, %v1440_v22  ;;  %v1062_v34 = vadd.f32 %v1061_v24, %v804_v23 }
 0x161   : > { %11941 = vmatmul.msk.f32.vlgmr.msrb.gmra.mxu0 %vm594_vm0, %v1805_v26 }
 0x162   : > { %11991 = vmatmul.msk.f32.vlgmr.msrb.gmra.mxu1 %vm594_vm0, %v2153_v27  ;;  %12041 = vmatmul.msk.f32.vlgmr.msrb.gmra.mxu2 %vm594_vm0, %v2501_v29  ;;  %v2505_v29 = vld [vmem:[%s13761_s26 + $0x35] sm:$0xff] }
 0x164   : > { %12091 = vmatmul.msk.f32.vlgmr.msrb.gmra.mxu3 %vm594_vm0, %v2849_v33 }
 0x165   : > { %v1369_v35 = vpop.f32.mrf.mxu2 }
 0x166   : > { %v1441_v37 = vadd.f32 %v1369_v35, %v1062_v34  ;;  %v807_v38 = vpop.f32.mrf.mxu0  ;;  %v2853_v34 = vld [vmem:[%s13761_s26 + $0x36] sm:$0xff] }
 0x167   : > { %v1064_v39 = vpop.f32.mrf.mxu1  ;;  %v1717_v42 = vpop.f32.mrf.mxu3 }
 0x168   : > { %v14277_v49 = vadd.f32 %v1717_v42, %v1441_v37  ;;  %v1065_v51 = vadd.f32 %v1064_v39, %v807_v38 }
 0x169   : > { %11942 = vmatmul.msk.f32.gmra.mxu0 %vm594_vm0, %v1806_v40 }
 0x16a   : > { %11992 = vmatmul.msk.f32.gmra.mxu1 %vm594_vm0, %v2154_v41  ;;  %12042 = vmatmul.msk.f32.gmra.mxu2 %vm594_vm0, %v2502_v48  ;;  %v2506_v48 = vld [vmem:[%s13761_s26 + $0x3d] sm:$0xff] }
 0x16c   : > { %12092 = vmatmul.msk.f32.gmra.mxu3 %vm594_vm0, %v2850_v50 }
 0x16d   : > { %v1372_v52 = vpop.f32.mrf.mxu2 }
 0x16e   : > { %v1442_v53 = vadd.f32 %v1372_v52, %v1065_v51  ;;  %v810_v54 = vpop.f32.mrf.mxu0  ;;  %v2854_v51 = vld [vmem:[%s13761_s26 + $0x3e] sm:$0xff] }
 0x16f   : > { %v1067_v57 = vpop.f32.mrf.mxu1  ;;  %v1720_v61 = vpop.f32.mrf.mxu3 }
 0x170   : > { %v14286_v0 = vadd.f32 %v1720_v61, %v1442_v53  ;;  %v1068_v2 = vadd.f32 %v1067_v57, %v810_v54  ;;  %v2159_v61 = vld [vmem:[%s13761_s26 + $0x44] sm:$0xff] }
 0x171   : > { %11943 = vmatmul.msk.f32.gmra.mxu0 %vm594_vm0, %v2153_v27  ;;  %v2157_v27 = vld [vmem:[%s13761_s26 + $0x34] sm:$0xff] }
 0x172   : > { %11993 = vmatmul.msk.f32.gmra.mxu1 %vm594_vm0, %v2155_v58  ;;  %12043 = vmatmul.msk.f32.gmra.mxu2 %vm594_vm0, %v2503_v62 }
 0x174   : > { %12093 = vmatmul.msk.f32.gmra.mxu3 %vm594_vm0, %v2851_v1  ;;  %v2507_v1 = vld [vmem:[%s13761_s26 + $0x45] sm:$0xff] }
 0x175   : > { %v1375_v4 = vpop.f32.mrf.mxu2 }
 0x176   : > { %v1443_v6 = vadd.f32 %v1375_v4, %v1068_v2  ;;  %v813_v8 = vpop.f32.mrf.mxu0  ;;  %v2855_v4 = vld [vmem:[%s13761_s26 + $0x46] sm:$0xff] }
 0x177   : > { %v1070_v9 = vpop.f32.mrf.mxu1  ;;  %v1723_v11 = vpop.f32.mrf.mxu3 }
 0x178   : > { %v14295_v17 = vadd.f32 %v1723_v11, %v1443_v6  ;;  %v1071_v21 = vadd.f32 %v1070_v9, %v813_v8 }
 0x179   : > { %11944 = vmatmul.msk.f32.gmra.mxu0 %vm594_vm0, %v2154_v41  ;;  %v2158_v41 = vld [vmem:[%s13761_s26 + $0x3c] sm:$0xff] }
 0x17a   : > { %11994 = vmatmul.msk.f32.gmra.mxu1 %vm594_vm0, %v2156_v10  ;;  %12044 = vmatmul.msk.f32.gmra.mxu2 %vm594_vm0, %v2504_v15  ;;  %v2160_v15 = vld [vmem:[%s13761_s26 + $0x4c] sm:$0xff] }
 0x17c   : > { %12094 = vmatmul.msk.f32.gmra.mxu3 %vm594_vm0, %v2852_v20 }
 0x17d   : > { %v1378_v22 = vpop.f32.mrf.mxu2 }
 0x17e   : > { %v1444_v23 = vadd.f32 %v1378_v22, %v1071_v21  ;;  %v816_v24 = vpop.f32.mrf.mxu0  ;;  %v2508_v21 = vld [vmem:[%s13761_s26 + $0x4d] sm:$0xff] }
 0x17f   : > { %v1073_v26 = vpop.f32.mrf.mxu1  ;;  %v1726_v28 = vpop.f32.mrf.mxu3 }
 0x180   : > { %v14304_v33 = vadd.f32 %v1726_v28, %v1444_v23  ;;  %v1074_v35 = vadd.f32 %v1073_v26, %v816_v24  ;;  %v2856_v23 = vld [vmem:[%s13761_s26 + $0x4e] sm:$0xff] }
 0x181   : > { %11945 = vmatmul.msk.f32.gmra.mxu0 %vm594_vm0, %v2155_v58 }
 0x182   : > { %11995 = vmatmul.msk.f32.gmra.mxu1 %vm594_vm0, %v2157_v27  ;;  %12045 = vmatmul.msk.f32.gmra.mxu2 %vm594_vm0, %v2505_v29 }
 0x184   : > { %12095 = vmatmul.msk.f32.gmra.mxu3 %vm594_vm0, %v2853_v34  ;;  %v2161_v34 = vld [vmem:[%s13761_s26 + $0x54] sm:$0xff] }
 0x185   : > { %v1381_v37 = vpop.f32.mrf.mxu2 }
 0x186   : > { %v1445_v38 = vadd.f32 %v1381_v37, %v1074_v35  ;;  %v819_v39 = vpop.f32.mrf.mxu0  ;;  %v2509_v37 = vld [vmem:[%s13761_s26 + $0x55] sm:$0xff] }
 0x187   : > { %v1076_v40 = vpop.f32.mrf.mxu1  ;;  %v1729_v42 = vpop.f32.mrf.mxu3 }
 0x188   : > { %v14313_v50 = vadd.f32 %v1729_v42, %v1445_v38  ;;  %v1077_v52 = vadd.f32 %v1076_v40, %v819_v39  ;;  %v2857_v39 = vld [vmem:[%s13761_s26 + $0x56] sm:$0xff] }
 0x189   : > { %11946 = vmatmul.msk.f32.gmra.mxu0 %vm594_vm0, %v2156_v10 }
 0x18a   : > { %11996 = vmatmul.msk.f32.gmra.mxu1 %vm594_vm0, %v2158_v41  ;;  %12046 = vmatmul.msk.f32.gmra.mxu2 %vm594_vm0, %v2506_v48 }
 0x18c   : > { %12096 = vmatmul.msk.f32.gmra.mxu3 %vm594_vm0, %v2854_v51 }
 0x18d   : > { %v1384_v53 = vpop.f32.mrf.mxu2 }
 0x18e   : > { %v1446_v54 = vadd.f32 %v1384_v53, %v1077_v52  ;;  %v822_v57 = vpop.f32.mrf.mxu0  ;;  %v2162_v52 = vld [vmem:[%s13761_s26 + $0x5c] sm:$0xff] }
 0x18f   : > { %v1079_v58 = vpop.f32.mrf.mxu1  ;;  %v1732_v62 = vpop.f32.mrf.mxu3 }
 0x190   : > { %v14322_v2 = vadd.f32 %v1732_v62, %v1446_v54  ;;  %v1080_v6 = vadd.f32 %v1079_v58, %v822_v57  ;;  %v2510_v54 = vld [vmem:[%s13761_s26 + $0x5d] sm:$0xff] }
 0x191   : > { %11947 = vmatmul.msk.f32.gmra.mxu0 %vm594_vm0, %v2157_v27  ;;  %v2858_v58 = vld [vmem:[%s13761_s26 + $0x5e] sm:$0xff] }
 0x192   : > { %11997 = vmatmul.msk.f32.gmra.mxu1 %vm594_vm0, %v2159_v61  ;;  %12047 = vmatmul.msk.f32.gmra.mxu2 %vm594_vm0, %v2507_v1 }
 0x194   : > { %12097 = vmatmul.msk.f32.gmra.mxu3 %vm594_vm0, %v2855_v4 }
 0x195   : > { %v1387_v8 = vpop.f32.mrf.mxu2 }
 0x196   : > { %v1447_v9 = vadd.f32 %v1387_v8, %v1080_v6  ;;  %v825_v10 = vpop.f32.mrf.mxu0  ;;  %v2163_v8 = vld [vmem:[%s13761_s26 + $0x64] sm:$0xff] }
 0x197   : > { %v1082_v11 = vpop.f32.mrf.mxu1  ;;  %v1735_v20 = vpop.f32.mrf.mxu3 }
 0x198   : > { %v14331_v22 = vadd.f32 %v1735_v20, %v1447_v9  ;;  %v1083_v24 = vadd.f32 %v1082_v11, %v825_v10  ;;  %v2511_v10 = vld [vmem:[%s13761_s26 + $0x65] sm:$0xff] }
 0x199   : > { %11948 = vmatmul.msk.f32.gmra.mxu0 %vm594_vm0, %v2158_v41 }
 0x19a   : > { %11998 = vmatmul.msk.f32.gmra.mxu1 %vm594_vm0, %v2160_v15  ;;  %12048 = vmatmul.msk.f32.gmra.mxu2 %vm594_vm0, %v2508_v21 }
 0x19c   : > { %12098 = vmatmul.msk.f32.gmra.mxu3 %vm594_vm0, %v2856_v23 }
 0x19d   : > { %v1390_v26 = vpop.f32.mrf.mxu2 }
 0x19e   : > { %v1448_v27 = vadd.f32 %v1390_v26, %v1083_v24  ;;  %v828_v28 = vpop.f32.mrf.mxu0 }
 0x19f   : > { %v1085_v29 = vpop.f32.mrf.mxu1  ;;  %v1738_v35 = vpop.f32.mrf.mxu3 }
 0x1a0   : > { %v14340_v38 = vadd.f32 %v1738_v35, %v1448_v27  ;;  %v1086_v40 = vadd.f32 %v1085_v29, %v828_v28  ;;  %v2164_v27 = vld [vmem:[%s13761_s26 + $0x6c] sm:$0xff] }
 0x1a1   : > { %11949 = vmatmul.msk.f32.gmra.mxu0 %vm594_vm0, %v2159_v61  ;;  %v2512_v29 = vld [vmem:[%s13761_s26 + $0x6d] sm:$0xff] }
 0x1a2   : > { %11999 = vmatmul.msk.f32.gmra.mxu1 %vm594_vm0, %v2161_v34  ;;  %12049 = vmatmul.msk.f32.gmra.mxu2 %vm594_vm0, %v2509_v37 }
 0x1a4   : > { %12099 = vmatmul.msk.f32.gmra.mxu3 %vm594_vm0, %v2857_v39 }
 0x1a5   : > { %v1393_v41 = vpop.f32.mrf.mxu2 }
 0x1a6   : > { %v1449_v42 = vadd.f32 %v1393_v41, %v1086_v40  ;;  %v831_v48 = vpop.f32.mrf.mxu0 }
 0x1a7   : > { %v1088_v51 = vpop.f32.mrf.mxu1  ;;  %v1741_v53 = vpop.f32.mrf.mxu3 }
 0x1a8   : > { %v14349_v57 = vadd.f32 %v1741_v53, %v1449_v42  ;;  %v1089_v61 = vadd.f32 %v1088_v51, %v831_v48  ;;  %v2165_v48 = vld [vmem:[%s13761_s26 + $0x74] sm:$0xff] }
 0x1a9   : > { %11950 = vmatmul.msk.f32.gmra.mxu0 %vm594_vm0, %v2160_v15  ;;  %v2859_v15 = vld [vmem:[%s13761_s26 + $0x66] sm:$0xff]  ;;  %v2513_v53 = vld [vmem:[%s13761_s26 + $0x75] sm:$0xff] }
 0x1aa   : > { %12000 = vmatmul.msk.f32.gmra.mxu1 %vm594_vm0, %v2162_v52  ;;  %12050 = vmatmul.msk.f32.gmra.mxu2 %vm594_vm0, %v2510_v54 }
 0x1ac   : > { %12100 = vmatmul.msk.f32.gmra.mxu3 %vm594_vm0, %v2858_v58 }
 0x1ad   : > { %v1396_v62 = vpop.f32.mrf.mxu2 }
 0x1ae   : > { %v1450_v1 = vadd.f32 %v1396_v62, %v1089_v61  ;;  %v834_v4 = vpop.f32.mrf.mxu0 }
 0x1af   : > { %v1091_v6 = vpop.f32.mrf.mxu1  ;;  %v1744_v9 = vpop.f32.mrf.mxu3 }
 0x1b0   : > { %v14358_v11 = vadd.f32 %v1744_v9, %v1450_v1  ;;  %v1092_v20 = vadd.f32 %v1091_v6, %v834_v4  ;;  %v2166_v6 = vld [vmem:[%s13761_s26 + $0x7c] sm:$0xff] }
 0x1b1   : > { %11951 = vmatmul.msk.f32.gmra.mxu0 %vm594_vm0, %v2161_v34  ;;  %v2860_v34 = vld [vmem:[%s13761_s26 + $0x6e] sm:$0xff] }
 0x1b2   : > { %12001 = vmatmul.msk.f32.gmra.mxu1 %vm594_vm0, %v2163_v8  ;;  %12051 = vmatmul.msk.f32.gmra.mxu2 %vm594_vm0, %v2511_v10  ;;  %v2514_v10 = vld [vmem:[%s13761_s26 + $0x7d] sm:$0xff] }
 0x1b4   : > { %12101 = vmatmul.msk.f32.gmra.mxu3 %vm594_vm0, %v2859_v15 }
 0x1b5   : > { %v1399_v21 = vpop.f32.mrf.mxu2 }
 0x1b6   : > { %v1451_v23 = vadd.f32 %v1399_v21, %v1092_v20  ;;  %v837_v24 = vpop.f32.mrf.mxu0 }
 0x1b7   : > { %v1094_v26 = vpop.f32.mrf.mxu1  ;;  %v1747_v28 = vpop.f32.mrf.mxu3 }
 0x1b8   : > { %v14367_v35 = vadd.f32 %v1747_v28, %v1451_v23  ;;  %v1095_v37 = vadd.f32 %v1094_v26, %v837_v24  ;;  %v2167_v28 = vld [vmem:[%s13761_s26 + $0x84] sm:$0xff] }
 0x1b9   : > { %11952 = vmatmul.msk.f32.gmra.mxu0 %vm594_vm0, %v2162_v52  ;;  %v2861_v52 = vld [vmem:[%s13761_s26 + $0x76] sm:$0xff] }
 0x1ba   : > { %12002 = vmatmul.msk.f32.gmra.mxu1 %vm594_vm0, %v2164_v27  ;;  %12052 = vmatmul.msk.f32.gmra.mxu2 %vm594_vm0, %v2512_v29 }
 0x1bc   : > { %12102 = vmatmul.msk.f32.gmra.mxu3 %vm594_vm0, %v2860_v34  ;;  %v2515_v34 = vld [vmem:[%s13761_s26 + $0x85] sm:$0xff] }
 0x1bd   : > { %v1402_v39 = vpop.f32.mrf.mxu2 }
 0x1be   : > { %v1452_v40 = vadd.f32 %v1402_v39, %v1095_v37  ;;  %v840_v41 = vpop.f32.mrf.mxu0 }
 0x1bf   : > { %v1097_v42 = vpop.f32.mrf.mxu1  ;;  %v1750_v51 = vpop.f32.mrf.mxu3 }
 0x1c0   : > { %v14376_v54 = vadd.f32 %v1750_v51, %v1452_v40  ;;  %v1098_v58 = vadd.f32 %v1097_v42, %v840_v41 }
 0x1c1   : > { %11953 = vmatmul.msk.f32.gmra.mxu0 %vm594_vm0, %v2163_v8  ;;  %v2862_v8 = vld [vmem:[%s13761_s26 + $0x7e] sm:$0xff] }
 0x1c2   : > { %12003 = vmatmul.msk.f32.gmra.mxu1 %vm594_vm0, %v2165_v48  ;;  %12053 = vmatmul.msk.f32.gmra.mxu2 %vm594_vm0, %v2513_v53  ;;  %v2168_v53 = vld [vmem:[%s13761_s26 + $0x8c] sm:$0xff] }
 0x1c4   : > { %12103 = vmatmul.msk.f32.gmra.mxu3 %vm594_vm0, %v2861_v52 }
 0x1c5   : > { %v1405_v61 = vpop.f32.mrf.mxu2 }
 0x1c6   : > { %v1453_v62 = vadd.f32 %v1405_v61, %v1098_v58  ;;  %v843_v1 = vpop.f32.mrf.mxu0  ;;  %v2516_v58 = vld [vmem:[%s13761_s26 + $0x8d] sm:$0xff] }
 0x1c7   : > { %v1100_v4 = vpop.f32.mrf.mxu1  ;;  %v1753_v9 = vpop.f32.mrf.mxu3 }
 0x1c8   : > { %v14385_v15 = vadd.f32 %v1753_v9, %v1453_v62  ;;  %v1101_v20 = vadd.f32 %v1100_v4, %v843_v1 }
 0x1c9   : > { %11954 = vmatmul.msk.f32.gmra.mxu0 %vm594_vm0, %v2164_v27  ;;  %v2863_v27 = vld [vmem:[%s13761_s26 + $0x86] sm:$0xff] }
 0x1ca   : > { %12004 = vmatmul.msk.f32.gmra.mxu1 %vm594_vm0, %v2166_v6  ;;  %12054 = vmatmul.msk.f32.gmra.mxu2 %vm594_vm0, %v2514_v10 }
 0x1cc   : > { %12104 = vmatmul.msk.f32.gmra.mxu3 %vm594_vm0, %v2862_v8  ;;  %v2169_v8 = vld [vmem:[%s13761_s26 + $0x94] sm:$0xff] }
 0x1cd   : > { %v1408_v21 = vpop.f32.mrf.mxu2 }
 0x1ce   : > { %v1454_v23 = vadd.f32 %v1408_v21, %v1101_v20  ;;  %v846_v24 = vpop.f32.mrf.mxu0 }
 0x1cf   : > { %v1103_v26 = vpop.f32.mrf.mxu1  ;;  %v1756_v29 = vpop.f32.mrf.mxu3 }
 0x1d0   : > { %v14394_v37 = vadd.f32 %v1756_v29, %v1454_v23  ;;  %v1104_v39 = vadd.f32 %v1103_v26, %v846_v24  ;;  %v2517_v23 = vld [vmem:[%s13761_s26 + $0x95] sm:$0xff] }
 0x1d1   : > { %11955 = vmatmul.msk.f32.gmra.mxu0 %vm594_vm0, %v2165_v48  ;;  %v2864_v48 = vld [vmem:[%s13761_s26 + $0x8e] sm:$0xff] }
 0x1d2   : > { %12005 = vmatmul.msk.f32.gmra.mxu1 %vm594_vm0, %v2167_v28  ;;  %12055 = vmatmul.msk.f32.gmra.mxu2 %vm594_vm0, %v2515_v34 }
 0x1d4   : > { %12105 = vmatmul.msk.f32.gmra.mxu3 %vm594_vm0, %v2863_v27 }
 0x1d5   : > { %v1411_v40 = vpop.f32.mrf.mxu2 }
 0x1d6   : > { %v1455_v41 = vadd.f32 %v1411_v40, %v1104_v39  ;;  %v849_v42 = vpop.f32.mrf.mxu0 }
 0x1d7   : > { %v1106_v51 = vpop.f32.mrf.mxu1  ;;  %v1759_v52 = vpop.f32.mrf.mxu3 }
 0x1d8   : > { %v14403_v61 = vadd.f32 %v1759_v52, %v1455_v41  ;;  %v1107_v62 = vadd.f32 %v1106_v51, %v849_v42  ;;  %v2518_v42 = vld [vmem:[%s13761_s26 + $0x9d] sm:$0xff] }
 0x1d9   : > { %11956 = vmatmul.msk.f32.gmra.mxu0 %vm594_vm0, %v2166_v6  ;;  %v2865_v6 = vld [vmem:[%s13761_s26 + $0x96] sm:$0xff] }
 0x1da   : > { %12006 = vmatmul.msk.f32.gmra.mxu1 %vm594_vm0, %v2168_v53  ;;  %12056 = vmatmul.msk.f32.gmra.mxu2 %vm594_vm0, %v2516_v58 }
 0x1dc   : > { %12106 = vmatmul.msk.f32.gmra.mxu3 %vm594_vm0, %v2864_v48 }
 0x1dd   : > { %v1414_v1 = vpop.f32.mrf.mxu2 }
 0x1de   : > { %v1456_v4 = vadd.f32 %v1414_v1, %v1107_v62  ;;  %v1993_v9 = vpop.f32.mrf.mxu0  ;;  %v2171_v1 = vld [vmem:[%s13761_s26 + $0xa4] sm:$0xff] }
 0x1df   : > { %v2341_v10 = vpop.f32.mrf.mxu1  ;;  %v1762_v20 = vpop.f32.mrf.mxu3  ;;  %v2113_v21 = vadd.f32 %v1993_v9, %v13917_v56  ;;  %v2170_v56 = vld [vmem:[%s13761_s26 + $0x9c] sm:$0xff] }
 0x1e0   : > { %v14413_v24 = vadd.f32 %v1762_v20, %v1456_v4 }
 0x1e1   : > { %v2461_v26 = vadd.f32 %v2341_v10, %v2113_v21  ;;  %11957 = vmatmul.msk.f32.gmra.mxu0 %vm594_vm0, %v2167_v28  ;;  %v2866_v28 = vld [vmem:[%s13761_s26 + $0x9e] sm:$0xff] }
 0x1e2   : > { %12007 = vmatmul.msk.f32.gmra.mxu1 %vm594_vm0, %v2169_v8  ;;  %12057 = vmatmul.msk.f32.gmra.mxu2 %vm594_vm0, %v2517_v23  ;;  %v2519_v10 = vld [vmem:[%s13761_s26 + $0xa5] sm:$0xff] }
 0x1e4   : > { %12107 = vmatmul.msk.f32.gmra.mxu3 %vm594_vm0, %v2865_v6 }
 0x1e5   : > { %v2689_v29 = vpop.f32.mrf.mxu2 }
 0x1e6   : > { %v2809_v34 = vadd.f32 %v2689_v29, %v2461_v26  ;;  %v1996_v27 = vpop.f32.mrf.mxu0  ;;  %v2172_v29 = vld [vmem:[%s13761_s26 + $0xac] sm:$0xff] }
 0x1e7   : > { %v2344_v39 = vpop.f32.mrf.mxu1  ;;  %v2114_v40 = vadd.f32 %v1996_v27, %v13927_v3  ;;  %v3037_v41 = vpop.f32.mrf.mxu3 }
 0x1e8   : > { %v14423_v51 = vadd.f32 %v3037_v41, %v2809_v34 }
 0x1e9   : > { %v2462_v52 = vadd.f32 %v2344_v39, %v2114_v40  ;;  %11958 = vmatmul.msk.f32.gmra.mxu0 %vm594_vm0, %v2168_v53  ;;  %v2867_v53 = vld [vmem:[%s13761_s26 + $0xa6] sm:$0xff] }
 0x1ea   : > { %12008 = vmatmul.msk.f32.gmra.mxu1 %vm594_vm0, %v2170_v56  ;;  %12058 = vmatmul.msk.f32.gmra.mxu2 %vm594_vm0, %v2518_v42  ;;  %v2520_v39 = vld [vmem:[%s13761_s26 + $0xad] sm:$0xff] }
 0x1ec   : > { %12108 = vmatmul.msk.f32.gmra.mxu3 %vm594_vm0, %v2866_v28 }
 0x1ed   : > { %v2692_v58 = vpop.f32.mrf.mxu2 }
 0x1ee   : > { %v2810_v48 = vadd.f32 %v2692_v58, %v2462_v52  ;;  %v1999_v62 = vpop.f32.mrf.mxu0  ;;  %v2173_v58 = vld [vmem:[%s13761_s26 + $0xb4] sm:$0xff] }
 0x1ef   : > { %v2347_v3 = vpop.f32.mrf.mxu1  ;;  %v2115_v4 = vadd.f32 %v1999_v62, %v13937_v14  ;;  %v3040_v9 = vpop.f32.mrf.mxu3 }
 0x1f0   : > { %v14433_v20 = vadd.f32 %v3040_v9, %v2810_v48 }
 0x1f1   : > { %v2463_v21 = vadd.f32 %v2347_v3, %v2115_v4  ;;  %11959 = vmatmul.msk.f32.gmra.mxu0 %vm594_vm0, %v2169_v8  ;;  %v2868_v8 = vld [vmem:[%s13761_s26 + $0xae] sm:$0xff] }
 0x1f2   : > { %12009 = vmatmul.msk.f32.gmra.mxu1 %vm594_vm0, %v2171_v1  ;;  %12059 = vmatmul.msk.f32.gmra.mxu2 %vm594_vm0, %v2519_v10  ;;  %v2521_v3 = vld [vmem:[%s13761_s26 + $0xb5] sm:$0xff] }
 0x1f4   : > { %12109 = vmatmul.msk.f32.gmra.mxu3 %vm594_vm0, %v2867_v53 }
 0x1f5   : > { %v2695_v23 = vpop.f32.mrf.mxu2 }
 0x1f6   : > { %v2811_v6 = vadd.f32 %v2695_v23, %v2463_v21  ;;  %v2002_v26 = vpop.f32.mrf.mxu0  ;;  %v2174_v23 = vld [vmem:[%s13761_s26 + $0xbc] sm:$0xff] }
 0x1f7   : > { %v2350_v14 = vpop.f32.mrf.mxu1  ;;  %v2116_v34 = vadd.f32 %v2002_v26, %v13947_v25  ;;  %v3043_v27 = vpop.f32.mrf.mxu3 }
 0x1f8   : > { %v14443_v40 = vadd.f32 %v3043_v27, %v2811_v6 }
 0x1f9   : > { %v2464_v41 = vadd.f32 %v2350_v14, %v2116_v34  ;;  %11960 = vmatmul.msk.f32.gmra.mxu0 %vm594_vm0, %v2170_v56  ;;  %v2869_v56 = vld [vmem:[%s13761_s26 + $0xb6] sm:$0xff] }
 0x1fa   : > { %12010 = vmatmul.msk.f32.gmra.mxu1 %vm594_vm0, %v2172_v29  ;;  %12060 = vmatmul.msk.f32.gmra.mxu2 %vm594_vm0, %v2520_v39  ;;  %v2522_v14 = vld [vmem:[%s13761_s26 + $0xbd] sm:$0xff] }
 0x1fc   : > { %12110 = vmatmul.msk.f32.gmra.mxu3 %vm594_vm0, %v2868_v8 }
 0x1fd   : > { %v2698_v42 = vpop.f32.mrf.mxu2 }
 0x1fe   : > { %v2812_v28 = vadd.f32 %v2698_v42, %v2464_v41  ;;  %v2005_v52 = vpop.f32.mrf.mxu0  ;;  %v2175_v42 = vld [vmem:[%s13761_s26 + $0xc4] sm:$0xff] }
 0x1ff   : > { %v2353_v25 = vpop.f32.mrf.mxu1  ;;  %v2117_v48 = vadd.f32 %v2005_v52, %v13957_v36  ;;  %v3046_v62 = vpop.f32.mrf.mxu3 }
 0x200   : > { %v14453_v4 = vadd.f32 %v3046_v62, %v2812_v28 }
 0x201   : > { %v2465_v9 = vadd.f32 %v2353_v25, %v2117_v48  ;;  %11961 = vmatmul.msk.f32.gmra.mxu0 %vm594_vm0, %v2171_v1  ;;  %v2870_v1 = vld [vmem:[%s13761_s26 + $0xbe] sm:$0xff] }
 0x202   : > { %12011 = vmatmul.msk.f32.gmra.mxu1 %vm594_vm0, %v2173_v58  ;;  %12061 = vmatmul.msk.f32.gmra.mxu2 %vm594_vm0, %v2521_v3  ;;  %v2523_v25 = vld [vmem:[%s13761_s26 + $0xc5] sm:$0xff] }
 0x204   : > { %12111 = vmatmul.msk.f32.gmra.mxu3 %vm594_vm0, %v2869_v56 }
 0x205   : > { %v2701_v10 = vpop.f32.mrf.mxu2 }
 0x206   : > { %v2813_v53 = vadd.f32 %v2701_v10, %v2465_v9  ;;  %v2008_v21 = vpop.f32.mrf.mxu0  ;;  %v2176_v10 = vld [vmem:[%s13761_s26 + $0xcc] sm:$0xff] }
 0x207   : > { %v2356_v36 = vpop.f32.mrf.mxu1  ;;  %v2118_v6 = vadd.f32 %v2008_v21, %v13967_v47  ;;  %v3049_v26 = vpop.f32.mrf.mxu3 }
 0x208   : > { %v14463_v34 = vadd.f32 %v3049_v26, %v2813_v53 }
 0x209   : > { %v2466_v27 = vadd.f32 %v2356_v36, %v2118_v6  ;;  %11962 = vmatmul.msk.f32.gmra.mxu0 %vm594_vm0, %v2172_v29  ;;  %v2871_v29 = vld [vmem:[%s13761_s26 + $0xc6] sm:$0xff] }
 0x20a   : > { %12012 = vmatmul.msk.f32.gmra.mxu1 %vm594_vm0, %v2174_v23  ;;  %12062 = vmatmul.msk.f32.gmra.mxu2 %vm594_vm0, %v2522_v14  ;;  %v2524_v36 = vld [vmem:[%s13761_s26 + $0xcd] sm:$0xff] }
 0x20c   : > { %12112 = vmatmul.msk.f32.gmra.mxu3 %vm594_vm0, %v2870_v1 }
 0x20d   : > { %v2704_v39 = vpop.f32.mrf.mxu2 }
 0x20e   : > { %v2814_v8 = vadd.f32 %v2704_v39, %v2466_v27  ;;  %v2011_v41 = vpop.f32.mrf.mxu0  ;;  %v2177_v39 = vld [vmem:[%s13761_s26 + $0xd4] sm:$0xff] }
 0x20f   : > { %v2359_v47 = vpop.f32.mrf.mxu1  ;;  %v2119_v28 = vadd.f32 %v2011_v41, %v13977_v59  ;;  %v3052_v52 = vpop.f32.mrf.mxu3 }
 0x210   : > { %v14473_v48 = vadd.f32 %v3052_v52, %v2814_v8 }
 0x211   : > { %v2467_v62 = vadd.f32 %v2359_v47, %v2119_v28  ;;  %11963 = vmatmul.msk.f32.gmra.mxu0 %vm594_vm0, %v2173_v58  ;;  %v2872_v58 = vld [vmem:[%s13761_s26 + $0xce] sm:$0xff] }
 0x212   : > { %12013 = vmatmul.msk.f32.gmra.mxu1 %vm594_vm0, %v2175_v42  ;;  %12063 = vmatmul.msk.f32.gmra.mxu2 %vm594_vm0, %v2523_v25  ;;  %v2525_v47 = vld [vmem:[%s13761_s26 + $0xd5] sm:$0xff] }
 0x214   : > { %12113 = vmatmul.msk.f32.gmra.mxu3 %vm594_vm0, %v2871_v29 }
 0x215   : > { %v2707_v3 = vpop.f32.mrf.mxu2 }
 0x216   : > { %v2815_v56 = vadd.f32 %v2707_v3, %v2467_v62  ;;  %v2014_v9 = vpop.f32.mrf.mxu0  ;;  %v2178_v3 = vld [vmem:[%s13761_s26 + $0xdc] sm:$0xff] }
 0x217   : > { %v2362_v59 = vpop.f32.mrf.mxu1  ;;  %v2120_v53 = vadd.f32 %v2014_v9, %v13987_v7  ;;  %v3055_v21 = vpop.f32.mrf.mxu3 }
 0x218   : > { %v14483_v6 = vadd.f32 %v3055_v21, %v2815_v56 }
 0x219   : > { %v2468_v26 = vadd.f32 %v2362_v59, %v2120_v53  ;;  %11964 = vmatmul.msk.f32.gmra.mxu0 %vm594_vm0, %v2174_v23  ;;  %v2873_v23 = vld [vmem:[%s13761_s26 + $0xd6] sm:$0xff] }
 0x21a   : > { %12014 = vmatmul.msk.f32.gmra.mxu1 %vm594_vm0, %v2176_v10  ;;  %12064 = vmatmul.msk.f32.gmra.mxu2 %vm594_vm0, %v2524_v36  ;;  %v2526_v59 = vld [vmem:[%s13761_s26 + $0xdd] sm:$0xff] }
 0x21c   : > { %12114 = vmatmul.msk.f32.gmra.mxu3 %vm594_vm0, %v2872_v58 }
 0x21d   : > { %v2710_v14 = vpop.f32.mrf.mxu2 }
 0x21e   : > { %v2816_v1 = vadd.f32 %v2710_v14, %v2468_v26  ;;  %v2017_v27 = vpop.f32.mrf.mxu0  ;;  %v2179_v14 = vld [vmem:[%s13761_s26 + $0xe4] sm:$0xff] }
 0x21f   : > { %v2365_v7 = vpop.f32.mrf.mxu1  ;;  %v2121_v8 = vadd.f32 %v2017_v27, %v13997_v19  ;;  %v3058_v41 = vpop.f32.mrf.mxu3 }
 0x220   : > { %v14493_v28 = vadd.f32 %v3058_v41, %v2816_v1 }
 0x221   : > { %v2469_v52 = vadd.f32 %v2365_v7, %v2121_v8  ;;  %11965 = vmatmul.msk.f32.gmra.mxu0 %vm594_vm0, %v2175_v42  ;;  %v2874_v42 = vld [vmem:[%s13761_s26 + $0xde] sm:$0xff] }
 0x222   : > { %12015 = vmatmul.msk.f32.gmra.mxu1 %vm594_vm0, %v2177_v39  ;;  %12065 = vmatmul.msk.f32.gmra.mxu2 %vm594_vm0, %v2525_v47  ;;  %v2527_v7 = vld [vmem:[%s13761_s26 + $0xe5] sm:$0xff] }
 0x224   : > { %12115 = vmatmul.msk.f32.gmra.mxu3 %vm594_vm0, %v2873_v23 }
 0x225   : > { %v2713_v25 = vpop.f32.mrf.mxu2 }
 0x226   : > { %v2817_v29 = vadd.f32 %v2713_v25, %v2469_v52  ;;  %v2020_v62 = vpop.f32.mrf.mxu0  ;;  %v2180_v25 = vld [vmem:[%s13761_s26 + $0xec] sm:$0xff] }
 0x227   : > { %v2368_v19 = vpop.f32.mrf.mxu1  ;;  %v2122_v56 = vadd.f32 %v2020_v62, %v14007_v31  ;;  %v3061_v9 = vpop.f32.mrf.mxu3 }
 0x228   : > { %v14503_v53 = vadd.f32 %v3061_v9, %v2817_v29 }
 0x229   : > { %v2470_v21 = vadd.f32 %v2368_v19, %v2122_v56  ;;  %11966 = vmatmul.msk.f32.gmra.mxu0 %vm594_vm0, %v2176_v10  ;;  %v2875_v10 = vld [vmem:[%s13761_s26 + $0xe6] sm:$0xff] }
 0x22a   : > { %12016 = vmatmul.msk.f32.gmra.mxu1 %vm594_vm0, %v2178_v3  ;;  %12066 = vmatmul.msk.f32.gmra.mxu2 %vm594_vm0, %v2526_v59  ;;  %v2528_v19 = vld [vmem:[%s13761_s26 + $0xed] sm:$0xff] }
 0x22c   : > { %12116 = vmatmul.msk.f32.gmra.mxu3 %vm594_vm0, %v2874_v42 }
 0x22d   : > { %v2716_v36 = vpop.f32.mrf.mxu2 }
 0x22e   : > { %v2818_v58 = vadd.f32 %v2716_v36, %v2470_v21  ;;  %v2023_v26 = vpop.f32.mrf.mxu0  ;;  %v2181_v36 = vld [vmem:[%s13761_s26 + $0xf4] sm:$0xff] }
 0x22f   : > { %v2371_v31 = vpop.f32.mrf.mxu1  ;;  %v2123_v1 = vadd.f32 %v2023_v26, %v14017_v43  ;;  %v3064_v27 = vpop.f32.mrf.mxu3 }
 0x230   : > { %v14513_v8 = vadd.f32 %v3064_v27, %v2818_v58 }
 0x231   : > { %v2471_v41 = vadd.f32 %v2371_v31, %v2123_v1  ;;  %11967 = vmatmul.msk.f32.gmra.mxu0 %vm594_vm0, %v2177_v39  ;;  %v2876_v39 = vld [vmem:[%s13761_s26 + $0xee] sm:$0xff] }
 0x232   : > { %12017 = vmatmul.msk.f32.gmra.mxu1 %vm594_vm0, %v2179_v14  ;;  %12067 = vmatmul.msk.f32.gmra.mxu2 %vm594_vm0, %v2527_v7  ;;  %v2529_v31 = vld [vmem:[%s13761_s26 + $0xf5] sm:$0xff] }
 0x234   : > { %12117 = vmatmul.msk.f32.gmra.mxu3 %vm594_vm0, %v2875_v10 }
 0x235   : > { %v2719_v47 = vpop.f32.mrf.mxu2 }
 0x236   : > { %v2819_v23 = vadd.f32 %v2719_v47, %v2471_v41  ;;  %v2026_v52 = vpop.f32.mrf.mxu0  ;;  %v2182_v47 = vld [vmem:[%s13761_s26 + $0xfc] sm:$0xff] }
 0x237   : > { %v2374_v43 = vpop.f32.mrf.mxu1  ;;  %v2124_v29 = vadd.f32 %v2026_v52, %v14027_v55  ;;  %v3067_v62 = vpop.f32.mrf.mxu3 }
 0x238   : > { %v14523_v56 = vadd.f32 %v3067_v62, %v2819_v23 }
 0x239   : > { %v2472_v9 = vadd.f32 %v2374_v43, %v2124_v29  ;;  %11968 = vmatmul.msk.f32.gmra.mxu0 %vm594_vm0, %v2178_v3  ;;  %v2877_v3 = vld [vmem:[%s13761_s26 + $0xf6] sm:$0xff] }
 0x23a   : > { %12018 = vmatmul.msk.f32.gmra.mxu1 %vm594_vm0, %v2180_v25  ;;  %12068 = vmatmul.msk.f32.gmra.mxu2 %vm594_vm0, %v2528_v19  ;;  %v2530_v43 = vld [vmem:[%s13761_s26 + $0xfd] sm:$0xff] }
 0x23c   : > { %12118 = vmatmul.msk.f32.gmra.mxu3 %vm594_vm0, %v2876_v39 }
 0x23d   : > { %v2722_v59 = vpop.f32.mrf.mxu2 }
 0x23e   : > { %v2820_v42 = vadd.f32 %v2722_v59, %v2472_v9  ;;  %v2029_v21 = vpop.f32.mrf.mxu0  ;;  %v2183_v59 = vld [vmem:[%s13761_s26 + $0x104] sm:$0xff] }
 0x23f   : > { %v2377_v55 = vpop.f32.mrf.mxu1  ;;  %v2125_v58 = vadd.f32 %v2029_v21, %v14037_v5  ;;  %v3070_v26 = vpop.f32.mrf.mxu3 }
 0x240   : > { %v14533_v1 = vadd.f32 %v3070_v26, %v2820_v42 }
 0x241   : > { %v2473_v27 = vadd.f32 %v2377_v55, %v2125_v58  ;;  %11969 = vmatmul.msk.f32.gmra.mxu0 %vm594_vm0, %v2179_v14  ;;  %v2878_v14 = vld [vmem:[%s13761_s26 + $0xfe] sm:$0xff] }
 0x242   : > { %12019 = vmatmul.msk.f32.gmra.mxu1 %vm594_vm0, %v2181_v36  ;;  %12069 = vmatmul.msk.f32.gmra.mxu2 %vm594_vm0, %v2529_v31  ;;  %v2531_v55 = vld [vmem:[%s13761_s26 + $0x105] sm:$0xff] }
 0x244   : > { %12119 = vmatmul.msk.f32.gmra.mxu3 %vm594_vm0, %v2877_v3 }
 0x245   : > { %v2725_v7 = vpop.f32.mrf.mxu2 }
 0x246   : > { %v2821_v10 = vadd.f32 %v2725_v7, %v2473_v27  ;;  %v2032_v41 = vpop.f32.mrf.mxu0  ;;  %v2184_v7 = vld [vmem:[%s13761_s26 + $0x10c] sm:$0xff] }
 0x247   : > { %v2380_v5 = vpop.f32.mrf.mxu1  ;;  %v2126_v23 = vadd.f32 %v2032_v41, %v14047_v18  ;;  %v3073_v52 = vpop.f32.mrf.mxu3 }
 0x248   : > { %v14543_v29 = vadd.f32 %v3073_v52, %v2821_v10 }
 0x249   : > { %v2474_v62 = vadd.f32 %v2380_v5, %v2126_v23  ;;  %11970 = vmatmul.msk.f32.gmra.mxu0 %vm594_vm0, %v2180_v25  ;;  %v2879_v25 = vld [vmem:[%s13761_s26 + $0x106] sm:$0xff] }
 0x24a   : > { %12020 = vmatmul.msk.f32.gmra.mxu1 %vm594_vm0, %v2182_v47  ;;  %12070 = vmatmul.msk.f32.gmra.mxu2 %vm594_vm0, %v2530_v43  ;;  %v2532_v5 = vld [vmem:[%s13761_s26 + $0x10d] sm:$0xff] }
 0x24c   : > { %12120 = vmatmul.msk.f32.gmra.mxu3 %vm594_vm0, %v2878_v14 }
 0x24d   : > { %v2728_v19 = vpop.f32.mrf.mxu2 }
 0x24e   : > { %v2822_v39 = vadd.f32 %v2728_v19, %v2474_v62  ;;  %v2035_v9 = vpop.f32.mrf.mxu0  ;;  %v2185_v19 = vld [vmem:[%s13761_s26 + $0x114] sm:$0xff] }
 0x24f   : > { %v2383_v18 = vpop.f32.mrf.mxu1  ;;  %v2127_v42 = vadd.f32 %v2035_v9, %v14057_v32  ;;  %v3076_v21 = vpop.f32.mrf.mxu3 }
 0x250   : > { %v14553_v58 = vadd.f32 %v3076_v21, %v2822_v39 }
 0x251   : > { %v2475_v26 = vadd.f32 %v2383_v18, %v2127_v42  ;;  %11971 = vmatmul.msk.f32.gmra.mxu0 %vm594_vm0, %v2181_v36  ;;  %v2880_v36 = vld [vmem:[%s13761_s26 + $0x10e] sm:$0xff] }
 0x252   : > { %12021 = vmatmul.msk.f32.gmra.mxu1 %vm594_vm0, %v2183_v59  ;;  %12071 = vmatmul.msk.f32.gmra.mxu2 %vm594_vm0, %v2531_v55  ;;  %v2533_v18 = vld [vmem:[%s13761_s26 + $0x115] sm:$0xff] }
 0x254   : > { %12121 = vmatmul.msk.f32.gmra.mxu3 %vm594_vm0, %v2879_v25 }
 0x255   : > { %v2731_v31 = vpop.f32.mrf.mxu2 }
 0x256   : > { %v2823_v3 = vadd.f32 %v2731_v31, %v2475_v26  ;;  %v2038_v27 = vpop.f32.mrf.mxu0  ;;  %v14581_v31 = vld [vmem:[%s13761_s26 + $0x11c] sm:$0xff] }
 0x257   : > { %v2386_v32 = vpop.f32.mrf.mxu1  ;;  %v2128_v10 = vadd.f32 %v2038_v27, %v14067_v45  ;;  %v3079_v41 = vpop.f32.mrf.mxu3 }
 0x258   : > { %v14563_v23 = vadd.f32 %v3079_v41, %v2823_v3 }
 0x259   : > { %v2476_v52 = vadd.f32 %v2386_v32, %v2128_v10  ;;  %11972 = vmatmul.msk.f32.gmra.mxu0 %vm594_vm0, %v2182_v47  ;;  %v2881_v47 = vld [vmem:[%s13761_s26 + $0x116] sm:$0xff] }
 0x25a   : > { %12022 = vmatmul.msk.f32.gmra.mxu1 %vm594_vm0, %v2184_v7  ;;  %12072 = vmatmul.msk.f32.gmra.mxu2 %vm594_vm0, %v2532_v5  ;;  %v2534_v32 = vld [vmem:[%s13761_s26 + $0x11d] sm:$0xff] }
 0x25c   : > { %12122 = vmatmul.msk.f32.gmra.mxu3 %vm594_vm0, %v2880_v36 }
 0x25d   : > { %v2734_v43 = vpop.f32.mrf.mxu2 }
 0x25e   : > { %v2824_v14 = vadd.f32 %v2734_v43, %v2476_v52  ;;  %v2041_v62 = vpop.f32.mrf.mxu0  ;;  %v14594_v43 = vld [vmem:[%s13761_s26 + $0x124] sm:$0xff] }
 0x25f   : > { %v2389_v45 = vpop.f32.mrf.mxu1  ;;  %v2129_v39 = vadd.f32 %v2041_v62, %v14077_v60  ;;  %v3082_v9 = vpop.f32.mrf.mxu3 }
 0x260   : > { %v14573_v42 = vadd.f32 %v3082_v9, %v2824_v14  ;;  %v12140_v14 = vld [vmem:[%s19629_s1 + $0x2c8] sm:$0xff] }
 0x261   : > { %v2477_v21 = vadd.f32 %v2389_v45, %v2129_v39  ;;  %11973 = vmatmul.msk.f32.gmra.mxu0 %vm594_vm0, %v2183_v59  ;;  %v2882_v59 = vld [vmem:[%s13761_s26 + $0x11e] sm:$0xff] }
 0x262   : > { %12023 = vmatmul.msk.f32.gmra.mxu1 %vm594_vm0, %v2185_v19  ;;  %12073 = vmatmul.msk.f32.gmra.mxu2 %vm594_vm0, %v2533_v18  ;;  %v2535_v39 = vld [vmem:[%s13761_s26 + $0x125] sm:$0xff] }
 0x263   : > { %3374 = vmatpush.msra.mxu0 %v12140_v14  ;;  %v2883_v18 = vld [vmem:[%s13761_s26 + $0x126] sm:$0xff] }
 0x264   : > { %12123 = vmatmul.msk.f32.gmra.mxu3 %vm594_vm0, %v2881_v47  ;;  %v12139_v47 = vld [vmem:[%s19629_s1 + $0x2c0] sm:$0xff]  ;;  %v14649_v14 = vld [vmem:[%s13761_s26 + $0x12c] sm:$0xff] }
 0x265   : > { %v2737_v55 = vpop.f32.mrf.mxu2  ;;  %3375 = vmatpush.msra.mxu0 %v12139_v47  ;;  %v2884_v47 = vld [vmem:[%s13761_s26 + $0x12e] sm:$0xff] }
 0x266   : > { %v2825_v25 = vadd.f32 %v2737_v55, %v2477_v21  ;;  %v2044_v26 = vpop.f32.mrf.mxu0  ;;  %v12190_v21 = vld [vmem:[%s19629_s1 + $0x318] sm:$0xff] }
 0x267   : > { %v2392_v60 = vpop.f32.mrf.mxu1  ;;  %v2130_v3 = vadd.f32 %v2044_v26, %v14093_v12  ;;  %v3085_v27 = vpop.f32.mrf.mxu3  ;;  %v12138_v26 = vld [vmem:[%s19629_s1 + $0x2b8] sm:$0xff]  ;;  %3722 = vmatpush.msra.mxu1 %v12190_v21  ;;  %v12187_v21 = vld [vmem:[%s19629_s1 + $0x300] sm:$0xff] }
 0x268   : > { %v14585_v10 = vadd.f32 %v3085_v27, %v2825_v25  ;;  %v12290_v25 = vld [vmem:[%s19629_s1 + $0x3b8] sm:$0xff]  ;;  %v12137_v27 = vld [vmem:[%s19629_s1 + $0x2b0] sm:$0xff]  ;;  %3376 = vmatpush.msra.mxu0 %v12138_v26  ;;  %v12235_v26 = vld [vmem:[%s19629_s1 + $0x340] sm:$0xff] }
 0x269   : > { %v2478_v41 = vadd.f32 %v2392_v60, %v2130_v3  ;;  %11974 = vmatmul.msk.f32.gmra.mxu0 %vm594_vm0, %v2184_v7  ;;  %v12240_v7 = vld [vmem:[%s19629_s1 + $0x368] sm:$0xff]  ;;  %v12238_v60 = vld [vmem:[%s19629_s1 + $0x358] sm:$0xff]  ;;  %v12289_v3 = vld [vmem:[%s19629_s1 + $0x3b0] sm:$0xff]  ;;  %4418 = vmatpush.msra.mxu3 %v12290_v25 }
 0x26a   : > { %12024 = vmatmul.msk.f32.gmra.mxu1 %vm594_vm0, %v14581_v31  ;;  %12074 = vmatmul.msk.f32.gmra.mxu2 %vm594_vm0, %v2534_v32  ;;  %v12188_v32 = vld [vmem:[%s19629_s1 + $0x308] sm:$0xff]  ;;  %v12135_v25 = vld [vmem:[%s19629_s1 + $0x2a0] sm:$0xff] }
 0x26b   : > { %4070 = vmatpush.msra.mxu2 %v12240_v7  ;;  %4419 = vmatpush.msra.mxu3 %v12289_v3  ;;  %v12185_v3 = vld [vmem:[%s19629_s1 + $0x2f0] sm:$0xff] }
 0x26c   : > { %12124 = vmatmul.msk.f32.gmra.mxu3 %vm594_vm0, %v2882_v59  ;;  %3377 = vmatpush.msra.mxu0 %v12137_v27 }
 0x26d   : > { %v2740_v5 = vpop.f32.mrf.mxu2 }
 0x26e   : > { %v2826_v36 = vadd.f32 %v2740_v5, %v2478_v41  ;;  %v2047_v12 = vpop.f32.mrf.mxu0  ;;  %v12237_v41 = vld [vmem:[%s19629_s1 + $0x350] sm:$0xff]  ;;  %v12288_v5 = vld [vmem:[%s19629_s1 + $0x3a8] sm:$0xff] }
 0x26f   : > { %v2395_v52 = vpop.f32.mrf.mxu1  ;;  %v2131_v62 = vadd.f32 %v2047_v12, %v14142_v44  ;;  %v3088_v45 = vpop.f32.mrf.mxu3  ;;  %v12239_v44 = vld [vmem:[%s19629_s1 + $0x360] sm:$0xff]  ;;  %4420 = vmatpush.msra.mxu3 %v12288_v5 }
 0x270   : > { %v14604_v9 = vadd.f32 %v3088_v45, %v2826_v36  ;;  %4071 = vmatpush.msra.mxu2 %v12239_v44  ;;  %v2536_v45 = vld [vmem:[%s13761_s26 + $0x12d] sm:$0xff]  ;;  %v12287_v44 = vld [vmem:[%s19629_s1 + $0x3a0] sm:$0xff] }
 0x271   : > { %v2479_v55 = vadd.f32 %v2395_v52, %v2131_v62  ;;  %11975 = vmatmul.msk.f32.gmra.mxu0 %vm594_vm0, %v2185_v19  ;;  %v12189_v19 = vld [vmem:[%s19629_s1 + $0x310] sm:$0xff]  ;;  %4421 = vmatpush.msra.mxu3 %v12287_v44  ;;  %v12132_v44 = vld [vmem:[%s19629_s1 + $0x288] sm:$0xff] }
 0x272   : > { %12025 = vmatmul.msk.f32.gmra.mxu1 %vm594_vm0, %v14594_v43  ;;  %12075 = vmatmul.msk.f32.gmra.mxu2 %vm594_vm0, %v2535_v39  ;;  %v12136_v39 = vld [vmem:[%s19629_s1 + $0x2a8] sm:$0xff] }
 0x273   : > { %3723 = vmatpush.msra.mxu1 %v12189_v19  ;;  %4072 = vmatpush.msra.mxu2 %v12238_v60  ;;  %v12286_v19 = vld [vmem:[%s19629_s1 + $0x398] sm:$0xff] }
 0x274   : > { %12125 = vmatmul.msk.f32.gmra.mxu3 %vm594_vm0, %v2883_v18  ;;  %3378 = vmatpush.msra.mxu0 %v12136_v39  ;;  %v12134_v60 = vld [vmem:[%s19629_s1 + $0x298] sm:$0xff] }
 0x275   : > { %v2743_v59 = vpop.f32.mrf.mxu2  ;;  %3724 = vmatpush.msra.mxu1 %v12188_v32  ;;  %4073 = vmatpush.msra.mxu2 %v12237_v41  ;;  %v12234_v32 = vld [vmem:[%s19629_s1 + $0x338] sm:$0xff] }
 0x276   : > { %v2827_v36 = vadd.f32 %v2743_v59, %v2479_v55  ;;  %v2050_v12 = vpop.f32.mrf.mxu0  ;;  %3379 = vmatpush.msra.mxu0 %v12135_v25  ;;  %v12285_v59 = vld [vmem:[%s19629_s1 + $0x390] sm:$0xff]  ;;  %4422 = vmatpush.msra.mxu3 %v12286_v19  ;;  %v12232_v25 = vld [vmem:[%s19629_s1 + $0x328] sm:$0xff]  ;;  %v12182_v19 = vld [vmem:[%s19629_s1 + $0x2d8] sm:$0xff] }
 0x277   : > { %v2398_v52 = vpop.f32.mrf.mxu1  ;;  %v2132_v7 = vadd.f32 %v2050_v12, %v14188_v13  ;;  %v3091_v62 = vpop.f32.mrf.mxu3  ;;  %v12236_v13 = vld [vmem:[%s19629_s1 + $0x348] sm:$0xff]  ;;  %3725 = vmatpush.msra.mxu1 %v12187_v21  ;;  %v14699_v12 = vld [vmem:[%s13761_s26 + $0x134] sm:$0xff] }
 0x278   : > { %v14656_v18 = vadd.f32 %v3091_v62, %v2827_v36  ;;  %4074 = vmatpush.msra.mxu2 %v12236_v13  ;;  %v2537_v62 = vld [vmem:[%s13761_s26 + $0x135] sm:$0xff]  ;;  %3380 = vmatpush.msra.mxu0 %v12134_v60  ;;  %v12184_v21 = vld [vmem:[%s19629_s1 + $0x2e8] sm:$0xff] }
 0x279   : > { %v2480_v55 = vadd.f32 %v2398_v52, %v2132_v7  ;;  %11976 = vmatmul.msk.f32.gmra.mxu0 %vm594_vm0, %v14581_v31  ;;  %v12186_v31 = vld [vmem:[%s19629_s1 + $0x2f8] sm:$0xff]  ;;  %4423 = vmatpush.msra.mxu3 %v12285_v59  ;;  %v12284_v13 = vld [vmem:[%s19629_s1 + $0x388] sm:$0xff] }
 0x27a   : > { %12026 = vmatmul.msk.f32.gmra.mxu1 %vm594_vm0, %v14649_v14  ;;  %12076 = vmatmul.msk.f32.gmra.mxu2 %vm594_vm0, %v2536_v45  ;;  %v12133_v45 = vld [vmem:[%s19629_s1 + $0x290] sm:$0xff] }
 0x27b   : > { %3726 = vmatpush.msra.mxu1 %v12186_v31  ;;  %4075 = vmatpush.msra.mxu2 %v12235_v26  ;;  %v12283_v31 = vld [vmem:[%s19629_s1 + $0x380] sm:$0xff] }
 0x27c   : > { %12126 = vmatmul.msk.f32.gmra.mxu3 %vm594_vm0, %v2884_v47  ;;  %v2885_v47 = vld [vmem:[%s13761_s26 + $0x136] sm:$0xff]  ;;  %3381 = vmatpush.msra.mxu0 %v12133_v45  ;;  %v12131_v26 = vld [vmem:[%s19629_s1 + $0x280] sm:$0xff] }
 0x27d   : > { %v2746_v27 = vpop.f32.mrf.mxu2  ;;  %3727 = vmatpush.msra.mxu1 %v12185_v3  ;;  %4076 = vmatpush.msra.mxu2 %v12234_v32  ;;  %v12231_v3 = vld [vmem:[%s19629_s1 + $0x320] sm:$0xff] }
 0x27e   : > { %v2828_v41 = vadd.f32 %v2746_v27, %v2480_v55  ;;  %v2053_v5 = vpop.f32.mrf.mxu0  ;;  %4424 = vmatpush.msra.mxu3 %v12284_v13  ;;  %3382 = vmatpush.msra.mxu0 %v12132_v44  ;;  %v12282_v27 = vld [vmem:[%s19629_s1 + $0x378] sm:$0xff] }
 0x27f   : > { %v2401_v36 = vpop.f32.mrf.mxu1  ;;  %v2133_v52 = vadd.f32 %v2053_v5, %v14234_v46  ;;  %v3094_v7 = vpop.f32.mrf.mxu3  ;;  %v12233_v46 = vld [vmem:[%s19629_s1 + $0x330] sm:$0xff]  ;;  %3728 = vmatpush.msra.mxu1 %v12184_v21  ;;  %v2190_v5 = vld [vmem:[%s13761_s26 + $0x13c] sm:$0xff] }
 0x280   : > { %v14706_v39 = vadd.f32 %v3094_v7, %v2828_v41  ;;  %4077 = vmatpush.msra.mxu2 %v12233_v46  ;;  %4425 = vmatpush.msra.mxu3 %v12283_v31  ;;  %v2538_v7 = vld [vmem:[%s13761_s26 + $0x13d] sm:$0xff]  ;;  %v2539_v31 = vld [vmem:[%s13761_s26 + $0x145] sm:$0xff] }
 0x281   : > { %v2481_v55 = vadd.f32 %v2401_v36, %v2133_v52  ;;  %11977 = vmatmul.msk.f32.gmra.mxu0 %vm594_vm0, %v14594_v43  ;;  %v12183_v43 = vld [vmem:[%s19629_s1 + $0x2e0] sm:$0xff] }
 0x282   : > { %12027 = vmatmul.msk.f32.gmra.mxu1 %vm594_vm0, %v14699_v12  ;;  %12077 = vmatmul.msk.f32.gmra.mxu2 %vm594_vm0, %v2537_v62  ;;  %v12181_v62 = vld [vmem:[%s19629_s1 + $0x2d0] sm:$0xff] }
 0x283   : > { %3729 = vmatpush.msra.mxu1 %v12183_v43  ;;  %4078 = vmatpush.msra.mxu2 %v12232_v25  ;;  %v2191_v43 = vld [vmem:[%s13761_s26 + $0x144] sm:$0xff] }
 0x284   : > { %12127 = vmatmul.msk.f32.gmra.mxu3 %vm594_vm0, %v2885_v47  ;;  %3383 = vmatpush.msra.mxu0 %v12131_v26  ;;  %v2886_v47 = vld [vmem:[%s13761_s26 + $0x13e] sm:$0xff] }
 0x285   : > { %v2749_v60 = vpop.f32.mrf.mxu2  ;;  %3730 = vmatpush.msra.mxu1 %v12182_v19  ;;  %4079 = vmatpush.msra.mxu2 %v12231_v3  ;;  %v2887_v19 = vld [vmem:[%s13761_s26 + $0x146] sm:$0xff] }
 0x286   : > { %v2829_v32 = vadd.f32 %v2749_v60, %v2481_v55  ;;  %v2056_v59 = vpop.f32.mrf.mxu0  ;;  %4426 = vmatpush.msra.mxu3 %v12282_v27 }
 0x287   : > { %v2404_v41 = vpop.f32.mrf.mxu1  ;;  %v2134_v36 = vadd.f32 %v2056_v59, %v14247_v63  ;;  %v3097_v52 = vpop.f32.mrf.mxu3  ;;  %v12281_v63 = vld [vmem:[%s19629_s1 + $0x370] sm:$0xff]  ;;  %3731 = vmatpush.msra.mxu1 %v12181_v62  ;;  %v1844_v59 = vld [vmem:[%s13761_s26 + $0x13c] sm:$0xf] }
 0x288   : > { %v14754_v45 = vadd.f32 %v3097_v52, %v2829_v32  ;;  %4427 = vmatpush.msra.mxu3 %v12281_v63  ;;  %v2540_v52 = vld [vmem:[%s13761_s26 + $0x14d] sm:$0xf] }
 0x289   : > { %v2482_v21 = vadd.f32 %v2404_v41, %v2134_v36  ;;  %11978 = vmatmul.msk.f32.gmra.mxu0 %vm594_vm0, %v14649_v14  ;;  %v2192_v41 = vld [vmem:[%s13761_s26 + $0x14c] sm:$0xf] }
 0x28a   : > { %12028 = vmatmul.msk.f32.gmra.mxu1 %vm594_vm0, %v2190_v5  ;;  %12078 = vmatmul.msk.f32.gmra.mxu2 %vm594_vm0, %v2538_v7  ;;  %v2888_v7 = vld [vmem:[%s13761_s26 + $0x14e] sm:$0xf] }
 0x28c   : > { %12128 = vmatmul.msk.f32.gmra.mxu3 %vm594_vm0, %v2886_v47 }
 0x28d   : > { %v2752_v55 = vpop.f32.mrf.mxu2 }
 0x28e   : > { %v2830_v46 = vadd.f32 %v2752_v55, %v2482_v21  ;;  %v2059_v13 = vpop.f32.mrf.mxu0  ;;  %v3197_v55 = vld [vmem:[%s13761_s26 + $0x17] sm:$0xff] }
 0x28f   : > { %v2407_v44 = vpop.f32.mrf.mxu1  ;;  %v2135_v14 = vadd.f32 %v2059_v13, %v14257_v16  ;;  %v3100_v25 = vpop.f32.mrf.mxu3 }
 0x290   : > { %v14768_v26 = vadd.f32 %v3100_v25, %v2830_v46  ;;  %v3545_v46 = vld [vmem:[%s13761_s26 + $0x18] sm:$0xff]  ;;  %v4241_v25 = vld [vmem:[%s13761_s26 + $0x29] sm:$0xff] }
 0x291   : > { %v2483_v60 = vadd.f32 %v2407_v44, %v2135_v14  ;;  %11979 = vmatmul.msk.f32.gmra.mxu0 %vm594_vm0, %v14699_v12 }
 0x292   : > { %12029 = vmatmul.msk.f32.gmra.mxu1 %vm594_vm0, %v2191_v43  ;;  %12079 = vmatmul.msk.f32.gmra.mxu2 %vm594_vm0, %v2539_v31  ;;  %v3893_v43 = vld [vmem:[%s13761_s26 + $0x28] sm:$0xff] }
 0x294   : > { %12129 = vmatmul.msk.f32.gmra.mxu3 %vm594_vm0, %v2887_v19 }
 0x295   : > { %v2755_v3 = vpop.f32.mrf.mxu2 }
 0x296   : > { %v2831_v27 = vadd.f32 %v2755_v3, %v2483_v60  ;;  %v2062_v16 = vpop.f32.mrf.mxu0 }
 0x297   : > { %v2410_v32 = vpop.f32.mrf.mxu1  ;;  %v2136_v5 = vadd.f32 %v2062_v16, %v14267_v30  ;;  %v3103_v36 = vpop.f32.mrf.mxu3  ;;  %v3546_v16 = vld [vmem:[%s13761_s26 + $0x20] sm:$0xff] }
 0x298   : > { %v14780_v12 = vadd.f32 %v3103_v36, %v2831_v27  ;;  %v3198_v27 = vld [vmem:[%s13761_s26 + $0x1f] sm:$0xff]  ;;  %v4242_v36 = vld [vmem:[%s13761_s26 + $0x31] sm:$0xff] }
 0x299   : > { %v2484_v62 = vadd.f32 %v2410_v32, %v2136_v5  ;;  %11980 = vmatmul.msk.f32.gmra.mxu0 %vm594_vm0, %v1844_v59 }
 0x29a   : > { %12030 = vmatmul.msk.f32.gmra.mxu1 %vm594_vm0, %v2192_v41  ;;  %12080 = vmatmul.msk.f32.gmra.mxu2 %vm594_vm0, %v2540_v52  ;;  %v3894_v41 = vld [vmem:[%s13761_s26 + $0x30] sm:$0xff] }
 0x29c   : > { %12130 = vmatmul.msk.f32.gmra.mxu3 %vm594_vm0, %v2888_v7 }
 0x29d   : > { %v2758_v47 = vpop.f32.mrf.mxu2 }
 0x29e   : > { %v2832_v21 = vadd.f32 %v2758_v47, %v2484_v62  ;;  %v2065_v63 = vpop.f32.mrf.mxu0 }
 0x29f   : > { %v2413_v30 = vpop.f32.mrf.mxu1  ;;  %v2137_v13 = vadd.f32 %v2065_v63, %v14277_v49  ;;  %v3106_v44 = vpop.f32.mrf.mxu3 }
 0x2a0   : > { %v14791_v14 = vadd.f32 %v3106_v44, %v2832_v21  ;;  %v3199_v21 = vld [vmem:[%s13761_s26 + $0x27] sm:$0xff] }
 0x2a1   : > { %v2485_v31 = vadd.f32 %v2413_v30, %v2137_v13  ;;  %12141 = vmatmul.msk.f32.vlgmr.msra.gmra.mxu0 %vm594_vm0, %v3197_v55  ;;  %v3895_v55 = vld [vmem:[%s13761_s26 + $0x38] sm:$0xff] }
 0x2a2   : > { %12191 = vmatmul.msk.f32.vlgmr.msra.gmra.mxu1 %vm594_vm0, %v3545_v46  ;;  %12241 = vmatmul.msk.f32.vlgmr.msra.gmra.mxu2 %vm594_vm0, %v3893_v43  ;;  %v4243_v13 = vld [vmem:[%s13761_s26 + $0x39] sm:$0xff] }
 0x2a4   : > { %12291 = vmatmul.msk.f32.vlgmr.msra.gmra.mxu3 %vm594_vm0, %v4241_v25 }
 0x2a5   : > { %v2761_v19 = vpop.f32.mrf.mxu2 }
 0x2a6   : > { %v2833_v60 = vadd.f32 %v2761_v19, %v2485_v31  ;;  %v2068_v3 = vpop.f32.mrf.mxu0 }
 0x2a7   : > { %v2416_v49 = vpop.f32.mrf.mxu1  ;;  %v2138_v32 = vadd.f32 %v2068_v3, %v14286_v0  ;;  %v3109_v59 = vpop.f32.mrf.mxu3 }
 0x2a8   : > { %v14802_v5 = vadd.f32 %v3109_v59, %v2833_v60  ;;  %v3200_v60 = vld [vmem:[%s13761_s26 + $0x2f] sm:$0xff] }
 0x2a9   : > { %v2486_v52 = vadd.f32 %v2416_v49, %v2138_v32  ;;  %12142 = vmatmul.msk.f32.gmra.mxu0 %vm594_vm0, %v3198_v27  ;;  %v3896_v27 = vld [vmem:[%s13761_s26 + $0x40] sm:$0xff] }
 0x2aa   : > { %12192 = vmatmul.msk.f32.gmra.mxu1 %vm594_vm0, %v3546_v16  ;;  %12242 = vmatmul.msk.f32.gmra.mxu2 %vm594_vm0, %v3894_v41  ;;  %v4244_v32 = vld [vmem:[%s13761_s26 + $0x41] sm:$0xff] }
 0x2ac   : > { %12292 = vmatmul.msk.f32.gmra.mxu3 %vm594_vm0, %v4242_v36 }
 0x2ad   : > { %v2764_v7 = vpop.f32.mrf.mxu2 }
 0x2ae   : > { %v2834_v62 = vadd.f32 %v2764_v7, %v2486_v52  ;;  %v2071_v47 = vpop.f32.mrf.mxu0  ;;  %v3201_v7 = vld [vmem:[%s13761_s26 + $0x37] sm:$0xff] }
 0x2af   : > { %v2419_v0 = vpop.f32.mrf.mxu1  ;;  %v2139_v63 = vadd.f32 %v2071_v47, %v14295_v17  ;;  %v3112_v30 = vpop.f32.mrf.mxu3 }
 0x2b0   : > { %v14812_v46 = vadd.f32 %v3112_v30, %v2834_v62 }
 0x2b1   : > { %v2487_v44 = vadd.f32 %v2419_v0, %v2139_v63  ;;  %12143 = vmatmul.msk.f32.gmra.mxu0 %vm594_vm0, %v3199_v21  ;;  %v3897_v0 = vld [vmem:[%s13761_s26 + $0x48] sm:$0xff] }
 0x2b2   : > { %12193 = vmatmul.msk.f32.gmra.mxu1 %vm594_vm0, %v3893_v43  ;;  %12243 = vmatmul.msk.f32.gmra.mxu2 %vm594_vm0, %v3895_v55  ;;  %v4245_v63 = vld [vmem:[%s13761_s26 + $0x49] sm:$0xff] }
 0x2b4   : > { %12293 = vmatmul.msk.f32.gmra.mxu3 %vm594_vm0, %v4243_v13 }
 0x2b5   : > { %v2767_v25 = vpop.f32.mrf.mxu2 }
 0x2b6   : > { %v2835_v31 = vadd.f32 %v2767_v25, %v2487_v44  ;;  %v2074_v19 = vpop.f32.mrf.mxu0  ;;  %v3202_v25 = vld [vmem:[%s13761_s26 + $0x3f] sm:$0xff] }
 0x2b7   : > { %v2422_v17 = vpop.f32.mrf.mxu1  ;;  %v2140_v3 = vadd.f32 %v2074_v19, %v14304_v33  ;;  %v3115_v49 = vpop.f32.mrf.mxu3 }
 0x2b8   : > { %v14822_v16 = vadd.f32 %v3115_v49, %v2835_v31 }
 0x2b9   : > { %v2488_v43 = vadd.f32 %v2422_v17, %v2140_v3  ;;  %12144 = vmatmul.msk.f32.gmra.mxu0 %vm594_vm0, %v3200_v60  ;;  %v3898_v17 = vld [vmem:[%s13761_s26 + $0x50] sm:$0xff] }
 0x2ba   : > { %12194 = vmatmul.msk.f32.gmra.mxu1 %vm594_vm0, %v3894_v41  ;;  %12244 = vmatmul.msk.f32.gmra.mxu2 %vm594_vm0, %v3896_v27  ;;  %v4246_v3 = vld [vmem:[%s13761_s26 + $0x51] sm:$0xff] }
 0x2bc   : > { %12294 = vmatmul.msk.f32.gmra.mxu3 %vm594_vm0, %v4244_v32 }
 0x2bd   : > { %v2770_v59 = vpop.f32.mrf.mxu2 }
 0x2be   : > { %v2836_v36 = vadd.f32 %v2770_v59, %v2488_v43  ;;  %v2077_v52 = vpop.f32.mrf.mxu0  ;;  %v3203_v59 = vld [vmem:[%s13761_s26 + $0x47] sm:$0xff] }
 0x2bf   : > { %v2425_v33 = vpop.f32.mrf.mxu1  ;;  %v2141_v62 = vadd.f32 %v2077_v52, %v14313_v50  ;;  %v3118_v47 = vpop.f32.mrf.mxu3 }
 0x2c0   : > { %v14832_v21 = vadd.f32 %v3118_v47, %v2836_v36 }
 0x2c1   : > { %v2489_v41 = vadd.f32 %v2425_v33, %v2141_v62  ;;  %12145 = vmatmul.msk.f32.gmra.mxu0 %vm594_vm0, %v3201_v7  ;;  %v3899_v33 = vld [vmem:[%s13761_s26 + $0x58] sm:$0xff] }
 0x2c2   : > { %12195 = vmatmul.msk.f32.gmra.mxu1 %vm594_vm0, %v3895_v55  ;;  %12245 = vmatmul.msk.f32.gmra.mxu2 %vm594_vm0, %v3897_v0  ;;  %v4247_v62 = vld [vmem:[%s13761_s26 + $0x59] sm:$0xff] }
 0x2c4   : > { %12295 = vmatmul.msk.f32.gmra.mxu3 %vm594_vm0, %v4245_v63 }
 0x2c5   : > { %v2773_v30 = vpop.f32.mrf.mxu2 }
 0x2c6   : > { %v2837_v13 = vadd.f32 %v2773_v30, %v2489_v41  ;;  %v2080_v44 = vpop.f32.mrf.mxu0  ;;  %v3204_v30 = vld [vmem:[%s13761_s26 + $0x4f] sm:$0xff] }
 0x2c7   : > { %v2428_v50 = vpop.f32.mrf.mxu1  ;;  %v2142_v31 = vadd.f32 %v2080_v44, %v14322_v2  ;;  %v3121_v19 = vpop.f32.mrf.mxu3 }
 0x2c8   : > { %v14842_v60 = vadd.f32 %v3121_v19, %v2837_v13 }
 0x2c9   : > { %v2490_v55 = vadd.f32 %v2428_v50, %v2142_v31  ;;  %12146 = vmatmul.msk.f32.gmra.mxu0 %vm594_vm0, %v3202_v25  ;;  %v3900_v50 = vld [vmem:[%s13761_s26 + $0x60] sm:$0xff] }
 0x2ca   : > { %12196 = vmatmul.msk.f32.gmra.mxu1 %vm594_vm0, %v3896_v27  ;;  %12246 = vmatmul.msk.f32.gmra.mxu2 %vm594_vm0, %v3898_v17  ;;  %v4248_v31 = vld [vmem:[%s13761_s26 + $0x61] sm:$0xff] }
 0x2cc   : > { %12296 = vmatmul.msk.f32.gmra.mxu3 %vm594_vm0, %v4246_v3 }
 0x2cd   : > { %v2776_v49 = vpop.f32.mrf.mxu2 }
 0x2ce   : > { %v2838_v32 = vadd.f32 %v2776_v49, %v2490_v55  ;;  %v2083_v43 = vpop.f32.mrf.mxu0  ;;  %v3205_v49 = vld [vmem:[%s13761_s26 + $0x57] sm:$0xff] }
 0x2cf   : > { %v2431_v2 = vpop.f32.mrf.mxu1  ;;  %v2143_v36 = vadd.f32 %v2083_v43, %v14331_v22  ;;  %v3124_v52 = vpop.f32.mrf.mxu3 }
 0x2d0   : > { %v14852_v7 = vadd.f32 %v3124_v52, %v2838_v32 }
 0x2d1   : > { %v2491_v27 = vadd.f32 %v2431_v2, %v2143_v36  ;;  %12147 = vmatmul.msk.f32.gmra.mxu0 %vm594_vm0, %v3203_v59  ;;  %v3901_v2 = vld [vmem:[%s13761_s26 + $0x68] sm:$0xff] }
 0x2d2   : > { %12197 = vmatmul.msk.f32.gmra.mxu1 %vm594_vm0, %v3897_v0  ;;  %12247 = vmatmul.msk.f32.gmra.mxu2 %vm594_vm0, %v3899_v33  ;;  %v4249_v36 = vld [vmem:[%s13761_s26 + $0x69] sm:$0xff] }
 0x2d4   : > { %12297 = vmatmul.msk.f32.gmra.mxu3 %vm594_vm0, %v4247_v62 }
 0x2d5   : > { %v2779_v47 = vpop.f32.mrf.mxu2 }
 0x2d6   : > { %v2839_v63 = vadd.f32 %v2779_v47, %v2491_v27  ;;  %v2086_v41 = vpop.f32.mrf.mxu0  ;;  %v3206_v47 = vld [vmem:[%s13761_s26 + $0x5f] sm:$0xff] }
 0x2d7   : > { %v2434_v22 = vpop.f32.mrf.mxu1  ;;  %v2144_v13 = vadd.f32 %v2086_v41, %v14340_v38  ;;  %v3127_v44 = vpop.f32.mrf.mxu3 }
 0x2d8   : > { %v14862_v25 = vadd.f32 %v3127_v44, %v2839_v63 }
 0x2d9   : > { %v2492_v0 = vadd.f32 %v2434_v22, %v2144_v13  ;;  %12148 = vmatmul.msk.f32.gmra.mxu0 %vm594_vm0, %v3204_v30  ;;  %v3902_v22 = vld [vmem:[%s13761_s26 + $0x70] sm:$0xff] }
 0x2da   : > { %12198 = vmatmul.msk.f32.gmra.mxu1 %vm594_vm0, %v3898_v17  ;;  %12248 = vmatmul.msk.f32.gmra.mxu2 %vm594_vm0, %v3900_v50  ;;  %v4250_v13 = vld [vmem:[%s13761_s26 + $0x71] sm:$0xff] }
 0x2dc   : > { %12298 = vmatmul.msk.f32.gmra.mxu3 %vm594_vm0, %v4248_v31 }
 0x2dd   : > { %v2782_v19 = vpop.f32.mrf.mxu2 }
 0x2de   : > { %v2840_v3 = vadd.f32 %v2782_v19, %v2492_v0  ;;  %v2089_v55 = vpop.f32.mrf.mxu0  ;;  %v3207_v19 = vld [vmem:[%s13761_s26 + $0x67] sm:$0xff] }
 0x2df   : > { %v2437_v38 = vpop.f32.mrf.mxu1  ;;  %v2145_v32 = vadd.f32 %v2089_v55, %v14349_v57  ;;  %v3130_v43 = vpop.f32.mrf.mxu3 }
 0x2e0   : > { %v14872_v59 = vadd.f32 %v3130_v43, %v2840_v3 }
 0x2e1   : > { %v2493_v17 = vadd.f32 %v2437_v38, %v2145_v32  ;;  %12149 = vmatmul.msk.f32.gmra.mxu0 %vm594_vm0, %v3205_v49  ;;  %v3903_v38 = vld [vmem:[%s13761_s26 + $0x78] sm:$0xff] }
 0x2e2   : > { %12199 = vmatmul.msk.f32.gmra.mxu1 %vm594_vm0, %v3899_v33  ;;  %12249 = vmatmul.msk.f32.gmra.mxu2 %vm594_vm0, %v3901_v2  ;;  %v4251_v32 = vld [vmem:[%s13761_s26 + $0x79] sm:$0xff] }
 0x2e4   : > { %12299 = vmatmul.msk.f32.gmra.mxu3 %vm594_vm0, %v4249_v36 }
 0x2e5   : > { %v2785_v52 = vpop.f32.mrf.mxu2 }
 0x2e6   : > { %v2841_v62 = vadd.f32 %v2785_v52, %v2493_v17  ;;  %v2092_v27 = vpop.f32.mrf.mxu0  ;;  %v3208_v52 = vld [vmem:[%s13761_s26 + $0x6f] sm:$0xff] }
 0x2e7   : > { %v2440_v57 = vpop.f32.mrf.mxu1  ;;  %v2146_v63 = vadd.f32 %v2092_v27, %v14358_v11  ;;  %v3133_v41 = vpop.f32.mrf.mxu3 }
 0x2e8   : > { %v14882_v30 = vadd.f32 %v3133_v41, %v2841_v62 }
 0x2e9   : > { %v2494_v33 = vadd.f32 %v2440_v57, %v2146_v63  ;;  %12150 = vmatmul.msk.f32.gmra.mxu0 %vm594_vm0, %v3206_v47  ;;  %v3904_v57 = vld [vmem:[%s13761_s26 + $0x80] sm:$0xff] }
 0x2ea   : > { %12200 = vmatmul.msk.f32.gmra.mxu1 %vm594_vm0, %v3900_v50  ;;  %12250 = vmatmul.msk.f32.gmra.mxu2 %vm594_vm0, %v3902_v22  ;;  %v4252_v63 = vld [vmem:[%s13761_s26 + $0x81] sm:$0xff] }
 0x2ec   : > { %12300 = vmatmul.msk.f32.gmra.mxu3 %vm594_vm0, %v4250_v13 }
 0x2ed   : > { %v2788_v44 = vpop.f32.mrf.mxu2 }
 0x2ee   : > { %v2842_v31 = vadd.f32 %v2788_v44, %v2494_v33  ;;  %v2095_v0 = vpop.f32.mrf.mxu0  ;;  %v3209_v44 = vld [vmem:[%s13761_s26 + $0x77] sm:$0xff] }
 0x2ef   : > { %v2443_v11 = vpop.f32.mrf.mxu1  ;;  %v2147_v3 = vadd.f32 %v2095_v0, %v14367_v35  ;;  %v3136_v55 = vpop.f32.mrf.mxu3 }
 0x2f0   : > { %v14892_v49 = vadd.f32 %v3136_v55, %v2842_v31 }
 0x2f1   : > { %v2495_v50 = vadd.f32 %v2443_v11, %v2147_v3  ;;  %12151 = vmatmul.msk.f32.gmra.mxu0 %vm594_vm0, %v3207_v19  ;;  %v3905_v11 = vld [vmem:[%s13761_s26 + $0x88] sm:$0xff] }
 0x2f2   : > { %12201 = vmatmul.msk.f32.gmra.mxu1 %vm594_vm0, %v3901_v2  ;;  %12251 = vmatmul.msk.f32.gmra.mxu2 %vm594_vm0, %v3903_v38  ;;  %v4253_v3 = vld [vmem:[%s13761_s26 + $0x89] sm:$0xff] }
 0x2f4   : > { %12301 = vmatmul.msk.f32.gmra.mxu3 %vm594_vm0, %v4251_v32 }
 0x2f5   : > { %v2791_v43 = vpop.f32.mrf.mxu2 }
 0x2f6   : > { %v2843_v36 = vadd.f32 %v2791_v43, %v2495_v50  ;;  %v2098_v17 = vpop.f32.mrf.mxu0  ;;  %v3210_v43 = vld [vmem:[%s13761_s26 + $0x7f] sm:$0xff] }
 0x2f7   : > { %v2446_v35 = vpop.f32.mrf.mxu1  ;;  %v2148_v62 = vadd.f32 %v2098_v17, %v14376_v54  ;;  %v3139_v27 = vpop.f32.mrf.mxu3 }
 0x2f8   : > { %v14902_v47 = vadd.f32 %v3139_v27, %v2843_v36 }
 0x2f9   : > { %v2496_v2 = vadd.f32 %v2446_v35, %v2148_v62  ;;  %12152 = vmatmul.msk.f32.gmra.mxu0 %vm594_vm0, %v3208_v52  ;;  %v3906_v35 = vld [vmem:[%s13761_s26 + $0x90] sm:$0xff] }
 0x2fa   : > { %12202 = vmatmul.msk.f32.gmra.mxu1 %vm594_vm0, %v3902_v22  ;;  %12252 = vmatmul.msk.f32.gmra.mxu2 %vm594_vm0, %v3904_v57  ;;  %v4254_v62 = vld [vmem:[%s13761_s26 + $0x91] sm:$0xff] }
 0x2fc   : > { %12302 = vmatmul.msk.f32.gmra.mxu3 %vm594_vm0, %v4252_v63 }
 0x2fd   : > { %v2794_v41 = vpop.f32.mrf.mxu2 }
 0x2fe   : > { %v2844_v13 = vadd.f32 %v2794_v41, %v2496_v2  ;;  %v2101_v33 = vpop.f32.mrf.mxu0  ;;  %v3211_v41 = vld [vmem:[%s13761_s26 + $0x87] sm:$0xff] }
 0x2ff   : > { %v2449_v54 = vpop.f32.mrf.mxu1  ;;  %v2149_v31 = vadd.f32 %v2101_v33, %v14385_v15  ;;  %v3142_v0 = vpop.f32.mrf.mxu3 }
 0x300   : > { %v14912_v19 = vadd.f32 %v3142_v0, %v2844_v13 }
 0x301   : > { %v2497_v22 = vadd.f32 %v2449_v54, %v2149_v31  ;;  %12153 = vmatmul.msk.f32.gmra.mxu0 %vm594_vm0, %v3209_v44  ;;  %v3907_v54 = vld [vmem:[%s13761_s26 + $0x98] sm:$0xff] }
 0x302   : > { %12203 = vmatmul.msk.f32.gmra.mxu1 %vm594_vm0, %v3903_v38  ;;  %12253 = vmatmul.msk.f32.gmra.mxu2 %vm594_vm0, %v3905_v11  ;;  %v4255_v31 = vld [vmem:[%s13761_s26 + $0x99] sm:$0xff] }
 0x304   : > { %12303 = vmatmul.msk.f32.gmra.mxu3 %vm594_vm0, %v4253_v3 }
 0x305   : > { %v2797_v55 = vpop.f32.mrf.mxu2 }
 0x306   : > { %v2845_v32 = vadd.f32 %v2797_v55, %v2497_v22  ;;  %v2104_v50 = vpop.f32.mrf.mxu0  ;;  %v3212_v55 = vld [vmem:[%s13761_s26 + $0x8f] sm:$0xff] }
 0x307   : > { %v2452_v15 = vpop.f32.mrf.mxu1  ;;  %v2150_v36 = vadd.f32 %v2104_v50, %v14394_v37  ;;  %v3145_v17 = vpop.f32.mrf.mxu3 }
 0x308   : > { %v14922_v52 = vadd.f32 %v3145_v17, %v2845_v32 }
 0x309   : > { %v2498_v38 = vadd.f32 %v2452_v15, %v2150_v36  ;;  %12154 = vmatmul.msk.f32.gmra.mxu0 %vm594_vm0, %v3210_v43  ;;  %v3908_v15 = vld [vmem:[%s13761_s26 + $0xa0] sm:$0xff] }
 0x30a   : > { %12204 = vmatmul.msk.f32.gmra.mxu1 %vm594_vm0, %v3904_v57  ;;  %12254 = vmatmul.msk.f32.gmra.mxu2 %vm594_vm0, %v3906_v35  ;;  %v4256_v36 = vld [vmem:[%s13761_s26 + $0xa1] sm:$0xff] }
 0x30c   : > { %12304 = vmatmul.msk.f32.gmra.mxu3 %vm594_vm0, %v4254_v62 }
 0x30d   : > { %v2800_v27 = vpop.f32.mrf.mxu2 }
 0x30e   : > { %v2846_v63 = vadd.f32 %v2800_v27, %v2498_v38  ;;  %v2107_v2 = vpop.f32.mrf.mxu0  ;;  %v3213_v27 = vld [vmem:[%s13761_s26 + $0x97] sm:$0xff] }
 0x30f   : > { %v2455_v37 = vpop.f32.mrf.mxu1  ;;  %v2151_v13 = vadd.f32 %v2107_v2, %v14403_v61  ;;  %v3148_v33 = vpop.f32.mrf.mxu3 }
 0x310   : > { %v14932_v44 = vadd.f32 %v3148_v33, %v2846_v63 }
 0x311   : > { %v2499_v57 = vadd.f32 %v2455_v37, %v2151_v13  ;;  %12155 = vmatmul.msk.f32.gmra.mxu0 %vm594_vm0, %v3211_v41  ;;  %v3909_v37 = vld [vmem:[%s13761_s26 + $0xa8] sm:$0xff] }
 0x312   : > { %12205 = vmatmul.msk.f32.gmra.mxu1 %vm594_vm0, %v3905_v11  ;;  %12255 = vmatmul.msk.f32.gmra.mxu2 %vm594_vm0, %v3907_v54  ;;  %v4257_v13 = vld [vmem:[%s13761_s26 + $0xa9] sm:$0xff] }
 0x314   : > { %12305 = vmatmul.msk.f32.gmra.mxu3 %vm594_vm0, %v4255_v31 }
 0x315   : > { %v2803_v0 = vpop.f32.mrf.mxu2 }
 0x316   : > { %v2847_v3 = vadd.f32 %v2803_v0, %v2499_v57  ;;  %v2110_v22 = vpop.f32.mrf.mxu0 }
 0x317   : > { %v2458_v61 = vpop.f32.mrf.mxu1  ;;  %v2152_v32 = vadd.f32 %v2110_v22, %v14413_v24  ;;  %v3151_v50 = vpop.f32.mrf.mxu3 }
 0x318   : > { %v14942_v43 = vadd.f32 %v3151_v50, %v2847_v3 }
 0x319   : > { %v2500_v11 = vadd.f32 %v2458_v61, %v2152_v32  ;;  %12156 = vmatmul.msk.f32.gmra.mxu0 %vm594_vm0, %v3212_v55  ;;  %v3910_v61 = vld [vmem:[%s13761_s26 + $0xb0] sm:$0xff] }
 0x31a   : > { %12206 = vmatmul.msk.f32.gmra.mxu1 %vm594_vm0, %v3906_v35  ;;  %12256 = vmatmul.msk.f32.gmra.mxu2 %vm594_vm0, %v3908_v15  ;;  %v4258_v32 = vld [vmem:[%s13761_s26 + $0xb1] sm:$0xff] }
 0x31c   : > { %12306 = vmatmul.msk.f32.gmra.mxu3 %vm594_vm0, %v4256_v36 }
 0x31d   : > { %v2806_v17 = vpop.f32.mrf.mxu2 }
 0x31e   : > { %v2848_v62 = vadd.f32 %v2806_v17, %v2500_v11  ;;  %v3385_v38 = vpop.f32.mrf.mxu0  ;;  %v3215_v17 = vld [vmem:[%s13761_s26 + $0xa7] sm:$0xff] }
 0x31f   : > { %v3733_v24 = vpop.f32.mrf.mxu1  ;;  %v3154_v63 = vpop.f32.mrf.mxu3  ;;  %v3505_v2 = vadd.f32 %v3385_v38, %v14423_v51  ;;  %v3214_v51 = vld [vmem:[%s13761_s26 + $0x9f] sm:$0xff] }
 0x320   : > { %v14952_v41 = vadd.f32 %v3154_v63, %v2848_v62  ;;  %v4259_v63 = vld [vmem:[%s13761_s26 + $0xb9] sm:$0xff] }
 0x321   : > { %v3853_v35 = vadd.f32 %v3733_v24, %v3505_v2  ;;  %12157 = vmatmul.msk.f32.gmra.mxu0 %vm594_vm0, %v3213_v27  ;;  %v3911_v24 = vld [vmem:[%s13761_s26 + $0xb8] sm:$0xff] }
 0x322   : > { %12207 = vmatmul.msk.f32.gmra.mxu1 %vm594_vm0, %v3907_v54  ;;  %12257 = vmatmul.msk.f32.gmra.mxu2 %vm594_vm0, %v3909_v37 }
 0x324   : > { %12307 = vmatmul.msk.f32.gmra.mxu3 %vm594_vm0, %v4257_v13 }
 0x325   : > { %v4081_v33 = vpop.f32.mrf.mxu2 }
 0x326   : > { %v4201_v31 = vadd.f32 %v4081_v33, %v3853_v35  ;;  %v3388_v57 = vpop.f32.mrf.mxu0  ;;  %v3216_v33 = vld [vmem:[%s13761_s26 + $0xaf] sm:$0xff] }
 0x327   : > { %v3736_v0 = vpop.f32.mrf.mxu1  ;;  %v3506_v3 = vadd.f32 %v3388_v57, %v14433_v20  ;;  %v4429_v22 = vpop.f32.mrf.mxu3 }
 0x328   : > { %v14962_v55 = vadd.f32 %v4429_v22, %v4201_v31 }
 0x329   : > { %v3854_v54 = vadd.f32 %v3736_v0, %v3506_v3  ;;  %12158 = vmatmul.msk.f32.gmra.mxu0 %vm594_vm0, %v3214_v51  ;;  %v3912_v0 = vld [vmem:[%s13761_s26 + $0xc0] sm:$0xff] }
 0x32a   : > { %12208 = vmatmul.msk.f32.gmra.mxu1 %vm594_vm0, %v3908_v15  ;;  %12258 = vmatmul.msk.f32.gmra.mxu2 %vm594_vm0, %v3910_v61  ;;  %v4260_v3 = vld [vmem:[%s13761_s26 + $0xc1] sm:$0xff] }
 0x32c   : > { %12308 = vmatmul.msk.f32.gmra.mxu3 %vm594_vm0, %v4258_v32 }
 0x32d   : > { %v4084_v50 = vpop.f32.mrf.mxu2 }
 0x32e   : > { %v4202_v36 = vadd.f32 %v4084_v50, %v3854_v54  ;;  %v3391_v11 = vpop.f32.mrf.mxu0  ;;  %v3217_v50 = vld [vmem:[%s13761_s26 + $0xb7] sm:$0xff] }
 0x32f   : > { %v3739_v20 = vpop.f32.mrf.mxu1  ;;  %v3507_v62 = vadd.f32 %v3391_v11, %v14443_v40  ;;  %v4432_v38 = vpop.f32.mrf.mxu3 }
 0x330   : > { %v14972_v27 = vadd.f32 %v4432_v38, %v4202_v36 }
 0x331   : > { %v3855_v15 = vadd.f32 %v3739_v20, %v3507_v62  ;;  %12159 = vmatmul.msk.f32.gmra.mxu0 %vm594_vm0, %v3215_v17  ;;  %v3913_v20 = vld [vmem:[%s13761_s26 + $0xc8] sm:$0xff] }
 0x332   : > { %12209 = vmatmul.msk.f32.gmra.mxu1 %vm594_vm0, %v3909_v37  ;;  %12259 = vmatmul.msk.f32.gmra.mxu2 %vm594_vm0, %v3911_v24  ;;  %v4261_v62 = vld [vmem:[%s13761_s26 + $0xc9] sm:$0xff] }
 0x334   : > { %12309 = vmatmul.msk.f32.gmra.mxu3 %vm594_vm0, %v4259_v63 }
 0x335   : > { %v4087_v2 = vpop.f32.mrf.mxu2 }
 0x336   : > { %v4203_v13 = vadd.f32 %v4087_v2, %v3855_v15  ;;  %v3394_v35 = vpop.f32.mrf.mxu0  ;;  %v3218_v2 = vld [vmem:[%s13761_s26 + $0xbf] sm:$0xff] }
 0x337   : > { %v3742_v40 = vpop.f32.mrf.mxu1  ;;  %v3508_v31 = vadd.f32 %v3394_v35, %v14453_v4  ;;  %v4435_v57 = vpop.f32.mrf.mxu3 }
 0x338   : > { %v14982_v51 = vadd.f32 %v4435_v57, %v4203_v13 }
 0x339   : > { %v3856_v37 = vadd.f32 %v3742_v40, %v3508_v31  ;;  %12160 = vmatmul.msk.f32.gmra.mxu0 %vm594_vm0, %v3216_v33  ;;  %v3914_v40 = vld [vmem:[%s13761_s26 + $0xd0] sm:$0xff] }
 0x33a   : > { %12210 = vmatmul.msk.f32.gmra.mxu1 %vm594_vm0, %v3910_v61  ;;  %12260 = vmatmul.msk.f32.gmra.mxu2 %vm594_vm0, %v3912_v0  ;;  %v4262_v31 = vld [vmem:[%s13761_s26 + $0xd1] sm:$0xff] }
 0x33c   : > { %12310 = vmatmul.msk.f32.gmra.mxu3 %vm594_vm0, %v4260_v3 }
 0x33d   : > { %v4090_v22 = vpop.f32.mrf.mxu2 }
 0x33e   : > { %v4204_v32 = vadd.f32 %v4090_v22, %v3856_v37  ;;  %v3397_v54 = vpop.f32.mrf.mxu0  ;;  %v3219_v22 = vld [vmem:[%s13761_s26 + $0xc7] sm:$0xff] }
 0x33f   : > { %v3745_v4 = vpop.f32.mrf.mxu1  ;;  %v3509_v36 = vadd.f32 %v3397_v54, %v14463_v34  ;;  %v4438_v11 = vpop.f32.mrf.mxu3 }
 0x340   : > { %v14992_v17 = vadd.f32 %v4438_v11, %v4204_v32 }
 0x341   : > { %v3857_v61 = vadd.f32 %v3745_v4, %v3509_v36  ;;  %12161 = vmatmul.msk.f32.gmra.mxu0 %vm594_vm0, %v3217_v50  ;;  %v3915_v4 = vld [vmem:[%s13761_s26 + $0xd8] sm:$0xff] }
 0x342   : > { %12211 = vmatmul.msk.f32.gmra.mxu1 %vm594_vm0, %v3911_v24  ;;  %12261 = vmatmul.msk.f32.gmra.mxu2 %vm594_vm0, %v3913_v20  ;;  %v4263_v36 = vld [vmem:[%s13761_s26 + $0xd9] sm:$0xff] }
 0x344   : > { %12311 = vmatmul.msk.f32.gmra.mxu3 %vm594_vm0, %v4261_v62 }
 0x345   : > { %v4093_v38 = vpop.f32.mrf.mxu2 }
 0x346   : > { %v4205_v63 = vadd.f32 %v4093_v38, %v3857_v61  ;;  %v3400_v15 = vpop.f32.mrf.mxu0  ;;  %v3220_v38 = vld [vmem:[%s13761_s26 + $0xcf] sm:$0xff] }
 0x347   : > { %v3748_v34 = vpop.f32.mrf.mxu1  ;;  %v3510_v13 = vadd.f32 %v3400_v15, %v14473_v48  ;;  %v4441_v35 = vpop.f32.mrf.mxu3 }
 0x348   : > { %v15002_v33 = vadd.f32 %v4441_v35, %v4205_v63 }
 0x349   : > { %v3858_v24 = vadd.f32 %v3748_v34, %v3510_v13  ;;  %12162 = vmatmul.msk.f32.gmra.mxu0 %vm594_vm0, %v3218_v2  ;;  %v3916_v34 = vld [vmem:[%s13761_s26 + $0xe0] sm:$0xff] }
 0x34a   : > { %12212 = vmatmul.msk.f32.gmra.mxu1 %vm594_vm0, %v3912_v0  ;;  %12262 = vmatmul.msk.f32.gmra.mxu2 %vm594_vm0, %v3914_v40  ;;  %v4264_v13 = vld [vmem:[%s13761_s26 + $0xe1] sm:$0xff] }
 0x34c   : > { %12312 = vmatmul.msk.f32.gmra.mxu3 %vm594_vm0, %v4262_v31 }
 0x34d   : > { %v4096_v57 = vpop.f32.mrf.mxu2 }
 0x34e   : > { %v4206_v3 = vadd.f32 %v4096_v57, %v3858_v24  ;;  %v3403_v37 = vpop.f32.mrf.mxu0  ;;  %v3221_v57 = vld [vmem:[%s13761_s26 + $0xd7] sm:$0xff] }
 0x34f   : > { %v3751_v48 = vpop.f32.mrf.mxu1  ;;  %v3511_v32 = vadd.f32 %v3403_v37, %v14483_v6  ;;  %v4444_v54 = vpop.f32.mrf.mxu3 }
 0x350   : > { %v15012_v50 = vadd.f32 %v4444_v54, %v4206_v3 }
 0x351   : > { %v3859_v0 = vadd.f32 %v3751_v48, %v3511_v32  ;;  %12163 = vmatmul.msk.f32.gmra.mxu0 %vm594_vm0, %v3219_v22  ;;  %v3917_v48 = vld [vmem:[%s13761_s26 + $0xe8] sm:$0xff] }
 0x352   : > { %12213 = vmatmul.msk.f32.gmra.mxu1 %vm594_vm0, %v3913_v20  ;;  %12263 = vmatmul.msk.f32.gmra.mxu2 %vm594_vm0, %v3915_v4  ;;  %v4265_v32 = vld [vmem:[%s13761_s26 + $0xe9] sm:$0xff] }
 0x354   : > { %12313 = vmatmul.msk.f32.gmra.mxu3 %vm594_vm0, %v4263_v36 }
 0x355   : > { %v4099_v11 = vpop.f32.mrf.mxu2 }
 0x356   : > { %v4207_v62 = vadd.f32 %v4099_v11, %v3859_v0  ;;  %v3406_v61 = vpop.f32.mrf.mxu0  ;;  %v3222_v11 = vld [vmem:[%s13761_s26 + $0xdf] sm:$0xff] }
 0x357   : > { %v3754_v6 = vpop.f32.mrf.mxu1  ;;  %v3512_v63 = vadd.f32 %v3406_v61, %v14493_v28  ;;  %v4447_v15 = vpop.f32.mrf.mxu3 }
 0x358   : > { %v15022_v2 = vadd.f32 %v4447_v15, %v4207_v62 }
 0x359   : > { %v3860_v20 = vadd.f32 %v3754_v6, %v3512_v63  ;;  %12164 = vmatmul.msk.f32.gmra.mxu0 %vm594_vm0, %v3220_v38  ;;  %v3918_v6 = vld [vmem:[%s13761_s26 + $0xf0] sm:$0xff] }
 0x35a   : > { %12214 = vmatmul.msk.f32.gmra.mxu1 %vm594_vm0, %v3914_v40  ;;  %12264 = vmatmul.msk.f32.gmra.mxu2 %vm594_vm0, %v3916_v34  ;;  %v4266_v63 = vld [vmem:[%s13761_s26 + $0xf1] sm:$0xff] }
 0x35c   : > { %12314 = vmatmul.msk.f32.gmra.mxu3 %vm594_vm0, %v4264_v13 }
 0x35d   : > { %v4102_v35 = vpop.f32.mrf.mxu2 }
 0x35e   : > { %v4208_v31 = vadd.f32 %v4102_v35, %v3860_v20  ;;  %v3409_v24 = vpop.f32.mrf.mxu0  ;;  %v3223_v35 = vld [vmem:[%s13761_s26 + $0xe7] sm:$0xff] }
 0x35f   : > { %v3757_v28 = vpop.f32.mrf.mxu1  ;;  %v3513_v3 = vadd.f32 %v3409_v24, %v14503_v53  ;;  %v4450_v37 = vpop.f32.mrf.mxu3 }
 0x360   : > { %v15032_v22 = vadd.f32 %v4450_v37, %v4208_v31 }
 0x361   : > { %v3861_v40 = vadd.f32 %v3757_v28, %v3513_v3  ;;  %12165 = vmatmul.msk.f32.gmra.mxu0 %vm594_vm0, %v3221_v57  ;;  %v3919_v28 = vld [vmem:[%s13761_s26 + $0xf8] sm:$0xff] }
 0x362   : > { %12215 = vmatmul.msk.f32.gmra.mxu1 %vm594_vm0, %v3915_v4  ;;  %12265 = vmatmul.msk.f32.gmra.mxu2 %vm594_vm0, %v3917_v48  ;;  %v4267_v3 = vld [vmem:[%s13761_s26 + $0xf9] sm:$0xff] }
 0x364   : > { %12315 = vmatmul.msk.f32.gmra.mxu3 %vm594_vm0, %v4265_v32 }
 0x365   : > { %v4105_v54 = vpop.f32.mrf.mxu2 }
 0x366   : > { %v4209_v36 = vadd.f32 %v4105_v54, %v3861_v40  ;;  %v3412_v0 = vpop.f32.mrf.mxu0  ;;  %v3224_v54 = vld [vmem:[%s13761_s26 + $0xef] sm:$0xff] }
 0x367   : > { %v3760_v53 = vpop.f32.mrf.mxu1  ;;  %v3514_v62 = vadd.f32 %v3412_v0, %v14513_v8  ;;  %v4453_v61 = vpop.f32.mrf.mxu3 }
 0x368   : > { %v15042_v38 = vadd.f32 %v4453_v61, %v4209_v36 }
 0x369   : > { %v3862_v4 = vadd.f32 %v3760_v53, %v3514_v62  ;;  %12166 = vmatmul.msk.f32.gmra.mxu0 %vm594_vm0, %v3222_v11  ;;  %v3920_v53 = vld [vmem:[%s13761_s26 + $0x100] sm:$0xff] }
 0x36a   : > { %12216 = vmatmul.msk.f32.gmra.mxu1 %vm594_vm0, %v3916_v34  ;;  %12266 = vmatmul.msk.f32.gmra.mxu2 %vm594_vm0, %v3918_v6  ;;  %v4268_v62 = vld [vmem:[%s13761_s26 + $0x101] sm:$0xff] }
 0x36c   : > { %12316 = vmatmul.msk.f32.gmra.mxu3 %vm594_vm0, %v4266_v63 }
 0x36d   : > { %v4108_v15 = vpop.f32.mrf.mxu2 }
 0x36e   : > { %v4210_v13 = vadd.f32 %v4108_v15, %v3862_v4  ;;  %v3415_v20 = vpop.f32.mrf.mxu0  ;;  %v3225_v15 = vld [vmem:[%s13761_s26 + $0xf7] sm:$0xff] }
 0x36f   : > { %v3763_v8 = vpop.f32.mrf.mxu1  ;;  %v3515_v31 = vadd.f32 %v3415_v20, %v14523_v56  ;;  %v4456_v24 = vpop.f32.mrf.mxu3 }
 0x370   : > { %v15052_v57 = vadd.f32 %v4456_v24, %v4210_v13 }
 0x371   : > { %v3863_v34 = vadd.f32 %v3763_v8, %v3515_v31  ;;  %12167 = vmatmul.msk.f32.gmra.mxu0 %vm594_vm0, %v3223_v35  ;;  %v3921_v8 = vld [vmem:[%s13761_s26 + $0x108] sm:$0xff] }
 0x372   : > { %12217 = vmatmul.msk.f32.gmra.mxu1 %vm594_vm0, %v3917_v48  ;;  %12267 = vmatmul.msk.f32.gmra.mxu2 %vm594_vm0, %v3919_v28  ;;  %v4269_v31 = vld [vmem:[%s13761_s26 + $0x109] sm:$0xff] }
 0x374   : > { %12317 = vmatmul.msk.f32.gmra.mxu3 %vm594_vm0, %v4267_v3 }
 0x375   : > { %v4111_v37 = vpop.f32.mrf.mxu2 }
 0x376   : > { %v4211_v32 = vadd.f32 %v4111_v37, %v3863_v34  ;;  %v3418_v40 = vpop.f32.mrf.mxu0  ;;  %v3226_v37 = vld [vmem:[%s13761_s26 + $0xff] sm:$0xff] }
 0x377   : > { %v3766_v56 = vpop.f32.mrf.mxu1  ;;  %v3516_v36 = vadd.f32 %v3418_v40, %v14533_v1  ;;  %v4459_v0 = vpop.f32.mrf.mxu3 }
 0x378   : > { %v15062_v11 = vadd.f32 %v4459_v0, %v4211_v32 }
 0x379   : > { %v3864_v48 = vadd.f32 %v3766_v56, %v3516_v36  ;;  %12168 = vmatmul.msk.f32.gmra.mxu0 %vm594_vm0, %v3224_v54  ;;  %v3922_v56 = vld [vmem:[%s13761_s26 + $0x110] sm:$0xff] }
 0x37a   : > { %12218 = vmatmul.msk.f32.gmra.mxu1 %vm594_vm0, %v3918_v6  ;;  %12268 = vmatmul.msk.f32.gmra.mxu2 %vm594_vm0, %v3920_v53  ;;  %v4270_v36 = vld [vmem:[%s13761_s26 + $0x111] sm:$0xff] }
 0x37c   : > { %12318 = vmatmul.msk.f32.gmra.mxu3 %vm594_vm0, %v4268_v62 }
 0x37d   : > { %v4114_v61 = vpop.f32.mrf.mxu2 }
 0x37e   : > { %v4212_v63 = vadd.f32 %v4114_v61, %v3864_v48  ;;  %v3421_v4 = vpop.f32.mrf.mxu0  ;;  %v3227_v61 = vld [vmem:[%s13761_s26 + $0x107] sm:$0xff] }
 0x37f   : > { %v3769_v1 = vpop.f32.mrf.mxu1  ;;  %v3517_v13 = vadd.f32 %v3421_v4, %v14543_v29  ;;  %v4462_v20 = vpop.f32.mrf.mxu3 }
 0x380   : > { %v15072_v35 = vadd.f32 %v4462_v20, %v4212_v63 }
 0x381   : > { %v3865_v6 = vadd.f32 %v3769_v1, %v3517_v13  ;;  %12169 = vmatmul.msk.f32.gmra.mxu0 %vm594_vm0, %v3225_v15  ;;  %v3923_v1 = vld [vmem:[%s13761_s26 + $0x118] sm:$0xff] }
 0x382   : > { %12219 = vmatmul.msk.f32.gmra.mxu1 %vm594_vm0, %v3919_v28  ;;  %12269 = vmatmul.msk.f32.gmra.mxu2 %vm594_vm0, %v3921_v8  ;;  %v4271_v13 = vld [vmem:[%s13761_s26 + $0x119] sm:$0xff] }
 0x384   : > { %12319 = vmatmul.msk.f32.gmra.mxu3 %vm594_vm0, %v4269_v31 }
 0x385   : > { %v4117_v24 = vpop.f32.mrf.mxu2 }
 0x386   : > { %v4213_v3 = vadd.f32 %v4117_v24, %v3865_v6  ;;  %v3424_v34 = vpop.f32.mrf.mxu0  ;;  %v3228_v24 = vld [vmem:[%s13761_s26 + $0x10f] sm:$0xff] }
 0x387   : > { %v3772_v29 = vpop.f32.mrf.mxu1  ;;  %v3518_v32 = vadd.f32 %v3424_v34, %v14553_v58  ;;  %v4465_v40 = vpop.f32.mrf.mxu3 }
 0x388   : > { %v15082_v54 = vadd.f32 %v4465_v40, %v4213_v3 }
 0x389   : > { %v3866_v28 = vadd.f32 %v3772_v29, %v3518_v32  ;;  %12170 = vmatmul.msk.f32.gmra.mxu0 %vm594_vm0, %v3226_v37  ;;  %v3924_v29 = vld [vmem:[%s13761_s26 + $0x120] sm:$0xff] }
 0x38a   : > { %12220 = vmatmul.msk.f32.gmra.mxu1 %vm594_vm0, %v3920_v53  ;;  %12270 = vmatmul.msk.f32.gmra.mxu2 %vm594_vm0, %v3922_v56  ;;  %v4272_v32 = vld [vmem:[%s13761_s26 + $0x121] sm:$0xff] }
 0x38c   : > { %12320 = vmatmul.msk.f32.gmra.mxu3 %vm594_vm0, %v4270_v36 }
 0x38d   : > { %v4120_v0 = vpop.f32.mrf.mxu2 }
 0x38e   : > { %v4214_v62 = vadd.f32 %v4120_v0, %v3866_v28  ;;  %v3427_v48 = vpop.f32.mrf.mxu0  ;;  %v3229_v0 = vld [vmem:[%s13761_s26 + $0x117] sm:$0xff] }
 0x38f   : > { %v3775_v58 = vpop.f32.mrf.mxu1  ;;  %v3519_v63 = vadd.f32 %v3427_v48, %v14563_v23  ;;  %v4468_v4 = vpop.f32.mrf.mxu3 }
 0x390   : > { %v15092_v15 = vadd.f32 %v4468_v4, %v4214_v62 }
 0x391   : > { %v3867_v53 = vadd.f32 %v3775_v58, %v3519_v63  ;;  %12171 = vmatmul.msk.f32.gmra.mxu0 %vm594_vm0, %v3227_v61  ;;  %v3925_v58 = vld [vmem:[%s13761_s26 + $0x128] sm:$0xff] }
 0x392   : > { %12221 = vmatmul.msk.f32.gmra.mxu1 %vm594_vm0, %v3921_v8  ;;  %12271 = vmatmul.msk.f32.gmra.mxu2 %vm594_vm0, %v3923_v1  ;;  %v4273_v63 = vld [vmem:[%s13761_s26 + $0x129] sm:$0xff] }
 0x394   : > { %12321 = vmatmul.msk.f32.gmra.mxu3 %vm594_vm0, %v4271_v13 }
 0x395   : > { %v4123_v20 = vpop.f32.mrf.mxu2 }
 0x396   : > { %v4215_v31 = vadd.f32 %v4123_v20, %v3867_v53  ;;  %v3430_v6 = vpop.f32.mrf.mxu0  ;;  %v3230_v20 = vld [vmem:[%s13761_s26 + $0x11f] sm:$0xff] }
 0x397   : > { %v3778_v23 = vpop.f32.mrf.mxu1  ;;  %v3520_v3 = vadd.f32 %v3430_v6, %v14573_v42  ;;  %v4471_v34 = vpop.f32.mrf.mxu3 }
 0x398   : > { %v15102_v37 = vadd.f32 %v4471_v34, %v4215_v31 }
 0x399   : > { %v3868_v8 = vadd.f32 %v3778_v23, %v3520_v3  ;;  %12172 = vmatmul.msk.f32.gmra.mxu0 %vm594_vm0, %v3228_v24  ;;  %v15122_v23 = vld [vmem:[%s13761_s26 + $0x130] sm:$0xff] }
 0x39a   : > { %12222 = vmatmul.msk.f32.gmra.mxu1 %vm594_vm0, %v3922_v56  ;;  %12272 = vmatmul.msk.f32.gmra.mxu2 %vm594_vm0, %v3924_v29  ;;  %v4274_v3 = vld [vmem:[%s13761_s26 + $0x131] sm:$0xff] }
 0x39c   : > { %12322 = vmatmul.msk.f32.gmra.mxu3 %vm594_vm0, %v4272_v32 }
 0x39d   : > { %v4126_v40 = vpop.f32.mrf.mxu2 }
 0x39e   : > { %v4216_v36 = vadd.f32 %v4126_v40, %v3868_v8  ;;  %v3433_v28 = vpop.f32.mrf.mxu0  ;;  %v3231_v40 = vld [vmem:[%s13761_s26 + $0x127] sm:$0xff] }
 0x39f   : > { %v3781_v42 = vpop.f32.mrf.mxu1  ;;  %v3521_v62 = vadd.f32 %v3433_v28, %v14585_v10  ;;  %v4474_v48 = vpop.f32.mrf.mxu3  ;;  %v12440_v28 = vld [vmem:[%s19629_s1 + $0x4a8] sm:$0xff] }
 0x3a0   : > { %v15112_v61 = vadd.f32 %v4474_v48, %v4216_v36  ;;  %v12340_v36 = vld [vmem:[%s19629_s1 + $0x408] sm:$0xff]  ;;  %5462 = vmatpush.msrb.mxu2 %v12440_v28  ;;  %v4275_v48 = vld [vmem:[%s13761_s26 + $0x139] sm:$0xff] }
 0x3a1   : > { %v3869_v56 = vadd.f32 %v3781_v42, %v3521_v62  ;;  %12173 = vmatmul.msk.f32.gmra.mxu0 %vm594_vm0, %v3229_v0  ;;  %v15141_v0 = vld [vmem:[%s13761_s26 + $0x138] sm:$0xff] }
 0x3a2   : > { %12223 = vmatmul.msk.f32.gmra.mxu1 %vm594_vm0, %v3923_v1  ;;  %12273 = vmatmul.msk.f32.gmra.mxu2 %vm594_vm0, %v3925_v58 }
 0x3a3   : > { %4766 = vmatpush.msrb.mxu0 %v12340_v36 }
 0x3a4   : > { %12323 = vmatmul.msk.f32.gmra.mxu3 %vm594_vm0, %v4273_v63  ;;  %v12339_v63 = vld [vmem:[%s19629_s1 + $0x400] sm:$0xff] }
 0x3a5   : > { %v4129_v4 = vpop.f32.mrf.mxu2  ;;  %4767 = vmatpush.msrb.mxu0 %v12339_v63  ;;  %v4276_v63 = vld [vmem:[%s13761_s26 + $0x141] sm:$0xff] }
 0x3a6   : > { %v4217_v13 = vadd.f32 %v4129_v4, %v3869_v56  ;;  %v3436_v53 = vpop.f32.mrf.mxu0  ;;  %v12390_v56 = vld [vmem:[%s19629_s1 + $0x458] sm:$0xff] }
 0x3a7   : > { %v3784_v10 = vpop.f32.mrf.mxu1  ;;  %v3522_v31 = vadd.f32 %v3436_v53, %v14604_v9  ;;  %v4477_v6 = vpop.f32.mrf.mxu3  ;;  %v12338_v53 = vld [vmem:[%s19629_s1 + $0x3f8] sm:$0xff]  ;;  %5114 = vmatpush.msrb.mxu1 %v12390_v56  ;;  %v12387_v56 = vld [vmem:[%s19629_s1 + $0x440] sm:$0xff] }
 0x3a8   : > { %v15124_v24 = vadd.f32 %v4477_v6, %v4217_v13  ;;  %v12490_v13 = vld [vmem:[%s19629_s1 + $0x4f8] sm:$0xff]  ;;  %v12388_v6 = vld [vmem:[%s19629_s1 + $0x448] sm:$0xff]  ;;  %4768 = vmatpush.msrb.mxu0 %v12338_v53  ;;  %v12435_v53 = vld [vmem:[%s19629_s1 + $0x480] sm:$0xff] }
 0x3a9   : > { %v3870_v1 = vadd.f32 %v3784_v10, %v3522_v31  ;;  %12174 = vmatmul.msk.f32.gmra.mxu0 %vm594_vm0, %v3230_v20  ;;  %v12438_v10 = vld [vmem:[%s19629_s1 + $0x498] sm:$0xff]  ;;  %v12489_v20 = vld [vmem:[%s19629_s1 + $0x4f0] sm:$0xff]  ;;  %5810 = vmatpush.msrb.mxu3 %v12490_v13  ;;  %v12335_v13 = vld [vmem:[%s19629_s1 + $0x3e0] sm:$0xff] }
 0x3aa   : > { %12224 = vmatmul.msk.f32.gmra.mxu1 %vm594_vm0, %v3924_v29  ;;  %12274 = vmatmul.msk.f32.gmra.mxu2 %vm594_vm0, %v15122_v23  ;;  %v12337_v31 = vld [vmem:[%s19629_s1 + $0x3f0] sm:$0xff] }
 0x3ab   : > { %5811 = vmatpush.msrb.mxu3 %v12489_v20  ;;  %4769 = vmatpush.msrb.mxu0 %v12337_v31  ;;  %v12385_v20 = vld [vmem:[%s19629_s1 + $0x430] sm:$0xff] }
 0x3ac   : > { %12324 = vmatmul.msk.f32.gmra.mxu3 %vm594_vm0, %v4274_v3 }
 0x3ad   : > { %v4132_v34 = vpop.f32.mrf.mxu2 }
 0x3ae   : > { %v4218_v9 = vadd.f32 %v4132_v34, %v3870_v1  ;;  %v3439_v32 = vpop.f32.mrf.mxu0  ;;  %v12437_v1 = vld [vmem:[%s19629_s1 + $0x490] sm:$0xff]  ;;  %v12488_v34 = vld [vmem:[%s19629_s1 + $0x4e8] sm:$0xff] }
 0x3af   : > { %v3787_v8 = vpop.f32.mrf.mxu1  ;;  %v3523_v29 = vadd.f32 %v3439_v32, %v14656_v18  ;;  %v4480_v42 = vpop.f32.mrf.mxu3  ;;  %v12439_v18 = vld [vmem:[%s19629_s1 + $0x4a0] sm:$0xff]  ;;  %5812 = vmatpush.msrb.mxu3 %v12488_v34 }
 0x3b0   : > { %v15143_v62 = vadd.f32 %v4480_v42, %v4218_v9  ;;  %5463 = vmatpush.msrb.mxu2 %v12439_v18  ;;  %v12336_v42 = vld [vmem:[%s19629_s1 + $0x3e8] sm:$0xff]  ;;  %v12487_v18 = vld [vmem:[%s19629_s1 + $0x4e0] sm:$0xff] }
 0x3b1   : > { %v3871_v4 = vadd.f32 %v3787_v8, %v3523_v29  ;;  %12175 = vmatmul.msk.f32.gmra.mxu0 %vm594_vm0, %v3231_v40  ;;  %v3232_v40 = vld [vmem:[%s13761_s26 + $0x12f] sm:$0xff]  ;;  %v15190_v29 = vld [vmem:[%s13761_s26 + $0x140] sm:$0xff]  ;;  %5813 = vmatpush.msrb.mxu3 %v12487_v18 }
 0x3b2   : > { %12225 = vmatmul.msk.f32.gmra.mxu1 %vm594_vm0, %v3925_v58  ;;  %12275 = vmatmul.msk.f32.gmra.mxu2 %vm594_vm0, %v15141_v0  ;;  %v12389_v58 = vld [vmem:[%s19629_s1 + $0x450] sm:$0xff]  ;;  %v12332_v18 = vld [vmem:[%s19629_s1 + $0x3c8] sm:$0xff] }
 0x3b3   : > { %5115 = vmatpush.msrb.mxu1 %v12389_v58  ;;  %5464 = vmatpush.msrb.mxu2 %v12438_v10  ;;  %v12486_v58 = vld [vmem:[%s19629_s1 + $0x4d8] sm:$0xff] }
 0x3b4   : > { %12325 = vmatmul.msk.f32.gmra.mxu3 %vm594_vm0, %v4275_v48  ;;  %4770 = vmatpush.msrb.mxu0 %v12336_v42  ;;  %v12334_v10 = vld [vmem:[%s19629_s1 + $0x3d8] sm:$0xff] }
 0x3b5   : > { %v4135_v3 = vpop.f32.mrf.mxu2  ;;  %5116 = vmatpush.msrb.mxu1 %v12388_v6  ;;  %5465 = vmatpush.msrb.mxu2 %v12437_v1  ;;  %v12434_v6 = vld [vmem:[%s19629_s1 + $0x478] sm:$0xff] }
 0x3b6   : > { %v4219_v9 = vadd.f32 %v4135_v3, %v3871_v4  ;;  %v3442_v32 = vpop.f32.mrf.mxu0  ;;  %4771 = vmatpush.msrb.mxu0 %v12335_v13  ;;  %v12485_v3 = vld [vmem:[%s19629_s1 + $0x4d0] sm:$0xff]  ;;  %5814 = vmatpush.msrb.mxu3 %v12486_v58  ;;  %v12432_v13 = vld [vmem:[%s19629_s1 + $0x468] sm:$0xff]  ;;  %v12382_v58 = vld [vmem:[%s19629_s1 + $0x418] sm:$0xff] }
 0x3b7   : > { %v3790_v8 = vpop.f32.mrf.mxu1  ;;  %v3524_v36 = vadd.f32 %v3442_v32, %v14706_v39  ;;  %v4483_v28 = vpop.f32.mrf.mxu3  ;;  %v12436_v39 = vld [vmem:[%s19629_s1 + $0x488] sm:$0xff]  ;;  %5117 = vmatpush.msrb.mxu1 %v12387_v56  ;;  %v3233_v32 = vld [vmem:[%s13761_s26 + $0x137] sm:$0xff] }
 0x3b8   : > { %v15195_v48 = vadd.f32 %v4483_v28, %v4219_v9  ;;  %5466 = vmatpush.msrb.mxu2 %v12436_v39  ;;  %4772 = vmatpush.msrb.mxu0 %v12334_v10  ;;  %v12333_v28 = vld [vmem:[%s19629_s1 + $0x3d0] sm:$0xff]  ;;  %v12384_v56 = vld [vmem:[%s19629_s1 + $0x428] sm:$0xff] }
 0x3b9   : > { %v3872_v4 = vadd.f32 %v3790_v8, %v3524_v36  ;;  %12176 = vmatmul.msk.f32.gmra.mxu0 %vm594_vm0, %v3232_v40  ;;  %v15240_v36 = vld [vmem:[%s13761_s26 + $0x148] sm:$0xff]  ;;  %5815 = vmatpush.msrb.mxu3 %v12485_v3 }
 0x3ba   : > { %12226 = vmatmul.msk.f32.gmra.mxu1 %vm594_vm0, %v15122_v23  ;;  %12276 = vmatmul.msk.f32.gmra.mxu2 %vm594_vm0, %v15190_v29  ;;  %v12386_v23 = vld [vmem:[%s19629_s1 + $0x438] sm:$0xff]  ;;  %v12484_v39 = vld [vmem:[%s19629_s1 + $0x4c8] sm:$0xff] }
 0x3bb   : > { %5118 = vmatpush.msrb.mxu1 %v12386_v23  ;;  %5467 = vmatpush.msrb.mxu2 %v12435_v53  ;;  %v12483_v23 = vld [vmem:[%s19629_s1 + $0x4c0] sm:$0xff] }
 0x3bc   : > { %12326 = vmatmul.msk.f32.gmra.mxu3 %vm594_vm0, %v4276_v63  ;;  %v4277_v63 = vld [vmem:[%s13761_s26 + $0x149] sm:$0xff]  ;;  %4773 = vmatpush.msrb.mxu0 %v12333_v28  ;;  %v12331_v53 = vld [vmem:[%s19629_s1 + $0x3c0] sm:$0xff] }
 0x3bd   : > { %v4138_v31 = vpop.f32.mrf.mxu2  ;;  %5119 = vmatpush.msrb.mxu1 %v12385_v20  ;;  %5468 = vmatpush.msrb.mxu2 %v12434_v6  ;;  %v12431_v20 = vld [vmem:[%s19629_s1 + $0x460] sm:$0xff] }
 0x3be   : > { %v4220_v1 = vadd.f32 %v4138_v31, %v3872_v4  ;;  %v3445_v34 = vpop.f32.mrf.mxu0  ;;  %5816 = vmatpush.msrb.mxu3 %v12484_v39  ;;  %4774 = vmatpush.msrb.mxu0 %v12332_v18  ;;  %v12482_v31 = vld [vmem:[%s19629_s1 + $0x4b8] sm:$0xff] }
 0x3bf   : > { %v3793_v9 = vpop.f32.mrf.mxu1  ;;  %v3525_v8 = vadd.f32 %v3445_v34, %v14754_v45  ;;  %v4486_v40 = vpop.f32.mrf.mxu3  ;;  %v12433_v45 = vld [vmem:[%s19629_s1 + $0x470] sm:$0xff]  ;;  %5120 = vmatpush.msrb.mxu1 %v12384_v56  ;;  %v3234_v34 = vld [vmem:[%s13761_s26 + $0x13f] sm:$0xff] }
 0x3c0   : > { %v15245_v42 = vadd.f32 %v4486_v40, %v4220_v1  ;;  %5469 = vmatpush.msrb.mxu2 %v12433_v45  ;;  %5817 = vmatpush.msrb.mxu3 %v12483_v23  ;;  %v12381_v40 = vld [vmem:[%s19629_s1 + $0x410] sm:$0xff]  ;;  %v3931_v23 = vld [vmem:[%s13761_s26 + $0x158] sm:$0xff] }
 0x3c1   : > { %v3873_v4 = vadd.f32 %v3793_v9, %v3525_v8  ;;  %12177 = vmatmul.msk.f32.gmra.mxu0 %vm594_vm0, %v3233_v32  ;;  %v3930_v8 = vld [vmem:[%s13761_s26 + $0x150] sm:$0xff] }
 0x3c2   : > { %12227 = vmatmul.msk.f32.gmra.mxu1 %vm594_vm0, %v15141_v0  ;;  %12277 = vmatmul.msk.f32.gmra.mxu2 %vm594_vm0, %v15240_v36  ;;  %v12383_v0 = vld [vmem:[%s19629_s1 + $0x420] sm:$0xff] }
 0x3c3   : > { %5121 = vmatpush.msrb.mxu1 %v12383_v0  ;;  %5470 = vmatpush.msrb.mxu2 %v12432_v13  ;;  %v3235_v0 = vld [vmem:[%s13761_s26 + $0x147] sm:$0xff] }
 0x3c4   : > { %12327 = vmatmul.msk.f32.gmra.mxu3 %vm594_vm0, %v4277_v63  ;;  %4775 = vmatpush.msrb.mxu0 %v12331_v53  ;;  %v4278_v63 = vld [vmem:[%s13761_s26 + $0x151] sm:$0xff] }
 0x3c5   : > { %v4141_v10 = vpop.f32.mrf.mxu2  ;;  %5122 = vmatpush.msrb.mxu1 %v12382_v58  ;;  %5471 = vmatpush.msrb.mxu2 %v12431_v20  ;;  %v4279_v58 = vld [vmem:[%s13761_s26 + $0x159] sm:$0xff] }
 0x3c6   : > { %v4221_v6 = vadd.f32 %v4141_v10, %v3873_v4  ;;  %v3448_v3 = vpop.f32.mrf.mxu0  ;;  %5818 = vmatpush.msrb.mxu3 %v12482_v31 }
 0x3c7   : > { %v3796_v1 = vpop.f32.mrf.mxu1  ;;  %v3526_v9 = vadd.f32 %v3448_v3, %v14768_v26  ;;  %v4489_v32 = vpop.f32.mrf.mxu3  ;;  %v12481_v26 = vld [vmem:[%s19629_s1 + $0x4b0] sm:$0xff]  ;;  %5123 = vmatpush.msrb.mxu1 %v12381_v40 }
 0x3c8   : > { %v15293_v28 = vadd.f32 %v4489_v32, %v4221_v6  ;;  %5819 = vmatpush.msrb.mxu3 %v12481_v26  ;;  %v3236_v3 = vld [vmem:[%s13761_s26 + $0x14f] sm:$0xf]  ;;  %v3932_v32 = vld [vmem:[%s13761_s26 + $0x160] sm:$0xf] }
 0x3c9   : > { %v3874_v56 = vadd.f32 %v3796_v1, %v3526_v9  ;;  %12178 = vmatmul.msk.f32.gmra.mxu0 %vm594_vm0, %v3234_v34  ;;  %v3584_v1 = vld [vmem:[%s13761_s26 + $0x150] sm:$0xf] }
 0x3ca   : > { %12228 = vmatmul.msk.f32.gmra.mxu1 %vm594_vm0, %v15190_v29  ;;  %12278 = vmatmul.msk.f32.gmra.mxu2 %vm594_vm0, %v3930_v8 }
 0x3cc   : > { %12328 = vmatmul.msk.f32.gmra.mxu3 %vm594_vm0, %v4278_v63 }
 0x3cd   : > { %v4144_v4 = vpop.f32.mrf.mxu2 }
 0x3ce   : > { %v4222_v45 = vadd.f32 %v4144_v4, %v3874_v56  ;;  %v3451_v39 = vpop.f32.mrf.mxu0  ;;  %v4589_v4 = vld [vmem:[%s13761_s26 + $0x2a] sm:$0xff] }
 0x3cf   : > { %v3799_v18 = vpop.f32.mrf.mxu1  ;;  %v3527_v13 = vadd.f32 %v3451_v39, %v14780_v12  ;;  %v4492_v29 = vpop.f32.mrf.mxu3 }
 0x3d0   : > { %v15307_v53 = vadd.f32 %v4492_v29, %v4222_v45  ;;  %v4937_v45 = vld [vmem:[%s13761_s26 + $0x2b] sm:$0xff]  ;;  %v5633_v29 = vld [vmem:[%s13761_s26 + $0x3c] sm:$0xff] }
 0x3d1   : > { %v3875_v10 = vadd.f32 %v3799_v18, %v3527_v13  ;;  %12179 = vmatmul.msk.f32.gmra.mxu0 %vm594_vm0, %v3235_v0  ;;  %v5285_v0 = vld [vmem:[%s13761_s26 + $0x2c] sm:$0xff] }
 0x3d2   : > { %12229 = vmatmul.msk.f32.gmra.mxu1 %vm594_vm0, %v15240_v36  ;;  %12279 = vmatmul.msk.f32.gmra.mxu2 %vm594_vm0, %v3931_v23  ;;  %v4280_v36 = vld [vmem:[%s13761_s26 + $0x161] sm:$0xf] }
 0x3d4   : > { %12329 = vmatmul.msk.f32.gmra.mxu3 %vm594_vm0, %v4279_v58 }
 0x3d5   : > { %v4147_v20 = vpop.f32.mrf.mxu2 }
 0x3d6   : > { %v4223_v31 = vadd.f32 %v4147_v20, %v3875_v10  ;;  %v3454_v12 = vpop.f32.mrf.mxu0 }
 0x3d7   : > { %v3802_v6 = vpop.f32.mrf.mxu1  ;;  %v3528_v34 = vadd.f32 %v3454_v12, %v14791_v14  ;;  %v4495_v9 = vpop.f32.mrf.mxu3  ;;  %v4938_v12 = vld [vmem:[%s13761_s26 + $0x33] sm:$0xff] }
 0x3d8   : > { %v15319_v8 = vadd.f32 %v4495_v9, %v4223_v31  ;;  %v4590_v31 = vld [vmem:[%s13761_s26 + $0x32] sm:$0xff]  ;;  %v5634_v9 = vld [vmem:[%s13761_s26 + $0x44] sm:$0xff] }
 0x3d9   : > { %v3876_v40 = vadd.f32 %v3802_v6, %v3528_v34  ;;  %12180 = vmatmul.msk.f32.gmra.mxu0 %vm594_vm0, %v3236_v3 }
 0x3da   : > { %12230 = vmatmul.msk.f32.gmra.mxu1 %vm594_vm0, %v3584_v1  ;;  %12280 = vmatmul.msk.f32.gmra.mxu2 %vm594_vm0, %v3932_v32  ;;  %v5286_v1 = vld [vmem:[%s13761_s26 + $0x34] sm:$0xff] }
 0x3dc   : > { %12330 = vmatmul.msk.f32.gmra.mxu3 %vm594_vm0, %v4280_v36 }
 0x3dd   : > { %v4150_v63 = vpop.f32.mrf.mxu2 }
 0x3de   : > { %v4224_v56 = vadd.f32 %v4150_v63, %v3876_v40  ;;  %v3457_v26 = vpop.f32.mrf.mxu0 }
 0x3df   : > { %v3805_v14 = vpop.f32.mrf.mxu1  ;;  %v3529_v39 = vadd.f32 %v3457_v26, %v14802_v5  ;;  %v4498_v18 = vpop.f32.mrf.mxu3  ;;  %v4939_v26 = vld [vmem:[%s13761_s26 + $0x3b] sm:$0xff] }
 0x3e0   : > { %v15330_v13 = vadd.f32 %v4498_v18, %v4224_v56 }
 0x3e1   : > { %v3877_v23 = vadd.f32 %v3805_v14, %v3529_v39  ;;  %12341 = vmatmul.msk.f32.vlgmr.msrb.gmra.mxu0 %vm594_vm0, %v4589_v4  ;;  %v5635_v39 = vld [vmem:[%s13761_s26 + $0x4c] sm:$0xff] }
 0x3e2   : > { %12391 = vmatmul.msk.f32.vlgmr.msrb.gmra.mxu1 %vm594_vm0, %v4937_v45  ;;  %12441 = vmatmul.msk.f32.vlgmr.msrb.gmra.mxu2 %vm594_vm0, %v5285_v0 }
 0x3e4   : > { %12491 = vmatmul.msk.f32.vlgmr.msrb.gmra.mxu3 %vm594_vm0, %v5633_v29 }
 0x3e5   : > { %v4153_v58 = vpop.f32.mrf.mxu2 }
 0x3e6   : > { %v4225_v10 = vadd.f32 %v4153_v58, %v3877_v23  ;;  %v3460_v20 = vpop.f32.mrf.mxu0 }
 0x3e7   : > { %v3808_v5 = vpop.f32.mrf.mxu1  ;;  %v3530_v6 = vadd.f32 %v3460_v20, %v14812_v46  ;;  %v4501_v3 = vpop.f32.mrf.mxu3  ;;  %v4591_v46 = vld [vmem:[%s13761_s26 + $0x3a] sm:$0xff]  ;;  %v4940_v20 = vld [vmem:[%s13761_s26 + $0x43] sm:$0xff] }
 0x3e8   : > { %v15341_v34 = vadd.f32 %v4501_v3, %v4225_v10 }
 0x3e9   : > { %v3878_v32 = vadd.f32 %v3808_v5, %v3530_v6  ;;  %12342 = vmatmul.msk.f32.gmra.mxu0 %vm594_vm0, %v4590_v31  ;;  %v5636_v6 = vld [vmem:[%s13761_s26 + $0x54] sm:$0xff] }
 0x3ea   : > { %12392 = vmatmul.msk.f32.gmra.mxu1 %vm594_vm0, %v4938_v12  ;;  %12442 = vmatmul.msk.f32.gmra.mxu2 %vm594_vm0, %v5286_v1 }
 0x3ec   : > { %12492 = vmatmul.msk.f32.gmra.mxu3 %vm594_vm0, %v5634_v9 }
 0x3ed   : > { %v4156_v36 = vpop.f32.mrf.mxu2 }
 0x3ee   : > { %v4226_v40 = vadd.f32 %v4156_v36, %v3878_v32  ;;  %v3463_v63 = vpop.f32.mrf.mxu0 }
 0x3ef   : > { %v3811_v56 = vpop.f32.mrf.mxu1  ;;  %v3531_v14 = vadd.f32 %v3463_v63, %v14822_v16  ;;  %v4504_v4 = vpop.f32.mrf.mxu3  ;;  %v4592_v16 = vld [vmem:[%s13761_s26 + $0x42] sm:$0xff] }
 0x3f0   : > { %v15351_v45 = vadd.f32 %v4504_v4, %v4226_v40  ;;  %v4941_v40 = vld [vmem:[%s13761_s26 + $0x4b] sm:$0xff] }
 0x3f1   : > { %v3879_v18 = vadd.f32 %v3811_v56, %v3531_v14  ;;  %12343 = vmatmul.msk.f32.gmra.mxu0 %vm594_vm0, %v4591_v46 }
 0x3f2   : > { %12393 = vmatmul.msk.f32.gmra.mxu1 %vm594_vm0, %v4939_v26  ;;  %12443 = vmatmul.msk.f32.gmra.mxu2 %vm594_vm0, %v5633_v29  ;;  %v5637_v26 = vld [vmem:[%s13761_s26 + $0x5c] sm:$0xff] }
 0x3f4   : > { %12493 = vmatmul.msk.f32.gmra.mxu3 %vm594_vm0, %v5635_v39 }
 0x3f5   : > { %v4159_v0 = vpop.f32.mrf.mxu2 }
 0x3f6   : > { %v4227_v23 = vadd.f32 %v4159_v0, %v3879_v18  ;;  %v3466_v58 = vpop.f32.mrf.mxu0 }
 0x3f7   : > { %v3814_v10 = vpop.f32.mrf.mxu1  ;;  %v3532_v5 = vadd.f32 %v3466_v58, %v14832_v21  ;;  %v4507_v31 = vpop.f32.mrf.mxu3  ;;  %v4593_v21 = vld [vmem:[%s13761_s26 + $0x4a] sm:$0xff] }
 0x3f8   : > { %v15361_v12 = vadd.f32 %v4507_v31, %v4227_v23  ;;  %v4942_v23 = vld [vmem:[%s13761_s26 + $0x53] sm:$0xff] }
 0x3f9   : > { %v3880_v3 = vadd.f32 %v3814_v10, %v3532_v5  ;;  %12344 = vmatmul.msk.f32.gmra.mxu0 %vm594_vm0, %v4592_v16 }
 0x3fa   : > { %12394 = vmatmul.msk.f32.gmra.mxu1 %vm594_vm0, %v4940_v20  ;;  %12444 = vmatmul.msk.f32.gmra.mxu2 %vm594_vm0, %v5634_v9  ;;  %v5638_v20 = vld [vmem:[%s13761_s26 + $0x64] sm:$0xff] }
 0x3fc   : > { %12494 = vmatmul.msk.f32.gmra.mxu3 %vm594_vm0, %v5636_v6 }
 0x3fd   : > { %v4162_v29 = vpop.f32.mrf.mxu2 }
 0x3fe   : > { %v4228_v1 = vadd.f32 %v4162_v29, %v3880_v3  ;;  %v3469_v32 = vpop.f32.mrf.mxu0 }
 0x3ff   : > { %v3817_v36 = vpop.f32.mrf.mxu1  ;;  %v3533_v63 = vadd.f32 %v3469_v32, %v14842_v60  ;;  %v4510_v56 = vpop.f32.mrf.mxu3  ;;  %v4594_v60 = vld [vmem:[%s13761_s26 + $0x52] sm:$0xff] }
 0x400   : > { %v15371_v46 = vadd.f32 %v4510_v56, %v4228_v1  ;;  %v4943_v1 = vld [vmem:[%s13761_s26 + $0x5b] sm:$0xff] }
 0x401   : > { %v3881_v14 = vadd.f32 %v3817_v36, %v3533_v63  ;;  %12345 = vmatmul.msk.f32.gmra.mxu0 %vm594_vm0, %v4593_v21 }
 0x402   : > { %12395 = vmatmul.msk.f32.gmra.mxu1 %vm594_vm0, %v4941_v40  ;;  %12445 = vmatmul.msk.f32.gmra.mxu2 %vm594_vm0, %v5635_v39  ;;  %v5639_v40 = vld [vmem:[%s13761_s26 + $0x6c] sm:$0xff] }
 0x404   : > { %12495 = vmatmul.msk.f32.gmra.mxu3 %vm594_vm0, %v5637_v26 }
 0x405   : > { %v4165_v9 = vpop.f32.mrf.mxu2 }
 0x406   : > { %v4229_v4 = vadd.f32 %v4165_v9, %v3881_v14  ;;  %v3472_v18 = vpop.f32.mrf.mxu0 }
 0x407   : > { %v3820_v0 = vpop.f32.mrf.mxu1  ;;  %v3534_v58 = vadd.f32 %v3472_v18, %v14852_v7  ;;  %v4513_v10 = vpop.f32.mrf.mxu3  ;;  %v4595_v7 = vld [vmem:[%s13761_s26 + $0x5a] sm:$0xff] }
 0x408   : > { %v15381_v16 = vadd.f32 %v4513_v10, %v4229_v4  ;;  %v4944_v4 = vld [vmem:[%s13761_s26 + $0x63] sm:$0xff] }
 0x409   : > { %v3882_v5 = vadd.f32 %v3820_v0, %v3534_v58  ;;  %12346 = vmatmul.msk.f32.gmra.mxu0 %vm594_vm0, %v4594_v60 }
 0x40a   : > { %12396 = vmatmul.msk.f32.gmra.mxu1 %vm594_vm0, %v4942_v23  ;;  %12446 = vmatmul.msk.f32.gmra.mxu2 %vm594_vm0, %v5636_v6  ;;  %v5640_v23 = vld [vmem:[%s13761_s26 + $0x74] sm:$0xff] }
 0x40c   : > { %12496 = vmatmul.msk.f32.gmra.mxu3 %vm594_vm0, %v5638_v20 }
 0x40d   : > { %v4168_v39 = vpop.f32.mrf.mxu2 }
 0x40e   : > { %v4230_v31 = vadd.f32 %v4168_v39, %v3882_v5  ;;  %v3475_v3 = vpop.f32.mrf.mxu0 }
 0x40f   : > { %v3823_v29 = vpop.f32.mrf.mxu1  ;;  %v3535_v32 = vadd.f32 %v3475_v3, %v14862_v25  ;;  %v4516_v36 = vpop.f32.mrf.mxu3  ;;  %v4596_v25 = vld [vmem:[%s13761_s26 + $0x62] sm:$0xff] }
 0x410   : > { %v15391_v21 = vadd.f32 %v4516_v36, %v4230_v31  ;;  %v4945_v31 = vld [vmem:[%s13761_s26 + $0x6b] sm:$0xff] }
 0x411   : > { %v3883_v63 = vadd.f32 %v3823_v29, %v3535_v32  ;;  %12347 = vmatmul.msk.f32.gmra.mxu0 %vm594_vm0, %v4595_v7 }
 0x412   : > { %12397 = vmatmul.msk.f32.gmra.mxu1 %vm594_vm0, %v4943_v1  ;;  %12447 = vmatmul.msk.f32.gmra.mxu2 %vm594_vm0, %v5637_v26  ;;  %v5641_v1 = vld [vmem:[%s13761_s26 + $0x7c] sm:$0xff] }
 0x414   : > { %12497 = vmatmul.msk.f32.gmra.mxu3 %vm594_vm0, %v5639_v40 }
 0x415   : > { %v4171_v6 = vpop.f32.mrf.mxu2 }
 0x416   : > { %v4231_v56 = vadd.f32 %v4171_v6, %v3883_v63  ;;  %v3478_v14 = vpop.f32.mrf.mxu0 }
 0x417   : > { %v3826_v9 = vpop.f32.mrf.mxu1  ;;  %v3536_v18 = vadd.f32 %v3478_v14, %v14872_v59  ;;  %v4519_v0 = vpop.f32.mrf.mxu3  ;;  %v4597_v59 = vld [vmem:[%s13761_s26 + $0x6a] sm:$0xff] }
 0x418   : > { %v15401_v60 = vadd.f32 %v4519_v0, %v4231_v56  ;;  %v4946_v56 = vld [vmem:[%s13761_s26 + $0x73] sm:$0xff] }
 0x419   : > { %v3884_v58 = vadd.f32 %v3826_v9, %v3536_v18  ;;  %12348 = vmatmul.msk.f32.gmra.mxu0 %vm594_vm0, %v4596_v25 }
 0x41a   : > { %12398 = vmatmul.msk.f32.gmra.mxu1 %vm594_vm0, %v4944_v4  ;;  %12448 = vmatmul.msk.f32.gmra.mxu2 %vm594_vm0, %v5638_v20  ;;  %v5642_v4 = vld [vmem:[%s13761_s26 + $0x84] sm:$0xff] }
 0x41c   : > { %12498 = vmatmul.msk.f32.gmra.mxu3 %vm594_vm0, %v5640_v23 }
 0x41d   : > { %v4174_v26 = vpop.f32.mrf.mxu2 }
 0x41e   : > { %v4232_v10 = vadd.f32 %v4174_v26, %v3884_v58  ;;  %v3481_v5 = vpop.f32.mrf.mxu0 }
 0x41f   : > { %v3829_v39 = vpop.f32.mrf.mxu1  ;;  %v3537_v3 = vadd.f32 %v3481_v5, %v14882_v30  ;;  %v4522_v29 = vpop.f32.mrf.mxu3  ;;  %v4598_v30 = vld [vmem:[%s13761_s26 + $0x72] sm:$0xff] }
 0x420   : > { %v15411_v7 = vadd.f32 %v4522_v29, %v4232_v10  ;;  %v4947_v10 = vld [vmem:[%s13761_s26 + $0x7b] sm:$0xff] }
 0x421   : > { %v3885_v32 = vadd.f32 %v3829_v39, %v3537_v3  ;;  %12349 = vmatmul.msk.f32.gmra.mxu0 %vm594_vm0, %v4597_v59 }
 0x422   : > { %12399 = vmatmul.msk.f32.gmra.mxu1 %vm594_vm0, %v4945_v31  ;;  %12449 = vmatmul.msk.f32.gmra.mxu2 %vm594_vm0, %v5639_v40  ;;  %v5643_v31 = vld [vmem:[%s13761_s26 + $0x8c] sm:$0xff] }
 0x424   : > { %12499 = vmatmul.msk.f32.gmra.mxu3 %vm594_vm0, %v5641_v1 }
 0x425   : > { %v4177_v20 = vpop.f32.mrf.mxu2 }
 0x426   : > { %v4233_v36 = vadd.f32 %v4177_v20, %v3885_v32  ;;  %v3484_v63 = vpop.f32.mrf.mxu0 }
 0x427   : > { %v3832_v6 = vpop.f32.mrf.mxu1  ;;  %v3538_v14 = vadd.f32 %v3484_v63, %v14892_v49  ;;  %v4525_v9 = vpop.f32.mrf.mxu3  ;;  %v4599_v49 = vld [vmem:[%s13761_s26 + $0x7a] sm:$0xff] }
 0x428   : > { %v15421_v25 = vadd.f32 %v4525_v9, %v4233_v36  ;;  %v4948_v36 = vld [vmem:[%s13761_s26 + $0x83] sm:$0xff] }
 0x429   : > { %v3886_v18 = vadd.f32 %v3832_v6, %v3538_v14  ;;  %12350 = vmatmul.msk.f32.gmra.mxu0 %vm594_vm0, %v4598_v30 }
 0x42a   : > { %12400 = vmatmul.msk.f32.gmra.mxu1 %vm594_vm0, %v4946_v56  ;;  %12450 = vmatmul.msk.f32.gmra.mxu2 %vm594_vm0, %v5640_v23  ;;  %v5644_v56 = vld [vmem:[%s13761_s26 + $0x94] sm:$0xff] }
 0x42c   : > { %12500 = vmatmul.msk.f32.gmra.mxu3 %vm594_vm0, %v5642_v4 }
 0x42d   : > { %v4180_v40 = vpop.f32.mrf.mxu2 }
 0x42e   : > { %v4234_v0 = vadd.f32 %v4180_v40, %v3886_v18  ;;  %v3487_v58 = vpop.f32.mrf.mxu0 }
 0x42f   : > { %v3835_v26 = vpop.f32.mrf.mxu1  ;;  %v3539_v5 = vadd.f32 %v3487_v58, %v14902_v47  ;;  %v4528_v39 = vpop.f32.mrf.mxu3  ;;  %v4600_v47 = vld [vmem:[%s13761_s26 + $0x82] sm:$0xff] }
 0x430   : > { %v15431_v59 = vadd.f32 %v4528_v39, %v4234_v0  ;;  %v4949_v0 = vld [vmem:[%s13761_s26 + $0x8b] sm:$0xff] }
 0x431   : > { %v3887_v3 = vadd.f32 %v3835_v26, %v3539_v5  ;;  %12351 = vmatmul.msk.f32.gmra.mxu0 %vm594_vm0, %v4599_v49 }
 0x432   : > { %12401 = vmatmul.msk.f32.gmra.mxu1 %vm594_vm0, %v4947_v10  ;;  %12451 = vmatmul.msk.f32.gmra.mxu2 %vm594_vm0, %v5641_v1  ;;  %v5645_v10 = vld [vmem:[%s13761_s26 + $0x9c] sm:$0xff] }
 0x434   : > { %12501 = vmatmul.msk.f32.gmra.mxu3 %vm594_vm0, %v5643_v31 }
 0x435   : > { %v4183_v23 = vpop.f32.mrf.mxu2 }
 0x436   : > { %v4235_v29 = vadd.f32 %v4183_v23, %v3887_v3  ;;  %v3490_v32 = vpop.f32.mrf.mxu0 }
 0x437   : > { %v3838_v20 = vpop.f32.mrf.mxu1  ;;  %v3540_v63 = vadd.f32 %v3490_v32, %v14912_v19  ;;  %v4531_v6 = vpop.f32.mrf.mxu3  ;;  %v4601_v19 = vld [vmem:[%s13761_s26 + $0x8a] sm:$0xff] }
 0x438   : > { %v15441_v30 = vadd.f32 %v4531_v6, %v4235_v29  ;;  %v4950_v29 = vld [vmem:[%s13761_s26 + $0x93] sm:$0xff] }
 0x439   : > { %v3888_v14 = vadd.f32 %v3838_v20, %v3540_v63  ;;  %12352 = vmatmul.msk.f32.gmra.mxu0 %vm594_vm0, %v4600_v47 }
 0x43a   : > { %12402 = vmatmul.msk.f32.gmra.mxu1 %vm594_vm0, %v4948_v36  ;;  %12452 = vmatmul.msk.f32.gmra.mxu2 %vm594_vm0, %v5642_v4  ;;  %v5646_v36 = vld [vmem:[%s13761_s26 + $0xa4] sm:$0xff] }
 0x43c   : > { %12502 = vmatmul.msk.f32.gmra.mxu3 %vm594_vm0, %v5644_v56 }
 0x43d   : > { %v4186_v1 = vpop.f32.mrf.mxu2 }
 0x43e   : > { %v4236_v9 = vadd.f32 %v4186_v1, %v3888_v14  ;;  %v3493_v18 = vpop.f32.mrf.mxu0 }
 0x43f   : > { %v3841_v40 = vpop.f32.mrf.mxu1  ;;  %v3541_v58 = vadd.f32 %v3493_v18, %v14922_v52  ;;  %v4534_v26 = vpop.f32.mrf.mxu3  ;;  %v4602_v52 = vld [vmem:[%s13761_s26 + $0x92] sm:$0xff] }
 0x440   : > { %v15451_v49 = vadd.f32 %v4534_v26, %v4236_v9  ;;  %v4951_v9 = vld [vmem:[%s13761_s26 + $0x9b] sm:$0xff] }
 0x441   : > { %v3889_v5 = vadd.f32 %v3841_v40, %v3541_v58  ;;  %12353 = vmatmul.msk.f32.gmra.mxu0 %vm594_vm0, %v4601_v19 }
 0x442   : > { %12403 = vmatmul.msk.f32.gmra.mxu1 %vm594_vm0, %v4949_v0  ;;  %12453 = vmatmul.msk.f32.gmra.mxu2 %vm594_vm0, %v5643_v31  ;;  %v5647_v0 = vld [vmem:[%s13761_s26 + $0xac] sm:$0xff] }
 0x444   : > { %12503 = vmatmul.msk.f32.gmra.mxu3 %vm594_vm0, %v5645_v10 }
 0x445   : > { %v4189_v4 = vpop.f32.mrf.mxu2 }
 0x446   : > { %v4237_v39 = vadd.f32 %v4189_v4, %v3889_v5  ;;  %v3496_v3 = vpop.f32.mrf.mxu0 }
 0x447   : > { %v3844_v23 = vpop.f32.mrf.mxu1  ;;  %v3542_v32 = vadd.f32 %v3496_v3, %v14932_v44  ;;  %v4537_v20 = vpop.f32.mrf.mxu3  ;;  %v4603_v44 = vld [vmem:[%s13761_s26 + $0x9a] sm:$0xff] }
 0x448   : > { %v15461_v47 = vadd.f32 %v4537_v20, %v4237_v39  ;;  %v4952_v39 = vld [vmem:[%s13761_s26 + $0xa3] sm:$0xff] }
 0x449   : > { %v3890_v63 = vadd.f32 %v3844_v23, %v3542_v32  ;;  %12354 = vmatmul.msk.f32.gmra.mxu0 %vm594_vm0, %v4602_v52 }
 0x44a   : > { %12404 = vmatmul.msk.f32.gmra.mxu1 %vm594_vm0, %v4950_v29  ;;  %12454 = vmatmul.msk.f32.gmra.mxu2 %vm594_vm0, %v5644_v56  ;;  %v5648_v29 = vld [vmem:[%s13761_s26 + $0xb4] sm:$0xff] }
 0x44c   : > { %12504 = vmatmul.msk.f32.gmra.mxu3 %vm594_vm0, %v5646_v36 }
 0x44d   : > { %v4192_v31 = vpop.f32.mrf.mxu2 }
 0x44e   : > { %v4238_v6 = vadd.f32 %v4192_v31, %v3890_v63  ;;  %v3499_v14 = vpop.f32.mrf.mxu0 }
 0x44f   : > { %v3847_v1 = vpop.f32.mrf.mxu1  ;;  %v3543_v18 = vadd.f32 %v3499_v14, %v14942_v43  ;;  %v4540_v40 = vpop.f32.mrf.mxu3  ;;  %v4604_v43 = vld [vmem:[%s13761_s26 + $0xa2] sm:$0xff] }
 0x450   : > { %v15471_v19 = vadd.f32 %v4540_v40, %v4238_v6  ;;  %v4953_v6 = vld [vmem:[%s13761_s26 + $0xab] sm:$0xff] }
 0x451   : > { %v3891_v58 = vadd.f32 %v3847_v1, %v3543_v18  ;;  %12355 = vmatmul.msk.f32.gmra.mxu0 %vm594_vm0, %v4603_v44 }
 0x452   : > { %12405 = vmatmul.msk.f32.gmra.mxu1 %vm594_vm0, %v4951_v9  ;;  %12455 = vmatmul.msk.f32.gmra.mxu2 %vm594_vm0, %v5645_v10  ;;  %v5649_v9 = vld [vmem:[%s13761_s26 + $0xbc] sm:$0xff] }
 0x454   : > { %12505 = vmatmul.msk.f32.gmra.mxu3 %vm594_vm0, %v5647_v0 }
 0x455   : > { %v4195_v56 = vpop.f32.mrf.mxu2 }
 0x456   : > { %v4239_v26 = vadd.f32 %v4195_v56, %v3891_v58  ;;  %v3502_v5 = vpop.f32.mrf.mxu0 }
 0x457   : > { %v3850_v4 = vpop.f32.mrf.mxu1  ;;  %v3544_v3 = vadd.f32 %v3502_v5, %v14952_v41  ;;  %v4543_v23 = vpop.f32.mrf.mxu3  ;;  %v4605_v41 = vld [vmem:[%s13761_s26 + $0xaa] sm:$0xff] }
 0x458   : > { %v15481_v52 = vadd.f32 %v4543_v23, %v4239_v26  ;;  %v4606_v26 = vld [vmem:[%s13761_s26 + $0xb2] sm:$0xff] }
 0x459   : > { %v3892_v32 = vadd.f32 %v3850_v4, %v3544_v3  ;;  %12356 = vmatmul.msk.f32.gmra.mxu0 %vm594_vm0, %v4604_v43 }
 0x45a   : > { %12406 = vmatmul.msk.f32.gmra.mxu1 %vm594_vm0, %v4952_v39  ;;  %12456 = vmatmul.msk.f32.gmra.mxu2 %vm594_vm0, %v5646_v36  ;;  %v5650_v39 = vld [vmem:[%s13761_s26 + $0xc4] sm:$0xff] }
 0x45c   : > { %12506 = vmatmul.msk.f32.gmra.mxu3 %vm594_vm0, %v5648_v29 }
 0x45d   : > { %v4198_v10 = vpop.f32.mrf.mxu2 }
 0x45e   : > { %v4240_v20 = vadd.f32 %v4198_v10, %v3892_v32  ;;  %v4777_v63 = vpop.f32.mrf.mxu0 }
 0x45f   : > { %v5125_v31 = vpop.f32.mrf.mxu1  ;;  %v4546_v14 = vpop.f32.mrf.mxu3  ;;  %v4897_v1 = vadd.f32 %v4777_v63, %v14962_v55  ;;  %v4954_v55 = vld [vmem:[%s13761_s26 + $0xb3] sm:$0xff] }
 0x460   : > { %v15491_v44 = vadd.f32 %v4546_v14, %v4240_v20  ;;  %v4955_v20 = vld [vmem:[%s13761_s26 + $0xbb] sm:$0xff] }
 0x461   : > { %v5245_v18 = vadd.f32 %v5125_v31, %v4897_v1  ;;  %12357 = vmatmul.msk.f32.gmra.mxu0 %vm594_vm0, %v4605_v41 }
 0x462   : > { %12407 = vmatmul.msk.f32.gmra.mxu1 %vm594_vm0, %v4953_v6  ;;  %12457 = vmatmul.msk.f32.gmra.mxu2 %vm594_vm0, %v5647_v0  ;;  %v5651_v6 = vld [vmem:[%s13761_s26 + $0xcc] sm:$0xff] }
 0x464   : > { %12507 = vmatmul.msk.f32.gmra.mxu3 %vm594_vm0, %v5649_v9 }
 0x465   : > { %v5473_v36 = vpop.f32.mrf.mxu2 }
 0x466   : > { %v5593_v40 = vadd.f32 %v5473_v36, %v5245_v18  ;;  %v4780_v58 = vpop.f32.mrf.mxu0 }
 0x467   : > { %v5128_v56 = vpop.f32.mrf.mxu1  ;;  %v4898_v5 = vadd.f32 %v4780_v58, %v14972_v27  ;;  %v5821_v4 = vpop.f32.mrf.mxu3  ;;  %v4607_v27 = vld [vmem:[%s13761_s26 + $0xba] sm:$0xff] }
 0x468   : > { %v15501_v43 = vadd.f32 %v5821_v4, %v5593_v40  ;;  %v4956_v40 = vld [vmem:[%s13761_s26 + $0xc3] sm:$0xff] }
 0x469   : > { %v5246_v3 = vadd.f32 %v5128_v56, %v4898_v5  ;;  %12358 = vmatmul.msk.f32.gmra.mxu0 %vm594_vm0, %v4606_v26 }
 0x46a   : > { %12408 = vmatmul.msk.f32.gmra.mxu1 %vm594_vm0, %v4954_v55  ;;  %12458 = vmatmul.msk.f32.gmra.mxu2 %vm594_vm0, %v5648_v29  ;;  %v5652_v55 = vld [vmem:[%s13761_s26 + $0xd4] sm:$0xff] }
 0x46c   : > { %12508 = vmatmul.msk.f32.gmra.mxu3 %vm594_vm0, %v5650_v39 }
 0x46d   : > { %v5476_v0 = vpop.f32.mrf.mxu2 }
 0x46e   : > { %v5594_v23 = vadd.f32 %v5476_v0, %v5246_v3  ;;  %v4783_v32 = vpop.f32.mrf.mxu0 }
 0x46f   : > { %v5131_v10 = vpop.f32.mrf.mxu1  ;;  %v4899_v63 = vadd.f32 %v4783_v32, %v14982_v51  ;;  %v5824_v31 = vpop.f32.mrf.mxu3  ;;  %v4608_v51 = vld [vmem:[%s13761_s26 + $0xc2] sm:$0xff] }
 0x470   : > { %v15511_v41 = vadd.f32 %v5824_v31, %v5594_v23  ;;  %v4957_v23 = vld [vmem:[%s13761_s26 + $0xcb] sm:$0xff] }
 0x471   : > { %v5247_v14 = vadd.f32 %v5131_v10, %v4899_v63  ;;  %12359 = vmatmul.msk.f32.gmra.mxu0 %vm594_vm0, %v4607_v27 }
 0x472   : > { %12409 = vmatmul.msk.f32.gmra.mxu1 %vm594_vm0, %v4955_v20  ;;  %12459 = vmatmul.msk.f32.gmra.mxu2 %vm594_vm0, %v5649_v9  ;;  %v5653_v20 = vld [vmem:[%s13761_s26 + $0xdc] sm:$0xff] }
 0x474   : > { %12509 = vmatmul.msk.f32.gmra.mxu3 %vm594_vm0, %v5651_v6 }
 0x475   : > { %v5479_v29 = vpop.f32.mrf.mxu2 }
 0x476   : > { %v5595_v1 = vadd.f32 %v5479_v29, %v5247_v14  ;;  %v4786_v18 = vpop.f32.mrf.mxu0 }
 0x477   : > { %v5134_v36 = vpop.f32.mrf.mxu1  ;;  %v4900_v58 = vadd.f32 %v4786_v18, %v14992_v17  ;;  %v5827_v56 = vpop.f32.mrf.mxu3  ;;  %v4609_v17 = vld [vmem:[%s13761_s26 + $0xca] sm:$0xff] }
 0x478   : > { %v15521_v26 = vadd.f32 %v5827_v56, %v5595_v1  ;;  %v4958_v1 = vld [vmem:[%s13761_s26 + $0xd3] sm:$0xff] }
 0x479   : > { %v5248_v5 = vadd.f32 %v5134_v36, %v4900_v58  ;;  %12360 = vmatmul.msk.f32.gmra.mxu0 %vm594_vm0, %v4608_v51 }
 0x47a   : > { %12410 = vmatmul.msk.f32.gmra.mxu1 %vm594_vm0, %v4956_v40  ;;  %12460 = vmatmul.msk.f32.gmra.mxu2 %vm594_vm0, %v5650_v39  ;;  %v5654_v40 = vld [vmem:[%s13761_s26 + $0xe4] sm:$0xff] }
 0x47c   : > { %12510 = vmatmul.msk.f32.gmra.mxu3 %vm594_vm0, %v5652_v55 }
 0x47d   : > { %v5482_v9 = vpop.f32.mrf.mxu2 }
 0x47e   : > { %v5596_v4 = vadd.f32 %v5482_v9, %v5248_v5  ;;  %v4789_v3 = vpop.f32.mrf.mxu0 }
 0x47f   : > { %v5137_v0 = vpop.f32.mrf.mxu1  ;;  %v4901_v32 = vadd.f32 %v4789_v3, %v15002_v33  ;;  %v5830_v10 = vpop.f32.mrf.mxu3  ;;  %v4610_v33 = vld [vmem:[%s13761_s26 + $0xd2] sm:$0xff] }
 0x480   : > { %v15531_v27 = vadd.f32 %v5830_v10, %v5596_v4  ;;  %v4959_v4 = vld [vmem:[%s13761_s26 + $0xdb] sm:$0xff] }
 0x481   : > { %v5249_v63 = vadd.f32 %v5137_v0, %v4901_v32  ;;  %12361 = vmatmul.msk.f32.gmra.mxu0 %vm594_vm0, %v4609_v17 }
 0x482   : > { %12411 = vmatmul.msk.f32.gmra.mxu1 %vm594_vm0, %v4957_v23  ;;  %12461 = vmatmul.msk.f32.gmra.mxu2 %vm594_vm0, %v5651_v6  ;;  %v5655_v23 = vld [vmem:[%s13761_s26 + $0xec] sm:$0xff] }
 0x484   : > { %12511 = vmatmul.msk.f32.gmra.mxu3 %vm594_vm0, %v5653_v20 }
 0x485   : > { %v5485_v39 = vpop.f32.mrf.mxu2 }
 0x486   : > { %v5597_v31 = vadd.f32 %v5485_v39, %v5249_v63  ;;  %v4792_v14 = vpop.f32.mrf.mxu0 }
 0x487   : > { %v5140_v29 = vpop.f32.mrf.mxu1  ;;  %v4902_v18 = vadd.f32 %v4792_v14, %v15012_v50  ;;  %v5833_v36 = vpop.f32.mrf.mxu3  ;;  %v4611_v50 = vld [vmem:[%s13761_s26 + $0xda] sm:$0xff] }
 0x488   : > { %v15541_v51 = vadd.f32 %v5833_v36, %v5597_v31  ;;  %v4960_v31 = vld [vmem:[%s13761_s26 + $0xe3] sm:$0xff] }
 0x489   : > { %v5250_v58 = vadd.f32 %v5140_v29, %v4902_v18  ;;  %12362 = vmatmul.msk.f32.gmra.mxu0 %vm594_vm0, %v4610_v33 }
 0x48a   : > { %12412 = vmatmul.msk.f32.gmra.mxu1 %vm594_vm0, %v4958_v1  ;;  %12462 = vmatmul.msk.f32.gmra.mxu2 %vm594_vm0, %v5652_v55  ;;  %v5656_v1 = vld [vmem:[%s13761_s26 + $0xf4] sm:$0xff] }
 0x48c   : > { %12512 = vmatmul.msk.f32.gmra.mxu3 %vm594_vm0, %v5654_v40 }
 0x48d   : > { %v5488_v6 = vpop.f32.mrf.mxu2 }
 0x48e   : > { %v5598_v56 = vadd.f32 %v5488_v6, %v5250_v58  ;;  %v4795_v5 = vpop.f32.mrf.mxu0 }
 0x48f   : > { %v5143_v9 = vpop.f32.mrf.mxu1  ;;  %v4903_v3 = vadd.f32 %v4795_v5, %v15022_v2  ;;  %v5836_v0 = vpop.f32.mrf.mxu3  ;;  %v4612_v2 = vld [vmem:[%s13761_s26 + $0xe2] sm:$0xff] }
 0x490   : > { %v15551_v17 = vadd.f32 %v5836_v0, %v5598_v56  ;;  %v4961_v56 = vld [vmem:[%s13761_s26 + $0xeb] sm:$0xff] }
 0x491   : > { %v5251_v32 = vadd.f32 %v5143_v9, %v4903_v3  ;;  %12363 = vmatmul.msk.f32.gmra.mxu0 %vm594_vm0, %v4611_v50 }
 0x492   : > { %12413 = vmatmul.msk.f32.gmra.mxu1 %vm594_vm0, %v4959_v4  ;;  %12463 = vmatmul.msk.f32.gmra.mxu2 %vm594_vm0, %v5653_v20  ;;  %v5657_v4 = vld [vmem:[%s13761_s26 + $0xfc] sm:$0xff] }
 0x494   : > { %12513 = vmatmul.msk.f32.gmra.mxu3 %vm594_vm0, %v5655_v23 }
 0x495   : > { %v5491_v55 = vpop.f32.mrf.mxu2 }
 0x496   : > { %v5599_v10 = vadd.f32 %v5491_v55, %v5251_v32  ;;  %v4798_v63 = vpop.f32.mrf.mxu0 }
 0x497   : > { %v5146_v39 = vpop.f32.mrf.mxu1  ;;  %v4904_v14 = vadd.f32 %v4798_v63, %v15032_v22  ;;  %v5839_v29 = vpop.f32.mrf.mxu3  ;;  %v4613_v22 = vld [vmem:[%s13761_s26 + $0xea] sm:$0xff] }
 0x498   : > { %v15561_v33 = vadd.f32 %v5839_v29, %v5599_v10  ;;  %v4962_v10 = vld [vmem:[%s13761_s26 + $0xf3] sm:$0xff] }
 0x499   : > { %v5252_v18 = vadd.f32 %v5146_v39, %v4904_v14  ;;  %12364 = vmatmul.msk.f32.gmra.mxu0 %vm594_vm0, %v4612_v2 }
 0x49a   : > { %12414 = vmatmul.msk.f32.gmra.mxu1 %vm594_vm0, %v4960_v31  ;;  %12464 = vmatmul.msk.f32.gmra.mxu2 %vm594_vm0, %v5654_v40  ;;  %v5658_v31 = vld [vmem:[%s13761_s26 + $0x104] sm:$0xff] }
 0x49c   : > { %12514 = vmatmul.msk.f32.gmra.mxu3 %vm594_vm0, %v5656_v1 }
 0x49d   : > { %v5494_v20 = vpop.f32.mrf.mxu2 }
 0x49e   : > { %v5600_v36 = vadd.f32 %v5494_v20, %v5252_v18  ;;  %v4801_v58 = vpop.f32.mrf.mxu0 }
 0x49f   : > { %v5149_v6 = vpop.f32.mrf.mxu1  ;;  %v4905_v5 = vadd.f32 %v4801_v58, %v15042_v38  ;;  %v5842_v9 = vpop.f32.mrf.mxu3  ;;  %v4614_v38 = vld [vmem:[%s13761_s26 + $0xf2] sm:$0xff] }
 0x4a0   : > { %v15571_v50 = vadd.f32 %v5842_v9, %v5600_v36  ;;  %v4963_v36 = vld [vmem:[%s13761_s26 + $0xfb] sm:$0xff] }
 0x4a1   : > { %v5253_v3 = vadd.f32 %v5149_v6, %v4905_v5  ;;  %12365 = vmatmul.msk.f32.gmra.mxu0 %vm594_vm0, %v4613_v22 }
 0x4a2   : > { %12415 = vmatmul.msk.f32.gmra.mxu1 %vm594_vm0, %v4961_v56  ;;  %12465 = vmatmul.msk.f32.gmra.mxu2 %vm594_vm0, %v5655_v23  ;;  %v5659_v56 = vld [vmem:[%s13761_s26 + $0x10c] sm:$0xff] }
 0x4a4   : > { %12515 = vmatmul.msk.f32.gmra.mxu3 %vm594_vm0, %v5657_v4 }
 0x4a5   : > { %v5497_v40 = vpop.f32.mrf.mxu2 }
 0x4a6   : > { %v5601_v0 = vadd.f32 %v5497_v40, %v5253_v3  ;;  %v4804_v32 = vpop.f32.mrf.mxu0 }
 0x4a7   : > { %v5152_v55 = vpop.f32.mrf.mxu1  ;;  %v4906_v63 = vadd.f32 %v4804_v32, %v15052_v57  ;;  %v5845_v39 = vpop.f32.mrf.mxu3  ;;  %v4615_v57 = vld [vmem:[%s13761_s26 + $0xfa] sm:$0xff] }
 0x4a8   : > { %v15581_v2 = vadd.f32 %v5845_v39, %v5601_v0  ;;  %v4964_v0 = vld [vmem:[%s13761_s26 + $0x103] sm:$0xff] }
 0x4a9   : > { %v5254_v14 = vadd.f32 %v5152_v55, %v4906_v63  ;;  %12366 = vmatmul.msk.f32.gmra.mxu0 %vm594_vm0, %v4614_v38 }
 0x4aa   : > { %12416 = vmatmul.msk.f32.gmra.mxu1 %vm594_vm0, %v4962_v10  ;;  %12466 = vmatmul.msk.f32.gmra.mxu2 %vm594_vm0, %v5656_v1  ;;  %v5660_v10 = vld [vmem:[%s13761_s26 + $0x114] sm:$0xff] }
 0x4ac   : > { %12516 = vmatmul.msk.f32.gmra.mxu3 %vm594_vm0, %v5658_v31 }
 0x4ad   : > { %v5500_v23 = vpop.f32.mrf.mxu2 }
 0x4ae   : > { %v5602_v29 = vadd.f32 %v5500_v23, %v5254_v14  ;;  %v4807_v18 = vpop.f32.mrf.mxu0 }
 0x4af   : > { %v5155_v20 = vpop.f32.mrf.mxu1  ;;  %v4907_v58 = vadd.f32 %v4807_v18, %v15062_v11  ;;  %v5848_v6 = vpop.f32.mrf.mxu3  ;;  %v4616_v11 = vld [vmem:[%s13761_s26 + $0x102] sm:$0xff] }
 0x4b0   : > { %v15591_v22 = vadd.f32 %v5848_v6, %v5602_v29  ;;  %v4965_v29 = vld [vmem:[%s13761_s26 + $0x10b] sm:$0xff] }
 0x4b1   : > { %v5255_v5 = vadd.f32 %v5155_v20, %v4907_v58  ;;  %12367 = vmatmul.msk.f32.gmra.mxu0 %vm594_vm0, %v4615_v57 }
 0x4b2   : > { %12417 = vmatmul.msk.f32.gmra.mxu1 %vm594_vm0, %v4963_v36  ;;  %12467 = vmatmul.msk.f32.gmra.mxu2 %vm594_vm0, %v5657_v4  ;;  %v5661_v36 = vld [vmem:[%s13761_s26 + $0x11c] sm:$0xff] }
 0x4b4   : > { %12517 = vmatmul.msk.f32.gmra.mxu3 %vm594_vm0, %v5659_v56 }
 0x4b5   : > { %v5503_v1 = vpop.f32.mrf.mxu2 }
 0x4b6   : > { %v5603_v9 = vadd.f32 %v5503_v1, %v5255_v5  ;;  %v4810_v3 = vpop.f32.mrf.mxu0 }
 0x4b7   : > { %v5158_v40 = vpop.f32.mrf.mxu1  ;;  %v4908_v32 = vadd.f32 %v4810_v3, %v15072_v35  ;;  %v5851_v55 = vpop.f32.mrf.mxu3  ;;  %v4617_v35 = vld [vmem:[%s13761_s26 + $0x10a] sm:$0xff] }
 0x4b8   : > { %v15601_v38 = vadd.f32 %v5851_v55, %v5603_v9  ;;  %v4966_v9 = vld [vmem:[%s13761_s26 + $0x113] sm:$0xff] }
 0x4b9   : > { %v5256_v63 = vadd.f32 %v5158_v40, %v4908_v32  ;;  %12368 = vmatmul.msk.f32.gmra.mxu0 %vm594_vm0, %v4616_v11 }
 0x4ba   : > { %12418 = vmatmul.msk.f32.gmra.mxu1 %vm594_vm0, %v4964_v0  ;;  %12468 = vmatmul.msk.f32.gmra.mxu2 %vm594_vm0, %v5658_v31  ;;  %v5662_v0 = vld [vmem:[%s13761_s26 + $0x124] sm:$0xff] }
 0x4bc   : > { %12518 = vmatmul.msk.f32.gmra.mxu3 %vm594_vm0, %v5660_v10 }
 0x4bd   : > { %v5506_v4 = vpop.f32.mrf.mxu2 }
 0x4be   : > { %v5604_v39 = vadd.f32 %v5506_v4, %v5256_v63  ;;  %v4813_v14 = vpop.f32.mrf.mxu0 }
 0x4bf   : > { %v5161_v23 = vpop.f32.mrf.mxu1  ;;  %v4909_v18 = vadd.f32 %v4813_v14, %v15082_v54  ;;  %v5854_v20 = vpop.f32.mrf.mxu3  ;;  %v4618_v54 = vld [vmem:[%s13761_s26 + $0x112] sm:$0xff] }
 0x4c0   : > { %v15611_v57 = vadd.f32 %v5854_v20, %v5604_v39  ;;  %v4967_v39 = vld [vmem:[%s13761_s26 + $0x11b] sm:$0xff] }
 0x4c1   : > { %v5257_v58 = vadd.f32 %v5161_v23, %v4909_v18  ;;  %12369 = vmatmul.msk.f32.gmra.mxu0 %vm594_vm0, %v4617_v35 }
 0x4c2   : > { %12419 = vmatmul.msk.f32.gmra.mxu1 %vm594_vm0, %v4965_v29  ;;  %12469 = vmatmul.msk.f32.gmra.mxu2 %vm594_vm0, %v5659_v56  ;;  %v5663_v29 = vld [vmem:[%s13761_s26 + $0x12c] sm:$0xff] }
 0x4c4   : > { %12519 = vmatmul.msk.f32.gmra.mxu3 %vm594_vm0, %v5661_v36 }
 0x4c5   : > { %v5509_v31 = vpop.f32.mrf.mxu2 }
 0x4c6   : > { %v5605_v6 = vadd.f32 %v5509_v31, %v5257_v58  ;;  %v4816_v5 = vpop.f32.mrf.mxu0 }
 0x4c7   : > { %v5164_v1 = vpop.f32.mrf.mxu1  ;;  %v4910_v3 = vadd.f32 %v4816_v5, %v15092_v15  ;;  %v5857_v40 = vpop.f32.mrf.mxu3  ;;  %v4619_v15 = vld [vmem:[%s13761_s26 + $0x11a] sm:$0xff] }
 0x4c8   : > { %v15621_v11 = vadd.f32 %v5857_v40, %v5605_v6  ;;  %v4968_v6 = vld [vmem:[%s13761_s26 + $0x123] sm:$0xff] }
 0x4c9   : > { %v5258_v32 = vadd.f32 %v5164_v1, %v4910_v3  ;;  %12370 = vmatmul.msk.f32.gmra.mxu0 %vm594_vm0, %v4618_v54 }
 0x4ca   : > { %12420 = vmatmul.msk.f32.gmra.mxu1 %vm594_vm0, %v4966_v9  ;;  %12470 = vmatmul.msk.f32.gmra.mxu2 %vm594_vm0, %v5660_v10  ;;  %v5664_v9 = vld [vmem:[%s13761_s26 + $0x134] sm:$0xff] }
 0x4cc   : > { %12520 = vmatmul.msk.f32.gmra.mxu3 %vm594_vm0, %v5662_v0 }
 0x4cd   : > { %v5512_v56 = vpop.f32.mrf.mxu2 }
 0x4ce   : > { %v5606_v55 = vadd.f32 %v5512_v56, %v5258_v32  ;;  %v4819_v63 = vpop.f32.mrf.mxu0 }
 0x4cf   : > { %v5167_v4 = vpop.f32.mrf.mxu1  ;;  %v4911_v14 = vadd.f32 %v4819_v63, %v15102_v37  ;;  %v5860_v23 = vpop.f32.mrf.mxu3  ;;  %v4620_v37 = vld [vmem:[%s13761_s26 + $0x122] sm:$0xff] }
 0x4d0   : > { %v15631_v35 = vadd.f32 %v5860_v23, %v5606_v55  ;;  %v4969_v55 = vld [vmem:[%s13761_s26 + $0x12b] sm:$0xff] }
 0x4d1   : > { %v5259_v18 = vadd.f32 %v5167_v4, %v4911_v14  ;;  %12371 = vmatmul.msk.f32.gmra.mxu0 %vm594_vm0, %v4619_v15 }
 0x4d2   : > { %12421 = vmatmul.msk.f32.gmra.mxu1 %vm594_vm0, %v4967_v39  ;;  %12471 = vmatmul.msk.f32.gmra.mxu2 %vm594_vm0, %v5661_v36  ;;  %v5665_v39 = vld [vmem:[%s13761_s26 + $0x13c] sm:$0xff] }
 0x4d4   : > { %12521 = vmatmul.msk.f32.gmra.mxu3 %vm594_vm0, %v5663_v29 }
 0x4d5   : > { %v5515_v10 = vpop.f32.mrf.mxu2 }
 0x4d6   : > { %v5607_v20 = vadd.f32 %v5515_v10, %v5259_v18  ;;  %v4822_v58 = vpop.f32.mrf.mxu0 }
 0x4d7   : > { %v5170_v31 = vpop.f32.mrf.mxu1  ;;  %v4912_v5 = vadd.f32 %v4822_v58, %v15112_v61  ;;  %v5863_v1 = vpop.f32.mrf.mxu3  ;;  %v4621_v61 = vld [vmem:[%s13761_s26 + $0x12a] sm:$0xff] }
 0x4d8   : > { %v15641_v54 = vadd.f32 %v5863_v1, %v5607_v20  ;;  %v4970_v20 = vld [vmem:[%s13761_s26 + $0x133] sm:$0xff] }
 0x4d9   : > { %v5260_v3 = vadd.f32 %v5170_v31, %v4912_v5  ;;  %12372 = vmatmul.msk.f32.gmra.mxu0 %vm594_vm0, %v4620_v37  ;;  %v4623_v1 = vld [vmem:[%s13761_s26 + $0x13a] sm:$0xff] }
 0x4da   : > { %12422 = vmatmul.msk.f32.gmra.mxu1 %vm594_vm0, %v4968_v6  ;;  %12472 = vmatmul.msk.f32.gmra.mxu2 %vm594_vm0, %v5662_v0  ;;  %v15664_v6 = vld [vmem:[%s13761_s26 + $0x144] sm:$0xff] }
 0x4dc   : > { %12522 = vmatmul.msk.f32.gmra.mxu3 %vm594_vm0, %v5664_v9 }
 0x4dd   : > { %v5518_v36 = vpop.f32.mrf.mxu2 }
 0x4de   : > { %v5608_v40 = vadd.f32 %v5518_v36, %v5260_v3  ;;  %v4825_v32 = vpop.f32.mrf.mxu0 }
 0x4df   : > { %v5173_v56 = vpop.f32.mrf.mxu1  ;;  %v4913_v63 = vadd.f32 %v4825_v32, %v15124_v24  ;;  %v5866_v4 = vpop.f32.mrf.mxu3  ;;  %v4622_v24 = vld [vmem:[%s13761_s26 + $0x132] sm:$0xff]  ;;  %v12540_v32 = vld [vmem:[%s19629_s1 + $0x548] sm:$0xff] }
 0x4e0   : > { %v15651_v15 = vadd.f32 %v5866_v4, %v5608_v40  ;;  %v4971_v40 = vld [vmem:[%s13761_s26 + $0x13b] sm:$0xff]  ;;  %6158 = vmatpush.msra.mxu0 %v12540_v32 }
 0x4e1   : > { %v5261_v14 = vadd.f32 %v5173_v56, %v4913_v63  ;;  %12373 = vmatmul.msk.f32.gmra.mxu0 %vm594_vm0, %v4621_v61  ;;  %v12640_v56 = vld [vmem:[%s19629_s1 + $0x5e8] sm:$0xff]  ;;  %v12539_v4 = vld [vmem:[%s19629_s1 + $0x540] sm:$0xff] }
 0x4e2   : > { %12423 = vmatmul.msk.f32.gmra.mxu1 %vm594_vm0, %v4969_v55  ;;  %12473 = vmatmul.msk.f32.gmra.mxu2 %vm594_vm0, %v5663_v29  ;;  %v15683_v63 = vld [vmem:[%s13761_s26 + $0x14c] sm:$0xff] }
 0x4e3   : > { %6854 = vmatpush.msra.mxu2 %v12640_v56  ;;  %6159 = vmatpush.msra.mxu0 %v12539_v4  ;;  %v15735_v4 = vld [vmem:[%s13761_s26 + $0x154] sm:$0xff] }
 0x4e4   : > { %12523 = vmatmul.msk.f32.gmra.mxu3 %vm594_vm0, %v5665_v39 }
 0x4e5   : > { %v5521_v0 = vpop.f32.mrf.mxu2 }
 0x4e6   : > { %v5609_v23 = vadd.f32 %v5521_v0, %v5261_v14  ;;  %v4828_v18 = vpop.f32.mrf.mxu0  ;;  %v12590_v14 = vld [vmem:[%s19629_s1 + $0x598] sm:$0xff] }
 0x4e7   : > { %v5176_v10 = vpop.f32.mrf.mxu1  ;;  %v4914_v58 = vadd.f32 %v4828_v18, %v15143_v62  ;;  %v5869_v31 = vpop.f32.mrf.mxu3  ;;  %v12538_v18 = vld [vmem:[%s19629_s1 + $0x538] sm:$0xff]  ;;  %6506 = vmatpush.msra.mxu1 %v12590_v14  ;;  %v12587_v14 = vld [vmem:[%s19629_s1 + $0x580] sm:$0xff] }
 0x4e8   : > { %v15661_v37 = vadd.f32 %v5869_v31, %v5609_v23  ;;  %v12690_v23 = vld [vmem:[%s19629_s1 + $0x638] sm:$0xff]  ;;  %6160 = vmatpush.msra.mxu0 %v12538_v18 }
 0x4e9   : > { %v5262_v5 = vadd.f32 %v5176_v10, %v4914_v58  ;;  %12374 = vmatmul.msk.f32.gmra.mxu0 %vm594_vm0, %v4622_v24  ;;  %v12589_v10 = vld [vmem:[%s19629_s1 + $0x590] sm:$0xff]  ;;  %v12638_v24 = vld [vmem:[%s19629_s1 + $0x5d8] sm:$0xff]  ;;  %7202 = vmatpush.msra.mxu3 %v12690_v23  ;;  %v12588_v58 = vld [vmem:[%s19629_s1 + $0x588] sm:$0xff] }
 0x4ea   : > { %12424 = vmatmul.msk.f32.gmra.mxu1 %vm594_vm0, %v4970_v20  ;;  %12474 = vmatmul.msk.f32.gmra.mxu2 %vm594_vm0, %v5664_v9  ;;  %v12537_v20 = vld [vmem:[%s19629_s1 + $0x530] sm:$0xff]  ;;  %v12535_v23 = vld [vmem:[%s19629_s1 + $0x520] sm:$0xff]  ;;  %v12586_v18 = vld [vmem:[%s19629_s1 + $0x578] sm:$0xff] }
 0x4eb   : > { %6507 = vmatpush.msra.mxu1 %v12589_v10  ;;  %6161 = vmatpush.msra.mxu0 %v12537_v20  ;;  %v12635_v10 = vld [vmem:[%s19629_s1 + $0x5c0] sm:$0xff] }
 0x4ec   : > { %12524 = vmatmul.msk.f32.gmra.mxu3 %vm594_vm0, %v15664_v6 }
 0x4ed   : > { %v5524_v29 = vpop.f32.mrf.mxu2  ;;  %6508 = vmatpush.msra.mxu1 %v12588_v58  ;;  %v12634_v58 = vld [vmem:[%s19629_s1 + $0x5b8] sm:$0xff] }
 0x4ee   : > { %v5610_v3 = vadd.f32 %v5524_v29, %v5262_v5  ;;  %v4831_v62 = vpop.f32.mrf.mxu0  ;;  %v12637_v5 = vld [vmem:[%s19629_s1 + $0x5d0] sm:$0xff]  ;;  %v12688_v29 = vld [vmem:[%s19629_s1 + $0x628] sm:$0xff] }
 0x4ef   : > { %v5179_v36 = vpop.f32.mrf.mxu1  ;;  %v4915_v61 = vadd.f32 %v4831_v62, %v15195_v48  ;;  %v5872_v9 = vpop.f32.mrf.mxu3  ;;  %v12639_v48 = vld [vmem:[%s19629_s1 + $0x5e0] sm:$0xff]  ;;  %6509 = vmatpush.msra.mxu1 %v12587_v14  ;;  %v12584_v14 = vld [vmem:[%s19629_s1 + $0x568] sm:$0xff] }
 0x4f0   : > { %v15680_v55 = vadd.f32 %v5872_v9, %v5610_v3  ;;  %6855 = vmatpush.msra.mxu2 %v12639_v48  ;;  %v12687_v48 = vld [vmem:[%s19629_s1 + $0x620] sm:$0xff] }
 0x4f1   : > { %v5263_v0 = vadd.f32 %v5179_v36, %v4915_v61  ;;  %12375 = vmatmul.msk.f32.gmra.mxu0 %vm594_vm0, %v4623_v1  ;;  %v4624_v36 = vld [vmem:[%s13761_s26 + $0x142] sm:$0xff]  ;;  %6510 = vmatpush.msra.mxu1 %v12586_v18 }
 0x4f2   : > { %12425 = vmatmul.msk.f32.gmra.mxu1 %vm594_vm0, %v4971_v40  ;;  %12475 = vmatmul.msk.f32.gmra.mxu2 %vm594_vm0, %v5665_v39  ;;  %v12689_v39 = vld [vmem:[%s19629_s1 + $0x630] sm:$0xff]  ;;  %v4972_v40 = vld [vmem:[%s13761_s26 + $0x143] sm:$0xff] }
 0x4f3   : > { %6856 = vmatpush.msra.mxu2 %v12638_v24  ;;  %7203 = vmatpush.msra.mxu3 %v12689_v39  ;;  %v12536_v61 = vld [vmem:[%s19629_s1 + $0x528] sm:$0xff]  ;;  %v12534_v24 = vld [vmem:[%s19629_s1 + $0x518] sm:$0xff]  ;;  %v12585_v39 = vld [vmem:[%s19629_s1 + $0x570] sm:$0xff] }
 0x4f4   : > { %12525 = vmatmul.msk.f32.gmra.mxu3 %vm594_vm0, %v15683_v63  ;;  %6162 = vmatpush.msra.mxu0 %v12536_v61  ;;  %v15785_v61 = vld [vmem:[%s13761_s26 + $0x15c] sm:$0xff]  ;;  %v12632_v18 = vld [vmem:[%s19629_s1 + $0x5a8] sm:$0xff] }
 0x4f5   : > { %v5527_v31 = vpop.f32.mrf.mxu2  ;;  %6857 = vmatpush.msra.mxu2 %v12637_v5  ;;  %7204 = vmatpush.msra.mxu3 %v12688_v29 }
 0x4f6   : > { %v5611_v1 = vadd.f32 %v5527_v31, %v5263_v0  ;;  %v4834_v3 = vpop.f32.mrf.mxu0  ;;  %6163 = vmatpush.msra.mxu0 %v12535_v23  ;;  %v12685_v31 = vld [vmem:[%s19629_s1 + $0x610] sm:$0xff]  ;;  %6511 = vmatpush.msra.mxu1 %v12585_v39  ;;  %v12583_v23 = vld [vmem:[%s19629_s1 + $0x560] sm:$0xff] }
 0x4f7   : > { %v5182_v62 = vpop.f32.mrf.mxu1  ;;  %v4916_v32 = vadd.f32 %v4834_v3, %v15245_v42  ;;  %v5875_v56 = vpop.f32.mrf.mxu3  ;;  %v12636_v42 = vld [vmem:[%s19629_s1 + $0x5c8] sm:$0xff]  ;;  %7205 = vmatpush.msra.mxu3 %v12687_v48  ;;  %v12631_v39 = vld [vmem:[%s19629_s1 + $0x5a0] sm:$0xff] }
 0x4f8   : > { %v15732_v9 = vadd.f32 %v5875_v56, %v5611_v1  ;;  %6858 = vmatpush.msra.mxu2 %v12636_v42  ;;  %v4625_v3 = vld [vmem:[%s13761_s26 + $0x14a] sm:$0xff]  ;;  %6164 = vmatpush.msra.mxu0 %v12534_v24 }
 0x4f9   : > { %v5264_v0 = vadd.f32 %v5182_v62, %v4916_v32  ;;  %12376 = vmatmul.msk.f32.gmra.mxu0 %vm594_vm0, %v4624_v36  ;;  %v4973_v62 = vld [vmem:[%s13761_s26 + $0x14b] sm:$0xff]  ;;  %6512 = vmatpush.msra.mxu1 %v12584_v14 }
 0x4fa   : > { %12426 = vmatmul.msk.f32.gmra.mxu1 %vm594_vm0, %v4972_v40  ;;  %12476 = vmatmul.msk.f32.gmra.mxu2 %vm594_vm0, %v15664_v6  ;;  %v12686_v6 = vld [vmem:[%s19629_s1 + $0x618] sm:$0xff]  ;;  %v12533_v32 = vld [vmem:[%s19629_s1 + $0x510] sm:$0xff]  ;;  %v12684_v42 = vld [vmem:[%s19629_s1 + $0x608] sm:$0xff] }
 0x4fb   : > { %6859 = vmatpush.msra.mxu2 %v12635_v10  ;;  %7206 = vmatpush.msra.mxu3 %v12686_v6  ;;  %v12532_v48 = vld [vmem:[%s19629_s1 + $0x508] sm:$0xff]  ;;  %v12531_v10 = vld [vmem:[%s19629_s1 + $0x500] sm:$0xff]  ;;  %v12582_v6 = vld [vmem:[%s19629_s1 + $0x558] sm:$0xff] }
 0x4fc   : > { %12526 = vmatmul.msk.f32.gmra.mxu3 %vm594_vm0, %v15735_v4  ;;  %6165 = vmatpush.msra.mxu0 %v12533_v32  ;;  %v5670_v32 = vld [vmem:[%s13761_s26 + $0x164] sm:$0xff] }
 0x4fd   : > { %v5530_v20 = vpop.f32.mrf.mxu2  ;;  %6860 = vmatpush.msra.mxu2 %v12634_v58  ;;  %7207 = vmatpush.msra.mxu3 %v12685_v31 }
 0x4fe   : > { %v5612_v5 = vadd.f32 %v5530_v20, %v5264_v0  ;;  %v4837_v29 = vpop.f32.mrf.mxu0  ;;  %6166 = vmatpush.msra.mxu0 %v12532_v48  ;;  %6513 = vmatpush.msra.mxu1 %v12583_v23  ;;  %v12682_v20 = vld [vmem:[%s19629_s1 + $0x5f8] sm:$0xff] }
 0x4ff   : > { %v5185_v1 = vpop.f32.mrf.mxu1  ;;  %v4917_v36 = vadd.f32 %v4837_v29, %v15293_v28  ;;  %v5878_v40 = vpop.f32.mrf.mxu3  ;;  %v12633_v28 = vld [vmem:[%s19629_s1 + $0x5b0] sm:$0xff]  ;;  %7208 = vmatpush.msra.mxu3 %v12684_v42  ;;  %v4627_v23 = vld [vmem:[%s13761_s26 + $0x15a] sm:$0xff] }
 0x500   : > { %v15782_v56 = vadd.f32 %v5878_v40, %v5612_v5  ;;  %6861 = vmatpush.msra.mxu2 %v12633_v28  ;;  %v4626_v29 = vld [vmem:[%s13761_s26 + $0x152] sm:$0xff]  ;;  %6167 = vmatpush.msra.mxu0 %v12531_v10 }
 0x501   : > { %v5265_v0 = vadd.f32 %v5185_v1, %v4917_v36  ;;  %12377 = vmatmul.msk.f32.gmra.mxu0 %vm594_vm0, %v4625_v3  ;;  %v4974_v1 = vld [vmem:[%s13761_s26 + $0x153] sm:$0xff]  ;;  %6514 = vmatpush.msra.mxu1 %v12582_v6 }
 0x502   : > { %12427 = vmatmul.msk.f32.gmra.mxu1 %vm594_vm0, %v4973_v62  ;;  %12477 = vmatmul.msk.f32.gmra.mxu2 %vm594_vm0, %v15683_v63  ;;  %v12683_v63 = vld [vmem:[%s19629_s1 + $0x600] sm:$0xff]  ;;  %v12581_v36 = vld [vmem:[%s19629_s1 + $0x550] sm:$0xff] }
 0x503   : > { %6862 = vmatpush.msra.mxu2 %v12632_v18  ;;  %7209 = vmatpush.msra.mxu3 %v12683_v63  ;;  %v4975_v18 = vld [vmem:[%s13761_s26 + $0x15b] sm:$0xff] }
 0x504   : > { %12527 = vmatmul.msk.f32.gmra.mxu3 %vm594_vm0, %v15785_v61  ;;  %6515 = vmatpush.msra.mxu1 %v12581_v36  ;;  %v5672_v36 = vld [vmem:[%s13761_s26 + $0x174] sm:$0xf] }
 0x505   : > { %v5533_v24 = vpop.f32.mrf.mxu2  ;;  %6863 = vmatpush.msra.mxu2 %v12631_v39  ;;  %7210 = vmatpush.msra.mxu3 %v12682_v20 }
 0x506   : > { %v5613_v58 = vadd.f32 %v5533_v24, %v5265_v0  ;;  %v4840_v31 = vpop.f32.mrf.mxu0  ;;  %v5671_v24 = vld [vmem:[%s13761_s26 + $0x16c] sm:$0xff] }
 0x507   : > { %v5188_v5 = vpop.f32.mrf.mxu1  ;;  %v4918_v3 = vadd.f32 %v4840_v31, %v15307_v53  ;;  %v5881_v62 = vpop.f32.mrf.mxu3  ;;  %v12681_v53 = vld [vmem:[%s19629_s1 + $0x5f0] sm:$0xff]  ;;  %v4628_v31 = vld [vmem:[%s13761_s26 + $0x162] sm:$0xf] }
 0x508   : > { %v15832_v40 = vadd.f32 %v5881_v62, %v5613_v58  ;;  %7211 = vmatpush.msra.mxu3 %v12681_v53 }
 0x509   : > { %v5266_v14 = vadd.f32 %v5188_v5, %v4918_v3  ;;  %12378 = vmatmul.msk.f32.gmra.mxu0 %vm594_vm0, %v4626_v29  ;;  %v4976_v5 = vld [vmem:[%s13761_s26 + $0x163] sm:$0xf] }
 0x50a   : > { %12428 = vmatmul.msk.f32.gmra.mxu1 %vm594_vm0, %v4974_v1  ;;  %12478 = vmatmul.msk.f32.gmra.mxu2 %vm594_vm0, %v15735_v4  ;;  %v5324_v3 = vld [vmem:[%s13761_s26 + $0x164] sm:$0xf] }
 0x50c   : > { %12528 = vmatmul.msk.f32.gmra.mxu3 %vm594_vm0, %v5670_v32 }
 0x50d   : > { %v5536_v0 = vpop.f32.mrf.mxu2 }
 0x50e   : > { %v5614_v28 = vadd.f32 %v5536_v0, %v5266_v14  ;;  %v4843_v42 = vpop.f32.mrf.mxu0  ;;  %v5981_v0 = vld [vmem:[%s13761_s26 + $0x3d] sm:$0xff] }
 0x50f   : > { %v5191_v48 = vpop.f32.mrf.mxu1  ;;  %v4919_v63 = vadd.f32 %v4843_v42, %v15319_v8  ;;  %v5884_v10 = vpop.f32.mrf.mxu3 }
 0x510   : > { %v15846_v6 = vadd.f32 %v5884_v10, %v5614_v28  ;;  %v6329_v28 = vld [vmem:[%s13761_s26 + $0x3e] sm:$0xff] }
 0x511   : > { %v5267_v4 = vadd.f32 %v5191_v48, %v4919_v63  ;;  %12379 = vmatmul.msk.f32.gmra.mxu0 %vm594_vm0, %v4627_v23  ;;  %v6677_v23 = vld [vmem:[%s13761_s26 + $0x3f] sm:$0xff] }
 0x512   : > { %12429 = vmatmul.msk.f32.gmra.mxu1 %vm594_vm0, %v4975_v18  ;;  %12479 = vmatmul.msk.f32.gmra.mxu2 %vm594_vm0, %v15785_v61  ;;  %v7025_v63 = vld [vmem:[%s13761_s26 + $0x40] sm:$0xff] }
 0x514   : > { %12529 = vmatmul.msk.f32.gmra.mxu3 %vm594_vm0, %v5671_v24 }
 0x515   : > { %v5539_v39 = vpop.f32.mrf.mxu2 }
 0x516   : > { %v5615_v20 = vadd.f32 %v5539_v39, %v5267_v4  ;;  %v4846_v58 = vpop.f32.mrf.mxu0 }
 0x517   : > { %v5194_v8 = vpop.f32.mrf.mxu1  ;;  %v4920_v29 = vadd.f32 %v4846_v58, %v15330_v13  ;;  %v5887_v1 = vpop.f32.mrf.mxu3  ;;  %v6330_v58 = vld [vmem:[%s13761_s26 + $0x46] sm:$0xff] }
 0x518   : > { %v15858_v62 = vadd.f32 %v5887_v1, %v5615_v20  ;;  %v5982_v20 = vld [vmem:[%s13761_s26 + $0x45] sm:$0xff] }
 0x519   : > { %v5268_v61 = vadd.f32 %v5194_v8, %v4920_v29  ;;  %12380 = vmatmul.msk.f32.gmra.mxu0 %vm594_vm0, %v4628_v31  ;;  %v7026_v1 = vld [vmem:[%s13761_s26 + $0x48] sm:$0xff] }
 0x51a   : > { %12430 = vmatmul.msk.f32.gmra.mxu1 %vm594_vm0, %v4976_v5  ;;  %12480 = vmatmul.msk.f32.gmra.mxu2 %vm594_vm0, %v5324_v3  ;;  %v6678_v5 = vld [vmem:[%s13761_s26 + $0x47] sm:$0xff] }
 0x51c   : > { %12530 = vmatmul.msk.f32.gmra.mxu3 %vm594_vm0, %v5672_v36 }
 0x51d   : > { %v5542_v32 = vpop.f32.mrf.mxu2 }
 0x51e   : > { %v5616_v14 = vadd.f32 %v5542_v32, %v5268_v61  ;;  %v4849_v53 = vpop.f32.mrf.mxu0 }
 0x51f   : > { %v5197_v13 = vpop.f32.mrf.mxu1  ;;  %v4921_v42 = vadd.f32 %v4849_v53, %v15341_v34  ;;  %v5890_v48 = vpop.f32.mrf.mxu3  ;;  %v6331_v53 = vld [vmem:[%s13761_s26 + $0x4e] sm:$0xff] }
 0x520   : > { %v15869_v18 = vadd.f32 %v5890_v48, %v5616_v14  ;;  %v5983_v14 = vld [vmem:[%s13761_s26 + $0x4d] sm:$0xff] }
 0x521   : > { %v5269_v10 = vadd.f32 %v5197_v13, %v4921_v42  ;;  %12541 = vmatmul.msk.f32.vlgmr.msra.gmra.mxu0 %vm594_vm0, %v5981_v0  ;;  %v7027_v48 = vld [vmem:[%s13761_s26 + $0x50] sm:$0xff] }
 0x522   : > { %12591 = vmatmul.msk.f32.vlgmr.msra.gmra.mxu1 %vm594_vm0, %v6329_v28  ;;  %12641 = vmatmul.msk.f32.vlgmr.msra.gmra.mxu2 %vm594_vm0, %v6677_v23  ;;  %v6679_v28 = vld [vmem:[%s13761_s26 + $0x4f] sm:$0xff] }
 0x524   : > { %12691 = vmatmul.msk.f32.vlgmr.msra.gmra.mxu3 %vm594_vm0, %v7025_v63 }
 0x525   : > { %v5545_v24 = vpop.f32.mrf.mxu2 }
 0x526   : > { %v5617_v4 = vadd.f32 %v5545_v24, %v5269_v10  ;;  %v4852_v39 = vpop.f32.mrf.mxu0 }
 0x527   : > { %v5200_v34 = vpop.f32.mrf.mxu1  ;;  %v4922_v8 = vadd.f32 %v4852_v39, %v15351_v45  ;;  %v5893_v31 = vpop.f32.mrf.mxu3  ;;  %v6332_v39 = vld [vmem:[%s13761_s26 + $0x56] sm:$0xff] }
 0x528   : > { %v15880_v29 = vadd.f32 %v5893_v31, %v5617_v4  ;;  %v5984_v4 = vld [vmem:[%s13761_s26 + $0x55] sm:$0xff] }
 0x529   : > { %v5270_v3 = vadd.f32 %v5200_v34, %v4922_v8  ;;  %12542 = vmatmul.msk.f32.gmra.mxu0 %vm594_vm0, %v5982_v20  ;;  %v7028_v31 = vld [vmem:[%s13761_s26 + $0x58] sm:$0xff] }
 0x52a   : > { %12592 = vmatmul.msk.f32.gmra.mxu1 %vm594_vm0, %v6330_v58  ;;  %12642 = vmatmul.msk.f32.gmra.mxu2 %vm594_vm0, %v6678_v5  ;;  %v6680_v58 = vld [vmem:[%s13761_s26 + $0x57] sm:$0xff] }
 0x52c   : > { %12692 = vmatmul.msk.f32.gmra.mxu3 %vm594_vm0, %v7026_v1 }
 0x52d   : > { %v5548_v36 = vpop.f32.mrf.mxu2 }
 0x52e   : > { %v5618_v61 = vadd.f32 %v5548_v36, %v5270_v3  ;;  %v4855_v32 = vpop.f32.mrf.mxu0 }
 0x52f   : > { %v5203_v45 = vpop.f32.mrf.mxu1  ;;  %v4923_v13 = vadd.f32 %v4855_v32, %v15361_v12  ;;  %v5896_v0 = vpop.f32.mrf.mxu3  ;;  %v6333_v32 = vld [vmem:[%s13761_s26 + $0x5e] sm:$0xff] }
 0x530   : > { %v15891_v42 = vadd.f32 %v5896_v0, %v5618_v61  ;;  %v5985_v61 = vld [vmem:[%s13761_s26 + $0x5d] sm:$0xff] }
 0x531   : > { %v5271_v23 = vadd.f32 %v5203_v45, %v4923_v13  ;;  %12543 = vmatmul.msk.f32.gmra.mxu0 %vm594_vm0, %v5983_v14  ;;  %v7029_v0 = vld [vmem:[%s13761_s26 + $0x60] sm:$0xff] }
 0x532   : > { %12593 = vmatmul.msk.f32.gmra.mxu1 %vm594_vm0, %v6331_v53  ;;  %12643 = vmatmul.msk.f32.gmra.mxu2 %vm594_vm0, %v6679_v28  ;;  %v6681_v53 = vld [vmem:[%s13761_s26 + $0x5f] sm:$0xff] }
 0x534   : > { %12693 = vmatmul.msk.f32.gmra.mxu3 %vm594_vm0, %v7027_v48 }
 0x535   : > { %v5551_v63 = vpop.f32.mrf.mxu2 }
 0x536   : > { %v5619_v10 = vadd.f32 %v5551_v63, %v5271_v23  ;;  %v4858_v24 = vpop.f32.mrf.mxu0 }
 0x537   : > { %v5206_v12 = vpop.f32.mrf.mxu1  ;;  %v4924_v34 = vadd.f32 %v4858_v24, %v15371_v46  ;;  %v5899_v20 = vpop.f32.mrf.mxu3  ;;  %v6334_v24 = vld [vmem:[%s13761_s26 + $0x66] sm:$0xff] }
 0x538   : > { %v15902_v8 = vadd.f32 %v5899_v20, %v5619_v10  ;;  %v5986_v10 = vld [vmem:[%s13761_s26 + $0x65] sm:$0xff] }
 0x539   : > { %v5272_v5 = vadd.f32 %v5206_v12, %v4924_v34  ;;  %12544 = vmatmul.msk.f32.gmra.mxu0 %vm594_vm0, %v5984_v4  ;;  %v7030_v20 = vld [vmem:[%s13761_s26 + $0x68] sm:$0xff] }
 0x53a   : > { %12594 = vmatmul.msk.f32.gmra.mxu1 %vm594_vm0, %v6332_v39  ;;  %12644 = vmatmul.msk.f32.gmra.mxu2 %vm594_vm0, %v6680_v58  ;;  %v6682_v39 = vld [vmem:[%s13761_s26 + $0x67] sm:$0xff] }
 0x53c   : > { %12694 = vmatmul.msk.f32.gmra.mxu3 %vm594_vm0, %v7028_v31 }
 0x53d   : > { %v5554_v1 = vpop.f32.mrf.mxu2 }
 0x53e   : > { %v5620_v3 = vadd.f32 %v5554_v1, %v5272_v5  ;;  %v4861_v36 = vpop.f32.mrf.mxu0 }
 0x53f   : > { %v5209_v46 = vpop.f32.mrf.mxu1  ;;  %v4925_v45 = vadd.f32 %v4861_v36, %v15381_v16  ;;  %v5902_v14 = vpop.f32.mrf.mxu3  ;;  %v6335_v36 = vld [vmem:[%s13761_s26 + $0x6e] sm:$0xff] }
 0x540   : > { %v15913_v13 = vadd.f32 %v5902_v14, %v5620_v3  ;;  %v5987_v3 = vld [vmem:[%s13761_s26 + $0x6d] sm:$0xff] }
 0x541   : > { %v5273_v28 = vadd.f32 %v5209_v46, %v4925_v45  ;;  %12545 = vmatmul.msk.f32.gmra.mxu0 %vm594_vm0, %v5985_v61  ;;  %v7031_v14 = vld [vmem:[%s13761_s26 + $0x70] sm:$0xff] }
 0x542   : > { %12595 = vmatmul.msk.f32.gmra.mxu1 %vm594_vm0, %v6333_v32  ;;  %12645 = vmatmul.msk.f32.gmra.mxu2 %vm594_vm0, %v6681_v53  ;;  %v6683_v32 = vld [vmem:[%s13761_s26 + $0x6f] sm:$0xff] }
 0x544   : > { %12695 = vmatmul.msk.f32.gmra.mxu3 %vm594_vm0, %v7029_v0 }
 0x545   : > { %v5557_v48 = vpop.f32.mrf.mxu2 }
 0x546   : > { %v5621_v23 = vadd.f32 %v5557_v48, %v5273_v28  ;;  %v4864_v63 = vpop.f32.mrf.mxu0 }
 0x547   : > { %v5212_v16 = vpop.f32.mrf.mxu1  ;;  %v4926_v12 = vadd.f32 %v4864_v63, %v15391_v21  ;;  %v5905_v4 = vpop.f32.mrf.mxu3  ;;  %v6336_v63 = vld [vmem:[%s13761_s26 + $0x76] sm:$0xff] }
 0x548   : > { %v15924_v34 = vadd.f32 %v5905_v4, %v5621_v23  ;;  %v5988_v23 = vld [vmem:[%s13761_s26 + $0x75] sm:$0xff] }
 0x549   : > { %v5274_v58 = vadd.f32 %v5212_v16, %v4926_v12  ;;  %12546 = vmatmul.msk.f32.gmra.mxu0 %vm594_vm0, %v5986_v10  ;;  %v7032_v4 = vld [vmem:[%s13761_s26 + $0x78] sm:$0xff] }
 0x54a   : > { %12596 = vmatmul.msk.f32.gmra.mxu1 %vm594_vm0, %v6334_v24  ;;  %12646 = vmatmul.msk.f32.gmra.mxu2 %vm594_vm0, %v6682_v39  ;;  %v6684_v24 = vld [vmem:[%s13761_s26 + $0x77] sm:$0xff] }
 0x54c   : > { %12696 = vmatmul.msk.f32.gmra.mxu3 %vm594_vm0, %v7030_v20 }
 0x54d   : > { %v5560_v31 = vpop.f32.mrf.mxu2 }
 0x54e   : > { %v5622_v5 = vadd.f32 %v5560_v31, %v5274_v58  ;;  %v4867_v1 = vpop.f32.mrf.mxu0 }
 0x54f   : > { %v5215_v21 = vpop.f32.mrf.mxu1  ;;  %v4927_v46 = vadd.f32 %v4867_v1, %v15401_v60  ;;  %v5908_v61 = vpop.f32.mrf.mxu3  ;;  %v6337_v1 = vld [vmem:[%s13761_s26 + $0x7e] sm:$0xff] }
 0x550   : > { %v15935_v45 = vadd.f32 %v5908_v61, %v5622_v5  ;;  %v5989_v5 = vld [vmem:[%s13761_s26 + $0x7d] sm:$0xff] }
 0x551   : > { %v5275_v53 = vadd.f32 %v5215_v21, %v4927_v46  ;;  %12547 = vmatmul.msk.f32.gmra.mxu0 %vm594_vm0, %v5987_v3  ;;  %v7033_v61 = vld [vmem:[%s13761_s26 + $0x80] sm:$0xff] }
 0x552   : > { %12597 = vmatmul.msk.f32.gmra.mxu1 %vm594_vm0, %v6335_v36  ;;  %12647 = vmatmul.msk.f32.gmra.mxu2 %vm594_vm0, %v6683_v32  ;;  %v6685_v36 = vld [vmem:[%s13761_s26 + $0x7f] sm:$0xff] }
 0x554   : > { %12697 = vmatmul.msk.f32.gmra.mxu3 %vm594_vm0, %v7031_v14 }
 0x555   : > { %v5563_v0 = vpop.f32.mrf.mxu2 }
 0x556   : > { %v5623_v28 = vadd.f32 %v5563_v0, %v5275_v53  ;;  %v4870_v48 = vpop.f32.mrf.mxu0 }
 0x557   : > { %v5218_v60 = vpop.f32.mrf.mxu1  ;;  %v4928_v16 = vadd.f32 %v4870_v48, %v15411_v7  ;;  %v5911_v10 = vpop.f32.mrf.mxu3  ;;  %v6338_v48 = vld [vmem:[%s13761_s26 + $0x86] sm:$0xff] }
 0x558   : > { %v15946_v12 = vadd.f32 %v5911_v10, %v5623_v28  ;;  %v5990_v28 = vld [vmem:[%s13761_s26 + $0x85] sm:$0xff] }
 0x559   : > { %v5276_v39 = vadd.f32 %v5218_v60, %v4928_v16  ;;  %12548 = vmatmul.msk.f32.gmra.mxu0 %vm594_vm0, %v5988_v23  ;;  %v7034_v10 = vld [vmem:[%s13761_s26 + $0x88] sm:$0xff] }
 0x55a   : > { %12598 = vmatmul.msk.f32.gmra.mxu1 %vm594_vm0, %v6336_v63  ;;  %12648 = vmatmul.msk.f32.gmra.mxu2 %vm594_vm0, %v6684_v24  ;;  %v6686_v63 = vld [vmem:[%s13761_s26 + $0x87] sm:$0xff] }
 0x55c   : > { %12698 = vmatmul.msk.f32.gmra.mxu3 %vm594_vm0, %v7032_v4 }
 0x55d   : > { %v5566_v20 = vpop.f32.mrf.mxu2 }
 0x55e   : > { %v5624_v58 = vadd.f32 %v5566_v20, %v5276_v39  ;;  %v4873_v31 = vpop.f32.mrf.mxu0 }
 0x55f   : > { %v5221_v7 = vpop.f32.mrf.mxu1  ;;  %v4929_v21 = vadd.f32 %v4873_v31, %v15421_v25  ;;  %v5914_v3 = vpop.f32.mrf.mxu3  ;;  %v6339_v31 = vld [vmem:[%s13761_s26 + $0x8e] sm:$0xff] }
 0x560   : > { %v15957_v46 = vadd.f32 %v5914_v3, %v5624_v58  ;;  %v5991_v58 = vld [vmem:[%s13761_s26 + $0x8d] sm:$0xff] }
 0x561   : > { %v5277_v32 = vadd.f32 %v5221_v7, %v4929_v21  ;;  %12549 = vmatmul.msk.f32.gmra.mxu0 %vm594_vm0, %v5989_v5  ;;  %v7035_v3 = vld [vmem:[%s13761_s26 + $0x90] sm:$0xff] }
 0x562   : > { %12599 = vmatmul.msk.f32.gmra.mxu1 %vm594_vm0, %v6337_v1  ;;  %12649 = vmatmul.msk.f32.gmra.mxu2 %vm594_vm0, %v6685_v36  ;;  %v6687_v1 = vld [vmem:[%s13761_s26 + $0x8f] sm:$0xff] }
 0x564   : > { %12699 = vmatmul.msk.f32.gmra.mxu3 %vm594_vm0, %v7033_v61 }
 0x565   : > { %v5569_v14 = vpop.f32.mrf.mxu2 }
 0x566   : > { %v5625_v53 = vadd.f32 %v5569_v14, %v5277_v32  ;;  %v4876_v0 = vpop.f32.mrf.mxu0 }
 0x567   : > { %v5224_v25 = vpop.f32.mrf.mxu1  ;;  %v4930_v60 = vadd.f32 %v4876_v0, %v15431_v59  ;;  %v5917_v23 = vpop.f32.mrf.mxu3  ;;  %v6340_v0 = vld [vmem:[%s13761_s26 + $0x96] sm:$0xff] }
 0x568   : > { %v15968_v16 = vadd.f32 %v5917_v23, %v5625_v53  ;;  %v5992_v53 = vld [vmem:[%s13761_s26 + $0x95] sm:$0xff] }
 0x569   : > { %v5278_v24 = vadd.f32 %v5224_v25, %v4930_v60  ;;  %12550 = vmatmul.msk.f32.gmra.mxu0 %vm594_vm0, %v5990_v28  ;;  %v7036_v23 = vld [vmem:[%s13761_s26 + $0x98] sm:$0xff] }
 0x56a   : > { %12600 = vmatmul.msk.f32.gmra.mxu1 %vm594_vm0, %v6338_v48  ;;  %12650 = vmatmul.msk.f32.gmra.mxu2 %vm594_vm0, %v6686_v63  ;;  %v6688_v48 = vld [vmem:[%s13761_s26 + $0x97] sm:$0xff] }
 0x56c   : > { %12700 = vmatmul.msk.f32.gmra.mxu3 %vm594_vm0, %v7034_v10 }
 0x56d   : > { %v5572_v4 = vpop.f32.mrf.mxu2 }
 0x56e   : > { %v5626_v39 = vadd.f32 %v5572_v4, %v5278_v24  ;;  %v4879_v20 = vpop.f32.mrf.mxu0 }
 0x56f   : > { %v5227_v59 = vpop.f32.mrf.mxu1  ;;  %v4931_v7 = vadd.f32 %v4879_v20, %v15441_v30  ;;  %v5920_v5 = vpop.f32.mrf.mxu3  ;;  %v6341_v20 = vld [vmem:[%s13761_s26 + $0x9e] sm:$0xff] }
 0x570   : > { %v15979_v21 = vadd.f32 %v5920_v5, %v5626_v39  ;;  %v5993_v39 = vld [vmem:[%s13761_s26 + $0x9d] sm:$0xff] }
 0x571   : > { %v5279_v36 = vadd.f32 %v5227_v59, %v4931_v7  ;;  %12551 = vmatmul.msk.f32.gmra.mxu0 %vm594_vm0, %v5991_v58  ;;  %v7037_v5 = vld [vmem:[%s13761_s26 + $0xa0] sm:$0xff] }
 0x572   : > { %12601 = vmatmul.msk.f32.gmra.mxu1 %vm594_vm0, %v6339_v31  ;;  %12651 = vmatmul.msk.f32.gmra.mxu2 %vm594_vm0, %v6687_v1  ;;  %v6689_v31 = vld [vmem:[%s13761_s26 + $0x9f] sm:$0xff] }
 0x574   : > { %12701 = vmatmul.msk.f32.gmra.mxu3 %vm594_vm0, %v7035_v3 }
 0x575   : > { %v5575_v61 = vpop.f32.mrf.mxu2 }
 0x576   : > { %v5627_v32 = vadd.f32 %v5575_v61, %v5279_v36  ;;  %v4882_v14 = vpop.f32.mrf.mxu0 }
 0x577   : > { %v5230_v30 = vpop.f32.mrf.mxu1  ;;  %v4932_v25 = vadd.f32 %v4882_v14, %v15451_v49  ;;  %v5923_v28 = vpop.f32.mrf.mxu3  ;;  %v6342_v14 = vld [vmem:[%s13761_s26 + $0xa6] sm:$0xff] }
 0x578   : > { %v15990_v60 = vadd.f32 %v5923_v28, %v5627_v32  ;;  %v5994_v32 = vld [vmem:[%s13761_s26 + $0xa5] sm:$0xff] }
 0x579   : > { %v5280_v63 = vadd.f32 %v5230_v30, %v4932_v25  ;;  %12552 = vmatmul.msk.f32.gmra.mxu0 %vm594_vm0, %v5992_v53  ;;  %v7038_v28 = vld [vmem:[%s13761_s26 + $0xa8] sm:$0xff] }
 0x57a   : > { %12602 = vmatmul.msk.f32.gmra.mxu1 %vm594_vm0, %v6340_v0  ;;  %12652 = vmatmul.msk.f32.gmra.mxu2 %vm594_vm0, %v6688_v48  ;;  %v6690_v0 = vld [vmem:[%s13761_s26 + $0xa7] sm:$0xff] }
 0x57c   : > { %12702 = vmatmul.msk.f32.gmra.mxu3 %vm594_vm0, %v7036_v23 }
 0x57d   : > { %v5578_v10 = vpop.f32.mrf.mxu2 }
 0x57e   : > { %v5628_v24 = vadd.f32 %v5578_v10, %v5280_v63  ;;  %v4885_v4 = vpop.f32.mrf.mxu0 }
 0x57f   : > { %v5233_v49 = vpop.f32.mrf.mxu1  ;;  %v4933_v59 = vadd.f32 %v4885_v4, %v15461_v47  ;;  %v5926_v58 = vpop.f32.mrf.mxu3  ;;  %v6343_v4 = vld [vmem:[%s13761_s26 + $0xae] sm:$0xff] }
 0x580   : > { %v16001_v7 = vadd.f32 %v5926_v58, %v5628_v24  ;;  %v5995_v24 = vld [vmem:[%s13761_s26 + $0xad] sm:$0xff] }
 0x581   : > { %v5281_v1 = vadd.f32 %v5233_v49, %v4933_v59  ;;  %12553 = vmatmul.msk.f32.gmra.mxu0 %vm594_vm0, %v5993_v39  ;;  %v7039_v58 = vld [vmem:[%s13761_s26 + $0xb0] sm:$0xff] }
 0x582   : > { %12603 = vmatmul.msk.f32.gmra.mxu1 %vm594_vm0, %v6341_v20  ;;  %12653 = vmatmul.msk.f32.gmra.mxu2 %vm594_vm0, %v6689_v31  ;;  %v6691_v20 = vld [vmem:[%s13761_s26 + $0xaf] sm:$0xff] }
 0x584   : > { %12703 = vmatmul.msk.f32.gmra.mxu3 %vm594_vm0, %v7037_v5 }
 0x585   : > { %v5581_v3 = vpop.f32.mrf.mxu2 }
 0x586   : > { %v5629_v36 = vadd.f32 %v5581_v3, %v5281_v1  ;;  %v4888_v61 = vpop.f32.mrf.mxu0 }
 0x587   : > { %v5236_v47 = vpop.f32.mrf.mxu1  ;;  %v4934_v30 = vadd.f32 %v4888_v61, %v15471_v19  ;;  %v5929_v53 = vpop.f32.mrf.mxu3  ;;  %v6344_v61 = vld [vmem:[%s13761_s26 + $0xb6] sm:$0xff] }
 0x588   : > { %v16012_v25 = vadd.f32 %v5929_v53, %v5629_v36  ;;  %v5996_v36 = vld [vmem:[%s13761_s26 + $0xb5] sm:$0xff] }
 0x589   : > { %v5282_v48 = vadd.f32 %v5236_v47, %v4934_v30  ;;  %12554 = vmatmul.msk.f32.gmra.mxu0 %vm594_vm0, %v5994_v32  ;;  %v7040_v53 = vld [vmem:[%s13761_s26 + $0xb8] sm:$0xff] }
 0x58a   : > { %12604 = vmatmul.msk.f32.gmra.mxu1 %vm594_vm0, %v6342_v14  ;;  %12654 = vmatmul.msk.f32.gmra.mxu2 %vm594_vm0, %v6690_v0  ;;  %v6692_v14 = vld [vmem:[%s13761_s26 + $0xb7] sm:$0xff] }
 0x58c   : > { %12704 = vmatmul.msk.f32.gmra.mxu3 %vm594_vm0, %v7038_v28 }
 0x58d   : > { %v5584_v23 = vpop.f32.mrf.mxu2 }
 0x58e   : > { %v5630_v63 = vadd.f32 %v5584_v23, %v5282_v48  ;;  %v4891_v10 = vpop.f32.mrf.mxu0 }
 0x58f   : > { %v5239_v19 = vpop.f32.mrf.mxu1  ;;  %v4935_v49 = vadd.f32 %v4891_v10, %v15481_v52  ;;  %v5932_v39 = vpop.f32.mrf.mxu3  ;;  %v6345_v10 = vld [vmem:[%s13761_s26 + $0xbe] sm:$0xff] }
 0x590   : > { %v16023_v59 = vadd.f32 %v5932_v39, %v5630_v63  ;;  %v5997_v63 = vld [vmem:[%s13761_s26 + $0xbd] sm:$0xff] }
 0x591   : > { %v5283_v31 = vadd.f32 %v5239_v19, %v4935_v49  ;;  %12555 = vmatmul.msk.f32.gmra.mxu0 %vm594_vm0, %v5995_v24  ;;  %v7041_v39 = vld [vmem:[%s13761_s26 + $0xc0] sm:$0xff] }
 0x592   : > { %12605 = vmatmul.msk.f32.gmra.mxu1 %vm594_vm0, %v6343_v4  ;;  %12655 = vmatmul.msk.f32.gmra.mxu2 %vm594_vm0, %v6691_v20  ;;  %v6693_v4 = vld [vmem:[%s13761_s26 + $0xbf] sm:$0xff] }
 0x594   : > { %12705 = vmatmul.msk.f32.gmra.mxu3 %vm594_vm0, %v7039_v58 }
 0x595   : > { %v5587_v5 = vpop.f32.mrf.mxu2 }
 0x596   : > { %v5631_v1 = vadd.f32 %v5587_v5, %v5283_v31  ;;  %v4894_v3 = vpop.f32.mrf.mxu0 }
 0x597   : > { %v5242_v52 = vpop.f32.mrf.mxu1  ;;  %v4936_v47 = vadd.f32 %v4894_v3, %v15491_v44  ;;  %v5935_v32 = vpop.f32.mrf.mxu3  ;;  %v6346_v3 = vld [vmem:[%s13761_s26 + $0xc6] sm:$0xff] }
 0x598   : > { %v16034_v30 = vadd.f32 %v5935_v32, %v5631_v1  ;;  %v7042_v32 = vld [vmem:[%s13761_s26 + $0xc8] sm:$0xff] }
 0x599   : > { %v5284_v0 = vadd.f32 %v5242_v52, %v4936_v47  ;;  %12556 = vmatmul.msk.f32.gmra.mxu0 %vm594_vm0, %v5996_v36 }
 0x59a   : > { %12606 = vmatmul.msk.f32.gmra.mxu1 %vm594_vm0, %v6344_v61  ;;  %12656 = vmatmul.msk.f32.gmra.mxu2 %vm594_vm0, %v6692_v14  ;;  %v6694_v61 = vld [vmem:[%s13761_s26 + $0xc7] sm:$0xff] }
 0x59c   : > { %12706 = vmatmul.msk.f32.gmra.mxu3 %vm594_vm0, %v7040_v53 }
 0x59d   : > { %v5590_v28 = vpop.f32.mrf.mxu2 }
 0x59e   : > { %v5632_v48 = vadd.f32 %v5590_v28, %v5284_v0  ;;  %v6169_v23 = vpop.f32.mrf.mxu0 }
 0x59f   : > { %v6517_v44 = vpop.f32.mrf.mxu1  ;;  %v5938_v19 = vpop.f32.mrf.mxu3  ;;  %v6289_v24 = vadd.f32 %v6169_v23, %v15501_v43  ;;  %v5998_v43 = vld [vmem:[%s13761_s26 + $0xc5] sm:$0xff]  ;;  %v6347_v23 = vld [vmem:[%s13761_s26 + $0xce] sm:$0xff] }
 0x5a0   : > { %v16045_v49 = vadd.f32 %v5938_v19, %v5632_v48  ;;  %v5999_v48 = vld [vmem:[%s13761_s26 + $0xcd] sm:$0xff] }
 0x5a1   : > { %v6637_v20 = vadd.f32 %v6517_v44, %v6289_v24  ;;  %12557 = vmatmul.msk.f32.gmra.mxu0 %vm594_vm0, %v5997_v63  ;;  %v7043_v24 = vld [vmem:[%s13761_s26 + $0xd0] sm:$0xff] }
 0x5a2   : > { %12607 = vmatmul.msk.f32.gmra.mxu1 %vm594_vm0, %v6345_v10  ;;  %12657 = vmatmul.msk.f32.gmra.mxu2 %vm594_vm0, %v6693_v4  ;;  %v6695_v10 = vld [vmem:[%s13761_s26 + $0xcf] sm:$0xff] }
 0x5a4   : > { %12707 = vmatmul.msk.f32.gmra.mxu3 %vm594_vm0, %v7041_v39 }
 0x5a5   : > { %v6865_v58 = vpop.f32.mrf.mxu2 }
 0x5a6   : > { %v6985_v31 = vadd.f32 %v6865_v58, %v6637_v20  ;;  %v6172_v5 = vpop.f32.mrf.mxu0 }
 0x5a7   : > { %v6520_v1 = vpop.f32.mrf.mxu1  ;;  %v6290_v52 = vadd.f32 %v6172_v5, %v15511_v41  ;;  %v7213_v36 = vpop.f32.mrf.mxu3  ;;  %v6348_v5 = vld [vmem:[%s13761_s26 + $0xd6] sm:$0xff] }
 0x5a8   : > { %v16056_v47 = vadd.f32 %v7213_v36, %v6985_v31  ;;  %v6000_v31 = vld [vmem:[%s13761_s26 + $0xd5] sm:$0xff] }
 0x5a9   : > { %v6638_v14 = vadd.f32 %v6520_v1, %v6290_v52  ;;  %12558 = vmatmul.msk.f32.gmra.mxu0 %vm594_vm0, %v5998_v43  ;;  %v7044_v36 = vld [vmem:[%s13761_s26 + $0xd8] sm:$0xff] }
 0x5aa   : > { %12608 = vmatmul.msk.f32.gmra.mxu1 %vm594_vm0, %v6346_v3  ;;  %12658 = vmatmul.msk.f32.gmra.mxu2 %vm594_vm0, %v6694_v61  ;;  %v6696_v3 = vld [vmem:[%s13761_s26 + $0xd7] sm:$0xff] }
 0x5ac   : > { %12708 = vmatmul.msk.f32.gmra.mxu3 %vm594_vm0, %v7042_v32 }
 0x5ad   : > { %v6868_v53 = vpop.f32.mrf.mxu2 }
 0x5ae   : > { %v6986_v0 = vadd.f32 %v6868_v53, %v6638_v14  ;;  %v6175_v28 = vpop.f32.mrf.mxu0 }
 0x5af   : > { %v6523_v41 = vpop.f32.mrf.mxu1  ;;  %v6291_v44 = vadd.f32 %v6175_v28, %v15521_v26  ;;  %v7216_v63 = vpop.f32.mrf.mxu3  ;;  %v6349_v28 = vld [vmem:[%s13761_s26 + $0xde] sm:$0xff] }
 0x5b0   : > { %v16067_v19 = vadd.f32 %v7216_v63, %v6986_v0  ;;  %v6001_v0 = vld [vmem:[%s13761_s26 + $0xdd] sm:$0xff] }
 0x5b1   : > { %v6639_v4 = vadd.f32 %v6523_v41, %v6291_v44  ;;  %12559 = vmatmul.msk.f32.gmra.mxu0 %vm594_vm0, %v5999_v48  ;;  %v7045_v63 = vld [vmem:[%s13761_s26 + $0xe0] sm:$0xff] }
 0x5b2   : > { %12609 = vmatmul.msk.f32.gmra.mxu1 %vm594_vm0, %v6347_v23  ;;  %12659 = vmatmul.msk.f32.gmra.mxu2 %vm594_vm0, %v6695_v10  ;;  %v6697_v23 = vld [vmem:[%s13761_s26 + $0xdf] sm:$0xff] }
 0x5b4   : > { %12709 = vmatmul.msk.f32.gmra.mxu3 %vm594_vm0, %v7043_v24 }
 0x5b5   : > { %v6871_v39 = vpop.f32.mrf.mxu2 }
 0x5b6   : > { %v6987_v20 = vadd.f32 %v6871_v39, %v6639_v4  ;;  %v6178_v58 = vpop.f32.mrf.mxu0 }
 0x5b7   : > { %v6526_v26 = vpop.f32.mrf.mxu1  ;;  %v6292_v1 = vadd.f32 %v6178_v58, %v15531_v27  ;;  %v7219_v43 = vpop.f32.mrf.mxu3  ;;  %v6350_v58 = vld [vmem:[%s13761_s26 + $0xe6] sm:$0xff] }
 0x5b8   : > { %v16078_v52 = vadd.f32 %v7219_v43, %v6987_v20  ;;  %v6002_v20 = vld [vmem:[%s13761_s26 + $0xe5] sm:$0xff] }
 0x5b9   : > { %v6640_v61 = vadd.f32 %v6526_v26, %v6292_v1  ;;  %12560 = vmatmul.msk.f32.gmra.mxu0 %vm594_vm0, %v6000_v31  ;;  %v7046_v43 = vld [vmem:[%s13761_s26 + $0xe8] sm:$0xff] }
 0x5ba   : > { %12610 = vmatmul.msk.f32.gmra.mxu1 %vm594_vm0, %v6348_v5  ;;  %12660 = vmatmul.msk.f32.gmra.mxu2 %vm594_vm0, %v6696_v3  ;;  %v6698_v5 = vld [vmem:[%s13761_s26 + $0xe7] sm:$0xff] }
 0x5bc   : > { %12710 = vmatmul.msk.f32.gmra.mxu3 %vm594_vm0, %v7044_v36 }
 0x5bd   : > { %v6874_v32 = vpop.f32.mrf.mxu2 }
 0x5be   : > { %v6988_v14 = vadd.f32 %v6874_v32, %v6640_v61  ;;  %v6181_v53 = vpop.f32.mrf.mxu0 }
 0x5bf   : > { %v6529_v27 = vpop.f32.mrf.mxu1  ;;  %v6293_v41 = vadd.f32 %v6181_v53, %v15541_v51  ;;  %v7222_v48 = vpop.f32.mrf.mxu3  ;;  %v6351_v53 = vld [vmem:[%s13761_s26 + $0xee] sm:$0xff] }
 0x5c0   : > { %v16089_v44 = vadd.f32 %v7222_v48, %v6988_v14  ;;  %v6003_v14 = vld [vmem:[%s13761_s26 + $0xed] sm:$0xff] }
 0x5c1   : > { %v6641_v10 = vadd.f32 %v6529_v27, %v6293_v41  ;;  %12561 = vmatmul.msk.f32.gmra.mxu0 %vm594_vm0, %v6001_v0  ;;  %v7047_v48 = vld [vmem:[%s13761_s26 + $0xf0] sm:$0xff] }
 0x5c2   : > { %12611 = vmatmul.msk.f32.gmra.mxu1 %vm594_vm0, %v6349_v28  ;;  %12661 = vmatmul.msk.f32.gmra.mxu2 %vm594_vm0, %v6697_v23  ;;  %v6699_v28 = vld [vmem:[%s13761_s26 + $0xef] sm:$0xff] }
 0x5c4   : > { %12711 = vmatmul.msk.f32.gmra.mxu3 %vm594_vm0, %v7045_v63 }
 0x5c5   : > { %v6877_v24 = vpop.f32.mrf.mxu2 }
 0x5c6   : > { %v6989_v4 = vadd.f32 %v6877_v24, %v6641_v10  ;;  %v6184_v39 = vpop.f32.mrf.mxu0 }
 0x5c7   : > { %v6532_v51 = vpop.f32.mrf.mxu1  ;;  %v6294_v26 = vadd.f32 %v6184_v39, %v15551_v17  ;;  %v7225_v31 = vpop.f32.mrf.mxu3  ;;  %v6352_v39 = vld [vmem:[%s13761_s26 + $0xf6] sm:$0xff] }
 0x5c8   : > { %v16100_v1 = vadd.f32 %v7225_v31, %v6989_v4  ;;  %v6004_v4 = vld [vmem:[%s13761_s26 + $0xf5] sm:$0xff] }
 0x5c9   : > { %v6642_v3 = vadd.f32 %v6532_v51, %v6294_v26  ;;  %12562 = vmatmul.msk.f32.gmra.mxu0 %vm594_vm0, %v6002_v20  ;;  %v7048_v31 = vld [vmem:[%s13761_s26 + $0xf8] sm:$0xff] }
 0x5ca   : > { %12612 = vmatmul.msk.f32.gmra.mxu1 %vm594_vm0, %v6350_v58  ;;  %12662 = vmatmul.msk.f32.gmra.mxu2 %vm594_vm0, %v6698_v5  ;;  %v6700_v58 = vld [vmem:[%s13761_s26 + $0xf7] sm:$0xff] }
 0x5cc   : > { %12712 = vmatmul.msk.f32.gmra.mxu3 %vm594_vm0, %v7046_v43 }
 0x5cd   : > { %v6880_v36 = vpop.f32.mrf.mxu2 }
 0x5ce   : > { %v6990_v61 = vadd.f32 %v6880_v36, %v6642_v3  ;;  %v6187_v32 = vpop.f32.mrf.mxu0 }
 0x5cf   : > { %v6535_v17 = vpop.f32.mrf.mxu1  ;;  %v6295_v27 = vadd.f32 %v6187_v32, %v15561_v33  ;;  %v7228_v0 = vpop.f32.mrf.mxu3  ;;  %v6353_v32 = vld [vmem:[%s13761_s26 + $0xfe] sm:$0xff] }
 0x5d0   : > { %v16111_v41 = vadd.f32 %v7228_v0, %v6990_v61  ;;  %v6005_v61 = vld [vmem:[%s13761_s26 + $0xfd] sm:$0xff] }
 0x5d1   : > { %v6643_v23 = vadd.f32 %v6535_v17, %v6295_v27  ;;  %12563 = vmatmul.msk.f32.gmra.mxu0 %vm594_vm0, %v6003_v14  ;;  %v7049_v0 = vld [vmem:[%s13761_s26 + $0x100] sm:$0xff] }
 0x5d2   : > { %12613 = vmatmul.msk.f32.gmra.mxu1 %vm594_vm0, %v6351_v53  ;;  %12663 = vmatmul.msk.f32.gmra.mxu2 %vm594_vm0, %v6699_v28  ;;  %v6701_v53 = vld [vmem:[%s13761_s26 + $0xff] sm:$0xff] }
 0x5d4   : > { %12713 = vmatmul.msk.f32.gmra.mxu3 %vm594_vm0, %v7047_v48 }
 0x5d5   : > { %v6883_v63 = vpop.f32.mrf.mxu2 }
 0x5d6   : > { %v6991_v10 = vadd.f32 %v6883_v63, %v6643_v23  ;;  %v6190_v24 = vpop.f32.mrf.mxu0 }
 0x5d7   : > { %v6538_v33 = vpop.f32.mrf.mxu1  ;;  %v6296_v51 = vadd.f32 %v6190_v24, %v15571_v50  ;;  %v7231_v20 = vpop.f32.mrf.mxu3  ;;  %v6354_v24 = vld [vmem:[%s13761_s26 + $0x106] sm:$0xff] }
 0x5d8   : > { %v16122_v26 = vadd.f32 %v7231_v20, %v6991_v10  ;;  %v6006_v10 = vld [vmem:[%s13761_s26 + $0x105] sm:$0xff] }
 0x5d9   : > { %v6644_v5 = vadd.f32 %v6538_v33, %v6296_v51  ;;  %12564 = vmatmul.msk.f32.gmra.mxu0 %vm594_vm0, %v6004_v4  ;;  %v7050_v20 = vld [vmem:[%s13761_s26 + $0x108] sm:$0xff] }
 0x5da   : > { %12614 = vmatmul.msk.f32.gmra.mxu1 %vm594_vm0, %v6352_v39  ;;  %12664 = vmatmul.msk.f32.gmra.mxu2 %vm594_vm0, %v6700_v58  ;;  %v6702_v39 = vld [vmem:[%s13761_s26 + $0x107] sm:$0xff] }
 0x5dc   : > { %12714 = vmatmul.msk.f32.gmra.mxu3 %vm594_vm0, %v7048_v31 }
 0x5dd   : > { %v6886_v43 = vpop.f32.mrf.mxu2 }
 0x5de   : > { %v6992_v3 = vadd.f32 %v6886_v43, %v6644_v5  ;;  %v6193_v36 = vpop.f32.mrf.mxu0 }
 0x5df   : > { %v6541_v50 = vpop.f32.mrf.mxu1  ;;  %v6297_v17 = vadd.f32 %v6193_v36, %v15581_v2  ;;  %v7234_v14 = vpop.f32.mrf.mxu3  ;;  %v6355_v36 = vld [vmem:[%s13761_s26 + $0x10e] sm:$0xff] }
 0x5e0   : > { %v16133_v27 = vadd.f32 %v7234_v14, %v6992_v3  ;;  %v6007_v3 = vld [vmem:[%s13761_s26 + $0x10d] sm:$0xff] }
 0x5e1   : > { %v6645_v28 = vadd.f32 %v6541_v50, %v6297_v17  ;;  %12565 = vmatmul.msk.f32.gmra.mxu0 %vm594_vm0, %v6005_v61  ;;  %v7051_v14 = vld [vmem:[%s13761_s26 + $0x110] sm:$0xff] }
 0x5e2   : > { %12615 = vmatmul.msk.f32.gmra.mxu1 %vm594_vm0, %v6353_v32  ;;  %12665 = vmatmul.msk.f32.gmra.mxu2 %vm594_vm0, %v6701_v53  ;;  %v6703_v32 = vld [vmem:[%s13761_s26 + $0x10f] sm:$0xff] }
 0x5e4   : > { %12715 = vmatmul.msk.f32.gmra.mxu3 %vm594_vm0, %v7049_v0 }
 0x5e5   : > { %v6889_v48 = vpop.f32.mrf.mxu2 }
 0x5e6   : > { %v6993_v23 = vadd.f32 %v6889_v48, %v6645_v28  ;;  %v6196_v63 = vpop.f32.mrf.mxu0 }
 0x5e7   : > { %v6544_v2 = vpop.f32.mrf.mxu1  ;;  %v6298_v33 = vadd.f32 %v6196_v63, %v15591_v22  ;;  %v7237_v4 = vpop.f32.mrf.mxu3  ;;  %v6356_v63 = vld [vmem:[%s13761_s26 + $0x116] sm:$0xff] }
 0x5e8   : > { %v16144_v51 = vadd.f32 %v7237_v4, %v6993_v23  ;;  %v6008_v23 = vld [vmem:[%s13761_s26 + $0x115] sm:$0xff] }
 0x5e9   : > { %v6646_v58 = vadd.f32 %v6544_v2, %v6298_v33  ;;  %12566 = vmatmul.msk.f32.gmra.mxu0 %vm594_vm0, %v6006_v10  ;;  %v7052_v4 = vld [vmem:[%s13761_s26 + $0x118] sm:$0xff] }
 0x5ea   : > { %12616 = vmatmul.msk.f32.gmra.mxu1 %vm594_vm0, %v6354_v24  ;;  %12666 = vmatmul.msk.f32.gmra.mxu2 %vm594_vm0, %v6702_v39  ;;  %v6704_v24 = vld [vmem:[%s13761_s26 + $0x117] sm:$0xff] }
 0x5ec   : > { %12716 = vmatmul.msk.f32.gmra.mxu3 %vm594_vm0, %v7050_v20 }
 0x5ed   : > { %v6892_v31 = vpop.f32.mrf.mxu2 }
 0x5ee   : > { %v6994_v5 = vadd.f32 %v6892_v31, %v6646_v58  ;;  %v6199_v43 = vpop.f32.mrf.mxu0 }
 0x5ef   : > { %v6547_v22 = vpop.f32.mrf.mxu1  ;;  %v6299_v50 = vadd.f32 %v6199_v43, %v15601_v38  ;;  %v7240_v61 = vpop.f32.mrf.mxu3  ;;  %v6357_v43 = vld [vmem:[%s13761_s26 + $0x11e] sm:$0xff] }
 0x5f0   : > { %v16155_v17 = vadd.f32 %v7240_v61, %v6994_v5  ;;  %v6009_v5 = vld [vmem:[%s13761_s26 + $0x11d] sm:$0xff] }
 0x5f1   : > { %v6647_v53 = vadd.f32 %v6547_v22, %v6299_v50  ;;  %12567 = vmatmul.msk.f32.gmra.mxu0 %vm594_vm0, %v6007_v3  ;;  %v7053_v61 = vld [vmem:[%s13761_s26 + $0x120] sm:$0xff] }
 0x5f2   : > { %12617 = vmatmul.msk.f32.gmra.mxu1 %vm594_vm0, %v6355_v36  ;;  %12667 = vmatmul.msk.f32.gmra.mxu2 %vm594_vm0, %v6703_v32  ;;  %v6705_v36 = vld [vmem:[%s13761_s26 + $0x11f] sm:$0xff] }
 0x5f4   : > { %12717 = vmatmul.msk.f32.gmra.mxu3 %vm594_vm0, %v7051_v14 }
 0x5f5   : > { %v6895_v0 = vpop.f32.mrf.mxu2 }
 0x5f6   : > { %v6995_v28 = vadd.f32 %v6895_v0, %v6647_v53  ;;  %v6202_v48 = vpop.f32.mrf.mxu0 }
 0x5f7   : > { %v6550_v38 = vpop.f32.mrf.mxu1  ;;  %v6300_v2 = vadd.f32 %v6202_v48, %v15611_v57  ;;  %v7243_v10 = vpop.f32.mrf.mxu3  ;;  %v6358_v48 = vld [vmem:[%s13761_s26 + $0x126] sm:$0xff] }
 0x5f8   : > { %v16166_v33 = vadd.f32 %v7243_v10, %v6995_v28  ;;  %v6010_v28 = vld [vmem:[%s13761_s26 + $0x125] sm:$0xff] }
 0x5f9   : > { %v6648_v39 = vadd.f32 %v6550_v38, %v6300_v2  ;;  %12568 = vmatmul.msk.f32.gmra.mxu0 %vm594_vm0, %v6008_v23  ;;  %v7054_v10 = vld [vmem:[%s13761_s26 + $0x128] sm:$0xff] }
 0x5fa   : > { %12618 = vmatmul.msk.f32.gmra.mxu1 %vm594_vm0, %v6356_v63  ;;  %12668 = vmatmul.msk.f32.gmra.mxu2 %vm594_vm0, %v6704_v24  ;;  %v6706_v63 = vld [vmem:[%s13761_s26 + $0x127] sm:$0xff] }
 0x5fc   : > { %12718 = vmatmul.msk.f32.gmra.mxu3 %vm594_vm0, %v7052_v4 }
 0x5fd   : > { %v6898_v20 = vpop.f32.mrf.mxu2 }
 0x5fe   : > { %v6996_v58 = vadd.f32 %v6898_v20, %v6648_v39  ;;  %v6205_v31 = vpop.f32.mrf.mxu0 }
 0x5ff   : > { %v6553_v57 = vpop.f32.mrf.mxu1  ;;  %v6301_v22 = vadd.f32 %v6205_v31, %v15621_v11  ;;  %v7246_v3 = vpop.f32.mrf.mxu3  ;;  %v6359_v31 = vld [vmem:[%s13761_s26 + $0x12e] sm:$0xff] }
 0x600   : > { %v16177_v50 = vadd.f32 %v7246_v3, %v6996_v58  ;;  %v6011_v58 = vld [vmem:[%s13761_s26 + $0x12d] sm:$0xff] }
 0x601   : > { %v6649_v32 = vadd.f32 %v6553_v57, %v6301_v22  ;;  %12569 = vmatmul.msk.f32.gmra.mxu0 %vm594_vm0, %v6009_v5  ;;  %v7055_v3 = vld [vmem:[%s13761_s26 + $0x130] sm:$0xff] }
 0x602   : > { %12619 = vmatmul.msk.f32.gmra.mxu1 %vm594_vm0, %v6357_v43  ;;  %12669 = vmatmul.msk.f32.gmra.mxu2 %vm594_vm0, %v6705_v36  ;;  %v6707_v43 = vld [vmem:[%s13761_s26 + $0x12f] sm:$0xff] }
 0x604   : > { %12719 = vmatmul.msk.f32.gmra.mxu3 %vm594_vm0, %v7053_v61 }
 0x605   : > { %v6901_v14 = vpop.f32.mrf.mxu2 }
 0x606   : > { %v6997_v53 = vadd.f32 %v6901_v14, %v6649_v32  ;;  %v6208_v0 = vpop.f32.mrf.mxu0 }
 0x607   : > { %v6556_v11 = vpop.f32.mrf.mxu1  ;;  %v6302_v38 = vadd.f32 %v6208_v0, %v15631_v35  ;;  %v7249_v23 = vpop.f32.mrf.mxu3  ;;  %v6360_v0 = vld [vmem:[%s13761_s26 + $0x136] sm:$0xff] }
 0x608   : > { %v16188_v2 = vadd.f32 %v7249_v23, %v6997_v53  ;;  %v6012_v53 = vld [vmem:[%s13761_s26 + $0x135] sm:$0xff] }
 0x609   : > { %v6650_v24 = vadd.f32 %v6556_v11, %v6302_v38  ;;  %12570 = vmatmul.msk.f32.gmra.mxu0 %vm594_vm0, %v6010_v28  ;;  %v7056_v23 = vld [vmem:[%s13761_s26 + $0x138] sm:$0xff] }
 0x60a   : > { %12620 = vmatmul.msk.f32.gmra.mxu1 %vm594_vm0, %v6358_v48  ;;  %12670 = vmatmul.msk.f32.gmra.mxu2 %vm594_vm0, %v6706_v63  ;;  %v6708_v48 = vld [vmem:[%s13761_s26 + $0x137] sm:$0xff] }
 0x60c   : > { %12720 = vmatmul.msk.f32.gmra.mxu3 %vm594_vm0, %v7054_v10 }
 0x60d   : > { %v6904_v4 = vpop.f32.mrf.mxu2 }
 0x60e   : > { %v6998_v39 = vadd.f32 %v6904_v4, %v6650_v24  ;;  %v6211_v20 = vpop.f32.mrf.mxu0 }
 0x60f   : > { %v6559_v35 = vpop.f32.mrf.mxu1  ;;  %v6303_v57 = vadd.f32 %v6211_v20, %v15641_v54  ;;  %v7252_v5 = vpop.f32.mrf.mxu3  ;;  %v6361_v20 = vld [vmem:[%s13761_s26 + $0x13e] sm:$0xff] }
 0x610   : > { %v16199_v22 = vadd.f32 %v7252_v5, %v6998_v39  ;;  %v6013_v39 = vld [vmem:[%s13761_s26 + $0x13d] sm:$0xff] }
 0x611   : > { %v6651_v36 = vadd.f32 %v6559_v35, %v6303_v57  ;;  %12571 = vmatmul.msk.f32.gmra.mxu0 %vm594_vm0, %v6011_v58  ;;  %v7057_v5 = vld [vmem:[%s13761_s26 + $0x140] sm:$0xff] }
 0x612   : > { %12621 = vmatmul.msk.f32.gmra.mxu1 %vm594_vm0, %v6359_v31  ;;  %12671 = vmatmul.msk.f32.gmra.mxu2 %vm594_vm0, %v6707_v43  ;;  %v6709_v31 = vld [vmem:[%s13761_s26 + $0x13f] sm:$0xff] }
 0x614   : > { %12721 = vmatmul.msk.f32.gmra.mxu3 %vm594_vm0, %v7055_v3 }
 0x615   : > { %v6907_v61 = vpop.f32.mrf.mxu2 }
 0x616   : > { %v6999_v32 = vadd.f32 %v6907_v61, %v6651_v36  ;;  %v6214_v14 = vpop.f32.mrf.mxu0 }
 0x617   : > { %v6562_v54 = vpop.f32.mrf.mxu1  ;;  %v6304_v11 = vadd.f32 %v6214_v14, %v15651_v15  ;;  %v7255_v28 = vpop.f32.mrf.mxu3  ;;  %v6362_v14 = vld [vmem:[%s13761_s26 + $0x146] sm:$0xff] }
 0x618   : > { %v16210_v38 = vadd.f32 %v7255_v28, %v6999_v32  ;;  %v6014_v32 = vld [vmem:[%s13761_s26 + $0x145] sm:$0xff] }
 0x619   : > { %v6652_v63 = vadd.f32 %v6562_v54, %v6304_v11  ;;  %12572 = vmatmul.msk.f32.gmra.mxu0 %vm594_vm0, %v6012_v53  ;;  %v7058_v28 = vld [vmem:[%s13761_s26 + $0x148] sm:$0xff] }
 0x61a   : > { %12622 = vmatmul.msk.f32.gmra.mxu1 %vm594_vm0, %v6360_v0  ;;  %12672 = vmatmul.msk.f32.gmra.mxu2 %vm594_vm0, %v6708_v48  ;;  %v6710_v0 = vld [vmem:[%s13761_s26 + $0x147] sm:$0xff] }
 0x61c   : > { %12722 = vmatmul.msk.f32.gmra.mxu3 %vm594_vm0, %v7056_v23 }
 0x61d   : > { %v6910_v10 = vpop.f32.mrf.mxu2 }
 0x61e   : > { %v7000_v24 = vadd.f32 %v6910_v10, %v6652_v63  ;;  %v6217_v4 = vpop.f32.mrf.mxu0  ;;  %v6015_v63 = vld [vmem:[%s13761_s26 + $0x14d] sm:$0xff] }
 0x61f   : > { %v6565_v15 = vpop.f32.mrf.mxu1  ;;  %v6305_v35 = vadd.f32 %v6217_v4, %v15661_v37  ;;  %v7258_v58 = vpop.f32.mrf.mxu3  ;;  %v6363_v4 = vld [vmem:[%s13761_s26 + $0x14e] sm:$0xff] }
 0x620   : > { %v16221_v57 = vadd.f32 %v7258_v58, %v7000_v24  ;;  %v6711_v58 = vld [vmem:[%s13761_s26 + $0x14f] sm:$0xff] }
 0x621   : > { %v6653_v43 = vadd.f32 %v6565_v15, %v6305_v35  ;;  %12573 = vmatmul.msk.f32.gmra.mxu0 %vm594_vm0, %v6013_v39  ;;  %v12740_v15 = vld [vmem:[%s19629_s1 + $0x688] sm:$0xff] }
 0x622   : > { %12623 = vmatmul.msk.f32.gmra.mxu1 %vm594_vm0, %v6361_v20  ;;  %12673 = vmatmul.msk.f32.gmra.mxu2 %vm594_vm0, %v6709_v31  ;;  %v12840_v39 = vld [vmem:[%s19629_s1 + $0x728] sm:$0xff] }
 0x623   : > { %7550 = vmatpush.msrb.mxu0 %v12740_v15  ;;  %8246 = vmatpush.msrb.mxu2 %v12840_v39 }
 0x624   : > { %12723 = vmatmul.msk.f32.gmra.mxu3 %vm594_vm0, %v7057_v5  ;;  %v7059_v5 = vld [vmem:[%s13761_s26 + $0x150] sm:$0xff] }
 0x625   : > { %v6913_v3 = vpop.f32.mrf.mxu2 }
 0x626   : > { %v7001_v36 = vadd.f32 %v6913_v3, %v6653_v43  ;;  %v6220_v37 = vpop.f32.mrf.mxu0  ;;  %v12739_v43 = vld [vmem:[%s19629_s1 + $0x680] sm:$0xff]  ;;  %v12790_v3 = vld [vmem:[%s19629_s1 + $0x6d8] sm:$0xff] }
 0x627   : > { %v6568_v61 = vpop.f32.mrf.mxu1  ;;  %v6306_v54 = vadd.f32 %v6220_v37, %v15680_v55  ;;  %v7261_v53 = vpop.f32.mrf.mxu3  ;;  %v12890_v37 = vld [vmem:[%s19629_s1 + $0x778] sm:$0xff]  ;;  %7551 = vmatpush.msrb.mxu0 %v12739_v43  ;;  %7898 = vmatpush.msrb.mxu1 %v12790_v3  ;;  %v12787_v43 = vld [vmem:[%s19629_s1 + $0x6c0] sm:$0xff] }
 0x628   : > { %v16232_v11 = vadd.f32 %v7261_v53, %v7001_v36  ;;  %8594 = vmatpush.msrb.mxu3 %v12890_v37  ;;  %v12737_v53 = vld [vmem:[%s19629_s1 + $0x670] sm:$0xff]  ;;  %v12786_v37 = vld [vmem:[%s19629_s1 + $0x6b8] sm:$0xff] }
 0x629   : > { %v6654_v48 = vadd.f32 %v6568_v61, %v6306_v54  ;;  %12574 = vmatmul.msk.f32.gmra.mxu0 %vm594_vm0, %v6014_v32  ;;  %v12738_v61 = vld [vmem:[%s19629_s1 + $0x678] sm:$0xff]  ;;  %v12789_v32 = vld [vmem:[%s19629_s1 + $0x6d0] sm:$0xff] }
 0x62a   : > { %19650 = vst [vmem:[#allocation3_spill] sm:$0xff] %v16232_v11  ;;  %12624 = vmatmul.msk.f32.gmra.mxu1 %vm594_vm0, %v6362_v14  ;;  %12674 = vmatmul.msk.f32.gmra.mxu2 %vm594_vm0, %v6710_v0  ;;  %v12838_v14 = vld [vmem:[%s19629_s1 + $0x718] sm:$0xff]  ;;  %v12889_v54 = vld [vmem:[%s19629_s1 + $0x770] sm:$0xff]  ;;  %v12788_v0 = vld [vmem:[%s19629_s1 + $0x6c8] sm:$0xff] }
 0x62b   : > { %7552 = vmatpush.msrb.mxu0 %v12738_v61  ;;  %7899 = vmatpush.msrb.mxu1 %v12789_v32  ;;  %v12835_v61 = vld [vmem:[%s19629_s1 + $0x700] sm:$0xff]  ;;  %v12886_v32 = vld [vmem:[%s19629_s1 + $0x758] sm:$0xff] }
 0x62c   : > { %12724 = vmatmul.msk.f32.gmra.mxu3 %vm594_vm0, %v7058_v28  ;;  %v8789_v11 = vld [vmem:[%s13761_s26 + $0x114] sm:$0xff] }
 0x62d   : > { %v6916_v23 = vpop.f32.mrf.mxu2  ;;  %8595 = vmatpush.msrb.mxu3 %v12889_v54  ;;  %7553 = vmatpush.msrb.mxu0 %v12737_v53  ;;  %v12785_v54 = vld [vmem:[%s19629_s1 + $0x6b0] sm:$0xff] }
 0x62e   : > { %v7002_v10 = vadd.f32 %v6916_v23, %v6654_v48  ;;  %v6223_v55 = vpop.f32.mrf.mxu0  ;;  %v12837_v48 = vld [vmem:[%s19629_s1 + $0x710] sm:$0xff]  ;;  %v12888_v23 = vld [vmem:[%s19629_s1 + $0x768] sm:$0xff]  ;;  %7900 = vmatpush.msrb.mxu1 %v12788_v0  ;;  %v12834_v0 = vld [vmem:[%s19629_s1 + $0x6f8] sm:$0xff] }
 0x62f   : > { %v6571_v24 = vpop.f32.mrf.mxu1  ;;  %v6307_v20 = vadd.f32 %v6223_v55, %v15732_v9  ;;  %v7264_v35 = vpop.f32.mrf.mxu3  ;;  %v12839_v9 = vld [vmem:[%s19629_s1 + $0x720] sm:$0xff]  ;;  %8596 = vmatpush.msrb.mxu3 %v12888_v23 }
 0x630   : > { %v16249_v31 = vadd.f32 %v7264_v35, %v7002_v10  ;;  %8247 = vmatpush.msrb.mxu2 %v12839_v9  ;;  %v12736_v35 = vld [vmem:[%s19629_s1 + $0x668] sm:$0xff]  ;;  %v12735_v9 = vld [vmem:[%s19629_s1 + $0x660] sm:$0xff]  ;;  %7901 = vmatpush.msrb.mxu1 %v12787_v43 }
 0x631   : > { %v6655_v36 = vadd.f32 %v6571_v24, %v6307_v20  ;;  %12575 = vmatmul.msk.f32.gmra.mxu0 %vm594_vm0, %v6015_v63  ;;  %v6016_v24 = vld [vmem:[%s13761_s26 + $0x155] sm:$0xff] }
 0x632   : > { %19651 = vst [vmem:[#allocation4_spill] sm:$0xff] %v16249_v31  ;;  %12625 = vmatmul.msk.f32.gmra.mxu1 %vm594_vm0, %v6363_v4  ;;  %12675 = vmatmul.msk.f32.gmra.mxu2 %vm594_vm0, %v6711_v58  ;;  %v6364_v4 = vld [vmem:[%s13761_s26 + $0x156] sm:$0xff] }
 0x633   : > { %8248 = vmatpush.msrb.mxu2 %v12838_v14  ;;  %v6712_v20 = vld [vmem:[%s13761_s26 + $0x157] sm:$0xff]  ;;  %7554 = vmatpush.msrb.mxu0 %v12736_v35  ;;  %v7061_v35 = vld [vmem:[%s13761_s26 + $0x160] sm:$0xff] }
 0x634   : > { %12725 = vmatmul.msk.f32.gmra.mxu3 %vm594_vm0, %v7059_v5  ;;  %v7060_v5 = vld [vmem:[%s13761_s26 + $0x158] sm:$0xff]  ;;  %7902 = vmatpush.msrb.mxu1 %v12786_v37  ;;  %v12883_v37 = vld [vmem:[%s19629_s1 + $0x740] sm:$0xff] }
 0x635   : > { %v6919_v28 = vpop.f32.mrf.mxu2  ;;  %8249 = vmatpush.msrb.mxu2 %v12837_v48  ;;  %v12734_v14 = vld [vmem:[%s19629_s1 + $0x658] sm:$0xff]  ;;  %7555 = vmatpush.msrb.mxu0 %v12735_v9  ;;  %v12832_v9 = vld [vmem:[%s19629_s1 + $0x6e8] sm:$0xff] }
 0x636   : > { %v7003_v63 = vadd.f32 %v6919_v28, %v6655_v36  ;;  %v6226_v10 = vpop.f32.mrf.mxu0  ;;  %v12887_v36 = vld [vmem:[%s19629_s1 + $0x760] sm:$0xff]  ;;  %v12885_v28 = vld [vmem:[%s19629_s1 + $0x750] sm:$0xff]  ;;  %7903 = vmatpush.msrb.mxu1 %v12785_v54 }
 0x637   : > { %v6574_v55 = vpop.f32.mrf.mxu1  ;;  %v6308_v15 = vadd.f32 %v6226_v10, %v15782_v56  ;;  %v7267_v39 = vpop.f32.mrf.mxu3  ;;  %v12836_v56 = vld [vmem:[%s19629_s1 + $0x708] sm:$0xff]  ;;  %8597 = vmatpush.msrb.mxu3 %v12887_v36  ;;  %v6017_v10 = vld [vmem:[%s13761_s26 + $0x15d] sm:$0xff]  ;;  %7556 = vmatpush.msrb.mxu0 %v12734_v14 }
 0x638   : > { %v16299_v58 = vadd.f32 %v7267_v39, %v7003_v63  ;;  %8250 = vmatpush.msrb.mxu2 %v12836_v56  ;;  %v12733_v39 = vld [vmem:[%s19629_s1 + $0x650] sm:$0xff]  ;;  %v12732_v56 = vld [vmem:[%s19629_s1 + $0x648] sm:$0xff]  ;;  %v12783_v36 = vld [vmem:[%s19629_s1 + $0x6a0] sm:$0xff] }
 0x639   : > { %v6656_v3 = vadd.f32 %v6574_v55, %v6308_v15  ;;  %12576 = vmatmul.msk.f32.gmra.mxu0 %vm594_vm0, %v6016_v24  ;;  %v6365_v55 = vld [vmem:[%s13761_s26 + $0x15e] sm:$0xff]  ;;  %8598 = vmatpush.msrb.mxu3 %v12886_v32 }
 0x63a   : > { %19652 = vst [vmem:[#allocation5_spill] sm:$0xff] %v16299_v58  ;;  %12626 = vmatmul.msk.f32.gmra.mxu1 %vm594_vm0, %v6364_v4  ;;  %12676 = vmatmul.msk.f32.gmra.mxu2 %vm594_vm0, %v6712_v20  ;;  %v6713_v15 = vld [vmem:[%s13761_s26 + $0x15f] sm:$0xff] }
 0x63b   : > { %8251 = vmatpush.msrb.mxu2 %v12835_v61  ;;  %8599 = vmatpush.msrb.mxu3 %v12885_v28  ;;  %v12731_v61 = vld [vmem:[%s19629_s1 + $0x640] sm:$0xff]  ;;  %v12782_v32 = vld [vmem:[%s19629_s1 + $0x698] sm:$0xff] }
 0x63c   : > { %12726 = vmatmul.msk.f32.gmra.mxu3 %vm594_vm0, %v7060_v5  ;;  %v12784_v5 = vld [vmem:[%s19629_s1 + $0x6a8] sm:$0xff]  ;;  %7557 = vmatpush.msrb.mxu0 %v12733_v39  ;;  %v12831_v54 = vld [vmem:[%s19629_s1 + $0x6e0] sm:$0xff] }
 0x63d   : > { %v6922_v53 = vpop.f32.mrf.mxu2  ;;  %8252 = vmatpush.msrb.mxu2 %v12834_v0  ;;  %7904 = vmatpush.msrb.mxu1 %v12784_v5  ;;  %v7062_v39 = vld [vmem:[%s13761_s26 + $0x168] sm:$0xff] }
 0x63e   : > { %v7004_v48 = vadd.f32 %v6922_v53, %v6656_v3  ;;  %v6229_v23 = vpop.f32.mrf.mxu0  ;;  %v12884_v3 = vld [vmem:[%s19629_s1 + $0x748] sm:$0xff]  ;;  %7558 = vmatpush.msrb.mxu0 %v12732_v56  ;;  %v12882_v53 = vld [vmem:[%s19629_s1 + $0x738] sm:$0xff] }
 0x63f   : > { %v6577_v63 = vpop.f32.mrf.mxu1  ;;  %v6309_v24 = vadd.f32 %v6229_v23, %v15832_v40  ;;  %v7270_v4 = vpop.f32.mrf.mxu3  ;;  %v12833_v40 = vld [vmem:[%s19629_s1 + $0x6f0] sm:$0xff]  ;;  %8600 = vmatpush.msrb.mxu3 %v12884_v3  ;;  %7905 = vmatpush.msrb.mxu1 %v12783_v36  ;;  %v6018_v23 = vld [vmem:[%s13761_s26 + $0x165] sm:$0xff] }
 0x640   : > { %v16346_v20 = vadd.f32 %v7270_v4, %v7004_v48  ;;  %8253 = vmatpush.msrb.mxu2 %v12833_v40  ;;  %7559 = vmatpush.msrb.mxu0 %v12731_v61  ;;  %v12781_v4 = vld [vmem:[%s19629_s1 + $0x690] sm:$0xff] }
 0x641   : > { %v6657_v43 = vadd.f32 %v6577_v63, %v6309_v24  ;;  %12577 = vmatmul.msk.f32.gmra.mxu0 %vm594_vm0, %v6017_v10  ;;  %v6366_v63 = vld [vmem:[%s13761_s26 + $0x166] sm:$0xff]  ;;  %8601 = vmatpush.msrb.mxu3 %v12883_v37  ;;  %v6367_v36 = vld [vmem:[%s13761_s26 + $0x16e] sm:$0xff] }
 0x642   : > { %19653 = vst [vmem:[#allocation6_spill] sm:$0xff] %v16346_v20  ;;  %12627 = vmatmul.msk.f32.gmra.mxu1 %vm594_vm0, %v6365_v55  ;;  %12677 = vmatmul.msk.f32.gmra.mxu2 %vm594_vm0, %v6713_v15  ;;  %v6714_v24 = vld [vmem:[%s13761_s26 + $0x167] sm:$0xff]  ;;  %v6715_v61 = vld [vmem:[%s13761_s26 + $0x16f] sm:$0xff] }
 0x643   : > { %8254 = vmatpush.msrb.mxu2 %v12832_v9  ;;  %7906 = vmatpush.msrb.mxu1 %v12782_v32  ;;  %v6019_v56 = vld [vmem:[%s13761_s26 + $0x16d] sm:$0xff] }
 0x644   : > { %12727 = vmatmul.msk.f32.gmra.mxu3 %vm594_vm0, %v7061_v35 }
 0x645   : > { %v6925_v14 = vpop.f32.mrf.mxu2  ;;  %8255 = vmatpush.msrb.mxu2 %v12831_v54  ;;  %8602 = vmatpush.msrb.mxu3 %v12882_v53 }
 0x646   : > { %v7005_v0 = vadd.f32 %v6925_v14, %v6657_v43  ;;  %v6232_v28 = vpop.f32.mrf.mxu0  ;;  %7907 = vmatpush.msrb.mxu1 %v12781_v4  ;;  %v7063_v14 = vld [vmem:[%s13761_s26 + $0x170] sm:$0xff]  ;;  %v7064_v4 = vld [vmem:[%s13761_s26 + $0x178] sm:$0xf] }
 0x647   : > { %v6580_v48 = vpop.f32.mrf.mxu1  ;;  %v6310_v10 = vadd.f32 %v6232_v28, %v15846_v6  ;;  %v7273_v55 = vpop.f32.mrf.mxu3  ;;  %v12881_v6 = vld [vmem:[%s19629_s1 + $0x730] sm:$0xff] }
 0x648   : > { %v16393_v15 = vadd.f32 %v7273_v55, %v7005_v0  ;;  %8603 = vmatpush.msrb.mxu3 %v12881_v6  ;;  %v6716_v55 = vld [vmem:[%s13761_s26 + $0x177] sm:$0xf] }
 0x649   : > { %v6658_v35 = vadd.f32 %v6580_v48, %v6310_v10  ;;  %12578 = vmatmul.msk.f32.gmra.mxu0 %vm594_vm0, %v6018_v23  ;;  %v6020_v48 = vld [vmem:[%s13761_s26 + $0x175] sm:$0xf] }
 0x64a   : > { %19654 = vst [vmem:[#allocation7_spill] sm:$0xff] %v16393_v15  ;;  %12628 = vmatmul.msk.f32.gmra.mxu1 %vm594_vm0, %v6366_v63  ;;  %12678 = vmatmul.msk.f32.gmra.mxu2 %vm594_vm0, %v6714_v24  ;;  %v6368_v23 = vld [vmem:[%s13761_s26 + $0x176] sm:$0xf] }
 0x64c   : > { %12728 = vmatmul.msk.f32.gmra.mxu3 %vm594_vm0, %v7062_v39 }
 0x64d   : > { %v6928_v5 = vpop.f32.mrf.mxu2 }
 0x64e   : > { %v7006_v43 = vadd.f32 %v6928_v5, %v6658_v35  ;;  %v6235_v40 = vpop.f32.mrf.mxu0 }
 0x64f   : > { %v6583_v3 = vpop.f32.mrf.mxu1  ;;  %v6311_v9 = vadd.f32 %v6235_v40, %v15858_v62  ;;  %v7276_v37 = vpop.f32.mrf.mxu3  ;;  %v7721_v40 = vld [vmem:[%s13761_s26 + $0x51] sm:$0xff] }
 0x650   : > { %v16407_v32 = vadd.f32 %v7276_v37, %v7006_v43  ;;  %v7373_v43 = vld [vmem:[%s13761_s26 + $0x50] sm:$0xff] }
 0x651   : > { %v6659_v54 = vadd.f32 %v6583_v3, %v6311_v9  ;;  %12579 = vmatmul.msk.f32.gmra.mxu0 %vm594_vm0, %v6019_v56  ;;  %v8417_v37 = vld [vmem:[%s13761_s26 + $0x53] sm:$0xff] }
 0x652   : > { %12629 = vmatmul.msk.f32.gmra.mxu1 %vm594_vm0, %v6367_v36  ;;  %12679 = vmatmul.msk.f32.gmra.mxu2 %vm594_vm0, %v6715_v61  ;;  %v8069_v36 = vld [vmem:[%s13761_s26 + $0x52] sm:$0xff] }
 0x654   : > { %12729 = vmatmul.msk.f32.gmra.mxu3 %vm594_vm0, %v7063_v14 }
 0x655   : > { %v6931_v53 = vpop.f32.mrf.mxu2 }
 0x656   : > { %v7007_v0 = vadd.f32 %v6931_v53, %v6659_v54  ;;  %v6238_v28 = vpop.f32.mrf.mxu0 }
 0x657   : > { %v6586_v62 = vpop.f32.mrf.mxu1  ;;  %v6312_v63 = vadd.f32 %v6238_v28, %v15869_v18  ;;  %v7279_v10 = vpop.f32.mrf.mxu3  ;;  %v7722_v28 = vld [vmem:[%s13761_s26 + $0x59] sm:$0xff] }
 0x658   : > { %v16418_v24 = vadd.f32 %v7279_v10, %v7007_v0  ;;  %v7374_v0 = vld [vmem:[%s13761_s26 + $0x58] sm:$0xff] }
 0x659   : > { %v6660_v39 = vadd.f32 %v6586_v62, %v6312_v63  ;;  %12580 = vmatmul.msk.f32.gmra.mxu0 %vm594_vm0, %v6020_v48  ;;  %v8418_v10 = vld [vmem:[%s13761_s26 + $0x5b] sm:$0xff] }
 0x65a   : > { %12630 = vmatmul.msk.f32.gmra.mxu1 %vm594_vm0, %v6368_v23  ;;  %12680 = vmatmul.msk.f32.gmra.mxu2 %vm594_vm0, %v6716_v55  ;;  %v8070_v23 = vld [vmem:[%s13761_s26 + $0x5a] sm:$0xff] }
 0x65c   : > { %12730 = vmatmul.msk.f32.gmra.mxu3 %vm594_vm0, %v7064_v4 }
 0x65d   : > { %v6934_v35 = vpop.f32.mrf.mxu2 }
 0x65e   : > { %v7008_v6 = vadd.f32 %v6934_v35, %v6660_v39  ;;  %v6241_v5 = vpop.f32.mrf.mxu0 }
 0x65f   : > { %v6589_v18 = vpop.f32.mrf.mxu1  ;;  %v6313_v3 = vadd.f32 %v6241_v5, %v15880_v29  ;;  %v7282_v56 = vpop.f32.mrf.mxu3  ;;  %v7723_v5 = vld [vmem:[%s13761_s26 + $0x61] sm:$0xff] }
 0x660   : > { %v16429_v9 = vadd.f32 %v7282_v56, %v7008_v6  ;;  %v7375_v6 = vld [vmem:[%s13761_s26 + $0x60] sm:$0xff] }
 0x661   : > { %v6661_v61 = vadd.f32 %v6589_v18, %v6313_v3  ;;  %12741 = vmatmul.msk.f32.vlgmr.msrb.gmra.mxu0 %vm594_vm0, %v7373_v43  ;;  %v8419_v56 = vld [vmem:[%s13761_s26 + $0x63] sm:$0xff] }
 0x662   : > { %12791 = vmatmul.msk.f32.vlgmr.msrb.gmra.mxu1 %vm594_vm0, %v7721_v40  ;;  %12841 = vmatmul.msk.f32.vlgmr.msrb.gmra.mxu2 %vm594_vm0, %v8069_v36  ;;  %v8071_v40 = vld [vmem:[%s13761_s26 + $0x62] sm:$0xff] }
 0x664   : > { %12891 = vmatmul.msk.f32.vlgmr.msrb.gmra.mxu3 %vm594_vm0, %v8417_v37 }
 0x665   : > { %v6937_v14 = vpop.f32.mrf.mxu2 }
 0x666   : > { %v7009_v54 = vadd.f32 %v6937_v14, %v6661_v61  ;;  %v6244_v53 = vpop.f32.mrf.mxu0 }
 0x667   : > { %v6592_v29 = vpop.f32.mrf.mxu1  ;;  %v6314_v62 = vadd.f32 %v6244_v53, %v15891_v42  ;;  %v7285_v48 = vpop.f32.mrf.mxu3  ;;  %v7724_v53 = vld [vmem:[%s13761_s26 + $0x69] sm:$0xff] }
 0x668   : > { %v16440_v63 = vadd.f32 %v7285_v48, %v7009_v54  ;;  %v7376_v54 = vld [vmem:[%s13761_s26 + $0x68] sm:$0xff] }
 0x669   : > { %v6662_v55 = vadd.f32 %v6592_v29, %v6314_v62  ;;  %12742 = vmatmul.msk.f32.gmra.mxu0 %vm594_vm0, %v7374_v0  ;;  %v8420_v48 = vld [vmem:[%s13761_s26 + $0x6b] sm:$0xff] }
 0x66a   : > { %12792 = vmatmul.msk.f32.gmra.mxu1 %vm594_vm0, %v7722_v28  ;;  %12842 = vmatmul.msk.f32.gmra.mxu2 %vm594_vm0, %v8070_v23  ;;  %v8072_v28 = vld [vmem:[%s13761_s26 + $0x6a] sm:$0xff] }
 0x66c   : > { %12892 = vmatmul.msk.f32.gmra.mxu3 %vm594_vm0, %v8418_v10 }
 0x66d   : > { %v6940_v4 = vpop.f32.mrf.mxu2 }
 0x66e   : > { %v7010_v39 = vadd.f32 %v6940_v4, %v6662_v55  ;;  %v6247_v35 = vpop.f32.mrf.mxu0 }
 0x66f   : > { %v6595_v42 = vpop.f32.mrf.mxu1  ;;  %v6315_v18 = vadd.f32 %v6247_v35, %v15902_v8  ;;  %v7288_v43 = vpop.f32.mrf.mxu3  ;;  %v7725_v35 = vld [vmem:[%s13761_s26 + $0x71] sm:$0xff] }
 0x670   : > { %v16451_v3 = vadd.f32 %v7288_v43, %v7010_v39  ;;  %v7377_v39 = vld [vmem:[%s13761_s26 + $0x70] sm:$0xff] }
 0x671   : > { %v6663_v36 = vadd.f32 %v6595_v42, %v6315_v18  ;;  %12743 = vmatmul.msk.f32.gmra.mxu0 %vm594_vm0, %v7375_v6  ;;  %v8421_v43 = vld [vmem:[%s13761_s26 + $0x73] sm:$0xff] }
 0x672   : > { %12793 = vmatmul.msk.f32.gmra.mxu1 %vm594_vm0, %v7723_v5  ;;  %12843 = vmatmul.msk.f32.gmra.mxu2 %vm594_vm0, %v8071_v40  ;;  %v8073_v5 = vld [vmem:[%s13761_s26 + $0x72] sm:$0xff] }
 0x674   : > { %12893 = vmatmul.msk.f32.gmra.mxu3 %vm594_vm0, %v8419_v56 }
 0x675   : > { %v6943_v37 = vpop.f32.mrf.mxu2 }
 0x676   : > { %v7011_v61 = vadd.f32 %v6943_v37, %v6663_v36  ;;  %v6250_v14 = vpop.f32.mrf.mxu0 }
 0x677   : > { %v6598_v8 = vpop.f32.mrf.mxu1  ;;  %v6316_v29 = vadd.f32 %v6250_v14, %v15913_v13  ;;  %v7291_v0 = vpop.f32.mrf.mxu3  ;;  %v7726_v14 = vld [vmem:[%s13761_s26 + $0x79] sm:$0xff] }
 0x678   : > { %v16462_v62 = vadd.f32 %v7291_v0, %v7011_v61  ;;  %v7378_v61 = vld [vmem:[%s13761_s26 + $0x78] sm:$0xff] }
 0x679   : > { %v6664_v23 = vadd.f32 %v6598_v8, %v6316_v29  ;;  %12744 = vmatmul.msk.f32.gmra.mxu0 %vm594_vm0, %v7376_v54  ;;  %v8422_v0 = vld [vmem:[%s13761_s26 + $0x7b] sm:$0xff] }
 0x67a   : > { %12794 = vmatmul.msk.f32.gmra.mxu1 %vm594_vm0, %v7724_v53  ;;  %12844 = vmatmul.msk.f32.gmra.mxu2 %vm594_vm0, %v8072_v28  ;;  %v8074_v53 = vld [vmem:[%s13761_s26 + $0x7a] sm:$0xff] }
 0x67c   : > { %12894 = vmatmul.msk.f32.gmra.mxu3 %vm594_vm0, %v8420_v48 }
 0x67d   : > { %v6946_v10 = vpop.f32.mrf.mxu2 }
 0x67e   : > { %v7012_v55 = vadd.f32 %v6946_v10, %v6664_v23  ;;  %v6253_v4 = vpop.f32.mrf.mxu0 }
 0x67f   : > { %v6601_v13 = vpop.f32.mrf.mxu1  ;;  %v6317_v42 = vadd.f32 %v6253_v4, %v15924_v34  ;;  %v7294_v6 = vpop.f32.mrf.mxu3  ;;  %v7727_v4 = vld [vmem:[%s13761_s26 + $0x81] sm:$0xff] }
 0x680   : > { %v16473_v18 = vadd.f32 %v7294_v6, %v7012_v55  ;;  %v7379_v55 = vld [vmem:[%s13761_s26 + $0x80] sm:$0xff] }
 0x681   : > { %v6665_v40 = vadd.f32 %v6601_v13, %v6317_v42  ;;  %12745 = vmatmul.msk.f32.gmra.mxu0 %vm594_vm0, %v7377_v39  ;;  %v8423_v6 = vld [vmem:[%s13761_s26 + $0x83] sm:$0xff] }
 0x682   : > { %12795 = vmatmul.msk.f32.gmra.mxu1 %vm594_vm0, %v7725_v35  ;;  %12845 = vmatmul.msk.f32.gmra.mxu2 %vm594_vm0, %v8073_v5  ;;  %v8075_v35 = vld [vmem:[%s13761_s26 + $0x82] sm:$0xff] }
 0x684   : > { %12895 = vmatmul.msk.f32.gmra.mxu3 %vm594_vm0, %v8421_v43 }
 0x685   : > { %v6949_v56 = vpop.f32.mrf.mxu2 }
 0x686   : > { %v7013_v36 = vadd.f32 %v6949_v56, %v6665_v40  ;;  %v6256_v37 = vpop.f32.mrf.mxu0 }
 0x687   : > { %v6604_v34 = vpop.f32.mrf.mxu1  ;;  %v6318_v8 = vadd.f32 %v6256_v37, %v15935_v45  ;;  %v7297_v54 = vpop.f32.mrf.mxu3  ;;  %v7728_v37 = vld [vmem:[%s13761_s26 + $0x89] sm:$0xff] }
 0x688   : > { %v16484_v29 = vadd.f32 %v7297_v54, %v7013_v36  ;;  %v7380_v36 = vld [vmem:[%s13761_s26 + $0x88] sm:$0xff] }
 0x689   : > { %v6666_v28 = vadd.f32 %v6604_v34, %v6318_v8  ;;  %12746 = vmatmul.msk.f32.gmra.mxu0 %vm594_vm0, %v7378_v61  ;;  %v8424_v54 = vld [vmem:[%s13761_s26 + $0x8b] sm:$0xff] }
 0x68a   : > { %12796 = vmatmul.msk.f32.gmra.mxu1 %vm594_vm0, %v7726_v14  ;;  %12846 = vmatmul.msk.f32.gmra.mxu2 %vm594_vm0, %v8074_v53  ;;  %v8076_v14 = vld [vmem:[%s13761_s26 + $0x8a] sm:$0xff] }
 0x68c   : > { %12896 = vmatmul.msk.f32.gmra.mxu3 %vm594_vm0, %v8422_v0 }
 0x68d   : > { %v6952_v48 = vpop.f32.mrf.mxu2 }
 0x68e   : > { %v7014_v23 = vadd.f32 %v6952_v48, %v6666_v28  ;;  %v6259_v10 = vpop.f32.mrf.mxu0 }
 0x68f   : > { %v6607_v45 = vpop.f32.mrf.mxu1  ;;  %v6319_v13 = vadd.f32 %v6259_v10, %v15946_v12  ;;  %v7300_v39 = vpop.f32.mrf.mxu3  ;;  %v7729_v10 = vld [vmem:[%s13761_s26 + $0x91] sm:$0xff] }
 0x690   : > { %v16495_v42 = vadd.f32 %v7300_v39, %v7014_v23  ;;  %v7381_v23 = vld [vmem:[%s13761_s26 + $0x90] sm:$0xff] }
 0x691   : > { %v6667_v5 = vadd.f32 %v6607_v45, %v6319_v13  ;;  %12747 = vmatmul.msk.f32.gmra.mxu0 %vm594_vm0, %v7379_v55  ;;  %v8425_v39 = vld [vmem:[%s13761_s26 + $0x93] sm:$0xff] }
 0x692   : > { %12797 = vmatmul.msk.f32.gmra.mxu1 %vm594_vm0, %v7727_v4  ;;  %12847 = vmatmul.msk.f32.gmra.mxu2 %vm594_vm0, %v8075_v35  ;;  %v8077_v4 = vld [vmem:[%s13761_s26 + $0x92] sm:$0xff] }
 0x694   : > { %12897 = vmatmul.msk.f32.gmra.mxu3 %vm594_vm0, %v8423_v6 }
 0x695   : > { %v6955_v43 = vpop.f32.mrf.mxu2 }
 0x696   : > { %v7015_v40 = vadd.f32 %v6955_v43, %v6667_v5  ;;  %v6262_v56 = vpop.f32.mrf.mxu0 }
 0x697   : > { %v6610_v12 = vpop.f32.mrf.mxu1  ;;  %v6320_v34 = vadd.f32 %v6262_v56, %v15957_v46  ;;  %v7303_v61 = vpop.f32.mrf.mxu3  ;;  %v7730_v56 = vld [vmem:[%s13761_s26 + $0x99] sm:$0xff] }
 0x698   : > { %v16506_v8 = vadd.f32 %v7303_v61, %v7015_v40  ;;  %v7382_v40 = vld [vmem:[%s13761_s26 + $0x98] sm:$0xff] }
 0x699   : > { %v6668_v53 = vadd.f32 %v6610_v12, %v6320_v34  ;;  %12748 = vmatmul.msk.f32.gmra.mxu0 %vm594_vm0, %v7380_v36  ;;  %v8426_v61 = vld [vmem:[%s13761_s26 + $0x9b] sm:$0xff] }
 0x69a   : > { %12798 = vmatmul.msk.f32.gmra.mxu1 %vm594_vm0, %v7728_v37  ;;  %12848 = vmatmul.msk.f32.gmra.mxu2 %vm594_vm0, %v8076_v14  ;;  %v8078_v37 = vld [vmem:[%s13761_s26 + $0x9a] sm:$0xff] }
 0x69c   : > { %12898 = vmatmul.msk.f32.gmra.mxu3 %vm594_vm0, %v8424_v54 }
 0x69d   : > { %v6958_v0 = vpop.f32.mrf.mxu2 }
 0x69e   : > { %v7016_v28 = vadd.f32 %v6958_v0, %v6668_v53  ;;  %v6265_v48 = vpop.f32.mrf.mxu0 }
 0x69f   : > { %v6613_v46 = vpop.f32.mrf.mxu1  ;;  %v6321_v45 = vadd.f32 %v6265_v48, %v15968_v16  ;;  %v7306_v55 = vpop.f32.mrf.mxu3  ;;  %v7731_v48 = vld [vmem:[%s13761_s26 + $0xa1] sm:$0xff] }
 0x6a0   : > { %v16517_v13 = vadd.f32 %v7306_v55, %v7016_v28  ;;  %v7383_v28 = vld [vmem:[%s13761_s26 + $0xa0] sm:$0xff] }
 0x6a1   : > { %v6669_v35 = vadd.f32 %v6613_v46, %v6321_v45  ;;  %12749 = vmatmul.msk.f32.gmra.mxu0 %vm594_vm0, %v7381_v23  ;;  %v8427_v55 = vld [vmem:[%s13761_s26 + $0xa3] sm:$0xff] }
 0x6a2   : > { %12799 = vmatmul.msk.f32.gmra.mxu1 %vm594_vm0, %v7729_v10  ;;  %12849 = vmatmul.msk.f32.gmra.mxu2 %vm594_vm0, %v8077_v4  ;;  %v8079_v10 = vld [vmem:[%s13761_s26 + $0xa2] sm:$0xff] }
 0x6a4   : > { %12899 = vmatmul.msk.f32.gmra.mxu3 %vm594_vm0, %v8425_v39 }
 0x6a5   : > { %v6961_v6 = vpop.f32.mrf.mxu2 }
 0x6a6   : > { %v7017_v5 = vadd.f32 %v6961_v6, %v6669_v35  ;;  %v6268_v43 = vpop.f32.mrf.mxu0 }
 0x6a7   : > { %v6616_v16 = vpop.f32.mrf.mxu1  ;;  %v6322_v12 = vadd.f32 %v6268_v43, %v15979_v21  ;;  %v7309_v36 = vpop.f32.mrf.mxu3  ;;  %v7732_v43 = vld [vmem:[%s13761_s26 + $0xa9] sm:$0xff] }
 0x6a8   : > { %v16528_v34 = vadd.f32 %v7309_v36, %v7017_v5  ;;  %v7384_v5 = vld [vmem:[%s13761_s26 + $0xa8] sm:$0xff] }
 0x6a9   : > { %v6670_v14 = vadd.f32 %v6616_v16, %v6322_v12  ;;  %12750 = vmatmul.msk.f32.gmra.mxu0 %vm594_vm0, %v7382_v40  ;;  %v8428_v36 = vld [vmem:[%s13761_s26 + $0xab] sm:$0xff] }
 0x6aa   : > { %19655 = vst [vmem:[#allocation8_spill] sm:$0xff] %v16528_v34  ;;  %12800 = vmatmul.msk.f32.gmra.mxu1 %vm594_vm0, %v7730_v56  ;;  %12850 = vmatmul.msk.f32.gmra.mxu2 %vm594_vm0, %v8078_v37  ;;  %v8080_v56 = vld [vmem:[%s13761_s26 + $0xaa] sm:$0xff] }
 0x6ac   : > { %12900 = vmatmul.msk.f32.gmra.mxu3 %vm594_vm0, %v8426_v61 }
 0x6ad   : > { %v6964_v54 = vpop.f32.mrf.mxu2 }
 0x6ae   : > { %v7018_v53 = vadd.f32 %v6964_v54, %v6670_v14  ;;  %v6271_v0 = vpop.f32.mrf.mxu0 }
 0x6af   : > { %v6619_v21 = vpop.f32.mrf.mxu1  ;;  %v6323_v46 = vadd.f32 %v6271_v0, %v15990_v60  ;;  %v7312_v23 = vpop.f32.mrf.mxu3  ;;  %v7733_v0 = vld [vmem:[%s13761_s26 + $0xb1] sm:$0xff] }
 0x6b0   : > { %v16539_v45 = vadd.f32 %v7312_v23, %v7018_v53  ;;  %v7385_v53 = vld [vmem:[%s13761_s26 + $0xb0] sm:$0xff] }
 0x6b1   : > { %v6671_v4 = vadd.f32 %v6619_v21, %v6323_v46  ;;  %12751 = vmatmul.msk.f32.gmra.mxu0 %vm594_vm0, %v7383_v28  ;;  %v8429_v23 = vld [vmem:[%s13761_s26 + $0xb3] sm:$0xff] }
 0x6b2   : > { %19656 = vst [vmem:[#allocation9_spill] sm:$0xff] %v16539_v45  ;;  %12801 = vmatmul.msk.f32.gmra.mxu1 %vm594_vm0, %v7731_v48  ;;  %12851 = vmatmul.msk.f32.gmra.mxu2 %vm594_vm0, %v8079_v10  ;;  %v8081_v48 = vld [vmem:[%s13761_s26 + $0xb2] sm:$0xff] }
 0x6b4   : > { %12901 = vmatmul.msk.f32.gmra.mxu3 %vm594_vm0, %v8427_v55 }
 0x6b5   : > { %v6967_v39 = vpop.f32.mrf.mxu2 }
 0x6b6   : > { %v7019_v35 = vadd.f32 %v6967_v39, %v6671_v4  ;;  %v6274_v6 = vpop.f32.mrf.mxu0 }
 0x6b7   : > { %v6622_v60 = vpop.f32.mrf.mxu1  ;;  %v6324_v16 = vadd.f32 %v6274_v6, %v16001_v7  ;;  %v7315_v40 = vpop.f32.mrf.mxu3  ;;  %v7734_v6 = vld [vmem:[%s13761_s26 + $0xb9] sm:$0xff] }
 0x6b8   : > { %v16550_v12 = vadd.f32 %v7315_v40, %v7019_v35  ;;  %v7386_v35 = vld [vmem:[%s13761_s26 + $0xb8] sm:$0xff] }
 0x6b9   : > { %v6672_v37 = vadd.f32 %v6622_v60, %v6324_v16  ;;  %12752 = vmatmul.msk.f32.gmra.mxu0 %vm594_vm0, %v7384_v5  ;;  %v8430_v40 = vld [vmem:[%s13761_s26 + $0xbb] sm:$0xff] }
 0x6ba   : > { %19657 = vst [vmem:[#allocation10_spill] sm:$0xff] %v16550_v12  ;;  %12802 = vmatmul.msk.f32.gmra.mxu1 %vm594_vm0, %v7732_v43  ;;  %12852 = vmatmul.msk.f32.gmra.mxu2 %vm594_vm0, %v8080_v56  ;;  %v8082_v43 = vld [vmem:[%s13761_s26 + $0xba] sm:$0xff] }
 0x6bc   : > { %12902 = vmatmul.msk.f32.gmra.mxu3 %vm594_vm0, %v8428_v36 }
 0x6bd   : > { %v6970_v61 = vpop.f32.mrf.mxu2 }
 0x6be   : > { %v7020_v14 = vadd.f32 %v6970_v61, %v6672_v37  ;;  %v6277_v54 = vpop.f32.mrf.mxu0 }
 0x6bf   : > { %v6625_v7 = vpop.f32.mrf.mxu1  ;;  %v6325_v21 = vadd.f32 %v6277_v54, %v16012_v25  ;;  %v7318_v28 = vpop.f32.mrf.mxu3  ;;  %v7735_v54 = vld [vmem:[%s13761_s26 + $0xc1] sm:$0xff] }
 0x6c0   : > { %v16561_v46 = vadd.f32 %v7318_v28, %v7020_v14  ;;  %v7387_v14 = vld [vmem:[%s13761_s26 + $0xc0] sm:$0xff] }
 0x6c1   : > { %v6673_v10 = vadd.f32 %v6625_v7, %v6325_v21  ;;  %12753 = vmatmul.msk.f32.gmra.mxu0 %vm594_vm0, %v7385_v53  ;;  %v8431_v28 = vld [vmem:[%s13761_s26 + $0xc3] sm:$0xff] }
 0x6c2   : > { %19658 = vst [vmem:[#allocation11_spill] sm:$0xff] %v16561_v46  ;;  %12803 = vmatmul.msk.f32.gmra.mxu1 %vm594_vm0, %v7733_v0  ;;  %12853 = vmatmul.msk.f32.gmra.mxu2 %vm594_vm0, %v8081_v48  ;;  %v8083_v0 = vld [vmem:[%s13761_s26 + $0xc2] sm:$0xff] }
 0x6c4   : > { %12903 = vmatmul.msk.f32.gmra.mxu3 %vm594_vm0, %v8429_v23 }
 0x6c5   : > { %v6973_v55 = vpop.f32.mrf.mxu2 }
 0x6c6   : > { %v7021_v4 = vadd.f32 %v6973_v55, %v6673_v10  ;;  %v6280_v39 = vpop.f32.mrf.mxu0 }
 0x6c7   : > { %v6628_v25 = vpop.f32.mrf.mxu1  ;;  %v6326_v60 = vadd.f32 %v6280_v39, %v16023_v59  ;;  %v7321_v5 = vpop.f32.mrf.mxu3  ;;  %v7736_v39 = vld [vmem:[%s13761_s26 + $0xc9] sm:$0xff] }
 0x6c8   : > { %v16572_v16 = vadd.f32 %v7321_v5, %v7021_v4  ;;  %v7388_v4 = vld [vmem:[%s13761_s26 + $0xc8] sm:$0xff] }
 0x6c9   : > { %v6674_v56 = vadd.f32 %v6628_v25, %v6326_v60  ;;  %12754 = vmatmul.msk.f32.gmra.mxu0 %vm594_vm0, %v7386_v35  ;;  %v8432_v5 = vld [vmem:[%s13761_s26 + $0xcb] sm:$0xff] }
 0x6ca   : > { %19659 = vst [vmem:[#allocation12_spill] sm:$0xff] %v16572_v16  ;;  %12804 = vmatmul.msk.f32.gmra.mxu1 %vm594_vm0, %v7734_v6  ;;  %12854 = vmatmul.msk.f32.gmra.mxu2 %vm594_vm0, %v8082_v43  ;;  %v8084_v6 = vld [vmem:[%s13761_s26 + $0xca] sm:$0xff] }
 0x6cc   : > { %12904 = vmatmul.msk.f32.gmra.mxu3 %vm594_vm0, %v8430_v40 }
 0x6cd   : > { %v6976_v36 = vpop.f32.mrf.mxu2 }
 0x6ce   : > { %v7022_v37 = vadd.f32 %v6976_v36, %v6674_v56  ;;  %v6283_v61 = vpop.f32.mrf.mxu0 }
 0x6cf   : > { %v6631_v59 = vpop.f32.mrf.mxu1  ;;  %v6327_v7 = vadd.f32 %v6283_v61, %v16034_v30  ;;  %v7324_v53 = vpop.f32.mrf.mxu3  ;;  %v7737_v61 = vld [vmem:[%s13761_s26 + $0xd1] sm:$0xff] }
 0x6d0   : > { %v16583_v21 = vadd.f32 %v7324_v53, %v7022_v37  ;;  %v7389_v37 = vld [vmem:[%s13761_s26 + $0xd0] sm:$0xff] }
 0x6d1   : > { %v6675_v48 = vadd.f32 %v6631_v59, %v6327_v7  ;;  %12755 = vmatmul.msk.f32.gmra.mxu0 %vm594_vm0, %v7387_v14  ;;  %v8433_v53 = vld [vmem:[%s13761_s26 + $0xd3] sm:$0xff] }
 0x6d2   : > { %19660 = vst [vmem:[#allocation13_spill] sm:$0xff] %v16583_v21  ;;  %12805 = vmatmul.msk.f32.gmra.mxu1 %vm594_vm0, %v7735_v54  ;;  %12855 = vmatmul.msk.f32.gmra.mxu2 %vm594_vm0, %v8083_v0  ;;  %v8085_v54 = vld [vmem:[%s13761_s26 + $0xd2] sm:$0xff] }
 0x6d4   : > { %12905 = vmatmul.msk.f32.gmra.mxu3 %vm594_vm0, %v8431_v28 }
 0x6d5   : > { %v6979_v23 = vpop.f32.mrf.mxu2 }
 0x6d6   : > { %v7023_v10 = vadd.f32 %v6979_v23, %v6675_v48  ;;  %v6286_v55 = vpop.f32.mrf.mxu0 }
 0x6d7   : > { %v6634_v30 = vpop.f32.mrf.mxu1  ;;  %v6328_v25 = vadd.f32 %v6286_v55, %v16045_v49  ;;  %v7327_v35 = vpop.f32.mrf.mxu3  ;;  %v7738_v55 = vld [vmem:[%s13761_s26 + $0xd9] sm:$0xff] }
 0x6d8   : > { %v16594_v60 = vadd.f32 %v7327_v35, %v7023_v10  ;;  %v8434_v35 = vld [vmem:[%s13761_s26 + $0xdb] sm:$0xff] }
 0x6d9   : > { %v6676_v43 = vadd.f32 %v6634_v30, %v6328_v25  ;;  %12756 = vmatmul.msk.f32.gmra.mxu0 %vm594_vm0, %v7388_v4 }
 0x6da   : > { %19661 = vst [vmem:[#allocation14_spill] sm:$0xff] %v16594_v60  ;;  %12806 = vmatmul.msk.f32.gmra.mxu1 %vm594_vm0, %v7736_v39  ;;  %12856 = vmatmul.msk.f32.gmra.mxu2 %vm594_vm0, %v8084_v6  ;;  %v8086_v39 = vld [vmem:[%s13761_s26 + $0xda] sm:$0xff] }
 0x6dc   : > { %12906 = vmatmul.msk.f32.gmra.mxu3 %vm594_vm0, %v8432_v5 }
 0x6dd   : > { %v6982_v40 = vpop.f32.mrf.mxu2 }
 0x6de   : > { %v7024_v56 = vadd.f32 %v6982_v40, %v6676_v43  ;;  %v7561_v36 = vpop.f32.mrf.mxu0 }
 0x6df   : > { %v7909_v49 = vpop.f32.mrf.mxu1  ;;  %v7330_v59 = vpop.f32.mrf.mxu3  ;;  %v7681_v14 = vadd.f32 %v7561_v36, %v16056_v47  ;;  %v7390_v47 = vld [vmem:[%s13761_s26 + $0xd8] sm:$0xff]  ;;  %v7739_v36 = vld [vmem:[%s13761_s26 + $0xe1] sm:$0xff] }
 0x6e0   : > { %v16605_v7 = vadd.f32 %v7330_v59, %v7024_v56  ;;  %v7391_v56 = vld [vmem:[%s13761_s26 + $0xe0] sm:$0xff] }
 0x6e1   : > { %v8029_v0 = vadd.f32 %v7909_v49, %v7681_v14  ;;  %12757 = vmatmul.msk.f32.gmra.mxu0 %vm594_vm0, %v7389_v37  ;;  %v8435_v14 = vld [vmem:[%s13761_s26 + $0xe3] sm:$0xff] }
 0x6e2   : > { %19662 = vst [vmem:[#allocation15_spill] sm:$0xff] %v16605_v7  ;;  %12807 = vmatmul.msk.f32.gmra.mxu1 %vm594_vm0, %v7737_v61  ;;  %12857 = vmatmul.msk.f32.gmra.mxu2 %vm594_vm0, %v8085_v54  ;;  %v8087_v61 = vld [vmem:[%s13761_s26 + $0xe2] sm:$0xff] }
 0x6e4   : > { %12907 = vmatmul.msk.f32.gmra.mxu3 %vm594_vm0, %v8433_v53 }
 0x6e5   : > { %v8257_v28 = vpop.f32.mrf.mxu2 }
 0x6e6   : > { %v8377_v48 = vadd.f32 %v8257_v28, %v8029_v0  ;;  %v7564_v23 = vpop.f32.mrf.mxu0 }
 0x6e7   : > { %v7912_v10 = vpop.f32.mrf.mxu1  ;;  %v7682_v30 = vadd.f32 %v7564_v23, %v16067_v19  ;;  %v8605_v4 = vpop.f32.mrf.mxu3  ;;  %v7740_v23 = vld [vmem:[%s13761_s26 + $0xe9] sm:$0xff] }
 0x6e8   : > { %v16616_v25 = vadd.f32 %v8605_v4, %v8377_v48  ;;  %v7392_v48 = vld [vmem:[%s13761_s26 + $0xe8] sm:$0xff] }
 0x6e9   : > { %v8030_v6 = vadd.f32 %v7912_v10, %v7682_v30  ;;  %12758 = vmatmul.msk.f32.gmra.mxu0 %vm594_vm0, %v7390_v47  ;;  %v8436_v4 = vld [vmem:[%s13761_s26 + $0xeb] sm:$0xff] }
 0x6ea   : > { %12808 = vmatmul.msk.f32.gmra.mxu1 %vm594_vm0, %v7738_v55  ;;  %12858 = vmatmul.msk.f32.gmra.mxu2 %vm594_vm0, %v8086_v39  ;;  %v8088_v55 = vld [vmem:[%s13761_s26 + $0xea] sm:$0xff] }
 0x6ec   : > { %12908 = vmatmul.msk.f32.gmra.mxu3 %vm594_vm0, %v8434_v35 }
 0x6ed   : > { %v8260_v5 = vpop.f32.mrf.mxu2 }
 0x6ee   : > { %v8378_v43 = vadd.f32 %v8260_v5, %v8030_v6  ;;  %v7567_v40 = vpop.f32.mrf.mxu0 }
 0x6ef   : > { %v7915_v19 = vpop.f32.mrf.mxu1  ;;  %v7683_v49 = vadd.f32 %v7567_v40, %v16078_v52  ;;  %v8608_v37 = vpop.f32.mrf.mxu3  ;;  %v7741_v40 = vld [vmem:[%s13761_s26 + $0xf1] sm:$0xff] }
 0x6f0   : > { %v16627_v59 = vadd.f32 %v8608_v37, %v8378_v43  ;;  %v7393_v43 = vld [vmem:[%s13761_s26 + $0xf0] sm:$0xff] }
 0x6f1   : > { %v8031_v54 = vadd.f32 %v7915_v19, %v7683_v49  ;;  %12759 = vmatmul.msk.f32.gmra.mxu0 %vm594_vm0, %v7391_v56  ;;  %v8437_v37 = vld [vmem:[%s13761_s26 + $0xf3] sm:$0xff] }
 0x6f2   : > { %12809 = vmatmul.msk.f32.gmra.mxu1 %vm594_vm0, %v7739_v36  ;;  %12859 = vmatmul.msk.f32.gmra.mxu2 %vm594_vm0, %v8087_v61  ;;  %v8089_v36 = vld [vmem:[%s13761_s26 + $0xf2] sm:$0xff] }
 0x6f4   : > { %12909 = vmatmul.msk.f32.gmra.mxu3 %vm594_vm0, %v8435_v14 }
 0x6f5   : > { %v8263_v53 = vpop.f32.mrf.mxu2 }
 0x6f6   : > { %v8379_v0 = vadd.f32 %v8263_v53, %v8031_v54  ;;  %v7570_v28 = vpop.f32.mrf.mxu0 }
 0x6f7   : > { %v7918_v52 = vpop.f32.mrf.mxu1  ;;  %v7684_v10 = vadd.f32 %v7570_v28, %v16089_v44  ;;  %v8611_v47 = vpop.f32.mrf.mxu3  ;;  %v7742_v28 = vld [vmem:[%s13761_s26 + $0xf9] sm:$0xff] }
 0x6f8   : > { %v16638_v30 = vadd.f32 %v8611_v47, %v8379_v0  ;;  %v7394_v0 = vld [vmem:[%s13761_s26 + $0xf8] sm:$0xff] }
 0x6f9   : > { %v8032_v39 = vadd.f32 %v7918_v52, %v7684_v10  ;;  %12760 = vmatmul.msk.f32.gmra.mxu0 %vm594_vm0, %v7392_v48  ;;  %v8438_v47 = vld [vmem:[%s13761_s26 + $0xfb] sm:$0xff] }
 0x6fa   : > { %12810 = vmatmul.msk.f32.gmra.mxu1 %vm594_vm0, %v7740_v23  ;;  %12860 = vmatmul.msk.f32.gmra.mxu2 %vm594_vm0, %v8088_v55  ;;  %v8090_v23 = vld [vmem:[%s13761_s26 + $0xfa] sm:$0xff] }
 0x6fc   : > { %12910 = vmatmul.msk.f32.gmra.mxu3 %vm594_vm0, %v8436_v4 }
 0x6fd   : > { %v8266_v35 = vpop.f32.mrf.mxu2 }
 0x6fe   : > { %v8380_v6 = vadd.f32 %v8266_v35, %v8032_v39  ;;  %v7573_v5 = vpop.f32.mrf.mxu0 }
 0x6ff   : > { %v7921_v44 = vpop.f32.mrf.mxu1  ;;  %v7685_v19 = vadd.f32 %v7573_v5, %v16100_v1  ;;  %v8614_v56 = vpop.f32.mrf.mxu3  ;;  %v7743_v5 = vld [vmem:[%s13761_s26 + $0x101] sm:$0xff] }
 0x700   : > { %v16649_v49 = vadd.f32 %v8614_v56, %v8380_v6  ;;  %v7395_v6 = vld [vmem:[%s13761_s26 + $0x100] sm:$0xff] }
 0x701   : > { %v8033_v61 = vadd.f32 %v7921_v44, %v7685_v19  ;;  %12761 = vmatmul.msk.f32.gmra.mxu0 %vm594_vm0, %v7393_v43  ;;  %v8439_v56 = vld [vmem:[%s13761_s26 + $0x103] sm:$0xff] }
 0x702   : > { %12811 = vmatmul.msk.f32.gmra.mxu1 %vm594_vm0, %v7741_v40  ;;  %12861 = vmatmul.msk.f32.gmra.mxu2 %vm594_vm0, %v8089_v36  ;;  %v8091_v40 = vld [vmem:[%s13761_s26 + $0x102] sm:$0xff] }
 0x704   : > { %12911 = vmatmul.msk.f32.gmra.mxu3 %vm594_vm0, %v8437_v37 }
 0x705   : > { %v8269_v14 = vpop.f32.mrf.mxu2 }
 0x706   : > { %v8381_v54 = vadd.f32 %v8269_v14, %v8033_v61  ;;  %v7576_v53 = vpop.f32.mrf.mxu0 }
 0x707   : > { %v7924_v1 = vpop.f32.mrf.mxu1  ;;  %v7686_v52 = vadd.f32 %v7576_v53, %v16111_v41  ;;  %v8617_v48 = vpop.f32.mrf.mxu3  ;;  %v7744_v53 = vld [vmem:[%s13761_s26 + $0x109] sm:$0xff] }
 0x708   : > { %v16660_v10 = vadd.f32 %v8617_v48, %v8381_v54  ;;  %v7396_v54 = vld [vmem:[%s13761_s26 + $0x108] sm:$0xff] }
 0x709   : > { %v8034_v55 = vadd.f32 %v7924_v1, %v7686_v52  ;;  %12762 = vmatmul.msk.f32.gmra.mxu0 %vm594_vm0, %v7394_v0  ;;  %v8440_v48 = vld [vmem:[%s13761_s26 + $0x10b] sm:$0xff] }
 0x70a   : > { %12812 = vmatmul.msk.f32.gmra.mxu1 %vm594_vm0, %v7742_v28  ;;  %12862 = vmatmul.msk.f32.gmra.mxu2 %vm594_vm0, %v8090_v23  ;;  %v8092_v28 = vld [vmem:[%s13761_s26 + $0x10a] sm:$0xff] }
 0x70c   : > { %12912 = vmatmul.msk.f32.gmra.mxu3 %vm594_vm0, %v8438_v47 }
 0x70d   : > { %v8272_v4 = vpop.f32.mrf.mxu2 }
 0x70e   : > { %v8382_v39 = vadd.f32 %v8272_v4, %v8034_v55  ;;  %v7579_v35 = vpop.f32.mrf.mxu0 }
 0x70f   : > { %v7927_v41 = vpop.f32.mrf.mxu1  ;;  %v7687_v44 = vadd.f32 %v7579_v35, %v16122_v26  ;;  %v8620_v43 = vpop.f32.mrf.mxu3  ;;  %v7745_v35 = vld [vmem:[%s13761_s26 + $0x111] sm:$0xff] }
 0x710   : > { %v16671_v19 = vadd.f32 %v8620_v43, %v8382_v39  ;;  %v7397_v39 = vld [vmem:[%s13761_s26 + $0x110] sm:$0xff] }
 0x711   : > { %v8035_v36 = vadd.f32 %v7927_v41, %v7687_v44  ;;  %12763 = vmatmul.msk.f32.gmra.mxu0 %vm594_vm0, %v7395_v6  ;;  %v8441_v43 = vld [vmem:[%s13761_s26 + $0x113] sm:$0xff] }
 0x712   : > { %12813 = vmatmul.msk.f32.gmra.mxu1 %vm594_vm0, %v7743_v5  ;;  %12863 = vmatmul.msk.f32.gmra.mxu2 %vm594_vm0, %v8091_v40  ;;  %v8093_v5 = vld [vmem:[%s13761_s26 + $0x112] sm:$0xff] }
 0x714   : > { %12913 = vmatmul.msk.f32.gmra.mxu3 %vm594_vm0, %v8439_v56 }
 0x715   : > { %v8275_v37 = vpop.f32.mrf.mxu2 }
 0x716   : > { %v8383_v61 = vadd.f32 %v8275_v37, %v8035_v36  ;;  %v7582_v14 = vpop.f32.mrf.mxu0 }
 0x717   : > { %v7930_v26 = vpop.f32.mrf.mxu1  ;;  %v7688_v1 = vadd.f32 %v7582_v14, %v16133_v27  ;;  %v8623_v0 = vpop.f32.mrf.mxu3  ;;  %v7746_v14 = vld [vmem:[%s13761_s26 + $0x119] sm:$0xff] }
 0x718   : > { %v16682_v52 = vadd.f32 %v8623_v0, %v8383_v61  ;;  %v7398_v61 = vld [vmem:[%s13761_s26 + $0x118] sm:$0xff] }
 0x719   : > { %v8036_v23 = vadd.f32 %v7930_v26, %v7688_v1  ;;  %12764 = vmatmul.msk.f32.gmra.mxu0 %vm594_vm0, %v7396_v54  ;;  %v8442_v0 = vld [vmem:[%s13761_s26 + $0x11b] sm:$0xff] }
 0x71a   : > { %12814 = vmatmul.msk.f32.gmra.mxu1 %vm594_vm0, %v7744_v53  ;;  %12864 = vmatmul.msk.f32.gmra.mxu2 %vm594_vm0, %v8092_v28  ;;  %v8094_v53 = vld [vmem:[%s13761_s26 + $0x11a] sm:$0xff] }
 0x71c   : > { %12914 = vmatmul.msk.f32.gmra.mxu3 %vm594_vm0, %v8440_v48 }
 0x71d   : > { %v8278_v47 = vpop.f32.mrf.mxu2 }
 0x71e   : > { %v8384_v55 = vadd.f32 %v8278_v47, %v8036_v23  ;;  %v7585_v4 = vpop.f32.mrf.mxu0 }
 0x71f   : > { %v7933_v27 = vpop.f32.mrf.mxu1  ;;  %v7689_v41 = vadd.f32 %v7585_v4, %v16144_v51  ;;  %v8626_v6 = vpop.f32.mrf.mxu3  ;;  %v7747_v4 = vld [vmem:[%s13761_s26 + $0x121] sm:$0xff] }
 0x720   : > { %v16693_v44 = vadd.f32 %v8626_v6, %v8384_v55  ;;  %v7399_v55 = vld [vmem:[%s13761_s26 + $0x120] sm:$0xff] }
 0x721   : > { %v8037_v40 = vadd.f32 %v7933_v27, %v7689_v41  ;;  %12765 = vmatmul.msk.f32.gmra.mxu0 %vm594_vm0, %v7397_v39  ;;  %v8443_v6 = vld [vmem:[%s13761_s26 + $0x123] sm:$0xff] }
 0x722   : > { %12815 = vmatmul.msk.f32.gmra.mxu1 %vm594_vm0, %v7745_v35  ;;  %12865 = vmatmul.msk.f32.gmra.mxu2 %vm594_vm0, %v8093_v5  ;;  %v8095_v35 = vld [vmem:[%s13761_s26 + $0x122] sm:$0xff] }
 0x724   : > { %12915 = vmatmul.msk.f32.gmra.mxu3 %vm594_vm0, %v8441_v43 }
 0x725   : > { %v8281_v56 = vpop.f32.mrf.mxu2 }
 0x726   : > { %v8385_v36 = vadd.f32 %v8281_v56, %v8037_v40  ;;  %v7588_v37 = vpop.f32.mrf.mxu0 }
 0x727   : > { %v7936_v51 = vpop.f32.mrf.mxu1  ;;  %v7690_v26 = vadd.f32 %v7588_v37, %v16155_v17  ;;  %v8629_v54 = vpop.f32.mrf.mxu3  ;;  %v7748_v37 = vld [vmem:[%s13761_s26 + $0x129] sm:$0xff] }
 0x728   : > { %v16704_v1 = vadd.f32 %v8629_v54, %v8385_v36  ;;  %v7400_v36 = vld [vmem:[%s13761_s26 + $0x128] sm:$0xff] }
 0x729   : > { %v8038_v28 = vadd.f32 %v7936_v51, %v7690_v26  ;;  %12766 = vmatmul.msk.f32.gmra.mxu0 %vm594_vm0, %v7398_v61  ;;  %v8444_v54 = vld [vmem:[%s13761_s26 + $0x12b] sm:$0xff] }
 0x72a   : > { %12816 = vmatmul.msk.f32.gmra.mxu1 %vm594_vm0, %v7746_v14  ;;  %12866 = vmatmul.msk.f32.gmra.mxu2 %vm594_vm0, %v8094_v53  ;;  %v8096_v14 = vld [vmem:[%s13761_s26 + $0x12a] sm:$0xff] }
 0x72c   : > { %12916 = vmatmul.msk.f32.gmra.mxu3 %vm594_vm0, %v8442_v0 }
 0x72d   : > { %v8284_v48 = vpop.f32.mrf.mxu2 }
 0x72e   : > { %v8386_v23 = vadd.f32 %v8284_v48, %v8038_v28  ;;  %v7591_v47 = vpop.f32.mrf.mxu0 }
 0x72f   : > { %v7939_v17 = vpop.f32.mrf.mxu1  ;;  %v7691_v27 = vadd.f32 %v7591_v47, %v16166_v33  ;;  %v8632_v39 = vpop.f32.mrf.mxu3  ;;  %v7749_v47 = vld [vmem:[%s13761_s26 + $0x131] sm:$0xff] }
 0x730   : > { %v16715_v41 = vadd.f32 %v8632_v39, %v8386_v23  ;;  %v7401_v23 = vld [vmem:[%s13761_s26 + $0x130] sm:$0xff] }
 0x731   : > { %v8039_v5 = vadd.f32 %v7939_v17, %v7691_v27  ;;  %12767 = vmatmul.msk.f32.gmra.mxu0 %vm594_vm0, %v7399_v55  ;;  %v8445_v39 = vld [vmem:[%s13761_s26 + $0x133] sm:$0xff] }
 0x732   : > { %12817 = vmatmul.msk.f32.gmra.mxu1 %vm594_vm0, %v7747_v4  ;;  %12867 = vmatmul.msk.f32.gmra.mxu2 %vm594_vm0, %v8095_v35  ;;  %v8097_v4 = vld [vmem:[%s13761_s26 + $0x132] sm:$0xff] }
 0x734   : > { %12917 = vmatmul.msk.f32.gmra.mxu3 %vm594_vm0, %v8443_v6 }
 0x735   : > { %v8287_v43 = vpop.f32.mrf.mxu2 }
 0x736   : > { %v8387_v40 = vadd.f32 %v8287_v43, %v8039_v5  ;;  %v7594_v56 = vpop.f32.mrf.mxu0 }
 0x737   : > { %v7942_v33 = vpop.f32.mrf.mxu1  ;;  %v7692_v51 = vadd.f32 %v7594_v56, %v16177_v50  ;;  %v8635_v61 = vpop.f32.mrf.mxu3  ;;  %v7750_v56 = vld [vmem:[%s13761_s26 + $0x139] sm:$0xff] }
 0x738   : > { %v16726_v26 = vadd.f32 %v8635_v61, %v8387_v40  ;;  %v7402_v40 = vld [vmem:[%s13761_s26 + $0x138] sm:$0xff] }
 0x739   : > { %v8040_v53 = vadd.f32 %v7942_v33, %v7692_v51  ;;  %12768 = vmatmul.msk.f32.gmra.mxu0 %vm594_vm0, %v7400_v36  ;;  %v8446_v61 = vld [vmem:[%s13761_s26 + $0x13b] sm:$0xff] }
 0x73a   : > { %12818 = vmatmul.msk.f32.gmra.mxu1 %vm594_vm0, %v7748_v37  ;;  %12868 = vmatmul.msk.f32.gmra.mxu2 %vm594_vm0, %v8096_v14  ;;  %v8098_v37 = vld [vmem:[%s13761_s26 + $0x13a] sm:$0xff] }
 0x73c   : > { %12918 = vmatmul.msk.f32.gmra.mxu3 %vm594_vm0, %v8444_v54 }
 0x73d   : > { %v8290_v0 = vpop.f32.mrf.mxu2 }
 0x73e   : > { %v8388_v28 = vadd.f32 %v8290_v0, %v8040_v53  ;;  %v7597_v48 = vpop.f32.mrf.mxu0 }
 0x73f   : > { %v7945_v50 = vpop.f32.mrf.mxu1  ;;  %v7693_v17 = vadd.f32 %v7597_v48, %v16188_v2  ;;  %v8638_v55 = vpop.f32.mrf.mxu3  ;;  %v7751_v48 = vld [vmem:[%s13761_s26 + $0x141] sm:$0xff] }
 0x740   : > { %v16737_v27 = vadd.f32 %v8638_v55, %v8388_v28  ;;  %v7403_v28 = vld [vmem:[%s13761_s26 + $0x140] sm:$0xff] }
 0x741   : > { %v8041_v35 = vadd.f32 %v7945_v50, %v7693_v17  ;;  %12769 = vmatmul.msk.f32.gmra.mxu0 %vm594_vm0, %v7401_v23  ;;  %v8447_v55 = vld [vmem:[%s13761_s26 + $0x143] sm:$0xff] }
 0x742   : > { %12819 = vmatmul.msk.f32.gmra.mxu1 %vm594_vm0, %v7749_v47  ;;  %12869 = vmatmul.msk.f32.gmra.mxu2 %vm594_vm0, %v8097_v4  ;;  %v8099_v47 = vld [vmem:[%s13761_s26 + $0x142] sm:$0xff] }
 0x744   : > { %12919 = vmatmul.msk.f32.gmra.mxu3 %vm594_vm0, %v8445_v39 }
 0x745   : > { %v8293_v6 = vpop.f32.mrf.mxu2 }
 0x746   : > { %v8389_v5 = vadd.f32 %v8293_v6, %v8041_v35  ;;  %v7600_v43 = vpop.f32.mrf.mxu0 }
 0x747   : > { %v7948_v2 = vpop.f32.mrf.mxu1  ;;  %v7694_v33 = vadd.f32 %v7600_v43, %v16199_v22  ;;  %v8641_v36 = vpop.f32.mrf.mxu3  ;;  %v7752_v43 = vld [vmem:[%s13761_s26 + $0x149] sm:$0xff] }
 0x748   : > { %v16748_v51 = vadd.f32 %v8641_v36, %v8389_v5  ;;  %v7404_v5 = vld [vmem:[%s13761_s26 + $0x148] sm:$0xff] }
 0x749   : > { %v8042_v14 = vadd.f32 %v7948_v2, %v7694_v33  ;;  %12770 = vmatmul.msk.f32.gmra.mxu0 %vm594_vm0, %v7402_v40  ;;  %v8448_v36 = vld [vmem:[%s13761_s26 + $0x14b] sm:$0xff] }
 0x74a   : > { %12820 = vmatmul.msk.f32.gmra.mxu1 %vm594_vm0, %v7750_v56  ;;  %12870 = vmatmul.msk.f32.gmra.mxu2 %vm594_vm0, %v8098_v37  ;;  %v8100_v56 = vld [vmem:[%s13761_s26 + $0x14a] sm:$0xff] }
 0x74c   : > { %12920 = vmatmul.msk.f32.gmra.mxu3 %vm594_vm0, %v8446_v61 }
 0x74d   : > { %v8296_v54 = vpop.f32.mrf.mxu2 }
 0x74e   : > { %v8390_v53 = vadd.f32 %v8296_v54, %v8042_v14  ;;  %v7603_v0 = vpop.f32.mrf.mxu0 }
 0x74f   : > { %v7951_v22 = vpop.f32.mrf.mxu1  ;;  %v7695_v50 = vadd.f32 %v7603_v0, %v16210_v38  ;;  %v8644_v23 = vpop.f32.mrf.mxu3  ;;  %v7753_v0 = vld [vmem:[%s13761_s26 + $0x151] sm:$0xff] }
 0x750   : > { %v16759_v17 = vadd.f32 %v8644_v23, %v8390_v53  ;;  %v7405_v53 = vld [vmem:[%s13761_s26 + $0x150] sm:$0xff] }
 0x751   : > { %v8043_v4 = vadd.f32 %v7951_v22, %v7695_v50  ;;  %12771 = vmatmul.msk.f32.gmra.mxu0 %vm594_vm0, %v7403_v28  ;;  %v8101_v28 = vld [vmem:[%s13761_s26 + $0x152] sm:$0xff] }
 0x752   : > { %12821 = vmatmul.msk.f32.gmra.mxu1 %vm594_vm0, %v7751_v48  ;;  %12871 = vmatmul.msk.f32.gmra.mxu2 %vm594_vm0, %v8099_v47  ;;  %v8449_v50 = vld [vmem:[%s13761_s26 + $0x153] sm:$0xff] }
 0x754   : > { %12921 = vmatmul.msk.f32.gmra.mxu3 %vm594_vm0, %v8447_v55  ;;  %v7406_v55 = vld [vmem:[%s13761_s26 + $0x158] sm:$0xff] }
 0x755   : > { %v8299_v39 = vpop.f32.mrf.mxu2 }
 0x756   : > { %v8391_v35 = vadd.f32 %v8299_v39, %v8043_v4  ;;  %v7606_v6 = vpop.f32.mrf.mxu0  ;;  %v7754_v4 = vld [vmem:[%s13761_s26 + $0x159] sm:$0xff] }
 0x757   : > { %v7954_v38 = vpop.f32.mrf.mxu1  ;;  %v7696_v2 = vadd.f32 %v7606_v6, %v16221_v57  ;;  %v8647_v40 = vpop.f32.mrf.mxu3  ;;  %v8102_v39 = vld [vmem:[%s13761_s26 + $0x15a] sm:$0xff] }
 0x758   : > { %v16770_v33 = vadd.f32 %v8647_v40, %v8391_v35  ;;  %v8450_v35 = vld [vmem:[%s13761_s26 + $0x15b] sm:$0xff] }
 0x759   : > { %v8044_v37 = vadd.f32 %v7954_v38, %v7696_v2  ;;  %12772 = vmatmul.msk.f32.gmra.mxu0 %vm594_vm0, %v7404_v5  ;;  %v7407_v5 = vld [vmem:[%s13761_s26 + $0x160] sm:$0xff]  ;;  %v12940_v2 = vld [vmem:[%s19629_s1 + $0x7c8] sm:$0xff] }
 0x75a   : > { %12822 = vmatmul.msk.f32.gmra.mxu1 %vm594_vm0, %v7752_v43  ;;  %12872 = vmatmul.msk.f32.gmra.mxu2 %vm594_vm0, %v8100_v56  ;;  %v7755_v43 = vld [vmem:[%s13761_s26 + $0x161] sm:$0xff] }
 0x75b   : > { %v8103_v40 = vld [vmem:[%s13761_s26 + $0x162] sm:$0xff]  ;;  %8942 = vmatpush.msra.mxu0 %v12940_v2  ;;  %v7409_v2 = vld [vmem:[%s13761_s26 + $0x170] sm:$0xff] }
 0x75c   : > { %12922 = vmatmul.msk.f32.gmra.mxu3 %vm594_vm0, %v8448_v36  ;;  %v8451_v56 = vld [vmem:[%s13761_s26 + $0x163] sm:$0xff] }
 0x75d   : > { %v8302_v61 = vpop.f32.mrf.mxu2  ;;  %v12939_v36 = vld [vmem:[%s19629_s1 + $0x7c0] sm:$0xff] }
 0x75e   : > { %v8392_v14 = vadd.f32 %v8302_v61, %v8044_v37  ;;  %v16777_v57 = vpop.f32.mrf.mxu0  ;;  %8943 = vmatpush.msra.mxu0 %v12939_v36  ;;  %v12938_v37 = vld [vmem:[%s19629_s1 + $0x7b8] sm:$0xff]  ;;  %v12937_v61 = vld [vmem:[%s19629_s1 + $0x7b0] sm:$0xff] }
 0x75f   : > { %19663 = vst [vmem:[#allocation16_spill] sm:$0xff] %v16777_v57  ;;  %v16779_v54 = vpop.f32.mrf.mxu1  ;;  %v8650_v22 = vpop.f32.mrf.mxu3  ;;  %v8105_v36 = vld [vmem:[%s13761_s26 + $0x172] sm:$0xff] }
 0x760   : > { %19664 = vst [vmem:[#allocation17_spill] sm:$0xff] %v16779_v54  ;;  %v16784_v48 = vadd.f32 %v8650_v22, %v8392_v14  ;;  %8944 = vmatpush.msra.mxu0 %v12938_v37  ;;  %v7756_v22 = vld [vmem:[%s13761_s26 + $0x169] sm:$0xff]  ;;  %v8453_v37 = vld [vmem:[%s13761_s26 + $0x173] sm:$0xff] }
 0x761   : > { %12773 = vmatmul.msk.f32.gmra.mxu0 %vm594_vm0, %v7405_v53 }
 0x762   : > { %12823 = vmatmul.msk.f32.gmra.mxu1 %vm594_vm0, %v7753_v0  ;;  %12873 = vmatmul.msk.f32.gmra.mxu2 %vm594_vm0, %v8101_v28  ;;  %v7408_v0 = vld [vmem:[%s13761_s26 + $0x168] sm:$0xff] }
 0x763   : > { %8945 = vmatpush.msra.mxu0 %v12937_v61  ;;  %v12936_v28 = vld [vmem:[%s19629_s1 + $0x7a8] sm:$0xff]  ;;  %v12931_v61 = vld [vmem:[%s19629_s1 + $0x780] sm:$0xff] }
 0x764   : > { %12923 = vmatmul.msk.f32.gmra.mxu3 %vm594_vm0, %v8449_v50  ;;  %v8104_v50 = vld [vmem:[%s13761_s26 + $0x16a] sm:$0xff] }
 0x765   : > { %8946 = vmatpush.msra.mxu0 %v12936_v28  ;;  %v7410_v28 = vld [vmem:[%s13761_s26 + $0x178] sm:$0xff] }
 0x766   : > { %v16791_v23 = vpop.f32.mrf.mxu0 }
 0x767   : > { %19665 = vst [vmem:[#allocation18_spill] sm:$0xff] %v16791_v23  ;;  %v16793_v47 = vpop.f32.mrf.mxu1  ;;  %v17008_v23 = vpop.f32.mrf.mxu2 }
 0x768   : > { %19666 = vst [vmem:[#allocation19_spill] sm:$0xff] %v16793_v47 }
 0x769   : > { %12774 = vmatmul.msk.f32.gmra.mxu0 %vm594_vm0, %v7406_v55  ;;  %v8452_v55 = vld [vmem:[%s13761_s26 + $0x16b] sm:$0xff]  ;;  %19683 = vst [vmem:[#allocation36_spill] sm:$0xff] %v17008_v23 }
 0x76a   : > { %12824 = vmatmul.msk.f32.gmra.mxu1 %vm594_vm0, %v7754_v4  ;;  %12874 = vmatmul.msk.f32.gmra.mxu2 %vm594_vm0, %v8102_v39  ;;  %v12935_v4 = vld [vmem:[%s19629_s1 + $0x7a0] sm:$0xff]  ;;  %v12934_v39 = vld [vmem:[%s19629_s1 + $0x798] sm:$0xff] }
 0x76b   : > { %8947 = vmatpush.msra.mxu0 %v12935_v4  ;;  %v8454_v4 = vld [vmem:[%s13761_s26 + $0x17b] sm:$0xff] }
 0x76c   : > { %12924 = vmatmul.msk.f32.gmra.mxu3 %vm594_vm0, %v8450_v35  ;;  %v12933_v35 = vld [vmem:[%s19629_s1 + $0x790] sm:$0xff] }
 0x76d   : > { %8948 = vmatpush.msra.mxu0 %v12934_v39 }
 0x76e   : > { %v16803_v6 = vpop.f32.mrf.mxu0 }
 0x76f   : > { %19667 = vst [vmem:[#allocation20_spill] sm:$0xff] %v16803_v6  ;;  %v16805_v38 = vpop.f32.mrf.mxu1  ;;  %8949 = vmatpush.msra.mxu0 %v12933_v35 }
 0x770   : > { %19668 = vst [vmem:[#allocation21_spill] sm:$0xff] %v16805_v38 }
 0x771   : > { %12775 = vmatmul.msk.f32.gmra.mxu0 %vm594_vm0, %v7407_v5 }
 0x772   : > { %12825 = vmatmul.msk.f32.gmra.mxu1 %vm594_vm0, %v7755_v43  ;;  %12875 = vmatmul.msk.f32.gmra.mxu2 %vm594_vm0, %v8103_v40  ;;  %v7757_v40 = vld [vmem:[%s13761_s26 + $0x171] sm:$0xff] }
 0x774   : > { %12925 = vmatmul.msk.f32.gmra.mxu3 %vm594_vm0, %v8451_v56  ;;  %v12932_v56 = vld [vmem:[%s19629_s1 + $0x788] sm:$0xff] }
 0x775   : > { %8950 = vmatpush.msra.mxu0 %v12932_v56  ;;  %v8107_v56 = vld [vmem:[%s13761_s26 + $0x182] sm:$0xff] }
 0x776   : > { %v16827_v14 = vpop.f32.mrf.mxu0 }
 0x777   : > { %19669 = vst [vmem:[#allocation22_spill] sm:$0xff] %v16827_v14  ;;  %v16829_v53 = vpop.f32.mrf.mxu1  ;;  %8951 = vmatpush.msra.mxu0 %v12931_v61  ;;  %v8795_v14 = vld [vmem:[%s13761_s26 + $0x144] sm:$0xff] }
 0x778   : > { %19670 = vst [vmem:[#allocation23_spill] sm:$0xff] %v16829_v53  ;;  %v8790_v53 = vld [vmem:[%s13761_s26 + $0x11c] sm:$0xff] }
 0x779   : > { %12776 = vmatmul.msk.f32.gmra.mxu0 %vm594_vm0, %v7408_v0 }
 0x77a   : > { %12826 = vmatmul.msk.f32.gmra.mxu1 %vm594_vm0, %v7756_v22  ;;  %12876 = vmatmul.msk.f32.gmra.mxu2 %vm594_vm0, %v8104_v50  ;;  %v7758_v50 = vld [vmem:[%s13761_s26 + $0x179] sm:$0xff] }
 0x77c   : > { %12926 = vmatmul.msk.f32.gmra.mxu3 %vm594_vm0, %v8452_v55  ;;  %v8106_v55 = vld [vmem:[%s13761_s26 + $0x17a] sm:$0xff] }
 0x77e   : > { %v16851_v5 = vpop.f32.mrf.mxu0 }
 0x77f   : > { %19671 = vst [vmem:[#allocation24_spill] sm:$0xff] %v16851_v5  ;;  %v16853_v43 = vpop.f32.mrf.mxu1 }
 0x780   : > { %19672 = vst [vmem:[#allocation25_spill] sm:$0xff] %v16853_v43  ;;  %v17015_v43 = vpop.f32.mrf.mxu2 }
 0x781   : > { %12777 = vmatmul.msk.f32.gmra.mxu0 %vm594_vm0, %v7409_v2  ;;  %v7411_v2 = vld [vmem:[%s13761_s26 + $0x180] sm:$0xff]  ;;  %19685 = vst [vmem:[#allocation38_spill] sm:$0xff] %v17015_v43 }
 0x782   : > { %12827 = vmatmul.msk.f32.gmra.mxu1 %vm594_vm0, %v7757_v40  ;;  %12877 = vmatmul.msk.f32.gmra.mxu2 %vm594_vm0, %v8105_v36  ;;  %v7759_v40 = vld [vmem:[%s13761_s26 + $0x181] sm:$0xff] }
 0x783   : > { %v8455_v36 = vld [vmem:[%s13761_s26 + $0x183] sm:$0xff] }
 0x784   : > { %12927 = vmatmul.msk.f32.gmra.mxu3 %vm594_vm0, %v8453_v37  ;;  %v8794_v43 = vld [vmem:[%s13761_s26 + $0x13c] sm:$0xff] }
 0x786   : > { %v16869_v0 = vpop.f32.mrf.mxu0 }
 0x787   : > { %v16871_v22 = vpop.f32.mrf.mxu1 }
 0x788   : > { %19673 = vst [vmem:[#allocation26_spill] sm:$0xff] %v16871_v22  ;;  %v17021_v6 = vpop.f32.mrf.mxu2 }
 0x789   : > { %12778 = vmatmul.msk.f32.gmra.mxu0 %vm594_vm0, %v7410_v28  ;;  %v7412_v28 = vld [vmem:[%s13761_s26 + $0x188] sm:$0xf]  ;;  %19687 = vst [vmem:[#allocation40_spill] sm:$0xff] %v17021_v6 }
 0x78a   : > { %12828 = vmatmul.msk.f32.gmra.mxu1 %vm594_vm0, %v7758_v50  ;;  %12878 = vmatmul.msk.f32.gmra.mxu2 %vm594_vm0, %v8106_v55  ;;  %v7760_v50 = vld [vmem:[%s13761_s26 + $0x189] sm:$0xf] }
 0x78b   : > { %v8108_v55 = vld [vmem:[%s13761_s26 + $0x18a] sm:$0xf] }
 0x78c   : > { %12928 = vmatmul.msk.f32.gmra.mxu3 %vm594_vm0, %v8454_v4  ;;  %v8456_v4 = vld [vmem:[%s13761_s26 + $0x18b] sm:$0xf] }
 0x78e   : > { %v16881_v39 = vpop.f32.mrf.mxu0 }
 0x78f   : > { %v16883_v35 = vpop.f32.mrf.mxu1 }
 0x790   : > { %19674 = vst [vmem:[#allocation27_spill] sm:$0xff] %v16883_v35  ;;  %v17027_v58 = vpop.f32.mrf.mxu2 }
 0x791   : > { %12779 = vmatmul.msk.f32.gmra.mxu0 %vm594_vm0, %v7411_v2  ;;  %19689 = vst [vmem:[#allocation42_spill] sm:$0xff] %v17027_v58  ;;  %v17044_v58 = vld [vmem:[%s19630_s2] ss:$0 sm:$0xff] }
 0x792   : > { %12829 = vmatmul.msk.f32.gmra.mxu1 %vm594_vm0, %v7759_v40  ;;  %12879 = vmatmul.msk.f32.gmra.mxu2 %vm594_vm0, %v8107_v56  ;;  %v8765_v56 = vld [vmem:[%s13761_s26 + $0x54] sm:$0xff] }
 0x794   : > { %12929 = vmatmul.msk.f32.gmra.mxu3 %vm594_vm0, %v8455_v36 }
 0x796   : > { %v16893_v37 = vpop.f32.mrf.mxu0 }
 0x797   : > { %v16895_v61 = vpop.f32.mrf.mxu1 }
 0x799   : > { %12780 = vmatmul.msk.f32.gmra.mxu0 %vm594_vm0, %v7412_v28  ;;  %v8766_v28 = vld [vmem:[%s13761_s26 + $0x5c] sm:$0xff] }
 0x79a   : > { %12830 = vmatmul.msk.f32.gmra.mxu1 %vm594_vm0, %v7760_v50  ;;  %12880 = vmatmul.msk.f32.gmra.mxu2 %vm594_vm0, %v8108_v55  ;;  %v8767_v55 = vld [vmem:[%s13761_s26 + $0x64] sm:$0xff] }
 0x79c   : > { %12930 = vmatmul.msk.f32.gmra.mxu3 %vm594_vm0, %v8456_v4 }
 0x79e   : > { %v7633_v2 = vpop.f32.mrf.mxu0 }
 0x79f   : > { %v7981_v40 = vpop.f32.mrf.mxu1  ;;  %v7705_v36 = vadd.f32 %v7633_v2, %v16440_v63  ;;  %v8768_v63 = vld [vmem:[%s13761_s26 + $0x6c] sm:$0xff] }
 0x7a1   : > { %v16907_v34 = vadd.f32 %v7981_v40, %v7705_v36  ;;  %12941 = vmatmul.msk.f32.vlgmr.msra.gmra.mxu0 %vm594_vm0, %v8765_v56  ;;  %v8769_v40 = vld [vmem:[%s13761_s26 + $0x74] sm:$0xff]  ;;  %v8770_v36 = vld [vmem:[%s13761_s26 + $0x7c] sm:$0xff] }
 0x7a6   : > { %v16910_v45 = vpop.f32.mrf.mxu0 }
 0x7a9   : > { %12942 = vmatmul.msk.f32.gmra.mxu0 %vm594_vm0, %v8766_v28 }
 0x7ae   : > { %v16914_v50 = vpop.f32.mrf.mxu0 }
 0x7b1   : > { %12943 = vmatmul.msk.f32.gmra.mxu0 %vm594_vm0, %v8767_v55  ;;  %v8771_v55 = vld [vmem:[%s13761_s26 + $0x84] sm:$0xff] }
 0x7b6   : > { %v16918_v4 = vpop.f32.mrf.mxu0 }
 0x7b9   : > { %12944 = vmatmul.msk.f32.gmra.mxu0 %vm594_vm0, %v8768_v63  ;;  %v8772_v63 = vld [vmem:[%s13761_s26 + $0x8c] sm:$0xff] }
 0x7be   : > { %v16922_v2 = vpop.f32.mrf.mxu0 }
 0x7c1   : > { %12945 = vmatmul.msk.f32.gmra.mxu0 %vm594_vm0, %v8769_v40  ;;  %v8773_v40 = vld [vmem:[%s13761_s26 + $0x94] sm:$0xff] }
 0x7c6   : > { %v16926_v56 = vpop.f32.mrf.mxu0 }
 0x7c9   : > { %12946 = vmatmul.msk.f32.gmra.mxu0 %vm594_vm0, %v8770_v36  ;;  %v8774_v36 = vld [vmem:[%s13761_s26 + $0x9c] sm:$0xff] }
 0x7ce   : > { %v16930_v28 = vpop.f32.mrf.mxu0 }
 0x7d1   : > { %12947 = vmatmul.msk.f32.gmra.mxu0 %vm594_vm0, %v8771_v55  ;;  %v8775_v55 = vld [vmem:[%s13761_s26 + $0xa4] sm:$0xff] }
 0x7d6   : > { %v16934_v12 = vpop.f32.mrf.mxu0 }
 0x7d9   : > { %12948 = vmatmul.msk.f32.gmra.mxu0 %vm594_vm0, %v8772_v63  ;;  %v8776_v63 = vld [vmem:[%s13761_s26 + $0xac] sm:$0xff] }
 0x7de   : > { %v16938_v46 = vpop.f32.mrf.mxu0 }
 0x7df   : > { %19675 = vst [vmem:[#allocation28_spill] sm:$0xff] %v16938_v46 }
 0x7e1   : > { %12949 = vmatmul.msk.f32.gmra.mxu0 %vm594_vm0, %v8773_v40  ;;  %v8777_v40 = vld [vmem:[%s13761_s26 + $0xb4] sm:$0xff] }
 0x7e6   : > { %v16942_v16 = vpop.f32.mrf.mxu0 }
 0x7e7   : > { %19676 = vst [vmem:[#allocation29_spill] sm:$0xff] %v16942_v16 }
 0x7e9   : > { %12950 = vmatmul.msk.f32.gmra.mxu0 %vm594_vm0, %v8774_v36  ;;  %v8778_v36 = vld [vmem:[%s13761_s26 + $0xbc] sm:$0xff] }
 0x7ee   : > { %v16946_v7 = vpop.f32.mrf.mxu0 }
 0x7ef   : > { %19677 = vst [vmem:[#allocation30_spill] sm:$0xff] %v16946_v7 }
 0x7f1   : > { %12951 = vmatmul.msk.f32.gmra.mxu0 %vm594_vm0, %v8775_v55  ;;  %v8779_v55 = vld [vmem:[%s13761_s26 + $0xc4] sm:$0xff] }
 0x7f6   : > { %v16950_v21 = vpop.f32.mrf.mxu0 }
 0x7f7   : > { %19678 = vst [vmem:[#allocation31_spill] sm:$0xff] %v16950_v21 }
 0x7f9   : > { %12952 = vmatmul.msk.f32.gmra.mxu0 %vm594_vm0, %v8776_v63  ;;  %v8780_v63 = vld [vmem:[%s13761_s26 + $0xcc] sm:$0xff] }
 0x7fe   : > { %v16954_v46 = vpop.f32.mrf.mxu0 }
 0x7ff   : > { %19679 = vst [vmem:[#allocation32_spill] sm:$0xff] %v16954_v46 }
 0x801   : > { %12953 = vmatmul.msk.f32.gmra.mxu0 %vm594_vm0, %v8777_v40  ;;  %v8781_v40 = vld [vmem:[%s13761_s26 + $0xd4] sm:$0xff] }
 0x806   : > { %v16958_v16 = vpop.f32.mrf.mxu0 }
 0x807   : > { %19680 = vst [vmem:[#allocation33_spill] sm:$0xff] %v16958_v16 }
 0x809   : > { %12954 = vmatmul.msk.f32.gmra.mxu0 %vm594_vm0, %v8778_v36  ;;  %v8782_v36 = vld [vmem:[%s13761_s26 + $0xdc] sm:$0xff] }
 0x80e   : > { %v16962_v7 = vpop.f32.mrf.mxu0 }
 0x80f   : > { %19681 = vst [vmem:[#allocation34_spill] sm:$0xff] %v16962_v7 }
 0x811   : > { %12955 = vmatmul.msk.f32.gmra.mxu0 %vm594_vm0, %v8779_v55  ;;  %v8783_v55 = vld [vmem:[%s13761_s26 + $0xe4] sm:$0xff] }
 0x816   : > { %v16966_v21 = vpop.f32.mrf.mxu0 }
 0x817   : > { %19682 = vst [vmem:[#allocation35_spill] sm:$0xff] %v16966_v21 }
 0x819   : > { %12956 = vmatmul.msk.f32.gmra.mxu0 %vm594_vm0, %v8780_v63  ;;  %v8784_v63 = vld [vmem:[%s13761_s26 + $0xec] sm:$0xff] }
 0x81e   : > { %v16970_v46 = vpop.f32.mrf.mxu0 }
 0x821   : > { %12957 = vmatmul.msk.f32.gmra.mxu0 %vm594_vm0, %v8781_v40  ;;  %v8785_v40 = vld [vmem:[%s13761_s26 + $0xf4] sm:$0xff] }
 0x826   : > { %v16974_v16 = vpop.f32.mrf.mxu0 }
 0x829   : > { %12958 = vmatmul.msk.f32.gmra.mxu0 %vm594_vm0, %v8782_v36  ;;  %v8786_v36 = vld [vmem:[%s13761_s26 + $0xfc] sm:$0xff] }
 0x82e   : > { %v16978_v7 = vpop.f32.mrf.mxu0 }
 0x831   : > { %12959 = vmatmul.msk.f32.gmra.mxu0 %vm594_vm0, %v8783_v55  ;;  %v8787_v55 = vld [vmem:[%s13761_s26 + $0x104] sm:$0xff] }
 0x836   : > { %v16982_v21 = vpop.f32.mrf.mxu0 }
 0x839   : > { %12960 = vmatmul.msk.f32.gmra.mxu0 %vm594_vm0, %v8784_v63  ;;  %v8788_v63 = vld [vmem:[%s13761_s26 + $0x10c] sm:$0xff] }
 0x83e   : > { %v16986_v60 = vpop.f32.mrf.mxu0 }
 0x841   : > { %12961 = vmatmul.msk.f32.gmra.mxu0 %vm594_vm0, %v8785_v40 }
 0x846   : > { %v16990_v54 = vpop.f32.mrf.mxu0 }
 0x849   : > { %12962 = vmatmul.msk.f32.gmra.mxu0 %vm594_vm0, %v8786_v36 }
 0x84e   : > { %v16994_v47 = vpop.f32.mrf.mxu0 }
 0x851   : > { %12963 = vmatmul.msk.f32.gmra.mxu0 %vm594_vm0, %v8787_v55  ;;  %v17011_v55 = vpop.f32.mrf.mxu3 }
 0x852   : > { %19684 = vst [vmem:[#allocation37_spill] sm:$0xff] %v17011_v55 }
 0x856   : > { %v16998_v38 = vpop.f32.mrf.mxu0 }
 0x859   : > { %12964 = vmatmul.msk.f32.gmra.mxu0 %vm594_vm0, %v8788_v63  ;;  %v8791_v63 = vld [vmem:[%s13761_s26 + $0x124] sm:$0xff] }
 0x85e   : > { %v8977_v57 = vpop.f32.mrf.mxu0 }
 0x85f   : > { %v17004_v40 = vadd.f32 %v8977_v57, %v16704_v1  ;;  %v17017_v1 = vpop.f32.mrf.mxu3  ;;  %v8792_v57 = vld [vmem:[%s13761_s26 + $0x12c] sm:$0xff] }
 0x860   : > { %19686 = vst [vmem:[#allocation39_spill] sm:$0xff] %v17017_v1 }
 0x861   : > { %12965 = vmatmul.msk.f32.gmra.mxu0 %vm594_vm0, %v8789_v11 }
 0x866   : > { %v8980_v36 = vpop.f32.mrf.mxu0 }
 0x867   : > { %v17024_v55 = vpop.f32.mrf.mxu3 }
 0x868   : > { %19688 = vst [vmem:[#allocation41_spill] sm:$0xff] %v17024_v55 }
 0x869   : > { %12966 = vmatmul.msk.f32.gmra.mxu0 %vm594_vm0, %v8790_v53  ;;  %v8793_v53 = vld [vmem:[%s13761_s26 + $0x134] sm:$0xff] }
 0x86e   : > { %v8983_v31 = vpop.f32.mrf.mxu0 }
 0x86f   : > { %v17031_v1 = vpop.f32.mrf.mxu3 }
 0x870   : > { %19690 = vst [vmem:[#allocation43_spill] sm:$0xff] %v17031_v1 }
 0x871   : > { %12967 = vmatmul.msk.f32.gmra.mxu0 %vm594_vm0, %v8791_v63 }
 0x876   : > { %v8986_v11 = vpop.f32.mrf.mxu0 }
 0x877   : > { %v17037_v6 = vpop.f32.mrf.mxu3 }
 0x878   : > { %19692 = vst [vmem:[#allocation45_spill] sm:$0xff] %v17037_v6 }
 0x879   : > { %12968 = vmatmul.msk.f32.gmra.mxu0 %vm594_vm0, %v8792_v57  ;;  %v17034_v57 = vpop.f32.mrf.mxu2 }
 0x87a   : > { %19691 = vst [vmem:[#allocation44_spill] sm:$0xff] %v17034_v57 }
 0x87e   : > { %v8989_v23 = vpop.f32.mrf.mxu0 }
 0x87f   : > { %v9085_v57 = vadd.f32 %v8989_v23, %v16748_v51  ;;  %v17063_v51 = vpop.f32.mrf.mxu3 }
 0x880   : > { %19694 = vst [vmem:[#allocation47_spill] sm:$0xff] %v17063_v51 }
 0x881   : > { %12969 = vmatmul.msk.f32.gmra.mxu0 %vm594_vm0, %v8793_v53  ;;  %v8796_v53 = vld [vmem:[%s13761_s26 + $0x14c] sm:$0xff] }
 0x886   : > { %v8992_v63 = vpop.f32.mrf.mxu0 }
 0x889   : > { %12970 = vmatmul.msk.f32.gmra.mxu0 %vm594_vm0, %v8794_v43  ;;  %v9086_v43 = vadd.f32 %v8992_v63, %v16759_v17  ;;  %v9083_v17 = vadd.f32 %v8983_v31, %v16726_v26  ;;  %v9079_v63 = vadd.f32 %v16994_v47, %v16682_v52  ;;  %v17102_v52 = vpop.f32.mrf.mxu3  ;;  %v9077_v47 = vadd.f32 %v16986_v60, %v16660_v10 }
 0x88a   : > { %19698 = vst [vmem:[#allocation51_spill] sm:$0xff] %v17102_v52  ;;  %v9075_v60 = vadd.f32 %v16978_v7, %v16638_v30  ;;  %v9073_v7 = vadd.f32 %v16970_v46, %v16616_v25  ;;  %v8800_v25 = vld [vmem:[%s13761_s26 + $0x16c] sm:$0xff] }
 0x88b   : > { %v9130_v35 = vadd.f32 %v17044_v58, %v9086_v43  ;;  %v9127_v31 = vadd.f32 %v17044_v58, %v9083_v17  ;;  %v9121_v10 = vadd.f32 %v17044_v58, %v9077_v47  ;;  %v9215_v52 = vld [vmem:[%s19631_s3 + $0x90] sm:$0xff] }
 0x88c   : > { %v9119_v30 = vadd.f32 %v17044_v58, %v9075_v60  ;;  %v8801_v60 = vld [vmem:[%s13761_s26 + $0x174] sm:$0xff] }
 0x88e   : > { %v8995_v22 = vpop.f32.mrf.mxu0 }
 0x88f   : > { %v9087_v55 = vadd.f32 %v8995_v22, %v16770_v33  ;;  %v17052_v33 = vpop.f32.mrf.mxu2  ;;  %v9084_v22 = vadd.f32 %v8986_v11, %v16737_v27  ;;  %v17070_v11 = vmax.f32 %v9130_v35, 0.0 }
 0x890   : > { %19693 = vst [vmem:[#allocation46_spill] sm:$0xff] %v17052_v33  ;;  %v9218_v33 = vld [vmem:[%s19631_s3 + $0xa8] sm:$0xff] }
 0x891   : > { %12971 = vmatmul.msk.f32.gmra.mxu0 %vm594_vm0, %v8795_v14  ;;  %v9131_v14 = vadd.f32 %v17044_v58, %v9087_v55  ;;  %v8797_v55 = vld [vmem:[%s13761_s26 + $0x154] sm:$0xff]  ;;  %v9128_v27 = vadd.f32 %v17044_v58, %v9084_v22 }
 0x896   : > { %v8998_v20 = vpop.f32.mrf.mxu0 }
 0x897   : > { %v9088_v1 = vadd.f32 %v8998_v20, %v16784_v48  ;;  %v9129_v20 = vadd.f32 %v17044_v58, %v9085_v57  ;;  %v17060_v48 = vmax.f32 %v9131_v14, 0.0  ;;  %v17084_v35 = vpop.f32.mrf.mxu2  ;;  %v9125_v57 = vadd.f32 %v17044_v58, %v17004_v40 }
 0x898   : > { %19696 = vst [vmem:[#allocation49_spill] sm:$0xff] %v17084_v35  ;;  %v9123_v40 = vadd.f32 %v17044_v58, %v9079_v63  ;;  %v17141_v63 = vpop.f32.mrf.mxu3  ;;  %v12990_v35 = vld [vmem:[%s19631_s3 + $0xc0] sm:$0xff] }
 0x899   : > { %v9132_v6 = vadd.f32 %v17044_v58, %v9088_v1  ;;  %12972 = vmatmul.msk.f32.gmra.mxu0 %vm594_vm0, %v8796_v53  ;;  %v9082_v1 = vadd.f32 %v8980_v36, %v16715_v41  ;;  %v17074_v26 = vmax.f32 %v9129_v20, 0.0  ;;  %v17081_v36 = vmax.f32 %v9128_v27, 0.0  ;;  %19701 = vst [vmem:[#allocation54_spill] sm:$0xff] %v17141_v63 }
 0x89a   : > { %v17090_v53 = vmax.f32 %v9127_v31, 0.0  ;;  %v17107_v17 = vmax.f32 %v9125_v57, 0.0  ;;  %v9117_v57 = vadd.f32 %v17044_v58, %v9073_v7 }
 0x89b   : > { %v17056_v5 = vmax.f32 %v9132_v6, 0.0  ;;  %v9080_v6 = vadd.f32 %v16998_v38, %v16693_v44  ;;  %v9126_v41 = vadd.f32 %v17044_v58, %v9082_v1  ;;  %v8798_v44 = vld [vmem:[%s13761_s26 + $0x15c] sm:$0xff]  ;;  %v9078_v38 = vadd.f32 %v16990_v54, %v16671_v19 }
 0x89c   : > { %v9076_v19 = vadd.f32 %v16982_v21, %v16649_v49  ;;  %v8799_v21 = vld [vmem:[%s13761_s26 + $0x164] sm:$0xff]  ;;  %v9074_v49 = vadd.f32 %v16974_v16, %v16627_v59  ;;  %v17159_v47 = vmax.f32 %v9117_v57, 0.0 }
 0x89d   : > { %9250 = vmatpush.msra.mxu1 %v17056_v5  ;;  %v9124_v14 = vadd.f32 %v17044_v58, %v9080_v6  ;;  %v17099_v22 = vmax.f32 %v9126_v41, 0.0  ;;  %v9122_v54 = vadd.f32 %v17044_v58, %v9078_v38  ;;  %v17137_v41 = vmax.f32 %v9121_v10, 0.0  ;;  %v17174_v10 = vpop.f32.mrf.mxu1 }
 0x89e   : > { %v17065_v23 = vpop.f32.mrf.mxu0  ;;  %v9120_v31 = vadd.f32 %v17044_v58, %v9076_v19  ;;  %v9118_v16 = vadd.f32 %v17044_v58, %v9074_v49  ;;  %19703 = vst [vmem:[#allocation56_spill] sm:$0xff] %v17159_v47 }
 0x89f   : > { %19695 = vst [vmem:[#allocation48_spill] sm:$0xff] %v17065_v23  ;;  %9251 = vmatpush.msra.mxu1 %v17060_v48  ;;  %v17114_v20 = vmax.f32 %v9124_v14, 0.0  ;;  %v17123_v1 = vpop.f32.mrf.mxu2  ;;  %v17131_v6 = vmax.f32 %v9122_v54, 0.0 }
 0x8a0   : > { %19699 = vst [vmem:[#allocation52_spill] sm:$0xff] %v17123_v1  ;;  %v17144_v59 = vmax.f32 %v9120_v31, 0.0  ;;  %v17154_v38 = vmax.f32 %v9118_v16, 0.0  ;;  %v17167_v19 = vpop.f32.mrf.mxu3  ;;  %v9203_v16 = vld [vmem:[%s19631_s3 + $0x30] sm:$0xff] }
 0x8a1   : > { %12973 = vmatmul.msk.f32.gmra.mxu0 %vm594_vm0, %v8797_v55  ;;  %9252 = vmatpush.msra.mxu1 %v17070_v11  ;;  %v17120_v55 = vmax.f32 %v9123_v40, 0.0  ;;  %v9197_v40 = vld [vmem:[%s19631_s3] sm:$0xff]  ;;  %19704 = vst [vmem:[#allocation57_spill] sm:$0xff] %v17167_v19 }
 0x8a3   : > { %9253 = vmatpush.msra.mxu1 %v17074_v26 }
 0x8a5   : > { %9254 = vmatpush.msra.mxu1 %v17081_v36  ;;  %v17196_v57 = vpop.f32.mrf.mxu1 }
 0x8a6   : > { %v17093_v43 = vpop.f32.mrf.mxu0 }
 0x8a7   : > { %19697 = vst [vmem:[#allocation50_spill] sm:$0xff] %v17093_v43  ;;  %9255 = vmatpush.msra.mxu1 %v17090_v53  ;;  %v17157_v14 = vpop.f32.mrf.mxu2 }
 0x8a8   : > { %v17185_v31 = vpop.f32.mrf.mxu3 }
 0x8a9   : > { %12974 = vmatmul.msk.f32.gmra.mxu0 %vm594_vm0, %v8798_v44  ;;  %9256 = vmatpush.msra.mxu1 %v17099_v22  ;;  %v17148_v44 = vmax.f32 %v9119_v30, 0.0  ;;  %19706 = vst [vmem:[#allocation59_spill] sm:$0xff] %v17185_v31  ;;  %v8802_v30 = vld [vmem:[%s13761_s26 + $0x17c] sm:$0xff] }
 0x8ab   : > { %9257 = vmatpush.msra.mxu1 %v17107_v17 }
 0x8ad   : > { %9258 = vmatpush.msra.mxu1 %v17114_v20 }
 0x8ae   : > { %v17125_v27 = vpop.f32.mrf.mxu0 }
 0x8af   : > { %19700 = vst [vmem:[#allocation53_spill] sm:$0xff] %v17125_v27  ;;  %9259 = vmatpush.msra.mxu1 %v17120_v55  ;;  %v17181_v49 = vpop.f32.mrf.mxu2  ;;  %v8804_v27 = vld [vmem:[%s13761_s26 + $0x18c] sm:$0xf] }
 0x8b1   : > { %12975 = vmatmul.msk.f32.gmra.mxu0 %vm594_vm0, %v8799_v21  ;;  %9260 = vmatpush.msra.mxu1 %v17131_v6  ;;  %v9200_v21 = vld [vmem:[%s19631_s3 + $0x18] sm:$0xff] }
 0x8b3   : > { %9261 = vmatpush.msra.mxu1 %v17137_v41 }
 0x8b5   : > { %9262 = vmatpush.msra.mxu1 %v17144_v59 }
 0x8b6   : > { %v17151_v46 = vpop.f32.mrf.mxu0 }
 0x8b7   : > { %19702 = vst [vmem:[#allocation55_spill] sm:$0xff] %v17151_v46  ;;  %9263 = vmatpush.msra.mxu1 %v17148_v44  ;;  %v9209_v46 = vld [vmem:[%s19631_s3 + $0x60] sm:$0xff] }
 0x8b9   : > { %12976 = vmatmul.msk.f32.gmra.mxu0 %vm594_vm0, %v8800_v25  ;;  %9264 = vmatpush.msra.mxu1 %v17154_v38  ;;  %v17199_v25 = vpop.f32.mrf.mxu2 }
 0x8bb   : > { %9265 = vmatpush.msra.mxu1 %v17159_v47 }
 0x8bc   : > { %9266 = vmatmul.f32.vlgmr.msra.gmra.mxu1 %v9197_v40 }
 0x8bd   : > { %9422 = vmatpush.msrb.mxu1 %v17056_v5 }
 0x8be   : > { %v17170_v54 = vpop.f32.mrf.mxu0 }
 0x8bf   : > { %19705 = vst [vmem:[#allocation58_spill] sm:$0xff] %v17170_v54  ;;  %9423 = vmatpush.msrb.mxu1 %v17060_v48 }
 0x8c1   : > { %9424 = vmatpush.msrb.mxu1 %v17070_v11  ;;  %12977 = vmatmul.msk.f32.gmra.mxu0 %vm594_vm0, %v8801_v60  ;;  %v8803_v60 = vld [vmem:[%s13761_s26 + $0x184] sm:$0xff]  ;;  %v17217_v23 = vpop.f32.mrf.mxu2 }
 0x8c3   : > { %9425 = vmatpush.msrb.mxu1 %v17074_v26 }
 0x8c4   : > { %9269 = vmatmul.f32.gmra.mxu1 %v9200_v21  ;;  %v17206_v21 = vpop.f32.mrf.mxu3 }
 0x8c5   : > { %9426 = vmatpush.msrb.mxu1 %v17081_v36 }
 0x8c6   : > { %v17187_v7 = vpop.f32.mrf.mxu0 }
 0x8c7   : > { %19707 = vst [vmem:[#allocation60_spill] sm:$0xff] %v17187_v7  ;;  %9427 = vmatpush.msrb.mxu1 %v17090_v53 }
 0x8c9   : > { %9428 = vmatpush.msrb.mxu1 %v17099_v22  ;;  %12978 = vmatmul.msk.f32.gmra.mxu0 %vm594_vm0, %v8802_v30  ;;  %v9206_v30 = vld [vmem:[%s19631_s3 + $0x48] sm:$0xff]  ;;  %v17237_v7 = vpop.f32.mrf.mxu2 }
 0x8cb   : > { %9429 = vmatpush.msrb.mxu1 %v17107_v17 }
 0x8cc   : > { %9272 = vmatmul.f32.gmra.mxu1 %v9203_v16  ;;  %v17214_v16 = vpop.f32.mrf.mxu1 }
 0x8cd   : > { %9430 = vmatpush.msrb.mxu1 %v17114_v20 }
 0x8ce   : > { %v17202_v40 = vpop.f32.mrf.mxu0 }
 0x8cf   : > { %19708 = vst [vmem:[#allocation61_spill] sm:$0xff] %v17202_v40  ;;  %9431 = vmatpush.msrb.mxu1 %v17120_v55 }
 0x8d1   : > { %9432 = vmatpush.msrb.mxu1 %v17131_v6  ;;  %12979 = vmatmul.msk.f32.gmra.mxu0 %vm594_vm0, %v8803_v60  ;;  %v17225_v60 = vpop.f32.mrf.mxu3 }
 0x8d3   : > { %9433 = vmatpush.msrb.mxu1 %v17137_v41 }
 0x8d4   : > { %9275 = vmatmul.f32.gmra.mxu1 %v9206_v30  ;;  %v17232_v30 = vpop.f32.mrf.mxu1 }
 0x8d5   : > { %9434 = vmatpush.msrb.mxu1 %v17144_v59 }
 0x8d6   : > { %v17219_v43 = vpop.f32.mrf.mxu0 }
 0x8d7   : > { %19709 = vst [vmem:[#allocation62_spill] sm:$0xff] %v17219_v43  ;;  %9435 = vmatpush.msrb.mxu1 %v17148_v44  ;;  %v8344_v43 = vpop.f32.mrf.mxu2 }
 0x8d9   : > { %9436 = vmatpush.msrb.mxu1 %v17154_v38  ;;  %12980 = vmatmul.msk.f32.gmra.mxu0 %vm594_vm0, %v8804_v27  ;;  %v9212_v27 = vld [vmem:[%s19631_s3 + $0x78] sm:$0xff]  ;;  %v17244_v40 = vpop.f32.mrf.mxu3 }
 0x8db   : > { %9437 = vmatpush.msrb.mxu1 %v17159_v47 }
 0x8dc   : > { %9278 = vmatmul.f32.gmra.mxu1 %v9209_v46  ;;  %v7996_v51 = vpop.f32.mrf.mxu1 }
 0x8dd   : > { %9602 = vmatpush.msra.mxu1 %v17056_v5 }
 0x8de   : > { %v17235_v54 = vpop.f32.mrf.mxu0 }
 0x8df   : > { %9603 = vmatpush.msra.mxu1 %v17060_v48  ;;  %19710 = vst [vmem:[#allocation63_spill] sm:$0xff] %v17235_v54 }
 0x8e1   : > { %9604 = vmatpush.msra.mxu1 %v17070_v11  ;;  %v8692_v54 = vpop.f32.mrf.mxu3 }
 0x8e3   : > { %9605 = vmatpush.msra.mxu1 %v17074_v26 }
 0x8e4   : > { %9281 = vmatmul.f32.gmra.mxu1 %v9212_v27  ;;  %v7999_v63 = vpop.f32.mrf.mxu1 }
 0x8e5   : > { %9606 = vmatpush.msra.mxu1 %v17081_v36 }
 0x8e6   : > { %v17248_v46 = vpop.f32.mrf.mxu0 }
 0x8e7   : > { %9607 = vmatpush.msra.mxu1 %v17090_v53  ;;  %19711 = vst [vmem:[#allocation64_spill] sm:$0xff] %v17248_v46  ;;  %v8347_v46 = vpop.f32.mrf.mxu2 }
 0x8e9   : > { %9608 = vmatpush.msra.mxu1 %v17099_v22  ;;  %v8695_v19 = vpop.f32.mrf.mxu3 }
 0x8eb   : > { %9609 = vmatpush.msra.mxu1 %v17107_v17 }
 0x8ec   : > { %9284 = vmatmul.f32.gmra.mxu1 %v9215_v52 }
 0x8ed   : > { %9610 = vmatpush.msra.mxu1 %v17114_v20 }
 0x8ee   : > { %v17257_v27 = vpop.f32.mrf.mxu0 }
 0x8ef   : > { %9611 = vmatpush.msra.mxu1 %v17120_v55  ;;  %19712 = vst [vmem:[#allocation65_spill] sm:$0xff] %v17257_v27  ;;  %v8002_v27 = vpop.f32.mrf.mxu1  ;;  %v8350_v31 = vpop.f32.mrf.mxu2 }
 0x8f1   : > { %9612 = vmatpush.msra.mxu1 %v17131_v6 }
 0x8f3   : > { %9613 = vmatpush.msra.mxu1 %v17137_v41 }
 0x8f4   : > { %9287 = vmatmul.f32.gmra.mxu1 %v9218_v33  ;;  %v8698_v33 = vpop.f32.mrf.mxu3 }
 0x8f5   : > { %9614 = vmatpush.msra.mxu1 %v17144_v59 }
 0x8f6   : > { %v17266_v52 = vpop.f32.mrf.mxu0 }
 0x8f7   : > { %9615 = vmatpush.msra.mxu1 %v17148_v44  ;;  %19713 = vst [vmem:[#allocation66_spill] sm:$0xff] %v17266_v52  ;;  %v17277_v15 = vpop.f32.mrf.mxu1  ;;  %v17280_v52 = vpop.f32.mrf.mxu2 }
 0x8f9   : > { %9616 = vmatpush.msra.mxu1 %v17154_v38 }
 0x8fb   : > { %9617 = vmatpush.msra.mxu1 %v17159_v47 }
 0x8fc   : > { %9438 = vmatmul.f32.vlgmr.msrb.gmra.mxu1 %v12990_v35 }
 0x8fd   : > { %9782 = vmatpush.msrb.mxu1 %v17056_v5  ;;  %v7711_v5 = vadd.f32 %v16930_v28, %v16506_v8  ;;  %v7708_v8 = vadd.f32 %v16918_v4, %v16473_v18 }
 0x8fe   : > { %v9037_v1 = vpop.f32.mrf.mxu0 }
 0x8ff   : > { %9783 = vmatpush.msrb.mxu1 %v17060_v48  ;;  %v7710_v48 = vadd.f32 %v16926_v56, %v16495_v42  ;;  %v8059_v35 = vadd.f32 %v7999_v63, %v7711_v5  ;;  %v8056_v18 = vadd.f32 %v17214_v16, %v7708_v8  ;;  %v19724_v8 = vld [vmem:[#allocation26_spill] sm:$0xff] }
 0x901   : > { %9784 = vmatpush.msrb.mxu1 %v17070_v11  ;;  %v7712_v11 = vadd.f32 %v16934_v12, %v16517_v13  ;;  %v8058_v28 = vadd.f32 %v7996_v51, %v7710_v48  ;;  %v7707_v13 = vadd.f32 %v16914_v50, %v16462_v62  ;;  %v17300_v12 = vpop.f32.mrf.mxu1  ;;  %v8404_v51 = vadd.f32 %v17217_v23, %v8056_v18 }
 0x902   : > { %v7703_v23 = vadd.f32 %v16881_v39, %v16418_v24 }
 0x903   : > { %9785 = vmatpush.msrb.mxu1 %v17074_v26  ;;  %v17290_v26 = vpop.f32.mrf.mxu3  ;;  %v8060_v42 = vadd.f32 %v8002_v27, %v7712_v11  ;;  %v8055_v50 = vadd.f32 %v17196_v57, %v7707_v13 }
 0x905   : > { %9786 = vmatpush.msrb.mxu1 %v17081_v36  ;;  %v7709_v36 = vadd.f32 %v16922_v2, %v16484_v29  ;;  %v8406_v29 = vadd.f32 %v8344_v43, %v8058_v28  ;;  %v8408_v2 = vadd.f32 %v8350_v31, %v8060_v42 }
 0x906   : > { %v9040_v47 = vpop.f32.mrf.mxu0 }
 0x907   : > { %9787 = vmatpush.msrb.mxu1 %v17090_v53  ;;  %v8057_v56 = vadd.f32 %v17232_v30, %v7709_v36  ;;  %v8754_v43 = vadd.f32 %v8692_v54, %v8406_v29  ;;  %v19716_v30 = vld [vmem:[#allocation24_spill] sm:$0xff]  ;;  %v19722_v36 = vld [vmem:[#allocation6_spill] sm:$0xff] }
 0x909   : > { %9788 = vmatpush.msrb.mxu1 %v17099_v22  ;;  %v8407_v22 = vadd.f32 %v8347_v46, %v8059_v35  ;;  %v8405_v4 = vadd.f32 %v17237_v7, %v8057_v56  ;;  %v17334_v24 = vpop.f32.mrf.mxu1  ;;  %v19718_v46 = vld [vmem:[#allocation52_spill] sm:$0xff]  ;;  %v19723_v35 = vld [vmem:[#allocation22_spill] sm:$0xff]  ;;  %v19726_v56 = vld [vmem:[#allocation57_spill] sm:$0xff] }
 0x90b   : > { %9789 = vmatpush.msrb.mxu1 %v17107_v17  ;;  %v7706_v17 = vadd.f32 %v16910_v45, %v16451_v3  ;;  %v8755_v62 = vadd.f32 %v8695_v19, %v8407_v22  ;;  %v7704_v3 = vadd.f32 %v16893_v37, %v16429_v9  ;;  %v8403_v19 = vadd.f32 %v17199_v25, %v8055_v50  ;;  %v19725_v22 = vld [vmem:[#allocation49_spill] sm:$0xff]  ;;  %v19729_v50 = vld [vmem:[#allocation20_spill] sm:$0xff] }
 0x90c   : > { %v8753_v7 = vadd.f32 %v17244_v40, %v8405_v4  ;;  %v8752_v9 = vadd.f32 %v17225_v60, %v8404_v51  ;;  %v7702_v25 = vadd.f32 %v16869_v0, %v16407_v32  ;;  %v8401_v40 = vadd.f32 %v17157_v14, %v16907_v34  ;;  %v19715_v60 = vld [vmem:[#allocation7_spill] sm:$0xff]  ;;  %v19719_v14 = vld [vmem:[#allocation56_spill] sm:$0xff] }
 0x90d   : > { %9790 = vmatpush.msrb.mxu1 %v17114_v20  ;;  %v17306_v20 = vpop.f32.mrf.mxu2  ;;  %v8054_v45 = vadd.f32 %v17174_v10, %v7706_v17  ;;  %v8751_v39 = vadd.f32 %v17206_v21, %v8403_v19  ;;  %v7701_v32 = vadd.f32 %v19716_v30, %v19715_v60  ;;  %v19717_v0 = vld [vmem:[#allocation27_spill] sm:$0xff]  ;;  %v19721_v21 = vld [vmem:[#allocation65_spill] sm:$0xff] }
 0x90e   : > { %v9043_v53 = vpop.f32.mrf.mxu0  ;;  %v9101_v37 = vadd.f32 %v9037_v1, %v8753_v7  ;;  %v8050_v28 = vadd.f32 %v19724_v8, %v7702_v25  ;;  %v8749_v29 = vadd.f32 %v19726_v56, %v8401_v40  ;;  %v19733_v7 = vld [vmem:[#allocation63_spill] sm:$0xff]  ;;  %v19737_v25 = vld [vmem:[#allocation44_spill] sm:$0xff] }
 0x90f   : > { %9791 = vmatpush.msrb.mxu1 %v17120_v55  ;;  %v8756_v55 = vadd.f32 %v8698_v33, %v8408_v2  ;;  %v9103_v63 = vadd.f32 %v9043_v53, %v8755_v62  ;;  %v8402_v54 = vadd.f32 %v17181_v49, %v8054_v45  ;;  %v9099_v5 = vadd.f32 %v19721_v21, %v8751_v39  ;;  %v19727_v2 = vld [vmem:[#allocation64_spill] sm:$0xff]  ;;  %v19728_v62 = vld [vmem:[#allocation5_spill] sm:$0xff]  ;;  %v19738_v40 = vld [vmem:[#allocation51_spill] sm:$0xff] }
 0x910   : > { %v9145_v48 = vadd.f32 %v17044_v58, %v9101_v37  ;;  %v7700_v53 = vadd.f32 %v19723_v35, %v19722_v36  ;;  %v7699_v51 = vadd.f32 %v19729_v50, %v19728_v62  ;;  %v19740_v30 = vld [vmem:[#allocation3_spill] sm:$0xff] }
 0x911   : > { %9792 = vmatpush.msrb.mxu1 %v17131_v6  ;;  %v17317_v6 = vpop.f32.mrf.mxu3  ;;  %v9147_v10 = vadd.f32 %v17044_v58, %v9103_v63  ;;  %v19731_v63 = vld [vmem:[#allocation46_spill] sm:$0xff] }
 0x913   : > { %9793 = vmatpush.msrb.mxu1 %v17137_v41  ;;  %v9102_v41 = vadd.f32 %v9040_v47, %v8754_v43  ;;  %v8052_v47 = vadd.f32 %v16895_v61, %v7704_v3  ;;  %v8051_v61 = vadd.f32 %v19717_v0, %v7703_v23  ;;  %v17352_v11 = vmax.f32 %v9147_v10, 0.0  ;;  %v19730_v43 = vld [vmem:[#allocation25_spill] sm:$0xff]  ;;  %v19736_v10 = vld [vmem:[#allocation23_spill] sm:$0xff] }
 0x914   : > { %v8398_v3 = vadd.f32 %v19731_v63, %v8050_v28  ;;  %v17376_v23 = vmax.f32 %v9145_v48, 0.0  ;;  %v19747_v28 = vld [vmem:[#allocation40_spill] sm:$0xff] }
 0x915   : > { %9794 = vmatpush.msrb.mxu1 %v17144_v59  ;;  %v9146_v49 = vadd.f32 %v17044_v58, %v9102_v41  ;;  %v8400_v27 = vadd.f32 %v19718_v46, %v8052_v47  ;;  %v17346_v34 = vpop.f32.mrf.mxu2  ;;  %v8399_v42 = vadd.f32 %v19725_v22, %v8051_v61  ;;  %v9097_v41 = vadd.f32 %v19733_v7, %v8749_v29  ;;  %v19742_v61 = vld [vmem:[#allocation21_spill] sm:$0xff] }
 0x916   : > { %v9046_v31 = vpop.f32.mrf.mxu0  ;;  %v8047_v46 = vadd.f32 %v19742_v61, %v7699_v51  ;;  %v19748_v29 = vld [vmem:[#allocation45_spill] sm:$0xff] }
 0x917   : > { %v9104_v57 = vadd.f32 %v9046_v31, %v8756_v55  ;;  %9795 = vmatpush.msrb.mxu1 %v17148_v44  ;;  %v19714_v44 = vld [vmem:[#allocation66_spill] sm:$0xff]  ;;  %v17364_v4 = vmax.f32 %v9146_v49, 0.0  ;;  %v8049_v55 = vadd.f32 %v19730_v43, %v7701_v32  ;;  %v8747_v39 = vadd.f32 %v19738_v40, %v8399_v42  ;;  %v19741_v32 = vld [vmem:[#allocation16_spill] sm:$0xff]  ;;  %v19751_v51 = vld [vmem:[#allocation17_spill] sm:$0xff] }
 0x918   : > { %v9100_v1 = vadd.f32 %v19714_v44, %v8752_v9  ;;  %v19732_v31 = vld [vmem:[#allocation54_spill] sm:$0xff]  ;;  %v7697_v0 = vadd.f32 %v19741_v32, %v19740_v30  ;;  %v9141_v36 = vadd.f32 %v17044_v58, %v9097_v41  ;;  %v8395_v22 = vadd.f32 %v19747_v28, %v8047_v46 }
 0x919   : > { %v9148_v59 = vadd.f32 %v17044_v58, %v9104_v57  ;;  %9796 = vmatpush.msrb.mxu1 %v17154_v38  ;;  %v19720_v38 = vld [vmem:[#allocation59_spill] sm:$0xff]  ;;  %v17371_v45 = vpop.f32.mrf.mxu3  ;;  %v8748_v19 = vadd.f32 %v19732_v31, %v8400_v27  ;;  %v9143_v57 = vadd.f32 %v17044_v58, %v9099_v5  ;;  %v19735_v9 = vld [vmem:[#allocation18_spill] sm:$0xff]  ;;  %v8397_v47 = vadd.f32 %v19737_v25, %v8049_v55  ;;  %v19745_v5 = vld [vmem:[#allocation61_spill] sm:$0xff] }
 0x91a   : > { %v8750_v33 = vadd.f32 %v19720_v38, %v8402_v54  ;;  %v9144_v18 = vadd.f32 %v17044_v58, %v9100_v1  ;;  %v19734_v54 = vld [vmem:[#allocation4_spill] sm:$0xff]  ;;  %v19739_v44 = vld [vmem:[#allocation62_spill] sm:$0xff]  ;;  %v17393_v38 = vpop.f32.mrf.mxu1  ;;  %v9095_v48 = vadd.f32 %v19745_v5, %v8747_v39  ;;  %v8045_v43 = vadd.f32 %v19751_v51, %v7697_v0  ;;  %v19758_v25 = vld [vmem:[#allocation55_spill] sm:$0xff] }
 0x91b   : > { %v17340_v16 = vmax.f32 %v9148_v59, 0.0  ;;  %9797 = vmatpush.msrb.mxu1 %v19719_v14  ;;  %v7698_v37 = vadd.f32 %v19735_v9, %v19734_v54  ;;  %v8048_v59 = vadd.f32 %v19736_v10, %v7700_v53  ;;  %v9096_v1 = vadd.f32 %v19739_v44, %v8748_v19  ;;  %v19743_v27 = vld [vmem:[#allocation42_spill] sm:$0xff]  ;;  %v19746_v53 = vld [vmem:[#allocation19_spill] sm:$0xff]  ;;  %v19756_v54 = vld [vmem:[#allocation36_spill] sm:$0xff] }
 0x91c   : > { %v9098_v17 = vadd.f32 %v19727_v2, %v8750_v33  ;;  %v17386_v60 = vmax.f32 %v9144_v18, 0.0  ;;  %v19744_v33 = vld [vmem:[#allocation47_spill] sm:$0xff]  ;;  %v17398_v35 = vmax.f32 %v9143_v57, 0.0  ;;  %v8745_v2 = vadd.f32 %v19748_v29, %v8397_v47  ;;  %v19752_v55 = vld [vmem:[#allocation38_spill] sm:$0xff]  ;;  %v19757_v10 = vld [vmem:[#allocation41_spill] sm:$0xff] }
 0x91d   : > { %9291 = vmatpush.msra.mxu2 %v17340_v16  ;;  %v8396_v14 = vadd.f32 %v19743_v27, %v8048_v59  ;;  %v8746_v21 = vadd.f32 %v19744_v33, %v8398_v3  ;;  %v8046_v8 = vadd.f32 %v19746_v53, %v7698_v37  ;;  %v17403_v42 = vpop.f32.mrf.mxu2  ;;  %v9140_v62 = vadd.f32 %v17044_v58, %v9096_v1  ;;  %v19753_v3 = vld [vmem:[#allocation43_spill] sm:$0xff]  ;;  %v19754_v19 = vld [vmem:[#allocation58_spill] sm:$0xff]  ;;  %v19761_v27 = vld [vmem:[#allocation37_spill] sm:$0xff] }
 0x91e   : > { %v17359_v13 = vpop.f32.mrf.mxu0  ;;  %v9142_v49 = vadd.f32 %v17044_v58, %v9098_v17  ;;  %v19749_v17 = vld [vmem:[#allocation60_spill] sm:$0xff]  ;;  %v9093_v7 = vadd.f32 %v19754_v19, %v8745_v2  ;;  %v9139_v41 = vadd.f32 %v17044_v58, %v9095_v48  ;;  %v17418_v57 = vmax.f32 %v9141_v36, 0.0  ;;  %v19759_v44 = vld [vmem:[#allocation39_spill] sm:$0xff]  ;;  %v19762_v33 = vld [vmem:[#allocation50_spill] sm:$0xff] }
 0x91f   : > { %9292 = vmatpush.msra.mxu2 %v17352_v11  ;;  %v9094_v18 = vadd.f32 %v19749_v17, %v8746_v21  ;;  %v8394_v63 = vadd.f32 %v19752_v55, %v8046_v8  ;;  %v8744_v31 = vadd.f32 %v19753_v3, %v8396_v14  ;;  %v8393_v9 = vadd.f32 %v19756_v54, %v8045_v43  ;;  %v19763_v53 = vld [vmem:[#allocation48_spill] sm:$0xff] }
 0x920   : > { %v17410_v50 = vmax.f32 %v9142_v49, 0.0  ;;  %19755 = vst [vmem:[#allocation7_spill] sm:$0xff] %v17418_v57  ;;  %v8743_v59 = vadd.f32 %v19757_v10, %v8395_v22  ;;  %v17427_v39 = vmax.f32 %v9140_v62, 0.0  ;;  %v19760_v49 = vld [vmem:[#allocation53_spill] sm:$0xff]  ;;  %v9137_v32 = vadd.f32 %v17044_v58, %v9093_v7  ;;  %v9198_v3 = vld [vmem:[%s19631_s3 + $0x8] sm:$0xff] }
 0x921   : > { %9293 = vmatpush.msra.mxu2 %v17364_v4  ;;  %v17422_v37 = vpop.f32.mrf.mxu3  ;;  %v9092_v47 = vadd.f32 %v19758_v25, %v8744_v31  ;;  %v9138_v40 = vadd.f32 %v17044_v58, %v9094_v18  ;;  %v8742_v1 = vadd.f32 %v19759_v44, %v8394_v63  ;;  %v17433_v0 = vmax.f32 %v9139_v41, 0.0  ;;  %v9201_v41 = vld [vmem:[%s19631_s3 + $0x20] sm:$0xff]  ;;  %v9204_v44 = vld [vmem:[%s19631_s3 + $0x38] sm:$0xff] }
 0x922   : > { %19750 = vst [vmem:[#allocation66_spill] sm:$0xff] %v17410_v50  ;;  %v9091_v30 = vadd.f32 %v19760_v49, %v8743_v59  ;;  %v8017_v61 = vpop.f32.mrf.mxu1  ;;  %v8741_v14 = vadd.f32 %v19761_v27, %v8393_v9  ;;  %v17448_v22 = vmax.f32 %v9137_v32, 0.0  ;;  %v19764_v25 = vld [vmem:[#allocation14_spill] sm:$0xff]  ;;  %v19767_v49 = vld [vmem:[#allocation33_spill] sm:$0xff]  ;;  %v19768_v32 = vld [vmem:[#allocation15_spill] sm:$0xff] }
 0x923   : > { %9294 = vmatpush.msra.mxu2 %v17376_v23  ;;  %v9090_v21 = vadd.f32 %v19762_v33, %v8742_v1  ;;  %v9136_v5 = vadd.f32 %v17044_v58, %v9092_v47  ;;  %v17441_v48 = vmax.f32 %v9138_v40, 0.0  ;;  %v19765_v47 = vld [vmem:[#allocation34_spill] sm:$0xff]  ;;  %v19766_v1 = vld [vmem:[#allocation13_spill] sm:$0xff]  ;;  %v19769_v27 = vld [vmem:[#allocation35_spill] sm:$0xff] }
 0x924   : > { %v9089_v8 = vadd.f32 %v19763_v53, %v8741_v14  ;;  %v9135_v28 = vadd.f32 %v17044_v58, %v9091_v30  ;;  %v7719_v40 = vadd.f32 %v19765_v47, %v19764_v25  ;;  %v7718_v30 = vadd.f32 %v19767_v49, %v19766_v1  ;;  %v19774_v49 = vld [vmem:[#allocation10_spill] sm:$0xff] }
 0x925   : > { %9295 = vmatpush.msra.mxu2 %v17386_v60  ;;  %v17444_v36 = vpop.f32.mrf.mxu2  ;;  %v9134_v29 = vadd.f32 %v17044_v58, %v9090_v21  ;;  %v17452_v2 = vmax.f32 %v9136_v5, 0.0  ;;  %v7720_v14 = vadd.f32 %v19769_v27, %v19768_v32  ;;  %v19770_v21 = vld [vmem:[#allocation12_spill] sm:$0xff]  ;;  %v19775_v32 = vld [vmem:[#allocation30_spill] sm:$0xff] }
 0x926   : > { %v17405_v56 = vpop.f32.mrf.mxu0  ;;  %v9133_v18 = vadd.f32 %v17044_v58, %v9089_v8  ;;  %v17458_v62 = vmax.f32 %v9135_v28, 0.0  ;;  %v19771_v5 = vld [vmem:[#allocation32_spill] sm:$0xff]  ;;  %v7715_v27 = vadd.f32 %v19775_v32, %v19774_v49 }
 0x927   : > { %9296 = vmatpush.msra.mxu2 %v17398_v35  ;;  %v17463_v43 = vmax.f32 %v9134_v29, 0.0  ;;  %v7717_v53 = vadd.f32 %v19771_v5, %v19770_v21  ;;  %v19777_v21 = vld [vmem:[#allocation29_spill] sm:$0xff] }
 0x928   : > { %v17466_v63 = vmax.f32 %v9133_v18, 0.0  ;;  %v19772_v18 = vld [vmem:[#allocation11_spill] sm:$0xff] }
 0x929   : > { %9297 = vmatpush.msra.mxu2 %v17410_v50  ;;  %v17455_v17 = vpop.f32.mrf.mxu3 }
 0x92a   : > { %v8020_v55 = vpop.f32.mrf.mxu1 }
 0x92b   : > { %9298 = vmatpush.msra.mxu2 %v17418_v57  ;;  %v8066_v25 = vadd.f32 %v8020_v55, %v7718_v30 }
 0x92d   : > { %9299 = vmatpush.msra.mxu2 %v17427_v39  ;;  %v8368_v31 = vpop.f32.mrf.mxu2 }
 0x92e   : > { %v17436_v46 = vpop.f32.mrf.mxu0 }
 0x92f   : > { %9300 = vmatpush.msra.mxu2 %v17433_v0 }
 0x931   : > { %9301 = vmatpush.msra.mxu2 %v17441_v48  ;;  %v8716_v19 = vpop.f32.mrf.mxu3 }
 0x932   : > { %v8023_v54 = vpop.f32.mrf.mxu1 }
 0x933   : > { %9302 = vmatpush.msra.mxu2 %v17448_v22  ;;  %v8067_v8 = vadd.f32 %v8023_v54, %v7719_v40  ;;  %v9207_v54 = vld [vmem:[%s19631_s3 + $0x50] sm:$0xff] }
 0x934   : > { %v19776_v40 = vld [vmem:[#allocation9_spill] sm:$0xff] }
 0x935   : > { %9303 = vmatpush.msra.mxu2 %v17452_v2  ;;  %v8371_v9 = vpop.f32.mrf.mxu2  ;;  %v7714_v5 = vadd.f32 %v19777_v21, %v19776_v40  ;;  %v19780_v21 = vld [vmem:[#allocation66_spill] sm:$0xff] }
 0x936   : > { %v17461_v51 = vpop.f32.mrf.mxu0  ;;  %v8415_v47 = vadd.f32 %v8371_v9, %v8067_v8 }
 0x937   : > { %9304 = vmatpush.msra.mxu2 %v17458_v62 }
 0x939   : > { %9305 = vmatpush.msra.mxu2 %v17463_v43  ;;  %v8719_v59 = vpop.f32.mrf.mxu3 }
 0x93a   : > { %v8026_v33 = vpop.f32.mrf.mxu1 }
 0x93b   : > { %9306 = vmatpush.msra.mxu2 %v17466_v63  ;;  %v8068_v1 = vadd.f32 %v8026_v33, %v7720_v14  ;;  %v8763_v14 = vadd.f32 %v8719_v59, %v8415_v47 }
 0x93c   : > { %9307 = vmatmul.f32.vlgmr.msra.gmra.mxu2 %v9198_v3  ;;  %v19773_v3 = vld [vmem:[#allocation31_spill] sm:$0xff] }
 0x93d   : > { %9463 = vmatpush.msrb.mxu2 %v17340_v16  ;;  %v8374_v28 = vpop.f32.mrf.mxu2 }
 0x93e   : > { %v9061_v7 = vpop.f32.mrf.mxu0 }
 0x93f   : > { %9464 = vmatpush.msrb.mxu2 %v17352_v11 }
 0x941   : > { %9465 = vmatpush.msrb.mxu2 %v17364_v4  ;;  %v8722_v55 = vpop.f32.mrf.mxu3 }
 0x943   : > { %9466 = vmatpush.msrb.mxu2 %v17376_v23 }
 0x944   : > { %9310 = vmatmul.f32.gmra.mxu2 %v9201_v41  ;;  %v7716_v41 = vadd.f32 %v19773_v3, %v19772_v18 }
 0x945   : > { %9467 = vmatpush.msrb.mxu2 %v17386_v60 }
 0x946   : > { %v9064_v10 = vpop.f32.mrf.mxu0  ;;  %v8064_v9 = vadd.f32 %v17393_v38, %v7716_v41  ;;  %v8062_v38 = vadd.f32 %v17300_v12, %v7714_v5 }
 0x947   : > { %9468 = vmatpush.msrb.mxu2 %v17398_v35 }
 0x948   : > { %v8412_v8 = vadd.f32 %v17403_v42, %v8064_v9  ;;  %v8410_v42 = vadd.f32 %v17306_v20, %v8062_v38  ;;  %v9216_v9 = vld [vmem:[%s19631_s3 + $0x98] sm:$0xff]  ;;  %v13012_v38 = vld [vmem:[%s19631_s3 + $0x170] sm:$0xff] }
 0x949   : > { %9469 = vmatpush.msrb.mxu2 %v17410_v50  ;;  %v8416_v50 = vadd.f32 %v8374_v28, %v8068_v1 }
 0x94b   : > { %9470 = vmatpush.msrb.mxu2 %v17418_v57  ;;  %v8414_v57 = vadd.f32 %v8368_v31, %v8066_v25  ;;  %v19779_v31 = vld [vmem:[#allocation28_spill] sm:$0xff]  ;;  %v8764_v18 = vadd.f32 %v8722_v55, %v8416_v50  ;;  %v8760_v50 = vadd.f32 %v17422_v37, %v8412_v8  ;;  %v19781_v55 = vld [vmem:[#allocation7_spill] sm:$0xff]  ;;  %v13005_v8 = vld [vmem:[%s19631_s3 + $0x138] sm:$0xff] }
 0x94c   : > { %9313 = vmatmul.f32.gmra.mxu2 %v9204_v44  ;;  %v8065_v44 = vadd.f32 %v8017_v61, %v7717_v53  ;;  %v19778_v61 = vld [vmem:[#allocation8_spill] sm:$0xff]  ;;  %v8063_v53 = vadd.f32 %v17334_v24, %v7715_v27 }
 0x94d   : > { %9471 = vmatpush.msrb.mxu2 %v17427_v39  ;;  %v7713_v33 = vadd.f32 %v19779_v31, %v19778_v61  ;;  %v8762_v28 = vadd.f32 %v8716_v19, %v8414_v57  ;;  %v9108_v20 = vadd.f32 %v17461_v51, %v8760_v50  ;;  %v9205_v61 = vld [vmem:[%s19631_s3 + $0x40] sm:$0xff]  ;;  %v12991_v31 = vld [vmem:[%s19631_s3 + $0xc8] sm:$0xff] }
 0x94e   : > { %v9067_v29 = vpop.f32.mrf.mxu0  ;;  %v8413_v30 = vadd.f32 %v17444_v36, %v8065_v44  ;;  %v8411_v36 = vadd.f32 %v17346_v34, %v8063_v53  ;;  %v12995_v53 = vld [vmem:[%s19631_s3 + $0xe8] sm:$0xff]  ;;  %v13027_v50 = vld [vmem:[%s19631_s3 + $0x1a0] sm:$0xff] }
 0x94f   : > { %9472 = vmatpush.msrb.mxu2 %v17433_v0  ;;  %v9111_v3 = vadd.f32 %v9067_v29, %v8763_v14  ;;  %v9110_v25 = vadd.f32 %v9064_v10, %v8762_v28  ;;  %v8061_v24 = vadd.f32 %v17277_v15, %v7713_v33  ;;  %v8758_v10 = vadd.f32 %v17317_v6, %v8410_v42  ;;  %v9219_v14 = vld [vmem:[%s19631_s3 + $0xb0] sm:$0xff]  ;;  %v9208_v33 = vld [vmem:[%s19631_s3 + $0x58] sm:$0xff]  ;;  %v13023_v42 = vld [vmem:[%s19631_s3 + $0x180] sm:$0xff] }
 0x950   : > { %v8761_v59 = vadd.f32 %v17455_v17, %v8413_v30  ;;  %v9210_v17 = vld [vmem:[%s19631_s3 + $0x68] sm:$0xff]  ;;  %v8759_v15 = vadd.f32 %v17371_v45, %v8411_v36  ;;  %v9152_v49 = vadd.f32 %v17044_v58, %v9108_v20  ;;  %v13009_v28 = vld [vmem:[%s19631_s3 + $0x158] sm:$0xff] }
 0x951   : > { %9473 = vmatpush.msrb.mxu2 %v17441_v48  ;;  %v9155_v19 = vadd.f32 %v17044_v58, %v9111_v3  ;;  %v8409_v34 = vadd.f32 %v17280_v52, %v8061_v24  ;;  %v9154_v37 = vadd.f32 %v17044_v58, %v9110_v25  ;;  %v9106_v51 = vadd.f32 %v17405_v56, %v8758_v10  ;;  %v9202_v30 = vld [vmem:[%s19631_s3 + $0x28] sm:$0xff]  ;;  %v13008_v3 = vld [vmem:[%s19631_s3 + $0x150] sm:$0xff] }
 0x952   : > { %v9109_v57 = vadd.f32 %v9061_v7, %v8761_v59  ;;  %v9107_v52 = vadd.f32 %v17436_v46, %v8759_v15  ;;  %v17561_v44 = vmax.f32 %v9152_v49, 0.0  ;;  %v13011_v36 = vld [vmem:[%s19631_s3 + $0x168] sm:$0xff]  ;;  %v13004_v25 = vld [vmem:[%s19631_s3 + $0x130] sm:$0xff]  ;;  %v13010_v15 = vld [vmem:[%s19631_s3 + $0x160] sm:$0xff] }
 0x953   : > { %9474 = vmatpush.msrb.mxu2 %v17448_v22  ;;  %v17539_v1 = vmax.f32 %v9155_v19, 0.0  ;;  %v8757_v45 = vadd.f32 %v17290_v26, %v8409_v34  ;;  %v17547_v32 = vmax.f32 %v9154_v37, 0.0  ;;  %v9213_v26 = vld [vmem:[%s19631_s3 + $0x80] sm:$0xff]  ;;  %v9150_v56 = vadd.f32 %v17044_v58, %v9106_v51  ;;  %v13024_v59 = vld [vmem:[%s19631_s3 + $0x188] sm:$0xff]  ;;  %v13026_v34 = vld [vmem:[%s19631_s3 + $0x198] sm:$0xff] }
 0x954   : > { %9316 = vmatmul.f32.gmra.mxu2 %v9207_v54  ;;  %v9153_v29 = vadd.f32 %v17044_v58, %v9109_v57  ;;  %v9151_v46 = vadd.f32 %v17044_v58, %v9107_v52  ;;  %v13007_v57 = vld [vmem:[%s19631_s3 + $0x148] sm:$0xff]  ;;  %v13033_v10 = vld [vmem:[%s19631_s3 + $0x1d0] sm:$0xff]  ;;  %v13013_v52 = vld [vmem:[%s19631_s3 + $0x178] sm:$0xff] }
 0x955   : > { %9475 = vmatpush.msrb.mxu2 %v17452_v2  ;;  %v9105_v6 = vadd.f32 %v17359_v13, %v8757_v45  ;;  %v17570_v40 = vmax.f32 %v9150_v56, 0.0  ;;  %v13032_v45 = vld [vmem:[%s19631_s3 + $0x1c8] sm:$0xff]  ;;  %v13025_v49 = vld [vmem:[%s19631_s3 + $0x190] sm:$0xff]  ;;  %v13035_v56 = vld [vmem:[%s19631_s3 + $0x1e0] sm:$0xff] }
 0x956   : > { %v9070_v41 = vpop.f32.mrf.mxu0  ;;  %v17553_v27 = vmax.f32 %v9153_v29, 0.0  ;;  %v17566_v54 = vmax.f32 %v9151_v46, 0.0  ;;  %v13036_v51 = vld [vmem:[%s19631_s3 + $0x1e8] sm:$0xff] }
 0x957   : > { %v9112_v47 = vadd.f32 %v9070_v41, %v8764_v18  ;;  %9476 = vmatpush.msrb.mxu2 %v17458_v62  ;;  %v9149_v13 = vadd.f32 %v17044_v58, %v9105_v6  ;;  %v12998_v18 = vld [vmem:[%s19631_s3 + $0x100] sm:$0xff]  ;;  %v13001_v41 = vld [vmem:[%s19631_s3 + $0x118] sm:$0xff] }
 0x959   : > { %v9156_v12 = vadd.f32 %v17044_v58, %v9112_v47  ;;  %9477 = vmatpush.msrb.mxu2 %v17463_v43  ;;  %v17574_v5 = vmax.f32 %v9149_v13, 0.0  ;;  %v9199_v58 = vld [vmem:[%s19631_s3 + $0x10] sm:$0xff]  ;;  %v9267_v47 = vpop.f32.mrf.mxu1  ;;  %v13028_v13 = vld [vmem:[%s19631_s3 + $0x1a8] sm:$0xff] }
 0x95b   : > { %v17532_v7 = vmax.f32 %v9156_v12, 0.0  ;;  %9478 = vmatpush.msrb.mxu2 %v17466_v63 }
 0x95c   : > { %9319 = vmatmul.f32.gmra.mxu2 %v9210_v17  ;;  %v13030_v17 = vld [vmem:[%s19631_s3 + $0x1b8] sm:$0xff] }
 0x95d   : > { %9643 = vmatpush.msra.mxu2 %v17340_v16  ;;  %12981 = vmatpush.msk.msra.mxu3 %vm9246_vm1, %v17532_v7 }
 0x95f   : > { %9644 = vmatpush.msra.mxu2 %v17352_v11  ;;  %9341 = vmatpush.msra.mxu3 %v17539_v1 }
 0x961   : > { %9645 = vmatpush.msra.mxu2 %v17364_v4  ;;  %9342 = vmatpush.msra.mxu3 %v17547_v32  ;;  %v9270_v19 = vpop.f32.mrf.mxu1 }
 0x963   : > { %9646 = vmatpush.msra.mxu2 %v17376_v23  ;;  %9343 = vmatpush.msra.mxu3 %v17553_v27 }
 0x964   : > { %9322 = vmatmul.f32.gmra.mxu2 %v9213_v26 }
 0x965   : > { %9647 = vmatpush.msra.mxu2 %v17386_v60  ;;  %9344 = vmatpush.msra.mxu3 %v17561_v44 }
 0x967   : > { %9648 = vmatpush.msra.mxu2 %v17398_v35  ;;  %9345 = vmatpush.msra.mxu3 %v17566_v54 }
 0x969   : > { %9649 = vmatpush.msra.mxu2 %v19780_v21  ;;  %9346 = vmatpush.msra.mxu3 %v17570_v40  ;;  %v9273_v20 = vpop.f32.mrf.mxu1 }
 0x96b   : > { %9650 = vmatpush.msra.mxu2 %v19781_v55  ;;  %9347 = vmatpush.msra.mxu3 %v17574_v5 }
 0x96c   : > { %12982 = vmatmul.msk.f32.vlgmr.msra.gmra.mxu3 %vm9221_vm2, %v9199_v58  ;;  %9325 = vmatmul.f32.gmra.mxu2 %v9216_v9  ;;  %v13042_v9 = vld [vmem:[%s19631_s3 + $0x218] sm:$0xff] }
 0x96d   : > { %9651 = vmatpush.msra.mxu2 %v17427_v39  ;;  %13014 = vmatpush.msk.msrb.mxu3 %vm9246_vm1, %v17532_v7 }
 0x96f   : > { %9652 = vmatpush.msra.mxu2 %v17433_v0  ;;  %9513 = vmatpush.msrb.mxu3 %v17539_v1 }
 0x971   : > { %9653 = vmatpush.msra.mxu2 %v17441_v48  ;;  %9514 = vmatpush.msrb.mxu3 %v17547_v32  ;;  %v9276_v29 = vpop.f32.mrf.mxu1 }
 0x973   : > { %9654 = vmatpush.msra.mxu2 %v17448_v22  ;;  %9515 = vmatpush.msrb.mxu3 %v17553_v27 }
 0x974   : > { %12983 = vmatmul.msk.f32.gmra.mxu3 %vm9221_vm2, %v9202_v30  ;;  %9328 = vmatmul.f32.gmra.mxu2 %v9219_v14  ;;  %v13031_v30 = vld [vmem:[%s19631_s3 + $0x1c0] sm:$0xff] }
 0x975   : > { %9655 = vmatpush.msra.mxu2 %v17452_v2  ;;  %9516 = vmatpush.msrb.mxu3 %v17561_v44 }
 0x977   : > { %9656 = vmatpush.msra.mxu2 %v17458_v62  ;;  %9517 = vmatpush.msrb.mxu3 %v17566_v54 }
 0x979   : > { %9657 = vmatpush.msra.mxu2 %v17463_v43  ;;  %9518 = vmatpush.msrb.mxu3 %v17570_v40  ;;  %v9279_v6 = vpop.f32.mrf.mxu1 }
 0x97b   : > { %9658 = vmatpush.msra.mxu2 %v17466_v63  ;;  %9519 = vmatpush.msrb.mxu3 %v17574_v5 }
 0x97c   : > { %12984 = vmatmul.msk.f32.gmra.mxu3 %vm9221_vm2, %v9205_v61  ;;  %9479 = vmatmul.f32.vlgmr.msrb.gmra.mxu2 %v12991_v31 }
 0x97d   : > { %13047 = vmatpush.msk.msra.mxu3 %vm9246_vm1, %v17532_v7  ;;  %9823 = vmatpush.msrb.mxu2 %v17340_v16  ;;  %v9211_v16 = vld [vmem:[%s19631_s3 + $0x70] sm:$0xff] }
 0x97f   : > { %9693 = vmatpush.msra.mxu3 %v17539_v1  ;;  %9824 = vmatpush.msrb.mxu2 %v17352_v11  ;;  %v9214_v11 = vld [vmem:[%s19631_s3 + $0x88] sm:$0xff] }
 0x981   : > { %9694 = vmatpush.msra.mxu3 %v17547_v32  ;;  %9825 = vmatpush.msrb.mxu2 %v17364_v4  ;;  %v12994_v4 = vld [vmem:[%s19631_s3 + $0xe0] sm:$0xff] }
 0x983   : > { %9695 = vmatpush.msra.mxu3 %v17553_v27  ;;  %9826 = vmatpush.msrb.mxu2 %v17376_v23  ;;  %v12993_v23 = vld [vmem:[%s19631_s3 + $0xd8] sm:$0xff] }
 0x984   : > { %12985 = vmatmul.msk.f32.gmra.mxu3 %vm9221_vm2, %v9208_v33  ;;  %9482 = vmatmul.f32.gmra.mxu2 %v12994_v4  ;;  %v13045_v4 = vld [vmem:[%s19631_s3 + $0x230] sm:$0xff] }
 0x985   : > { %9696 = vmatpush.msra.mxu3 %v17561_v44  ;;  %9827 = vmatpush.msrb.mxu2 %v17386_v60  ;;  %v9217_v60 = vld [vmem:[%s19631_s3 + $0xa0] sm:$0xff] }
 0x986   : > { %9441 = vmatmul.f32.gmra.mxu1 %v12993_v23  ;;  %v13034_v23 = vld [vmem:[%s19631_s3 + $0x1d8] sm:$0xff] }
 0x987   : > { %9697 = vmatpush.msra.mxu3 %v17566_v54  ;;  %9828 = vmatpush.msrb.mxu2 %v17398_v35  ;;  %v12997_v35 = vld [vmem:[%s19631_s3 + $0xf8] sm:$0xff] }
 0x989   : > { %9698 = vmatpush.msra.mxu3 %v17570_v40  ;;  %9829 = vmatpush.msrb.mxu2 %v19780_v21 }
 0x98b   : > { %9699 = vmatpush.msra.mxu3 %v17574_v5  ;;  %9830 = vmatpush.msrb.mxu2 %v19781_v55  ;;  %v13038_v55 = vld [vmem:[%s19631_s3 + $0x1f8] sm:$0xff] }
 0x98c   : > { %12986 = vmatmul.msk.f32.gmra.mxu3 %vm9221_vm2, %v9211_v16  ;;  %9485 = vmatmul.f32.gmra.mxu2 %v12997_v35 }
 0x98d   : > { %9831 = vmatpush.msrb.mxu2 %v17427_v39  ;;  %v12996_v39 = vld [vmem:[%s19631_s3 + $0xf0] sm:$0xff] }
 0x98e   : > { %9444 = vmatmul.f32.gmra.mxu1 %v12996_v39 }
 0x98f   : > { %9832 = vmatpush.msrb.mxu2 %v17433_v0  ;;  %v13000_v0 = vld [vmem:[%s19631_s3 + $0x110] sm:$0xff] }
 0x991   : > { %9833 = vmatpush.msrb.mxu2 %v17441_v48  ;;  %v9220_v48 = vld [vmem:[%s19631_s3 + $0xb8] sm:$0xff] }
 0x993   : > { %9834 = vmatpush.msrb.mxu2 %v17448_v22  ;;  %v12999_v22 = vld [vmem:[%s19631_s3 + $0x108] sm:$0xff] }
 0x994   : > { %12987 = vmatmul.msk.f32.gmra.mxu3 %vm9221_vm2, %v9214_v11  ;;  %9488 = vmatmul.f32.gmra.mxu2 %v13000_v0  ;;  %v13041_v11 = vld [vmem:[%s19631_s3 + $0x210] sm:$0xff] }
 0x995   : > { %9835 = vmatpush.msrb.mxu2 %v17452_v2  ;;  %v13003_v2 = vld [vmem:[%s19631_s3 + $0x128] sm:$0xff] }
 0x996   : > { %9447 = vmatmul.f32.gmra.mxu1 %v12999_v22  ;;  %v13044_v22 = vld [vmem:[%s19631_s3 + $0x228] sm:$0xff] }
 0x997   : > { %9836 = vmatpush.msrb.mxu2 %v17458_v62  ;;  %v12992_v62 = vld [vmem:[%s19631_s3 + $0xd0] sm:$0xff] }
 0x999   : > { %9837 = vmatpush.msrb.mxu2 %v17463_v43  ;;  %v13002_v43 = vld [vmem:[%s19631_s3 + $0x120] sm:$0xff] }
 0x99b   : > { %9838 = vmatpush.msrb.mxu2 %v17466_v63  ;;  %v13006_v63 = vld [vmem:[%s19631_s3 + $0x140] sm:$0xff] }
 0x99c   : > { %12988 = vmatmul.msk.f32.gmra.mxu3 %vm9221_vm2, %v9217_v60  ;;  %9491 = vmatmul.f32.gmra.mxu2 %v13003_v2  ;;  %v13057_v2 = vld [vmem:[%s19631_s3 + $0x248] sm:$0xff] }
 0x99e   : > { %9450 = vmatmul.f32.gmra.mxu1 %v13002_v43 }
 0x9a4   : > { %12989 = vmatmul.msk.f32.gmra.mxu3 %vm9221_vm2, %v9220_v48  ;;  %9494 = vmatmul.f32.gmra.mxu2 %v13006_v63 }
 0x9a6   : > { %9453 = vmatmul.f32.gmra.mxu1 %v13005_v8 }
 0x9ac   : > { %13015 = vmatmul.msk.f32.vlgmr.msrb.gmra.mxu3 %vm9221_vm2, %v12992_v62  ;;  %9497 = vmatmul.f32.gmra.mxu2 %v13009_v28  ;;  %v13037_v62 = vld [vmem:[%s19631_s3 + $0x1f0] sm:$0xff] }
 0x9ad   : > { %13080 = vmatpush.msk.msrb.mxu3 %vm9246_vm1, %v17532_v7  ;;  %v13029_v7 = vld [vmem:[%s19631_s3 + $0x1b0] sm:$0xff] }
 0x9ae   : > { %9456 = vmatmul.f32.gmra.mxu1 %v13008_v3  ;;  %v13040_v3 = vld [vmem:[%s19631_s3 + $0x208] sm:$0xff] }
 0x9af   : > { %9873 = vmatpush.msrb.mxu3 %v17539_v1 }
 0x9b1   : > { %9874 = vmatpush.msrb.mxu3 %v17547_v32 }
 0x9b3   : > { %9875 = vmatpush.msrb.mxu3 %v17553_v27 }
 0x9b4   : > { %13016 = vmatmul.msk.f32.gmra.mxu3 %vm9221_vm2, %v12995_v53  ;;  %9500 = vmatmul.f32.gmra.mxu2 %v13012_v38  ;;  %v13060_v38 = vld [vmem:[%s19631_s3 + $0x260] sm:$0xff] }
 0x9b5   : > { %9876 = vmatpush.msrb.mxu3 %v17561_v44  ;;  %v13039_v44 = vld [vmem:[%s19631_s3 + $0x200] sm:$0xff] }
 0x9b6   : > { %9459 = vmatmul.f32.gmra.mxu1 %v13011_v36 }
 0x9b7   : > { %9877 = vmatpush.msrb.mxu3 %v17566_v54 }
 0x9b9   : > { %9878 = vmatpush.msrb.mxu3 %v17570_v40  ;;  %v9282_v40 = vpop.f32.mrf.mxu1 }
 0x9bb   : > { %9879 = vmatpush.msrb.mxu3 %v17574_v5 }
 0x9bc   : > { %13017 = vmatmul.msk.f32.gmra.mxu3 %vm9221_vm2, %v12998_v18  ;;  %9659 = vmatmul.f32.vlgmr.msra.gmra.mxu2 %v13024_v59  ;;  %v13056_v18 = vld [vmem:[%s19631_s3 + $0x240] sm:$0xff] }
 0x9be   : > { %9618 = vmatmul.f32.vlgmr.msra.gmra.mxu1 %v13023_v42  ;;  %v13043_v42 = vld [vmem:[%s19631_s3 + $0x220] sm:$0xff] }
 0x9bf   : > { %v9308_v24 = vpop.f32.mrf.mxu2 }
 0x9c0   : > { %v9309_v32 = vadd.f32 %v9308_v24, %v9267_v47  ;;  %v13059_v24 = vld [vmem:[%s19631_s3 + $0x258] sm:$0xff] }
 0x9c1   : > { %v9285_v61 = vpop.f32.mrf.mxu1 }
 0x9c4   : > { %13018 = vmatmul.msk.f32.gmra.mxu3 %vm9221_vm2, %v13001_v41  ;;  %9662 = vmatmul.f32.gmra.mxu2 %v13027_v50  ;;  %v13063_v50 = vld [vmem:[%s19631_s3 + $0x278] sm:$0xff] }
 0x9c6   : > { %9621 = vmatmul.f32.gmra.mxu1 %v13026_v34 }
 0x9c7   : > { %v9311_v12 = vpop.f32.mrf.mxu2 }
 0x9c8   : > { %v9312_v54 = vadd.f32 %v9311_v12, %v9270_v19 }
 0x9c9   : > { %v9288_v35 = vpop.f32.mrf.mxu1 }
 0x9cc   : > { %13019 = vmatmul.msk.f32.gmra.mxu3 %vm9221_vm2, %v13004_v25  ;;  %9665 = vmatmul.f32.gmra.mxu2 %v13030_v17 }
 0x9ce   : > { %9624 = vmatmul.f32.gmra.mxu1 %v13029_v7 }
 0x9cf   : > { %v9314_v37 = vpop.f32.mrf.mxu2 }
 0x9d0   : > { %v9315_v14 = vadd.f32 %v9314_v37, %v9273_v20  ;;  %v13046_v20 = vld [vmem:[%s19631_s3 + $0x238] sm:$0xff]  ;;  %v13066_v37 = vld [vmem:[%s19631_s3 + $0x290] sm:$0xff] }
 0x9d1   : > { %v17824_v63 = vpop.f32.mrf.mxu1 }
 0x9d4   : > { %13020 = vmatmul.msk.f32.gmra.mxu3 %vm9221_vm2, %v13007_v57  ;;  %9668 = vmatmul.f32.gmra.mxu2 %v13033_v10 }
 0x9d6   : > { %9627 = vmatmul.f32.gmra.mxu1 %v13032_v45  ;;  %v13065_v45 = vld [vmem:[%s19631_s3 + $0x288] sm:$0xff] }
 0x9d7   : > { %v9317_v1 = vpop.f32.mrf.mxu2 }
 0x9d8   : > { %v9318_v60 = vadd.f32 %v9317_v1, %v9276_v29 }
 0x9dc   : > { %13021 = vmatmul.msk.f32.gmra.mxu3 %vm9221_vm2, %v13010_v15  ;;  %9671 = vmatmul.f32.gmra.mxu2 %v13036_v51  ;;  %v13062_v15 = vld [vmem:[%s19631_s3 + $0x270] sm:$0xff] }
 0x9dd   : > { %v13058_v51 = vld [vmem:[%s19631_s3 + $0x250] sm:$0xff] }
 0x9de   : > { %9630 = vmatmul.f32.gmra.mxu1 %v13035_v56  ;;  %v13061_v56 = vld [vmem:[%s19631_s3 + $0x268] sm:$0xff] }
 0x9df   : > { %v9320_v46 = vpop.f32.mrf.mxu2 }
 0x9e0   : > { %v9321_v43 = vadd.f32 %v9320_v46, %v9279_v6 }
 0x9e4   : > { %13022 = vmatmul.msk.f32.gmra.mxu3 %vm9221_vm2, %v13013_v52  ;;  %9674 = vmatmul.f32.gmra.mxu2 %v13039_v44  ;;  %v13072_v44 = vld [vmem:[%s19631_s3 + $0x2c0] sm:$0xff] }
 0x9e6   : > { %9633 = vmatmul.f32.gmra.mxu1 %v13038_v55  ;;  %v13075_v55 = vld [vmem:[%s19631_s3 + $0x2d8] sm:$0xff] }
 0x9e7   : > { %v9323_v21 = vpop.f32.mrf.mxu2 }
 0x9e8   : > { %v9324_v41 = vadd.f32 %v9323_v21, %v9282_v40  ;;  %v13071_v21 = vld [vmem:[%s19631_s3 + $0x2b8] sm:$0xff] }
 0x9ec   : > { %13048 = vmatmul.msk.f32.vlgmr.msra.gmra.mxu3 %vm9221_vm2, %v13025_v49  ;;  %9677 = vmatmul.f32.gmra.mxu2 %v13042_v9  ;;  %v13069_v49 = vld [vmem:[%s19631_s3 + $0x2a8] sm:$0xff] }
 0x9ee   : > { %9636 = vmatmul.f32.gmra.mxu1 %v13041_v11 }
 0x9ef   : > { %v9349_v27 = vpop.f32.mrf.mxu3  ;;  %v9326_v31 = vpop.f32.mrf.mxu2 }
 0x9f0   : > { %v17776_v26 = vadd.f32 %v9349_v27, %v9309_v32  ;;  %v9327_v57 = vadd.f32 %v9326_v31, %v9285_v61  ;;  %v13068_v27 = vld [vmem:[%s19631_s3 + $0x2a0] sm:$0xff]  ;;  %v13074_v61 = vld [vmem:[%s19631_s3 + $0x2d0] sm:$0xff]  ;;  %v13067_v31 = vld [vmem:[%s19631_s3 + $0x298] sm:$0xff] }
 0x9f4   : > { %13049 = vmatmul.msk.f32.gmra.mxu3 %vm9221_vm2, %v13028_v13  ;;  %9680 = vmatmul.f32.gmra.mxu2 %v13045_v4 }
 0x9f6   : > { %9639 = vmatmul.f32.gmra.mxu1 %v13044_v22 }
 0x9f7   : > { %v9352_v5 = vpop.f32.mrf.mxu3  ;;  %v9329_v39 = vpop.f32.mrf.mxu2 }
 0x9f8   : > { %v17788_v58 = vadd.f32 %v9352_v5, %v9312_v54  ;;  %v9330_v7 = vadd.f32 %v9329_v39, %v9288_v35  ;;  %v13064_v5 = vld [vmem:[%s19631_s3 + $0x280] sm:$0xff]  ;;  %v13070_v35 = vld [vmem:[%s19631_s3 + $0x2b0] sm:$0xff] }
 0x9fc   : > { %13050 = vmatmul.msk.f32.gmra.mxu3 %vm9221_vm2, %v13031_v30  ;;  %9839 = vmatmul.f32.vlgmr.msrb.gmra.mxu2 %v13057_v2  ;;  %v13073_v2 = vld [vmem:[%s19631_s3 + $0x2c8] sm:$0xff] }
 0x9fe   : > { %9798 = vmatmul.f32.vlgmr.msrb.gmra.mxu1 %v13056_v18  ;;  %v13076_v18 = vld [vmem:[%s19631_s3 + $0x2e0] sm:$0xff] }
 0x9ff   : > { %v9355_v33 = vpop.f32.mrf.mxu3  ;;  %v17826_v53 = vpop.f32.mrf.mxu2 }
 0xa00   : > { %v17800_v16 = vadd.f32 %v9355_v33, %v9315_v14  ;;  %v13078_v33 = vld [vmem:[%s19631_s3 + $0x2f0] sm:$0xff] }
 0xa03   : > { %v17840_v36 = vpop.f32.mrf.mxu1 }
 0xa04   : > { %13051 = vmatmul.msk.f32.gmra.mxu3 %vm9221_vm2, %v13034_v23  ;;  %9842 = vmatmul.f32.gmra.mxu2 %v13060_v38 }
 0xa06   : > { %9801 = vmatmul.f32.gmra.mxu1 %v13059_v24 }
 0xa07   : > { %v9358_v0 = vpop.f32.mrf.mxu3  ;;  %v17842_v59 = vpop.f32.mrf.mxu2 }
 0xa08   : > { %v17812_v48 = vadd.f32 %v9358_v0, %v9318_v60  ;;  %v13077_v60 = vld [vmem:[%s19631_s3 + $0x2e8] sm:$0xff] }
 0xa0b   : > { %v17856_v19 = vpop.f32.mrf.mxu1 }
 0xa0c   : > { %13052 = vmatmul.msk.f32.gmra.mxu3 %vm9221_vm2, %v13037_v62  ;;  %9845 = vmatmul.f32.gmra.mxu2 %v13063_v50 }
 0xa0e   : > { %9804 = vmatmul.f32.gmra.mxu1 %v13062_v15 }
 0xa0f   : > { %v9361_v8 = vpop.f32.mrf.mxu3  ;;  %v17858_v12 = vpop.f32.mrf.mxu2 }
 0xa10   : > { %v17828_v28 = vadd.f32 %v9361_v8, %v9321_v43 }
 0xa13   : > { %v17872_v10 = vpop.f32.mrf.mxu1 }
 0xa14   : > { %13053 = vmatmul.msk.f32.gmra.mxu3 %vm9221_vm2, %v13040_v3  ;;  %9848 = vmatmul.f32.gmra.mxu2 %v13066_v37  ;;  %v9924_v37 = vld [vmem:[%s19632_s4 + $0x58] sm:$0xff] }
 0xa15   : > { %9954 = vmatpush.msra.mxu1 %v9924_v37  ;;  %v9913_v37 = vld [vmem:[%s19632_s4] sm:$0xff] }
 0xa16   : > { %9807 = vmatmul.f32.gmra.mxu1 %v13065_v45 }
 0xa17   : > { %v9364_v25 = vpop.f32.mrf.mxu3  ;;  %v17874_v52 = vpop.f32.mrf.mxu2 }
 0xa18   : > { %v17844_v47 = vadd.f32 %v9364_v25, %v9324_v41  ;;  %v13079_v25 = vld [vmem:[%s19631_s3 + $0x2f8] sm:$0xff] }
 0xa1b   : > { %v17888_v32 = vpop.f32.mrf.mxu1 }
 0xa1c   : > { %13054 = vmatmul.msk.f32.gmra.mxu3 %vm9221_vm2, %v13043_v42  ;;  %9851 = vmatmul.f32.gmra.mxu2 %v13069_v49  ;;  %v9922_v49 = vld [vmem:[%s19632_s4 + $0x48] sm:$0xff] }
 0xa1e   : > { %9810 = vmatmul.f32.gmra.mxu1 %v13068_v27  ;;  %v9921_v27 = vld [vmem:[%s19632_s4 + $0x40] sm:$0xff] }
 0xa1f   : > { %v9367_v34 = vpop.f32.mrf.mxu3  ;;  %v17890_v6 = vpop.f32.mrf.mxu2 }
 0xa20   : > { %v17860_v17 = vadd.f32 %v9367_v34, %v9327_v57 }
 0xa22   : > { %19782 = vst [vmem:[#allocation24_spill] sm:$0xff] %v17860_v17 }
 0xa23   : > { %v17904_v13 = vpop.f32.mrf.mxu1 }
 0xa24   : > { %13055 = vmatmul.msk.f32.gmra.mxu3 %vm9221_vm2, %v13046_v20  ;;  %9854 = vmatmul.f32.gmra.mxu2 %v13072_v44 }
 0xa26   : > { %9813 = vmatmul.f32.gmra.mxu1 %v13071_v21 }
 0xa27   : > { %v9370_v29 = vpop.f32.mrf.mxu3  ;;  %v17906_v54 = vpop.f32.mrf.mxu2 }
 0xa28   : > { %v17876_v1 = vadd.f32 %v9370_v29, %v9330_v7 }
 0xa2a   : > { %19783 = vst [vmem:[#allocation27_spill] sm:$0xff] %v17876_v1 }
 0xa2b   : > { %v17920_v9 = vpop.f32.mrf.mxu1 }
 0xa2c   : > { %13081 = vmatmul.msk.f32.vlgmr.msrb.gmra.mxu3 %vm9221_vm2, %v13058_v51  ;;  %9857 = vmatmul.f32.gmra.mxu2 %v13075_v55  ;;  %v9923_v51 = vld [vmem:[%s19632_s4 + $0x50] sm:$0xff] }
 0xa2d   : > { %9955 = vmatpush.msra.mxu1 %v9923_v51  ;;  %v9919_v55 = vld [vmem:[%s19632_s4 + $0x30] sm:$0xff] }
 0xa2e   : > { %9816 = vmatmul.f32.gmra.mxu1 %v13074_v61  ;;  %v9918_v61 = vld [vmem:[%s19632_s4 + $0x28] sm:$0xff] }
 0xa2f   : > { %v17892_v46 = vpop.f32.mrf.mxu3  ;;  %v17922_v30 = vpop.f32.mrf.mxu2  ;;  %9956 = vmatpush.msra.mxu1 %v9922_v49 }
 0xa31   : > { %9957 = vmatpush.msra.mxu1 %v9921_v27 }
 0xa33   : > { %v17936_v11 = vpop.f32.mrf.mxu1 }
 0xa34   : > { %13082 = vmatmul.msk.f32.gmra.mxu3 %vm9221_vm2, %v13061_v56  ;;  %9860 = vmatmul.f32.gmra.mxu2 %v13078_v33  ;;  %19784 = vst [vmem:[#allocation52_spill] sm:$0xff] %v17936_v11  ;;  %v9920_v56 = vld [vmem:[%s19632_s4 + $0x38] sm:$0xff] }
 0xa35   : > { %9958 = vmatpush.msra.mxu1 %v9920_v56  ;;  %v9916_v33 = vld [vmem:[%s19632_s4 + $0x18] sm:$0xff] }
 0xa36   : > { %9819 = vmatmul.f32.gmra.mxu1 %v13077_v60 }
 0xa37   : > { %v17908_v40 = vpop.f32.mrf.mxu3  ;;  %v17938_v4 = vpop.f32.mrf.mxu2  ;;  %9959 = vmatpush.msra.mxu1 %v9919_v55 }
 0xa38   : > { %19785 = vst [vmem:[#allocation56_spill] sm:$0xff] %v17938_v4 }
 0xa39   : > { %9960 = vmatpush.msra.mxu1 %v9918_v61 }
 0xa3b   : > { %v17949_v39 = vpop.f32.mrf.mxu1 }
 0xa3c   : > { %13083 = vmatmul.msk.f32.gmra.mxu3 %vm9221_vm2, %v13064_v5 }
 0xa3f   : > { %v17924_v14 = vpop.f32.mrf.mxu3  ;;  %v9660_v0 = vpop.f32.mrf.mxu2 }
 0xa43   : > { %v17957_v62 = vpop.f32.mrf.mxu1 }
 0xa44   : > { %13084 = vmatmul.msk.f32.gmra.mxu3 %vm9221_vm2, %v13067_v31  ;;  %v9917_v31 = vld [vmem:[%s19632_s4 + $0x20] sm:$0xff] }
 0xa45   : > { %9961 = vmatpush.msra.mxu1 %v9917_v31  ;;  %v9481_v31 = vadd.f32 %v17826_v53, %v17824_v63 }
 0xa47   : > { %v17940_v23 = vpop.f32.mrf.mxu3  ;;  %v17959_v43 = vpop.f32.mrf.mxu2  ;;  %9962 = vmatpush.msra.mxu1 %v9916_v33 }
 0xa48   : > { %v9664_v63 = vadd.f32 %v17959_v43, %v17957_v62 }
 0xa4b   : > { %v17967_v3 = vpop.f32.mrf.mxu1 }
 0xa4c   : > { %13085 = vmatmul.msk.f32.gmra.mxu3 %vm9221_vm2, %v13070_v35  ;;  %v9915_v35 = vld [vmem:[%s19632_s4 + $0x10] sm:$0xff] }
 0xa4d   : > { %9963 = vmatpush.msra.mxu1 %v9915_v35  ;;  %v9661_v35 = vadd.f32 %v9660_v0, %v17949_v39 }
 0xa4f   : > { %v17951_v22 = vpop.f32.mrf.mxu3  ;;  %v17971_v41 = vpop.f32.mrf.mxu2 }
 0xa53   : > { %v17979_v42 = vpop.f32.mrf.mxu1 }
 0xa54   : > { %13086 = vmatmul.msk.f32.gmra.mxu3 %vm9221_vm2, %v13073_v2 }
 0xa57   : > { %v17961_v8 = vpop.f32.mrf.mxu3  ;;  %v17981_v50 = vpop.f32.mrf.mxu2 }
 0xa5b   : > { %v17983_v34 = vpop.f32.mrf.mxu1 }
 0xa5c   : > { %13087 = vmatmul.msk.f32.gmra.mxu3 %vm9221_vm2, %v13076_v18 }
 0xa5f   : > { %v17969_v38 = vpop.f32.mrf.mxu3  ;;  %v17985_v15 = vpop.f32.mrf.mxu2 }
 0xa63   : > { %v17990_v7 = vpop.f32.mrf.mxu1 }
 0xa64   : > { %13088 = vmatmul.msk.f32.gmra.mxu3 %vm9221_vm2, %v13079_v25  ;;  %v9914_v25 = vld [vmem:[%s19632_s4 + $0x8] sm:$0xff] }
 0xa65   : > { %9964 = vmatpush.msra.mxu1 %v9914_v25  ;;  %v9522_v25 = vadd.f32 %v17892_v46, %v9481_v31 }
 0xa67   : > { %v17977_v24 = vpop.f32.mrf.mxu3  ;;  %v17992_v29 = vpop.f32.mrf.mxu2  ;;  %9965 = vmatpush.msra.mxu1 %v9913_v37  ;;  %v9545_v37 = vmax.f32 %v17776_v26, %v9522_v25  ;;  %v10008_v25 = vld [vmem:[%s19633_s5 + $0x48] sm:$0xff] }
 0xa68   : > { %19786 = vst [vmem:[#allocation59_spill] sm:$0xff] %v17977_v24 }
 0xa6b   : > { %v18008_v44 = vpop.f32.mrf.mxu1 }
 0xa6f   : > { %v9701_v57 = vpop.f32.mrf.mxu3  ;;  %v18012_v5 = vpop.f32.mrf.mxu2 }
 0xa70   : > { %v9702_v1 = vadd.f32 %v9701_v57, %v9661_v35 }
 0xa72   : > { %v9725_v17 = vmax.f32 %v9545_v37, %v9702_v1  ;;  %v13175_v37 = vld [vmem:[%s19633_s5 + $0x230] sm:$0xff] }
 0xa73   : > { %v18031_v2 = vpop.f32.mrf.mxu1 }
 0xa74   : > { %19787 = vst [vmem:[#allocation65_spill] sm:$0xff] %v18031_v2 }
 0xa77   : > { %v9704_v20 = vpop.f32.mrf.mxu3  ;;  %v18033_v18 = vpop.f32.mrf.mxu2 }
 0xa78   : > { %19788 = vst [vmem:[#allocation6_spill] sm:$0xff] %v18033_v18  ;;  %v9484_v18 = vadd.f32 %v17842_v59, %v17840_v36  ;;  %v9705_v46 = vadd.f32 %v9704_v20, %v9664_v63  ;;  %v9487_v59 = vadd.f32 %v17858_v12, %v17856_v19  ;;  %v9490_v12 = vadd.f32 %v17874_v52, %v17872_v10  ;;  %v13108_v63 = vld [vmem:[%s19633_s5 + $0xb8] sm:$0xff] }
 0xa79   : > { %v9493_v52 = vadd.f32 %v17890_v6, %v17888_v32  ;;  %v10010_v32 = vld [vmem:[%s19633_s5 + $0x58] sm:$0xff]  ;;  %v10009_v6 = vld [vmem:[%s19633_s5 + $0x50] sm:$0xff]  ;;  %10048 = vmatpush.msra.mxu2 %v13108_v63  ;;  %v19795_v63 = vld [vmem:[#allocation27_spill] sm:$0xff] }
 0xa7a   : > { %v9525_v39 = vadd.f32 %v17908_v40, %v9484_v18  ;;  %10085 = vmatpush.msra.mxu3 %v10010_v32 }
 0xa7b   : > { %v9799_v49 = vpop.f32.mrf.mxu1 }
 0xa7c   : > { %v9546_v36 = vmax.f32 %v17788_v58, %v9525_v39  ;;  %10086 = vmatpush.msra.mxu3 %v10009_v6  ;;  %v9676_v39 = vadd.f32 %v17992_v29, %v17990_v7  ;;  %v13106_v7 = vld [vmem:[%s19633_s5 + $0xa8] sm:$0xff] }
 0xa7d   : > { %v13158_v29 = vld [vmem:[%s19633_s5 + $0x1c8] sm:$0xff] }
 0xa7e   : > { %v9726_v57 = vmax.f32 %v9546_v36, %v9705_v46  ;;  %v13107_v36 = vld [vmem:[%s19633_s5 + $0xb0] sm:$0xff]  ;;  %10087 = vmatpush.msra.mxu3 %v10008_v25 }
 0xa7f   : > { %v17994_v45 = vpop.f32.mrf.mxu3  ;;  %v9840_v27 = vpop.f32.mrf.mxu2  ;;  %10049 = vmatpush.msra.mxu2 %v13107_v36  ;;  %v13155_v36 = vld [vmem:[%s19633_s5 + $0x1b0] sm:$0xff] }
 0xa80   : > { %v9841_v24 = vadd.f32 %v9840_v27, %v9799_v49 }
 0xa81   : > { %10050 = vmatpush.msra.mxu2 %v13106_v7  ;;  %v13169_v7 = vld [vmem:[%s19633_s5 + $0x200] sm:$0xff] }
 0xa83   : > { %v9802_v55 = vpop.f32.mrf.mxu1 }
 0xa87   : > { %v18010_v21 = vpop.f32.mrf.mxu3  ;;  %v9843_v61 = vpop.f32.mrf.mxu2 }
 0xa88   : > { %v9844_v26 = vadd.f32 %v9843_v61, %v9802_v55 }
 0xa8b   : > { %v9805_v2 = vpop.f32.mrf.mxu1 }
 0xa8f   : > { %v18026_v60 = vpop.f32.mrf.mxu3  ;;  %v9846_v11 = vpop.f32.mrf.mxu2 }
 0xa90   : > { %v9847_v58 = vadd.f32 %v9846_v11, %v9805_v2  ;;  %v9534_v2 = vadd.f32 %v17951_v22, %v9493_v52  ;;  %v13176_v22 = vld [vmem:[%s19633_s5 + $0x238] sm:$0xff]  ;;  %v10001_v52 = vld [vmem:[%s19633_s5 + $0x10] sm:$0xff] }
 0xa91   : > { %10315 = vmatpush.msrb.mxu1 %v13176_v22  ;;  %v19794_v22 = vld [vmem:[#allocation59_spill] sm:$0xff] }
 0xa93   : > { %v9808_v43 = vpop.f32.mrf.mxu1  ;;  %10316 = vmatpush.msrb.mxu1 %v13175_v37 }
 0xa97   : > { %v18041_v51 = vpop.f32.mrf.mxu3  ;;  %v9849_v40 = vpop.f32.mrf.mxu2 }
 0xa9f   : > { %v18043_v56 = vpop.f32.mrf.mxu3  ;;  %v9852_v55 = vpop.f32.mrf.mxu2 }
 0xaa7   : > { %v18047_v33 = vpop.f32.mrf.mxu3 }
 0xaaf   : > { %v9881_v4 = vpop.f32.mrf.mxu3 }
 0xab0   : > { %v9882_v53 = vadd.f32 %v9881_v4, %v9841_v24  ;;  %v9667_v4 = vadd.f32 %v17971_v41, %v17967_v3  ;;  %v9670_v41 = vadd.f32 %v17981_v50, %v17979_v42 }
 0xab2   : > { %v18057_v0 = vmax.f32 %v9725_v17, %v9882_v53  ;;  %v9528_v17 = vadd.f32 %v17924_v14, %v9487_v59  ;;  %v9708_v20 = vadd.f32 %v17994_v45, %v9667_v4  ;;  %v9531_v14 = vadd.f32 %v17940_v23, %v9490_v12  ;;  %v9811_v45 = vpop.f32.mrf.mxu1  ;;  %v13159_v59 = vld [vmem:[%s19633_s5 + $0x1d0] sm:$0xff]  ;;  %v10006_v4 = vld [vmem:[%s19633_s5 + $0x38] sm:$0xff] }
 0xab3   : > { %v9711_v61 = vadd.f32 %v18010_v21, %v9670_v41  ;;  %v9673_v23 = vadd.f32 %v17985_v15, %v17983_v34  ;;  %v9853_v35 = vadd.f32 %v9852_v55, %v9811_v45  ;;  %v9855_v34 = vpop.f32.mrf.mxu2  ;;  %v9549_v15 = vmax.f32 %v17828_v28, %v9534_v2  ;;  %v13160_v28 = vld [vmem:[%s19633_s5 + $0x1d8] sm:$0xff]  ;;  %v10004_v41 = vld [vmem:[%s19633_s5 + $0x28] sm:$0xff] }
 0xab4   : > { %13089 = vmatmul.msk.f32.vlgmr.msra.gmra.mxu1 %vm9925_vm3, %v18057_v0  ;;  %v9547_v19 = vmax.f32 %v17800_v16, %v9528_v17  ;;  %v9850_v16 = vadd.f32 %v9849_v40, %v9808_v43  ;;  %v9548_v10 = vmax.f32 %v17812_v48, %v9531_v14  ;;  %10266 = vmatpush.msrb.mxu0 %v13160_v28  ;;  %v13105_v43 = vld [vmem:[%s19633_s5 + $0xa0] sm:$0xff] }
 0xab5   : > { %v9714_v21 = vadd.f32 %v18026_v60, %v9673_v23  ;;  %v9496_v60 = vadd.f32 %v17906_v54, %v17904_v13  ;;  %v13174_v13 = vld [vmem:[%s19633_s5 + $0x228] sm:$0xff]  ;;  %v9717_v40 = vadd.f32 %v18041_v51, %v9676_v39  ;;  %v13156_v51 = vld [vmem:[%s19633_s5 + $0x1b8] sm:$0xff]  ;;  %10051 = vmatpush.msra.mxu2 %v13105_v43  ;;  %v13153_v43 = vld [vmem:[%s19633_s5 + $0x1a0] sm:$0xff] }
 0xab6   : > { %v9727_v3 = vmax.f32 %v9547_v19, %v9708_v20  ;;  %v9728_v42 = vmax.f32 %v9548_v10, %v9711_v61  ;;  %10317 = vmatpush.msrb.mxu1 %v13174_v13  ;;  %10267 = vmatpush.msrb.mxu0 %v13159_v59  ;;  %v10005_v20 = vld [vmem:[%s19633_s5 + $0x30] sm:$0xff]  ;;  %v13104_v19 = vld [vmem:[%s19633_s5 + $0x98] sm:$0xff]  ;;  %v9999_v59 = vld [vmem:[%s19633_s5] sm:$0xff] }
 0xab7   : > { %v9884_v1 = vpop.f32.mrf.mxu3  ;;  %v9729_v54 = vmax.f32 %v9549_v15, %v9714_v21  ;;  %10052 = vmatpush.msra.mxu2 %v13104_v19  ;;  %v10002_v10 = vld [vmem:[%s19633_s5 + $0x18] sm:$0xff]  ;;  %v19791_v23 = vld [vmem:[#allocation56_spill] sm:$0xff] }
 0xab8   : > { %v9885_v62 = vadd.f32 %v9884_v1, %v9844_v26  ;;  %v10007_v26 = vld [vmem:[%s19633_s5 + $0x40] sm:$0xff]  ;;  %v9537_v1 = vadd.f32 %v17961_v8, %v9496_v60  ;;  %10268 = vmatpush.msrb.mxu0 %v13158_v29  ;;  %v13102_v29 = vld [vmem:[%s19633_s5 + $0x88] sm:$0xff]  ;;  %v13151_v19 = vld [vmem:[%s19633_s5 + $0x190] sm:$0xff] }
 0xab9   : > { %10088 = vmatpush.msra.mxu3 %v10007_v26  ;;  %v13157_v8 = vld [vmem:[%s19633_s5 + $0x1c0] sm:$0xff]  ;;  %v13103_v26 = vld [vmem:[%s19633_s5 + $0x90] sm:$0xff] }
 0xaba   : > { %v18067_v24 = vmax.f32 %v9726_v57, %v9885_v62  ;;  %v9814_v48 = vpop.f32.mrf.mxu1  ;;  %v13173_v62 = vld [vmem:[%s19633_s5 + $0x220] sm:$0xff]  ;;  %v9550_v12 = vmax.f32 %v17844_v47, %v9537_v1  ;;  %10269 = vmatpush.msrb.mxu0 %v13157_v8  ;;  %v9679_v47 = vadd.f32 %v18012_v5, %v18008_v44  ;;  %10053 = vmatpush.msra.mxu2 %v13103_v26  ;;  %v13154_v1 = vld [vmem:[%s19633_s5 + $0x1a8] sm:$0xff]  ;;  %v13167_v8 = vld [vmem:[%s19633_s5 + $0x1f0] sm:$0xff] }
 0xabb   : > { %v9856_v17 = vadd.f32 %v9855_v34, %v9814_v48  ;;  %10089 = vmatpush.msra.mxu3 %v10006_v4  ;;  %10318 = vmatpush.msrb.mxu1 %v13173_v62  ;;  %v9858_v45 = vpop.f32.mrf.mxu2  ;;  %v19793_v48 = vld [vmem:[#allocation6_spill] sm:$0xff] }
 0xabc   : > { %13090 = vmatmul.msk.f32.gmra.mxu1 %vm9925_vm3, %v18067_v24  ;;  %v9730_v55 = vmax.f32 %v9550_v12, %v9717_v40  ;;  %10270 = vmatpush.msrb.mxu0 %v13156_v51  ;;  %v9720_v44 = vadd.f32 %v18043_v56, %v9679_v47  ;;  %v13168_v4 = vld [vmem:[%s19633_s5 + $0x1f8] sm:$0xff]  ;;  %v13101_v62 = vld [vmem:[%s19633_s5 + $0x80] sm:$0xff]  ;;  %v13098_v12 = vld [vmem:[%s19633_s5 + $0x68] sm:$0xff] }
 0xabd   : > { %10090 = vmatpush.msra.mxu3 %v10005_v20  ;;  %10054 = vmatpush.msra.mxu2 %v13102_v29  ;;  %v13100_v40 = vld [vmem:[%s19633_s5 + $0x78] sm:$0xff]  ;;  %v13166_v20 = vld [vmem:[%s19633_s5 + $0x1e8] sm:$0xff]  ;;  %v13165_v51 = vld [vmem:[%s19633_s5 + $0x1e0] sm:$0xff] }
 0xabe   : > { %10271 = vmatpush.msrb.mxu0 %v13155_v36  ;;  %v13140_v47 = vld [vmem:[%s19633_s5 + $0x158] sm:$0xff]  ;;  %v13121_v26 = vld [vmem:[%s19633_s5 + $0xe0] sm:$0xff] }
 0xabf   : > { %v9887_v18 = vpop.f32.mrf.mxu3  ;;  %10091 = vmatpush.msra.mxu3 %v10004_v41  ;;  %10055 = vmatpush.msra.mxu2 %v13101_v62  ;;  %v13097_v41 = vld [vmem:[%s19633_s5 + $0x60] sm:$0xff]  ;;  %v13216_v29 = vld [vmem:[%s19633_s5 + $0x318] sm:$0xff] }
 0xac0   : > { %v9888_v49 = vadd.f32 %v9887_v18, %v9847_v58  ;;  %v13172_v58 = vld [vmem:[%s19633_s5 + $0x218] sm:$0xff]  ;;  %v9499_v18 = vadd.f32 %v17922_v30, %v17920_v9  ;;  %v10003_v30 = vld [vmem:[%s19633_s5 + $0x20] sm:$0xff]  ;;  %10272 = vmatpush.msrb.mxu0 %v13154_v1 }
 0xac1   : > { %10319 = vmatpush.msrb.mxu1 %v13172_v58  ;;  %10092 = vmatpush.msra.mxu3 %v10003_v30  ;;  %v13099_v58 = vld [vmem:[%s19633_s5 + $0x70] sm:$0xff]  ;;  %v13217_v36 = vld [vmem:[%s19633_s5 + $0x320] sm:$0xff] }
 0xac2   : > { %v18078_v27 = vmax.f32 %v9727_v3, %v9888_v49  ;;  %v9817_v3 = vpop.f32.mrf.mxu1  ;;  %v13171_v49 = vld [vmem:[%s19633_s5 + $0x210] sm:$0xff]  ;;  %v9540_v61 = vadd.f32 %v17969_v38, %v9499_v18  ;;  %10273 = vmatpush.msrb.mxu0 %v13153_v43  ;;  %10056 = vmatpush.msra.mxu2 %v13100_v40  ;;  %v13150_v18 = vld [vmem:[%s19633_s5 + $0x188] sm:$0xff]  ;;  %v13229_v40 = vld [vmem:[%s19633_s5 + $0x360] sm:$0xff] }
 0xac3   : > { %10320 = vmatpush.msrb.mxu1 %v13171_v49  ;;  %v9859_v5 = vadd.f32 %v9858_v45, %v9817_v3  ;;  %10093 = vmatpush.msra.mxu3 %v10002_v10  ;;  %v9861_v34 = vpop.f32.mrf.mxu2  ;;  %v13144_v3 = vld [vmem:[%s19633_s5 + $0x178] sm:$0xff]  ;;  %v13149_v49 = vld [vmem:[%s19633_s5 + $0x180] sm:$0xff]  ;;  %v13142_v45 = vld [vmem:[%s19633_s5 + $0x168] sm:$0xff] }
 0xac4   : > { %13091 = vmatmul.msk.f32.gmra.mxu1 %vm9925_vm3, %v18078_v27  ;;  %10057 = vmatpush.msra.mxu2 %v13099_v58  ;;  %v13139_v30 = vld [vmem:[%s19633_s5 + $0x150] sm:$0xff]  ;;  %v13128_v10 = vld [vmem:[%s19633_s5 + $0x118] sm:$0xff] }
 0xac5   : > { %10094 = vmatpush.msra.mxu3 %v10001_v52  ;;  %v13238_v52 = vld [vmem:[%s19633_s5 + $0x3a8] sm:$0xff]  ;;  %v13119_v43 = vld [vmem:[%s19633_s5 + $0xd0] sm:$0xff] }
 0xac6   : > { %10058 = vmatpush.msra.mxu2 %v13098_v12  ;;  %v13214_v12 = vld [vmem:[%s19633_s5 + $0x308] sm:$0xff] }
 0xac7   : > { %v9890_v11 = vpop.f32.mrf.mxu3 }
 0xac8   : > { %v9891_v50 = vadd.f32 %v9890_v11, %v9850_v16  ;;  %v19789_v11 = vld [vmem:[#allocation24_spill] sm:$0xff]  ;;  %10059 = vmatpush.msra.mxu2 %v13097_v41 }
 0xac9   : > { %v9551_v38 = vmax.f32 %v19789_v11, %v9540_v61  ;;  %v13239_v61 = vld [vmem:[%s19633_s5 + $0x3b0] sm:$0xff] }
 0xaca   : > { %v18089_v31 = vmax.f32 %v9728_v42, %v9891_v50  ;;  %v19790_v42 = vld [vmem:[#allocation52_spill] sm:$0xff]  ;;  %v9820_v6 = vpop.f32.mrf.mxu1  ;;  %10143 = vmatpush.msrb.mxu2 %v13128_v10  ;;  %v13204_v10 = vld [vmem:[%s19633_s5 + $0x2d8] sm:$0xff] }
 0xacb   : > { %v9502_v50 = vadd.f32 %v19791_v23, %v19790_v42  ;;  %v9731_v21 = vmax.f32 %v9551_v38, %v9720_v44  ;;  %v9862_v37 = vadd.f32 %v9861_v34, %v9820_v6  ;;  %v13224_v44 = vld [vmem:[%s19633_s5 + $0x358] sm:$0xff]  ;;  %v13127_v11 = vld [vmem:[%s19633_s5 + $0x110] sm:$0xff]  ;;  %v13137_v42 = vld [vmem:[%s19633_s5 + $0x140] sm:$0xff] }
 0xacc   : > { %13092 = vmatmul.msk.f32.gmra.mxu1 %vm9925_vm3, %v18089_v31  ;;  %v13223_v38 = vld [vmem:[%s19633_s5 + $0x350] sm:$0xff]  ;;  %10144 = vmatpush.msrb.mxu2 %v13127_v11  ;;  %v13237_v23 = vld [vmem:[%s19633_s5 + $0x3a0] sm:$0xff]  ;;  %v13124_v34 = vld [vmem:[%s19633_s5 + $0xf8] sm:$0xff] }
 0xacd   : > { %v9543_v15 = vadd.f32 %v19794_v22, %v9502_v50  ;;  %v13126_v50 = vld [vmem:[%s19633_s5 + $0x108] sm:$0xff]  ;;  %v13235_v6 = vld [vmem:[%s19633_s5 + $0x390] sm:$0xff]  ;;  %v13220_v22 = vld [vmem:[%s19633_s5 + $0x338] sm:$0xff] }
 0xace   : > { %10145 = vmatpush.msrb.mxu2 %v13126_v50  ;;  %v13303_v11 = vld [vmem:[%s19633_s5 + $0x530] sm:$0xff]  ;;  %v13302_v50 = vld [vmem:[%s19633_s5 + $0x528] sm:$0xff] }
 0xacf   : > { %v9893_v53 = vpop.f32.mrf.mxu3 }
 0xad0   : > { %v9894_v46 = vadd.f32 %v9893_v53, %v9853_v35  ;;  %v19792_v35 = vld [vmem:[#allocation65_spill] sm:$0xff]  ;;  %v9552_v53 = vmax.f32 %v19795_v63, %v9543_v15 }
 0xad1   : > { %v9682_v56 = vadd.f32 %v19793_v48, %v19792_v35  ;;  %v13236_v35 = vld [vmem:[%s19633_s5 + $0x398] sm:$0xff]  ;;  %v13125_v48 = vld [vmem:[%s19633_s5 + $0x100] sm:$0xff] }
 0xad2   : > { %v18139_v57 = vmax.f32 %v9729_v54, %v9894_v46  ;;  %v10000_v46 = vld [vmem:[%s19633_s5 + $0x8] sm:$0xff]  ;;  %10146 = vmatpush.msrb.mxu2 %v13125_v48  ;;  %v13287_v48 = vld [vmem:[%s19633_s5 + $0x4d0] sm:$0xff] }
 0xad3   : > { %v9723_v25 = vadd.f32 %v18047_v33, %v9682_v56  ;;  %v13170_v33 = vld [vmem:[%s19633_s5 + $0x208] sm:$0xff]  ;;  %10095 = vmatpush.msra.mxu3 %v10000_v46  ;;  %v13221_v56 = vld [vmem:[%s19633_s5 + $0x340] sm:$0xff] }
 0xad4   : > { %13093 = vmatmul.msk.f32.gmra.mxu1 %vm9925_vm3, %v18139_v57  ;;  %10147 = vmatpush.msrb.mxu2 %v13124_v34  ;;  %v13218_v46 = vld [vmem:[%s19633_s5 + $0x328] sm:$0xff] }
 0xad5   : > { %v9732_v13 = vmax.f32 %v9552_v53, %v9723_v25  ;;  %10321 = vmatpush.msrb.mxu1 %v13170_v33  ;;  %10096 = vmatpush.msra.mxu3 %v9999_v59  ;;  %v13134_v25 = vld [vmem:[%s19633_s5 + $0x128] sm:$0xff]  ;;  %v13123_v53 = vld [vmem:[%s19633_s5 + $0xf0] sm:$0xff]  ;;  %v13232_v33 = vld [vmem:[%s19633_s5 + $0x378] sm:$0xff] }
 0xad6   : > { %10148 = vmatpush.msrb.mxu2 %v13123_v53  ;;  %v13231_v59 = vld [vmem:[%s19633_s5 + $0x370] sm:$0xff]  ;;  %v13286_v34 = vld [vmem:[%s19633_s5 + $0x4c8] sm:$0xff]  ;;  %v13189_v53 = vld [vmem:[%s19633_s5 + $0x280] sm:$0xff] }
 0xad7   : > { %v9896_v14 = vpop.f32.mrf.mxu3  ;;  %10322 = vmatpush.msrb.mxu1 %v13169_v7  ;;  %10205 = vmatpush.msrb.mxu3 %v13144_v3  ;;  %v13120_v7 = vld [vmem:[%s19633_s5 + $0xd8] sm:$0xff] }
 0xad8   : > { %v9897_v9 = vadd.f32 %v9896_v14, %v9856_v17  ;;  %v13152_v17 = vld [vmem:[%s19633_s5 + $0x198] sm:$0xff]  ;;  %v13143_v14 = vld [vmem:[%s19633_s5 + $0x170] sm:$0xff] }
 0xad9   : > { %10323 = vmatpush.msrb.mxu1 %v13168_v4  ;;  %10274 = vmatpush.msrb.mxu0 %v13152_v17  ;;  %v13230_v4 = vld [vmem:[%s19633_s5 + $0x368] sm:$0xff] }
 0xada   : > { %v18183_v16 = vmax.f32 %v9730_v55, %v9897_v9  ;;  %10206 = vmatpush.msrb.mxu3 %v13143_v14  ;;  %v13141_v55 = vld [vmem:[%s19633_s5 + $0x160] sm:$0xff]  ;;  %v13240_v9 = vld [vmem:[%s19633_s5 + $0x3b8] sm:$0xff]  ;;  %v13207_v14 = vld [vmem:[%s19633_s5 + $0x2f0] sm:$0xff] }
 0xadb   : > { %10324 = vmatpush.msrb.mxu1 %v13167_v8  ;;  %10275 = vmatpush.msrb.mxu0 %v13151_v19  ;;  %v13215_v8 = vld [vmem:[%s19633_s5 + $0x310] sm:$0xff] }
 0xadc   : > { %13094 = vmatmul.msk.f32.gmra.mxu1 %vm9925_vm3, %v18183_v16  ;;  %10207 = vmatpush.msrb.mxu3 %v13142_v45 }
 0xadd   : > { %10325 = vmatpush.msrb.mxu1 %v13166_v20  ;;  %10276 = vmatpush.msrb.mxu0 %v13150_v18  ;;  %v13117_v18 = vld [vmem:[%s19633_s5 + $0xc0] sm:$0xff] }
 0xade   : > { %10208 = vmatpush.msrb.mxu3 %v13141_v55  ;;  %v13206_v55 = vld [vmem:[%s19633_s5 + $0x2e8] sm:$0xff] }
 0xadf   : > { %v9899_v2 = vpop.f32.mrf.mxu3  ;;  %10326 = vmatpush.msrb.mxu1 %v13165_v51  ;;  %10277 = vmatpush.msrb.mxu0 %v13149_v49  ;;  %v13208_v51 = vld [vmem:[%s19633_s5 + $0x2f8] sm:$0xff]  ;;  %v13213_v49 = vld [vmem:[%s19633_s5 + $0x300] sm:$0xff] }
 0xae0   : > { %v9900_v32 = vadd.f32 %v9899_v2, %v9859_v5  ;;  %10209 = vmatpush.msrb.mxu3 %v13140_v47  ;;  %v13138_v5 = vld [vmem:[%s19633_s5 + $0x148] sm:$0xff] }
 0xae1   : > { %10523 = vmatpush.msra.mxu1 %v13240_v9  ;;  %10471 = vmatpush.msra.mxu0 %v13224_v44  ;;  %v13222_v2 = vld [vmem:[%s19633_s5 + $0x348] sm:$0xff]  ;;  %v13205_v9 = vld [vmem:[%s19633_s5 + $0x2e0] sm:$0xff] }
 0xae2   : > { %v18200_v60 = vmax.f32 %v9731_v21, %v9900_v32  ;;  %10210 = vmatpush.msrb.mxu3 %v13139_v30  ;;  %v13136_v21 = vld [vmem:[%s19633_s5 + $0x138] sm:$0xff]  ;;  %v13135_v32 = vld [vmem:[%s19633_s5 + $0x130] sm:$0xff] }
 0xae3   : > { %10524 = vmatpush.msra.mxu1 %v13239_v61  ;;  %10472 = vmatpush.msra.mxu0 %v13223_v38  ;;  %v13192_v38 = vld [vmem:[%s19633_s5 + $0x298] sm:$0xff] }
 0xae4   : > { %13095 = vmatmul.msk.f32.gmra.mxu1 %vm9925_vm3, %v18200_v60  ;;  %10211 = vmatpush.msrb.mxu3 %v13138_v5 }
 0xae5   : > { %10525 = vmatpush.msra.mxu1 %v13238_v52  ;;  %10473 = vmatpush.msra.mxu0 %v13222_v2  ;;  %v13203_v52 = vld [vmem:[%s19633_s5 + $0x2d0] sm:$0xff] }
 0xae6   : > { %10212 = vmatpush.msrb.mxu3 %v13137_v42  ;;  %v13288_v42 = vld [vmem:[%s19633_s5 + $0x4d8] sm:$0xff] }
 0xae7   : > { %v9902_v28 = vpop.f32.mrf.mxu3  ;;  %10526 = vmatpush.msra.mxu1 %v13237_v23  ;;  %10474 = vmatpush.msra.mxu0 %v13221_v56 }
 0xae8   : > { %v9903_v54 = vadd.f32 %v9902_v28, %v9862_v37  ;;  %10213 = vmatpush.msrb.mxu3 %v13136_v21  ;;  %v13234_v37 = vld [vmem:[%s19633_s5 + $0x388] sm:$0xff]  ;;  %v13219_v28 = vld [vmem:[%s19633_s5 + $0x330] sm:$0xff] }
 0xae9   : > { %10527 = vmatpush.msra.mxu1 %v13236_v35  ;;  %10475 = vmatpush.msra.mxu0 %v13220_v22  ;;  %v13202_v21 = vld [vmem:[%s19633_s5 + $0x2c8] sm:$0xff]  ;;  %v13191_v35 = vld [vmem:[%s19633_s5 + $0x290] sm:$0xff]  ;;  %v13201_v22 = vld [vmem:[%s19633_s5 + $0x2c0] sm:$0xff] }
 0xaea   : > { %v18206_v39 = vmax.f32 %v9732_v13, %v9903_v54  ;;  %10214 = vmatpush.msrb.mxu3 %v13135_v32  ;;  %v13133_v13 = vld [vmem:[%s19633_s5 + $0x120] sm:$0xff]  ;;  %v13122_v54 = vld [vmem:[%s19633_s5 + $0xe8] sm:$0xff] }
 0xaeb   : > { %10528 = vmatpush.msra.mxu1 %v13235_v6  ;;  %10476 = vmatpush.msra.mxu0 %v13219_v28  ;;  %v13190_v6 = vld [vmem:[%s19633_s5 + $0x288] sm:$0xff]  ;;  %v13285_v28 = vld [vmem:[%s19633_s5 + $0x4c0] sm:$0xff] }
 0xaec   : > { %13096 = vmatmul.msk.f32.gmra.mxu1 %vm9925_vm3, %v18206_v39  ;;  %10215 = vmatpush.msrb.mxu3 %v13134_v25 }
 0xaed   : > { %10529 = vmatpush.msra.mxu1 %v13234_v37  ;;  %10149 = vmatpush.msrb.mxu2 %v13122_v54  ;;  %v13299_v54 = vld [vmem:[%s19633_s5 + $0x510] sm:$0xff] }
 0xaee   : > { %10216 = vmatpush.msrb.mxu3 %v13133_v13  ;;  %10477 = vmatpush.msra.mxu0 %v13218_v46  ;;  %v13188_v46 = vld [vmem:[%s19633_s5 + $0x278] sm:$0xff] }
 0xaef   : > { %10150 = vmatpush.msrb.mxu2 %v13121_v26 }
 0xaf0   : > { %10478 = vmatpush.msra.mxu0 %v13217_v36 }
 0xaf1   : > { %10151 = vmatpush.msrb.mxu2 %v13120_v7  ;;  %v13199_v7 = vld [vmem:[%s19633_s5 + $0x2b0] sm:$0xff] }
 0xaf2   : > { %10479 = vmatpush.msra.mxu0 %v13216_v29  ;;  %v13298_v29 = vld [vmem:[%s19633_s5 + $0x508] sm:$0xff] }
 0xaf3   : > { %10152 = vmatpush.msrb.mxu2 %v13119_v43  ;;  %v13198_v43 = vld [vmem:[%s19633_s5 + $0x2a8] sm:$0xff] }
 0xaf4   : > { %10480 = vmatpush.msra.mxu0 %v13215_v8  ;;  %v13297_v8 = vld [vmem:[%s19633_s5 + $0x500] sm:$0xff] }
 0xaf6   : > { %10481 = vmatpush.msra.mxu0 %v13214_v12  ;;  %v13185_v12 = vld [vmem:[%s19633_s5 + $0x260] sm:$0xff] }
 0xaf8   : > { %10482 = vmatpush.msra.mxu0 %v13213_v49  ;;  %v13295_v49 = vld [vmem:[%s19633_s5 + $0x4f0] sm:$0xff] }
 0xb31   : > { %v9967_v15 = vpop.f32.mrf.mxu1 }
 0xb32   : > { %v18361_v63 = vmax.f32 %v18057_v0, %v9967_v15  ;;  %v13233_v0 = vld [vmem:[%s19633_s5 + $0x380] sm:$0xff]  ;;  %v13300_v15 = vld [vmem:[%s19633_s5 + $0x518] sm:$0xff] }
 0xb33   : > { %10530 = vmatpush.msra.mxu1 %v13233_v0  ;;  %v13200_v0 = vld [vmem:[%s19633_s5 + $0x2b8] sm:$0xff] }
 0xb34   : > { %13113 = vmatmul.msk.f32.vlgmr.msra.gmra.mxu3 %vm9925_vm3, %v18361_v63  ;;  %v10029_v17 = vrot.slane %v18361_v63, 1  ;;  %v10247_v58 = vrot.slane %v18361_v63, 4  ;;  %v10186_v36 = vrot.slane %v18361_v63, 3 }
 0xb35   : > { %10531 = vmatpush.msra.mxu1 %v13232_v33  ;;  %10419 = vmatpush.msra.mxu3 %v13208_v51  ;;  %v13284_v33 = vld [vmem:[%s19633_s5 + $0x4b8] sm:$0xff] }
 0xb37   : > { %10532 = vmatpush.msra.mxu1 %v13231_v59  ;;  %10420 = vmatpush.msra.mxu3 %v13207_v14  ;;  %v13184_v14 = vld [vmem:[%s19633_s5 + $0x258] sm:$0xff] }
 0xb39   : > { %v9970_v1 = vpop.f32.mrf.mxu1  ;;  %10533 = vmatpush.msra.mxu1 %v13230_v4  ;;  %10421 = vmatpush.msra.mxu3 %v13206_v55  ;;  %v13187_v4 = vld [vmem:[%s19633_s5 + $0x270] sm:$0xff]  ;;  %v13280_v55 = vld [vmem:[%s19633_s5 + $0x498] sm:$0xff] }
 0xb3a   : > { %v18405_v62 = vmax.f32 %v18067_v24, %v9970_v1  ;;  %v13118_v24 = vld [vmem:[%s19633_s5 + $0xc8] sm:$0xff] }
 0xb3b   : > { %10534 = vmatpush.msra.mxu1 %v13229_v40  ;;  %10153 = vmatpush.msrb.mxu2 %v13118_v24  ;;  %v13186_v24 = vld [vmem:[%s19633_s5 + $0x268] sm:$0xff] }
 0xb3c   : > { %13114 = vmatmul.msk.f32.gmra.mxu3 %vm9925_vm3, %v18405_v62  ;;  %13177 = vmatmul.msk.f32.vlgmr.msrb.gmra.mxu1 %vm9925_vm3, %v18405_v62  ;;  %v10030_v20 = vrot.slane %v18405_v62, 1  ;;  %v10248_v19 = vrot.slane %v18405_v62, 4  ;;  %v10187_v13 = vrot.slane %v18405_v62, 3 }
 0xb3d   : > { %10154 = vmatpush.msrb.mxu2 %v13117_v18  ;;  %10422 = vmatpush.msra.mxu3 %v13205_v9  ;;  %v13281_v18 = vld [vmem:[%s19633_s5 + $0x4a0] sm:$0xff]  ;;  %v13272_v9 = vld [vmem:[%s19633_s5 + $0x478] sm:$0xff] }
 0xb3e   : > { %v10031_v3 = vsel %vm10028_vm4, %v10029_v17, %v10030_v20  ;;  %v10249_v41 = vsel %vm9246_vm1, %v10247_v58, %v10248_v19  ;;  %v10188_v1 = vsel %vm10185_vm5, %v10186_v36, %v10187_v13  ;;  %v13282_v17 = vld [vmem:[%s19633_s5 + $0x4a8] sm:$0xff]  ;;  %v13197_v58 = vld [vmem:[%s19633_s5 + $0x2a0] sm:$0xff]  ;;  %v13351_v36 = vld [vmem:[%s19633_s5 + $0x650] sm:$0xff] }
 0xb3f   : > { %13109 = vmatmul.msk.f32.vlgmr.msra.gmra.mxu2 %vm9925_vm3, %v10031_v3  ;;  %13161 = vmatmul.msk.f32.vlgmr.msrb.gmra.mxu0 %vm9925_vm3, %v10249_v41  ;;  %v10125_v41 = vrot.slane %v18405_v62, 2  ;;  %v10124_v62 = vrot.slane %v18361_v63, 2  ;;  %v13279_v63 = vld [vmem:[%s19633_s5 + $0x490] sm:$0xff] }
 0xb40   : > { %10423 = vmatpush.msra.mxu3 %v13204_v10  ;;  %10367 = vmatpush.msra.mxu2 %v13192_v38  ;;  %v13278_v38 = vld [vmem:[%s19633_s5 + $0x488] sm:$0xff] }
 0xb41   : > { %v9973_v45 = vpop.f32.mrf.mxu1  ;;  %10676 = vmatpush.msrb.mxu0 %v13288_v42  ;;  %v13270_v42 = vld [vmem:[%s19633_s5 + $0x468] sm:$0xff] }
 0xb42   : > { %v18450_v47 = vmax.f32 %v18078_v27, %v9973_v45  ;;  %v13304_v27 = vld [vmem:[%s19633_s5 + $0x538] sm:$0xff]  ;;  %10424 = vmatpush.msra.mxu3 %v13203_v52  ;;  %10368 = vmatpush.msra.mxu2 %v13191_v35  ;;  %v13182_v52 = vld [vmem:[%s19633_s5 + $0x248] sm:$0xff] }
 0xb43   : > { %10728 = vmatpush.msrb.mxu1 %v13304_v27  ;;  %10677 = vmatpush.msrb.mxu0 %v13287_v48  ;;  %v10126_v27 = vsel %vm10123_vm6, %v10124_v62, %v10125_v41  ;;  %v13181_v48 = vld [vmem:[%s19633_s5 + $0x240] sm:$0xff]  ;;  %v13262_v62 = vld [vmem:[%s19633_s5 + $0x428] sm:$0xff] }
 0xb44   : > { %13115 = vmatmul.msk.f32.gmra.mxu3 %vm9925_vm3, %v18450_v47  ;;  %13178 = vmatmul.msk.f32.gmra.mxu1 %vm9925_vm3, %v18450_v47  ;;  %v10032_v30 = vrot.slane %v18450_v47, 1  ;;  %v10250_v61 = vrot.slane %v18450_v47, 4  ;;  %v10127_v35 = vrot.slane %v18450_v47, 2 }
 0xb45   : > { %10729 = vmatpush.msrb.mxu1 %v13303_v11  ;;  %10425 = vmatpush.msra.mxu3 %v13202_v21  ;;  %v13271_v11 = vld [vmem:[%s19633_s5 + $0x470] sm:$0xff] }
 0xb46   : > { %v18468_v44 = vsel %vm10028_vm4, %v10030_v20, %v10032_v30  ;;  %v18471_v5 = vsel %vm9246_vm1, %v10248_v19, %v10250_v61  ;;  %10369 = vmatpush.msra.mxu2 %v13190_v6  ;;  %10678 = vmatpush.msrb.mxu0 %v13286_v34  ;;  %v10189_v20 = vrot.slane %v18450_v47, 3  ;;  %v13296_v19 = vld [vmem:[%s19633_s5 + $0x4f8] sm:$0xff] }
 0xb47   : > { %13110 = vmatmul.msk.f32.gmra.mxu2 %vm9925_vm3, %v18468_v44  ;;  %13162 = vmatmul.msk.f32.gmra.mxu0 %vm9925_vm3, %v18471_v5  ;;  %v13268_v34 = vld [vmem:[%s19633_s5 + $0x458] sm:$0xff] }
 0xb48   : > { %10730 = vmatpush.msrb.mxu1 %v13302_v50  ;;  %10426 = vmatpush.msra.mxu3 %v13201_v22  ;;  %v10190_v45 = vsel %vm10185_vm5, %v10187_v13, %v10189_v20  ;;  %v13367_v13 = vld [vmem:[%s19633_s5 + $0x6b0] sm:$0xff] }
 0xb49   : > { %v9976_v23 = vpop.f32.mrf.mxu1  ;;  %10370 = vmatpush.msra.mxu2 %v13189_v53  ;;  %10679 = vmatpush.msrb.mxu0 %v13285_v28  ;;  %v13267_v28 = vld [vmem:[%s19633_s5 + $0x450] sm:$0xff] }
 0xb4a   : > { %v18493_v2 = vmax.f32 %v18089_v31, %v9976_v23  ;;  %v13301_v31 = vld [vmem:[%s19633_s5 + $0x520] sm:$0xff]  ;;  %10427 = vmatpush.msra.mxu3 %v13200_v0  ;;  %v13256_v0 = vld [vmem:[%s19633_s5 + $0x418] sm:$0xff] }
 0xb4b   : > { %10731 = vmatpush.msrb.mxu1 %v13301_v31  ;;  %10371 = vmatpush.msra.mxu2 %v13188_v46  ;;  %v13277_v31 = vld [vmem:[%s19633_s5 + $0x480] sm:$0xff]  ;;  %v13352_v46 = vld [vmem:[%s19633_s5 + $0x658] sm:$0xff] }
 0xb4c   : > { %13116 = vmatmul.msk.f32.gmra.mxu3 %vm9925_vm3, %v18493_v2  ;;  %13179 = vmatmul.msk.f32.gmra.mxu1 %vm9925_vm3, %v18493_v2  ;;  %v10034_v56 = vrot.slane %v18493_v2, 1  ;;  %v18513_v32 = vrot.slane %v18493_v2, 4  ;;  %v18643_v10 = vrot.slane %v18493_v2, 3 }
 0xb4d   : > { %10732 = vmatpush.msrb.mxu1 %v13300_v15  ;;  %10680 = vmatpush.msrb.mxu0 %v13284_v33  ;;  %v10128_v15 = vsel %vm10123_vm6, %v10125_v41, %v10127_v35  ;;  %v13366_v33 = vld [vmem:[%s19633_s5 + $0x6a8] sm:$0xff]  ;;  %v13348_v41 = vld [vmem:[%s19633_s5 + $0x638] sm:$0xff] }
 0xb4e   : > { %v18528_v25 = vsel %vm10028_vm4, %v10032_v30, %v10034_v56  ;;  %v18532_v37 = vsel %vm9246_vm1, %v10250_v61, %v18513_v32  ;;  %10428 = vmatpush.msra.mxu3 %v13199_v7  ;;  %10372 = vmatpush.msra.mxu2 %v13187_v4  ;;  %v13294_v30 = vld [vmem:[%s19633_s5 + $0x4e8] sm:$0xff]  ;;  %v13183_v61 = vld [vmem:[%s19633_s5 + $0x250] sm:$0xff]  ;;  %v18730_v7 = vrot.slane %v18493_v2, 2  ;;  %v13365_v4 = vld [vmem:[%s19633_s5 + $0x6a0] sm:$0xff] }
 0xb4f   : > { %13111 = vmatmul.msk.f32.gmra.mxu2 %vm9925_vm3, %v18528_v25  ;;  %13163 = vmatmul.msk.f32.gmra.mxu0 %vm9925_vm3, %v18532_v37 }
 0xb50   : > { %10733 = vmatpush.msrb.mxu1 %v13299_v54  ;;  %10429 = vmatpush.msra.mxu3 %v13198_v43  ;;  %v13254_v43 = vld [vmem:[%s19633_s5 + $0x408] sm:$0xff] }
 0xb51   : > { %v9979_v26 = vpop.f32.mrf.mxu1  ;;  %10373 = vmatpush.msra.mxu2 %v13186_v24  ;;  %v13364_v24 = vld [vmem:[%s19633_s5 + $0x698] sm:$0xff] }
 0xb52   : > { %v18559_v59 = vmax.f32 %v18139_v57, %v9979_v26  ;;  %v13283_v57 = vld [vmem:[%s19633_s5 + $0x4b0] sm:$0xff]  ;;  %10734 = vmatpush.msrb.mxu1 %v13298_v29  ;;  %10430 = vmatpush.msra.mxu3 %v13197_v58  ;;  %v13253_v58 = vld [vmem:[%s19633_s5 + $0x400] sm:$0xff] }
 0xb53   : > { %10681 = vmatpush.msrb.mxu0 %v13283_v57  ;;  %10374 = vmatpush.msra.mxu2 %v13185_v12  ;;  %v13255_v26 = vld [vmem:[%s19633_s5 + $0x410] sm:$0xff]  ;;  %v13264_v12 = vld [vmem:[%s19633_s5 + $0x438] sm:$0xff] }
 0xb54   : > { %13145 = vmatmul.msk.f32.vlgmr.msrb.gmra.mxu3 %vm9925_vm3, %v10188_v1  ;;  %13180 = vmatmul.msk.f32.gmra.mxu1 %vm9925_vm3, %v18559_v59  ;;  %v18584_v40 = vrot.slane %v18559_v59, 1  ;;  %v18701_v53 = vrot.slane %v18559_v59, 4  ;;  %v18733_v29 = vrot.slane %v18559_v59, 3  ;;  %v13266_v1 = vld [vmem:[%s19633_s5 + $0x448] sm:$0xff] }
 0xb55   : > { %10735 = vmatpush.msrb.mxu1 %v13297_v8  ;;  %10682 = vmatpush.msrb.mxu0 %v13282_v17  ;;  %v13350_v8 = vld [vmem:[%s19633_s5 + $0x648] sm:$0xff]  ;;  %v10130_v17 = vsel %vm10123_vm6, %v10127_v35, %v18730_v7  ;;  %v13247_v35 = vld [vmem:[%s19633_s5 + $0x3d0] sm:$0xff] }
 0xb56   : > { %v18604_v51 = vsel %vm10028_vm4, %v10034_v56, %v18584_v40  ;;  %10375 = vmatpush.msra.mxu2 %v13184_v14  ;;  %10624 = vmatpush.msrb.mxu3 %v13272_v9  ;;  %v18744_v57 = vsel %vm9246_vm1, %v18513_v32, %v18701_v53  ;;  %v13362_v14 = vld [vmem:[%s19633_s5 + $0x688] sm:$0xff]  ;;  %v13361_v9 = vld [vmem:[%s19633_s5 + $0x680] sm:$0xff] }
 0xb57   : > { %13112 = vmatmul.msk.f32.gmra.mxu2 %vm9925_vm3, %v10034_v56  ;;  %13164 = vmatmul.msk.f32.gmra.mxu0 %vm9925_vm3, %v18513_v32  ;;  %v13368_v56 = vld [vmem:[%s19633_s5 + $0x6b8] sm:$0xff]  ;;  %v13265_v32 = vld [vmem:[%s19633_s5 + $0x440] sm:$0xff] }
 0xb58   : > { %10736 = vmatpush.msrb.mxu1 %v13296_v19  ;;  %10683 = vmatpush.msrb.mxu0 %v13281_v18  ;;  %v13349_v19 = vld [vmem:[%s19633_s5 + $0x640] sm:$0xff]  ;;  %v13363_v18 = vld [vmem:[%s19633_s5 + $0x690] sm:$0xff] }
 0xb59   : > { %v9982_v3 = vpop.f32.mrf.mxu1  ;;  %10376 = vmatpush.msra.mxu2 %v13183_v61  ;;  %10625 = vmatpush.msrb.mxu3 %v13271_v11  ;;  %v13346_v61 = vld [vmem:[%s19633_s5 + $0x628] sm:$0xff]  ;;  %v13248_v11 = vld [vmem:[%s19633_s5 + $0x3d8] sm:$0xff] }
 0xb5a   : > { %10737 = vmatpush.msrb.mxu1 %v13295_v49  ;;  %10684 = vmatpush.msrb.mxu0 %v13280_v55  ;;  %v18661_v23 = vmax.f32 %v18183_v16, %v9982_v3  ;;  %v18675_v16 = vsel %vm10185_vm5, %v10189_v20, %v18643_v10  ;;  %v18767_v20 = vsel %vm10185_vm5, %v18643_v10, %v18733_v29  ;;  %v13252_v3 = vld [vmem:[%s19633_s5 + $0x3f8] sm:$0xff]  ;;  %v13263_v49 = vld [vmem:[%s19633_s5 + $0x430] sm:$0xff] }
 0xb5b   : > { %10377 = vmatpush.msra.mxu2 %v13182_v52  ;;  %10626 = vmatpush.msrb.mxu3 %v13270_v42  ;;  %v13347_v55 = vld [vmem:[%s19633_s5 + $0x630] sm:$0xff]  ;;  %v13336_v42 = vld [vmem:[%s19633_s5 + $0x5f8] sm:$0xff] }
 0xb5c   : > { %13146 = vmatmul.msk.f32.gmra.mxu3 %vm9925_vm3, %v10190_v45  ;;  %13241 = vmatmul.msk.f32.vlgmr.msra.gmra.mxu1 %vm9925_vm3, %v18471_v5  ;;  %v13293_v5 = vld [vmem:[%s19633_s5 + $0x4e0] sm:$0xff]  ;;  %v18694_v22 = vrot.slane %v18661_v23, 3  ;;  %v13359_v52 = vld [vmem:[%s19633_s5 + $0x670] sm:$0xff] }
 0xb5d   : > { %10738 = vmatpush.msrb.mxu1 %v13294_v30  ;;  %10685 = vmatpush.msrb.mxu0 %v13279_v63  ;;  %v13250_v30 = vld [vmem:[%s19633_s5 + $0x3e8] sm:$0xff]  ;;  %v13360_v63 = vld [vmem:[%s19633_s5 + $0x678] sm:$0xff] }
 0xb5e   : > { %10378 = vmatpush.msra.mxu2 %v13181_v48  ;;  %v13343_v48 = vld [vmem:[%s19633_s5 + $0x610] sm:$0xff] }
 0xb5f   : > { %13129 = vmatmul.msk.f32.vlgmr.msrb.gmra.mxu2 %vm9925_vm3, %v10126_v27  ;;  %13225 = vmatmul.msk.f32.vlgmr.msra.gmra.mxu0 %vm9925_vm3, %v10190_v45  ;;  %v13251_v45 = vld [vmem:[%s19633_s5 + $0x3f0] sm:$0xff]  ;;  %v13261_v27 = vld [vmem:[%s19633_s5 + $0x420] sm:$0xff] }
 0xb60   : > { %10739 = vmatpush.msrb.mxu1 %v13293_v5  ;;  %10686 = vmatpush.msrb.mxu0 %v13278_v38  ;;  %v13345_v5 = vld [vmem:[%s19633_s5 + $0x620] sm:$0xff]  ;;  %v13344_v38 = vld [vmem:[%s19633_s5 + $0x618] sm:$0xff] }
 0xb61   : > { %v9985_v50 = vpop.f32.mrf.mxu1  ;;  %10572 = vmatpush.msrb.mxu2 %v13256_v0  ;;  %v13333_v0 = vld [vmem:[%s19633_s5 + $0x5e0] sm:$0xff] }
 0xb62   : > { %v18664_v21 = vmax.f32 %v18200_v60, %v9985_v50  ;;  %v13269_v60 = vld [vmem:[%s19633_s5 + $0x460] sm:$0xff]  ;;  %10687 = vmatpush.msrb.mxu0 %v13277_v31  ;;  %10933 = vmatpush.msra.mxu1 %v13368_v56  ;;  %v13358_v50 = vld [vmem:[%s19633_s5 + $0x668] sm:$0xff]  ;;  %v10409_v31 = vrot.slane %v18559_v59, 2  ;;  %v13335_v56 = vld [vmem:[%s19633_s5 + $0x5f0] sm:$0xff] }
 0xb63   : > { %10627 = vmatpush.msrb.mxu3 %v13269_v60  ;;  %10573 = vmatpush.msrb.mxu2 %v13255_v26  ;;  %v13246_v60 = vld [vmem:[%s19633_s5 + $0x3c8] sm:$0xff]  ;;  %v13331_v26 = vld [vmem:[%s19633_s5 + $0x5d0] sm:$0xff] }
 0xb64   : > { %13147 = vmatmul.msk.f32.gmra.mxu3 %vm9925_vm3, %v18675_v16  ;;  %13242 = vmatmul.msk.f32.gmra.mxu1 %vm9925_vm3, %v18532_v37  ;;  %v18688_v6 = vrot.slane %v18664_v21, 3 }
 0xb65   : > { %10628 = vmatpush.msrb.mxu3 %v13268_v34  ;;  %10934 = vmatpush.msra.mxu1 %v13367_v13  ;;  %v13334_v34 = vld [vmem:[%s19633_s5 + $0x5e8] sm:$0xff]  ;;  %v18884_v13 = vsel %vm10123_vm6, %v18730_v7, %v10409_v31 }
 0xb66   : > { %v18715_v54 = vsel %vm10185_vm5, %v18694_v22, %v18688_v6  ;;  %10881 = vmatpush.msra.mxu0 %v13352_v46  ;;  %10574 = vmatpush.msrb.mxu2 %v13254_v43  ;;  %v13432_v46 = vld [vmem:[%s19633_s5 + $0x838] sm:$0xff]  ;;  %v13319_v43 = vld [vmem:[%s19633_s5 + $0x590] sm:$0xff] }
 0xb67   : > { %13130 = vmatmul.msk.f32.gmra.mxu2 %vm9925_vm3, %v10128_v15  ;;  %13226 = vmatmul.msk.f32.gmra.mxu0 %vm9925_vm3, %v18675_v16 }
 0xb68   : > { %10629 = vmatpush.msrb.mxu3 %v13267_v28  ;;  %10935 = vmatpush.msra.mxu1 %v13366_v33  ;;  %v13341_v28 = vld [vmem:[%s19633_s5 + $0x600] sm:$0xff]  ;;  %v13332_v33 = vld [vmem:[%s19633_s5 + $0x5d8] sm:$0xff] }
 0xb69   : > { %10882 = vmatpush.msra.mxu0 %v13351_v36  ;;  %10575 = vmatpush.msrb.mxu2 %v13253_v58  ;;  %v13431_v36 = vld [vmem:[%s19633_s5 + $0x830] sm:$0xff]  ;;  %v18936_v58 = vsel %vm10185_vm5, %v18733_v29, %v18694_v22 }
 0xb6a   : > { %10630 = vmatpush.msrb.mxu3 %v13266_v1  ;;  %10936 = vmatpush.msra.mxu1 %v13365_v4  ;;  %v13416_v1 = vld [vmem:[%s19633_s5 + $0x7d8] sm:$0xff]  ;;  %v13430_v4 = vld [vmem:[%s19633_s5 + $0x828] sm:$0xff] }
 0xb6b   : > { %10883 = vmatpush.msra.mxu0 %v13350_v8  ;;  %10576 = vmatpush.msrb.mxu2 %v13252_v3  ;;  %v13415_v8 = vld [vmem:[%s19633_s5 + $0x7d0] sm:$0xff] }
 0xb6c   : > { %13148 = vmatmul.msk.f32.gmra.mxu3 %vm9925_vm3, %v18643_v10  ;;  %13243 = vmatmul.msk.f32.gmra.mxu1 %vm9925_vm3, %v18744_v57  ;;  %v13249_v10 = vld [vmem:[%s19633_s5 + $0x3e0] sm:$0xff] }
 0xb6d   : > { %10631 = vmatpush.msrb.mxu3 %v13265_v32  ;;  %10937 = vmatpush.msra.mxu1 %v13364_v24  ;;  %v18925_v32 = vrot.slane %v18661_v23, 2  ;;  %v13330_v24 = vld [vmem:[%s19633_s5 + $0x5c8] sm:$0xff] }
 0xb6e   : > { %10884 = vmatpush.msra.mxu0 %v13349_v19  ;;  %10577 = vmatpush.msrb.mxu2 %v13251_v45  ;;  %v13318_v19 = vld [vmem:[%s19633_s5 + $0x588] sm:$0xff]  ;;  %v13427_v45 = vld [vmem:[%s19633_s5 + $0x810] sm:$0xff] }
 0xb6f   : > { %13131 = vmatmul.msk.f32.gmra.mxu2 %vm9925_vm3, %v10130_v17  ;;  %13227 = vmatmul.msk.f32.gmra.mxu0 %vm9925_vm3, %v18767_v20  ;;  %v18955_v3 = vsel %vm10123_vm6, %v10409_v31, %v18925_v32 }
 0xb70   : > { %10632 = vmatpush.msrb.mxu3 %v13264_v12  ;;  %10938 = vmatpush.msra.mxu1 %v13363_v18  ;;  %v13414_v12 = vld [vmem:[%s19633_s5 + $0x7c8] sm:$0xff]  ;;  %v13428_v18 = vld [vmem:[%s19633_s5 + $0x818] sm:$0xff] }
 0xb71   : > { %10885 = vmatpush.msra.mxu0 %v13348_v41  ;;  %10578 = vmatpush.msrb.mxu2 %v13250_v30  ;;  %v13317_v41 = vld [vmem:[%s19633_s5 + $0x580] sm:$0xff]  ;;  %v13426_v30 = vld [vmem:[%s19633_s5 + $0x808] sm:$0xff] }
 0xb72   : > { %10633 = vmatpush.msrb.mxu3 %v13263_v49  ;;  %10939 = vmatpush.msra.mxu1 %v13362_v14  ;;  %v13413_v49 = vld [vmem:[%s19633_s5 + $0x7c0] sm:$0xff]  ;;  %v13328_v14 = vld [vmem:[%s19633_s5 + $0x5b8] sm:$0xff] }
 0xb73   : > { %10886 = vmatpush.msra.mxu0 %v13347_v55  ;;  %10579 = vmatpush.msrb.mxu2 %v13249_v10  ;;  %v13316_v55 = vld [vmem:[%s19633_s5 + $0x578] sm:$0xff]  ;;  %v13425_v10 = vld [vmem:[%s19633_s5 + $0x800] sm:$0xff] }
 0xb74   : > { %13209 = vmatmul.msk.f32.vlgmr.msra.gmra.mxu3 %vm9925_vm3, %v10128_v15  ;;  %13244 = vmatmul.msk.f32.gmra.mxu1 %vm9925_vm3, %v18701_v53  ;;  %v13245_v15 = vld [vmem:[%s19633_s5 + $0x3c0] sm:$0xff] }
 0xb75   : > { %10634 = vmatpush.msrb.mxu3 %v13262_v62  ;;  %10940 = vmatpush.msra.mxu1 %v13361_v9  ;;  %v13412_v62 = vld [vmem:[%s19633_s5 + $0x7b8] sm:$0xff]  ;;  %v13327_v9 = vld [vmem:[%s19633_s5 + $0x5b0] sm:$0xff] }
 0xb76   : > { %10887 = vmatpush.msra.mxu0 %v13346_v61  ;;  %10580 = vmatpush.msrb.mxu2 %v13248_v11  ;;  %v13315_v61 = vld [vmem:[%s19633_s5 + $0x570] sm:$0xff]  ;;  %v13313_v11 = vld [vmem:[%s19633_s5 + $0x560] sm:$0xff] }
 0xb77   : > { %13132 = vmatmul.msk.f32.gmra.mxu2 %vm9925_vm3, %v18730_v7  ;;  %13228 = vmatmul.msk.f32.gmra.mxu0 %vm9925_vm3, %v18733_v29  ;;  %v13320_v7 = vld [vmem:[%s19633_s5 + $0x598] sm:$0xff]  ;;  %v13329_v29 = vld [vmem:[%s19633_s5 + $0x5c0] sm:$0xff] }
 0xb78   : > { %10635 = vmatpush.msrb.mxu3 %v13261_v27  ;;  %10941 = vmatpush.msra.mxu1 %v13360_v63  ;;  %v13411_v27 = vld [vmem:[%s19633_s5 + $0x7b0] sm:$0xff]  ;;  %v13326_v63 = vld [vmem:[%s19633_s5 + $0x5a8] sm:$0xff] }
 0xb79   : > { %10888 = vmatpush.msra.mxu0 %v13345_v5  ;;  %10581 = vmatpush.msrb.mxu2 %v13247_v35  ;;  %v13314_v5 = vld [vmem:[%s19633_s5 + $0x568] sm:$0xff]  ;;  %v13408_v35 = vld [vmem:[%s19633_s5 + $0x798] sm:$0xff] }
 0xb7a   : > { %10942 = vmatpush.msra.mxu1 %v13359_v52  ;;  %10829 = vmatpush.msra.mxu3 %v13336_v42  ;;  %v13424_v52 = vld [vmem:[%s19633_s5 + $0x7f8] sm:$0xff]  ;;  %v13423_v42 = vld [vmem:[%s19633_s5 + $0x7f0] sm:$0xff] }
 0xb7b   : > { %10889 = vmatpush.msra.mxu0 %v13344_v38  ;;  %10582 = vmatpush.msrb.mxu2 %v13246_v60  ;;  %v13409_v38 = vld [vmem:[%s19633_s5 + $0x7a0] sm:$0xff]  ;;  %v13407_v60 = vld [vmem:[%s19633_s5 + $0x790] sm:$0xff] }
 0xb7c   : > { %13210 = vmatmul.msk.f32.gmra.mxu3 %vm9925_vm3, %v10130_v17  ;;  %13305 = vmatmul.msk.f32.vlgmr.msrb.gmra.mxu1 %vm9925_vm3, %v18675_v16  ;;  %v13357_v16 = vld [vmem:[%s19633_s5 + $0x660] sm:$0xff] }
 0xb7d   : > { %10943 = vmatpush.msra.mxu1 %v13358_v50  ;;  %10890 = vmatpush.msra.mxu0 %v13343_v48  ;;  %v13312_v50 = vld [vmem:[%s19633_s5 + $0x558] sm:$0xff] }
 0xb7e   : > { %10830 = vmatpush.msra.mxu3 %v13335_v56  ;;  %10583 = vmatpush.msrb.mxu2 %v13245_v15  ;;  %v13400_v48 = vld [vmem:[%s19633_s5 + $0x778] sm:$0xff]  ;;  %v10614_v56 = vrot.slane %v18661_v23, 1  ;;  %v13399_v15 = vld [vmem:[%s19633_s5 + $0x770] sm:$0xff] }
 0xb7f   : > { %13193 = vmatmul.msk.f32.vlgmr.msra.gmra.mxu2 %vm9925_vm3, %v18468_v44  ;;  %13289 = vmatmul.msk.f32.vlgmr.msrb.gmra.mxu0 %vm9925_vm3, %v10130_v17  ;;  %v13342_v44 = vld [vmem:[%s19633_s5 + $0x608] sm:$0xff]  ;;  %v13429_v17 = vld [vmem:[%s19633_s5 + $0x820] sm:$0xff] }
 0xb80   : > { %10944 = vmatpush.msra.mxu1 %v13357_v16  ;;  %10891 = vmatpush.msra.mxu0 %v13342_v44  ;;  %v13311_v16 = vld [vmem:[%s19633_s5 + $0x550] sm:$0xff]  ;;  %v13421_v44 = vld [vmem:[%s19633_s5 + $0x7e0] sm:$0xff] }
 0xb81   : > { %10831 = vmatpush.msra.mxu3 %v13334_v34  ;;  %10780 = vmatpush.msra.mxu2 %v13320_v7  ;;  %v13310_v34 = vld [vmem:[%s19633_s5 + $0x548] sm:$0xff]  ;;  %v13480_v7 = vld [vmem:[%s19633_s5 + $0x958] sm:$0xff] }
 0xb82   : > { %10892 = vmatpush.msra.mxu0 %v13341_v28  ;;  %11138 = vmatpush.msrb.mxu1 %v13432_v46  ;;  %v13309_v28 = vld [vmem:[%s19633_s5 + $0x540] sm:$0xff] }
 0xb83   : > { %10832 = vmatpush.msra.mxu3 %v13333_v0  ;;  %10781 = vmatpush.msra.mxu2 %v13319_v43  ;;  %v19076_v0 = vsel %vm10028_vm4, %v18584_v40, %v10614_v56  ;;  %v13397_v46 = vld [vmem:[%s19633_s5 + $0x760] sm:$0xff]  ;;  %v13383_v43 = vld [vmem:[%s19633_s5 + $0x710] sm:$0xff] }
 0xb84   : > { %13211 = vmatmul.msk.f32.gmra.mxu3 %vm9925_vm3, %v18884_v13  ;;  %13306 = vmatmul.msk.f32.gmra.mxu1 %vm9925_vm3, %v18767_v20 }
 0xb85   : > { %10833 = vmatpush.msra.mxu3 %v13332_v33  ;;  %11139 = vmatpush.msrb.mxu1 %v13431_v36  ;;  %v13396_v33 = vld [vmem:[%s19633_s5 + $0x758] sm:$0xff] }
 0xb86   : > { %11086 = vmatpush.msrb.mxu0 %v13416_v1  ;;  %10782 = vmatpush.msra.mxu2 %v13318_v19  ;;  %v13384_v36 = vld [vmem:[%s19633_s5 + $0x718] sm:$0xff]  ;;  %v19105_v1 = vrot.slane %v18664_v21, 1  ;;  %v13478_v19 = vld [vmem:[%s19633_s5 + $0x948] sm:$0xff] }
 0xb87   : > { %13194 = vmatmul.msk.f32.gmra.mxu2 %vm9925_vm3, %v18528_v25  ;;  %13290 = vmatmul.msk.f32.gmra.mxu0 %vm9925_vm3, %v18884_v13 }
 0xb88   : > { %10834 = vmatpush.msra.mxu3 %v13331_v26  ;;  %11140 = vmatpush.msrb.mxu1 %v13430_v4  ;;  %v13395_v26 = vld [vmem:[%s19633_s5 + $0x750] sm:$0xff]  ;;  %v13394_v4 = vld [vmem:[%s19633_s5 + $0x748] sm:$0xff] }
 0xb89   : > { %11087 = vmatpush.msrb.mxu0 %v13415_v8  ;;  %10783 = vmatpush.msra.mxu2 %v13317_v41  ;;  %v13479_v8 = vld [vmem:[%s19633_s5 + $0x950] sm:$0xff]  ;;  %v13392_v41 = vld [vmem:[%s19633_s5 + $0x738] sm:$0xff] }
 0xb8a   : > { %10835 = vmatpush.msra.mxu3 %v13330_v24  ;;  %11141 = vmatpush.msrb.mxu1 %v13429_v17  ;;  %v13382_v17 = vld [vmem:[%s19633_s5 + $0x708] sm:$0xff] }
 0xb8b   : > { %11088 = vmatpush.msrb.mxu0 %v13414_v12  ;;  %10784 = vmatpush.msra.mxu2 %v13316_v55  ;;  %v13381_v12 = vld [vmem:[%s19633_s5 + $0x700] sm:$0xff]  ;;  %v13379_v55 = vld [vmem:[%s19633_s5 + $0x6f0] sm:$0xff] }
 0xb8c   : > { %13212 = vmatmul.msk.f32.gmra.mxu3 %vm9925_vm3, %v10409_v31  ;;  %13307 = vmatmul.msk.f32.gmra.mxu1 %vm9925_vm3, %v18936_v58  ;;  %v13422_v31 = vld [vmem:[%s19633_s5 + $0x7e8] sm:$0xff] }
 0xb8d   : > { %10836 = vmatpush.msra.mxu3 %v13329_v29  ;;  %11142 = vmatpush.msrb.mxu1 %v13428_v18  ;;  %v19138_v29 = vsel %vm10028_vm4, %v10614_v56, %v19105_v1  ;;  %v13477_v18 = vld [vmem:[%s19633_s5 + $0x940] sm:$0xff] }
 0xb8e   : > { %11089 = vmatpush.msrb.mxu0 %v13413_v49  ;;  %10785 = vmatpush.msra.mxu2 %v13315_v61  ;;  %v13380_v49 = vld [vmem:[%s19633_s5 + $0x6f8] sm:$0xff]  ;;  %v13474_v61 = vld [vmem:[%s19633_s5 + $0x928] sm:$0xff] }
 0xb8f   : > { %13195 = vmatmul.msk.f32.gmra.mxu2 %vm9925_vm3, %v18604_v51  ;;  %13291 = vmatmul.msk.f32.gmra.mxu0 %vm9925_vm3, %v18955_v3 }
 0xb90   : > { %10837 = vmatpush.msra.mxu3 %v13328_v14  ;;  %11143 = vmatpush.msrb.mxu1 %v13427_v45  ;;  %v13476_v14 = vld [vmem:[%s19633_s5 + $0x938] sm:$0xff]  ;;  %v13391_v45 = vld [vmem:[%s19633_s5 + $0x730] sm:$0xff] }
 0xb91   : > { %11090 = vmatpush.msrb.mxu0 %v13412_v62  ;;  %10786 = vmatpush.msra.mxu2 %v13314_v5  ;;  %v13475_v62 = vld [vmem:[%s19633_s5 + $0x930] sm:$0xff]  ;;  %v13376_v5 = vld [vmem:[%s19633_s5 + $0x6d8] sm:$0xff] }
 0xb92   : > { %10838 = vmatpush.msra.mxu3 %v13327_v9  ;;  %11144 = vmatpush.msrb.mxu1 %v13426_v30  ;;  %v13390_v9 = vld [vmem:[%s19633_s5 + $0x728] sm:$0xff] }
 0xb93   : > { %11091 = vmatpush.msrb.mxu0 %v13411_v27  ;;  %10787 = vmatpush.msra.mxu2 %v13313_v11  ;;  %v13378_v30 = vld [vmem:[%s19633_s5 + $0x6e8] sm:$0xff]  ;;  %v13375_v11 = vld [vmem:[%s19633_s5 + $0x6d0] sm:$0xff] }
 0xb94   : > { %13273 = vmatmul.msk.f32.vlgmr.msrb.gmra.mxu3 %vm9925_vm3, %v18528_v25  ;;  %13308 = vmatmul.msk.f32.gmra.mxu1 %vm9925_vm3, %v18694_v22  ;;  %v13410_v25 = vld [vmem:[%s19633_s5 + $0x7a8] sm:$0xff]  ;;  %v13325_v22 = vld [vmem:[%s19633_s5 + $0x5a0] sm:$0xff] }
 0xb95   : > { %10839 = vmatpush.msra.mxu3 %v13326_v63  ;;  %11145 = vmatpush.msrb.mxu1 %v13425_v10  ;;  %v13377_v63 = vld [vmem:[%s19633_s5 + $0x6e0] sm:$0xff] }
 0xb96   : > { %11092 = vmatpush.msrb.mxu0 %v13410_v25  ;;  %10788 = vmatpush.msra.mxu2 %v13312_v50  ;;  %v13473_v10 = vld [vmem:[%s19633_s5 + $0x920] sm:$0xff]  ;;  %v13472_v25 = vld [vmem:[%s19633_s5 + $0x918] sm:$0xff]  ;;  %v13374_v50 = vld [vmem:[%s19633_s5 + $0x6c8] sm:$0xff] }
 0xb97   : > { %13196 = vmatmul.msk.f32.gmra.mxu2 %vm9925_vm3, %v18584_v40  ;;  %13292 = vmatmul.msk.f32.gmra.mxu0 %vm9925_vm3, %v18925_v32  ;;  %v19093_v40 = vrot.slane %v18664_v21, 2 }
 0xb98   : > { %10840 = vmatpush.msra.mxu3 %v13325_v22  ;;  %11146 = vmatpush.msrb.mxu1 %v13424_v52  ;;  %v13464_v52 = vld [vmem:[%s19633_s5 + $0x8f8] sm:$0xff] }
 0xb99   : > { %11093 = vmatpush.msrb.mxu0 %v13409_v38  ;;  %10789 = vmatpush.msra.mxu2 %v13311_v16  ;;  %v19119_v24 = vsel %vm10123_vm6, %v18925_v32, %v19093_v40  ;;  %v13393_v32 = vld [vmem:[%s19633_s5 + $0x740] sm:$0xff]  ;;  %v13471_v38 = vld [vmem:[%s19633_s5 + $0x910] sm:$0xff] }
 0xb9a   : > { %11147 = vmatpush.msrb.mxu1 %v13423_v42  ;;  %11037 = vmatpush.msrb.mxu3 %v13400_v48  ;;  %v13463_v48 = vld [vmem:[%s19633_s5 + $0x8f0] sm:$0xff]  ;;  %v13373_v16 = vld [vmem:[%s19633_s5 + $0x6c0] sm:$0xff] }
 0xb9b   : > { %11094 = vmatpush.msrb.mxu0 %v13408_v35  ;;  %10790 = vmatpush.msra.mxu2 %v13310_v34  ;;  %v13470_v35 = vld [vmem:[%s19633_s5 + $0x908] sm:$0xff]  ;;  %v13461_v34 = vld [vmem:[%s19633_s5 + $0x8e0] sm:$0xff] }
 0xb9c   : > { %13274 = vmatmul.msk.f32.gmra.mxu3 %vm9925_vm3, %v18604_v51  ;;  %13369 = vmatmul.msk.f32.vlgmr.msra.gmra.mxu1 %vm9925_vm3, %v18884_v13  ;;  %v13405_v13 = vld [vmem:[%s19633_s5 + $0x780] sm:$0xff] }
 0xb9d   : > { %11148 = vmatpush.msrb.mxu1 %v13422_v31  ;;  %11095 = vmatpush.msrb.mxu0 %v13407_v60  ;;  %v9988_v31 = vpop.f32.mrf.mxu1  ;;  %v13469_v60 = vld [vmem:[%s19633_s5 + $0x900] sm:$0xff] }
 0xb9e   : > { %11038 = vmatpush.msrb.mxu3 %v13399_v15  ;;  %10791 = vmatpush.msra.mxu2 %v13309_v28  ;;  %v13459_v28 = vld [vmem:[%s19633_s5 + $0x8d0] sm:$0xff] }
 0xb9f   : > { %13257 = vmatmul.msk.f32.vlgmr.msrb.gmra.mxu2 %vm9925_vm3, %v18450_v47  ;;  %13353 = vmatmul.msk.f32.vlgmr.msra.gmra.mxu0 %vm9925_vm3, %v18604_v51  ;;  %v13406_v47 = vld [vmem:[%s19633_s5 + $0x788] sm:$0xff] }
 0xba0   : > { %v13398_v51 = vld [vmem:[%s19633_s5 + $0x768] sm:$0xff]  ;;  %11149 = vmatpush.msrb.mxu1 %v13421_v44  ;;  %11096 = vmatpush.msrb.mxu0 %v13406_v47 }
 0xba1   : > { %11039 = vmatpush.msrb.mxu3 %v13398_v51  ;;  %10985 = vmatpush.msrb.mxu2 %v13384_v36 }
 0xba2   : > { %11097 = vmatpush.msrb.mxu0 %v13405_v13  ;;  %v13448_v13 = vld [vmem:[%s19633_s5 + $0x898] sm:$0xff] }
 0xba3   : > { %11040 = vmatpush.msrb.mxu3 %v13397_v46  ;;  %10986 = vmatpush.msrb.mxu2 %v13383_v43  ;;  %v19263_v46 = vrot.slane %v18661_v23, 4  ;;  %v13457_v43 = vld [vmem:[%s19633_s5 + $0x8c0] sm:$0xff] }
 0xba4   : > { %13275 = vmatmul.msk.f32.gmra.mxu3 %vm9925_vm3, %v19076_v0  ;;  %13370 = vmatmul.msk.f32.gmra.mxu1 %vm9925_vm3, %v18955_v3 }
 0xba5   : > { %11041 = vmatpush.msrb.mxu3 %v13396_v33  ;;  %11294 = vmatpush.msra.mxu0 %v13480_v7  ;;  %v13458_v33 = vld [vmem:[%s19633_s5 + $0x8c8] sm:$0xff] }
 0xba6   : > { %10987 = vmatpush.msrb.mxu2 %v13382_v17 }
 0xba7   : > { %13258 = vmatmul.msk.f32.gmra.mxu2 %vm9925_vm3, %v18493_v2  ;;  %13354 = vmatmul.msk.f32.gmra.mxu0 %vm9925_vm3, %v19076_v0 }
 0xba8   : > { %11042 = vmatpush.msrb.mxu3 %v13395_v26  ;;  %11295 = vmatpush.msra.mxu0 %v13479_v8  ;;  %v13447_v26 = vld [vmem:[%s19633_s5 + $0x890] sm:$0xff]  ;;  %v10771_v8 = vsel %vm9246_vm1, %v18701_v53, %v19263_v46 }
 0xba9   : > { %10988 = vmatpush.msrb.mxu2 %v13381_v12  ;;  %v13455_v53 = vld [vmem:[%s19633_s5 + $0x8b0] sm:$0xff] }
 0xbaa   : > { %11043 = vmatpush.msrb.mxu3 %v13394_v4  ;;  %11296 = vmatpush.msra.mxu0 %v13478_v19  ;;  %v13456_v19 = vld [vmem:[%s19633_s5 + $0x8b8] sm:$0xff] }
 0xbab   : > { %10989 = vmatpush.msrb.mxu2 %v13380_v49  ;;  %v13454_v49 = vld [vmem:[%s19633_s5 + $0x8a8] sm:$0xff] }
 0xbac   : > { %13276 = vmatmul.msk.f32.gmra.mxu3 %vm9925_vm3, %v10614_v56  ;;  %13371 = vmatmul.msk.f32.gmra.mxu1 %vm9925_vm3, %v19119_v24  ;;  %v19235_v56 = vmax.f32 %v18206_v39, %v9988_v31  ;;  %v13460_v39 = vld [vmem:[%s19633_s5 + $0x8d8] sm:$0xff] }
 0xbad   : > { %11044 = vmatpush.msrb.mxu3 %v13393_v32  ;;  %11297 = vmatpush.msra.mxu0 %v13477_v18  ;;  %v13444_v32 = vld [vmem:[%s19633_s5 + $0x878] sm:$0xff] }
 0xbae   : > { %10990 = vmatpush.msrb.mxu2 %v13379_v55  ;;  %v11128_v51 = vrot.slane %v19235_v56, 1 }
 0xbaf   : > { %13259 = vmatmul.msk.f32.gmra.mxu2 %vm9925_vm3, %v18559_v59  ;;  %13355 = vmatmul.msk.f32.gmra.mxu0 %vm9925_vm3, %v19138_v29 }
 0xbb0   : > { %11045 = vmatpush.msrb.mxu3 %v13392_v41  ;;  %11298 = vmatpush.msra.mxu0 %v13476_v14  ;;  %v11129_v7 = vsel %vm10028_vm4, %v19105_v1, %v11128_v51  ;;  %v13442_v14 = vld [vmem:[%s19633_s5 + $0x868] sm:$0xff] }
 0xbb1   : > { %10991 = vmatpush.msrb.mxu2 %v13378_v30 }
 0xbb2   : > { %11046 = vmatpush.msrb.mxu3 %v13391_v45  ;;  %11299 = vmatpush.msra.mxu0 %v13475_v62  ;;  %v13441_v62 = vld [vmem:[%s19633_s5 + $0x860] sm:$0xff] }
 0xbb3   : > { %10992 = vmatpush.msrb.mxu2 %v13377_v63 }
 0xbb4   : > { %13337 = vmatmul.msk.f32.vlgmr.msra.gmra.mxu3 %vm9925_vm3, %v18493_v2  ;;  %13372 = vmatmul.msk.f32.gmra.mxu1 %vm9925_vm3, %v19093_v40  ;;  %v13389_v2 = vld [vmem:[%s19633_s5 + $0x720] sm:$0xff] }
 0xbb5   : > { %11047 = vmatpush.msrb.mxu3 %v13390_v9  ;;  %11300 = vmatpush.msra.mxu0 %v13474_v61  ;;  %v13440_v9 = vld [vmem:[%s19633_s5 + $0x858] sm:$0xff] }
 0xbb6   : > { %10993 = vmatpush.msrb.mxu2 %v13376_v5  ;;  %v11027_v5 = vrot.slane %v18664_v21, 4 }
 0xbb7   : > { %v10098_v27 = vpop.f32.mrf.mxu3  ;;  %13260 = vmatmul.msk.f32.gmra.mxu2 %vm9925_vm3, %v18661_v23  ;;  %13356 = vmatmul.msk.f32.gmra.mxu0 %vm9925_vm3, %v19105_v1  ;;  %v13445_v1 = vld [vmem:[%s19633_s5 + $0x880] sm:$0xff] }
 0xbb8   : > { %11048 = vmatpush.msrb.mxu3 %v13389_v2  ;;  %11301 = vmatpush.msra.mxu0 %v13473_v10  ;;  %v13438_v2 = vld [vmem:[%s19633_s5 + $0x848] sm:$0xff] }
 0xbb9   : > { %10994 = vmatpush.msrb.mxu2 %v13375_v11  ;;  %v10328_v41 = vpop.f32.mrf.mxu1 }
 0xbba   : > { %11302 = vmatpush.msra.mxu0 %v13472_v25  ;;  %11242 = vmatpush.msra.mxu3 %v13464_v52  ;;  %v13437_v25 = vld [vmem:[%s19633_s5 + $0x840] sm:$0xff] }
 0xbbb   : > { %10995 = vmatpush.msrb.mxu2 %v13374_v50 }
 0xbbc   : > { %v19197_v22 = vpop.f32.mrf.mxu0  ;;  %13338 = vmatmul.msk.f32.gmra.mxu3 %vm9925_vm3, %v18559_v59  ;;  %13433 = vmatmul.msk.f32.vlgmr.msrb.gmra.mxu1 %vm9925_vm3, %v19076_v0 }
 0xbbd   : > { %11303 = vmatpush.msra.mxu0 %v13471_v38  ;;  %11243 = vmatpush.msra.mxu3 %v13463_v48 }
 0xbbe   : > { %10996 = vmatpush.msrb.mxu2 %v13373_v16 }
 0xbbf   : > { %v10101_v42 = vpop.f32.mrf.mxu3  ;;  %13321 = vmatmul.msk.f32.vlgmr.msra.gmra.mxu2 %vm9925_vm3, %v18532_v37  ;;  %13417 = vmatmul.msk.f32.vlgmr.msrb.gmra.mxu0 %vm9925_vm3, %v18559_v59  ;;  %v13462_v37 = vld [vmem:[%s19633_s5 + $0x8e8] sm:$0xff] }
 0xbc0   : > { %11304 = vmatpush.msra.mxu0 %v13470_v35  ;;  %11244 = vmatpush.msra.mxu3 %v13462_v37 }
 0xbc1   : > { %11190 = vmatpush.msra.mxu2 %v13448_v13  ;;  %v10331_v63 = vpop.f32.mrf.mxu1 }
 0xbc2   : > { %v10061_v59 = vpop.f32.mrf.mxu2  ;;  %11305 = vmatpush.msra.mxu0 %v13469_v60  ;;  %11245 = vmatpush.msra.mxu3 %v13461_v34 }
 0xbc3   : > { %v19237_v44 = vadd.f32 %v10098_v27, %v10061_v59  ;;  %11191 = vmatpush.msra.mxu2 %v13447_v26  ;;  %v13439_v27 = vld [vmem:[%s19633_s5 + $0x850] sm:$0xff]  ;;  %v11284_v59 = vrot.slane %v19235_v56, 4 }
 0xbc4   : > { %v19242_v15 = vpop.f32.mrf.mxu0  ;;  %13339 = vmatmul.msk.f32.gmra.mxu3 %vm9925_vm3, %v18661_v23  ;;  %13434 = vmatmul.msk.f32.gmra.mxu1 %vm9925_vm3, %v19138_v29  ;;  %v13443_v29 = vld [vmem:[%s19633_s5 + $0x870] sm:$0xff] }
 0xbc5   : > { %11246 = vmatpush.msra.mxu3 %v13460_v39 }
 0xbc7   : > { %v10104_v47 = vpop.f32.mrf.mxu3  ;;  %13322 = vmatmul.msk.f32.gmra.mxu2 %vm9925_vm3, %v18744_v57  ;;  %13418 = vmatmul.msk.f32.gmra.mxu0 %vm9925_vm3, %v18661_v23  ;;  %v13446_v23 = vld [vmem:[%s19633_s5 + $0x888] sm:$0xff] }
 0xbc8   : > { %11247 = vmatpush.msra.mxu3 %v13459_v28  ;;  %11192 = vmatpush.msra.mxu2 %v13446_v23 }
 0xbc9   : > { %v10334_v35 = vpop.f32.mrf.mxu1 }
 0xbca   : > { %v10064_v0 = vpop.f32.mrf.mxu2  ;;  %11248 = vmatpush.msra.mxu3 %v13458_v33  ;;  %11193 = vmatpush.msra.mxu2 %v13445_v1 }
 0xbcb   : > { %v19271_v36 = vadd.f32 %v10101_v42, %v10064_v0  ;;  %v11028_v42 = vsel %vm9246_vm1, %v19263_v46, %v11027_v5 }
 0xbcc   : > { %v19275_v4 = vpop.f32.mrf.mxu0  ;;  %13340 = vmatmul.msk.f32.gmra.mxu3 %vm9925_vm3, %v18664_v21  ;;  %13435 = vmatmul.msk.f32.gmra.mxu1 %vm9925_vm3, %v11129_v7 }
 0xbcd   : > { %11249 = vmatpush.msra.mxu3 %v13457_v43  ;;  %11194 = vmatpush.msra.mxu2 %v13444_v32 }
 0xbcf   : > { %v10107_v17 = vpop.f32.mrf.mxu3  ;;  %13323 = vmatmul.msk.f32.gmra.mxu2 %vm9925_vm3, %v10771_v8  ;;  %13419 = vmatmul.msk.f32.gmra.mxu0 %vm9925_vm3, %v18664_v21 }
 0xbd0   : > { %11250 = vmatpush.msra.mxu3 %v13456_v19  ;;  %11195 = vmatpush.msra.mxu2 %v13443_v29 }
 0xbd2   : > { %v10067_v12 = vpop.f32.mrf.mxu2  ;;  %11251 = vmatpush.msra.mxu3 %v13455_v53  ;;  %11196 = vmatpush.msra.mxu2 %v13442_v14 }
 0xbd3   : > { %v10105_v18 = vadd.f32 %v10104_v47, %v10067_v12 }
 0xbd4   : > { %13401 = vmatmul.msk.f32.vlgmr.msrb.gmra.mxu3 %vm9925_vm3, %v18744_v57  ;;  %13436 = vmatmul.msk.f32.gmra.mxu1 %vm9925_vm3, %v11128_v51  ;;  %v19316_v45 = vpop.f32.mrf.mxu0  ;;  %v13453_v57 = vld [vmem:[%s19633_s5 + $0x8a0] sm:$0xff]  ;;  %v10337_v51 = vpop.f32.mrf.mxu1 }
 0xbd5   : > { %11252 = vmatpush.msra.mxu3 %v13454_v49  ;;  %11197 = vmatpush.msra.mxu2 %v13441_v62  ;;  %v11180_v49 = vrot.slane %v19235_v56, 2 }
 0xbd7   : > { %v10218_v55 = vpop.f32.mrf.mxu3  ;;  %13324 = vmatmul.msk.f32.gmra.mxu2 %vm9925_vm3, %v19263_v46  ;;  %13420 = vmatmul.msk.f32.gmra.mxu0 %vm9925_vm3, %v19235_v56 }
 0xbd8   : > { %11253 = vmatpush.msra.mxu3 %v13453_v57  ;;  %11198 = vmatpush.msra.mxu2 %v13440_v9 }
 0xbda   : > { %v10070_v30 = vpop.f32.mrf.mxu2  ;;  %11199 = vmatpush.msra.mxu2 %v13439_v27 }
 0xbdb   : > { %v10108_v61 = vadd.f32 %v10107_v17, %v10070_v30 }
 0xbdc   : > { %13402 = vmatmul.msk.f32.gmra.mxu3 %vm9925_vm3, %v10771_v8  ;;  %v10484_v52 = vpop.f32.mrf.mxu0  ;;  %11200 = vmatpush.msra.mxu2 %v13438_v2  ;;  %v10536_v7 = vpop.f32.mrf.mxu1 }
 0xbde   : > { %11201 = vmatpush.msra.mxu2 %v13437_v25 }
 0xbdf   : > { %v10221_v10 = vpop.f32.mrf.mxu3  ;;  %13385 = vmatmul.msk.f32.vlgmr.msrb.gmra.mxu2 %vm9925_vm3, %v18767_v20  ;;  %13481 = vmatmul.msk.f32.vlgmr.msra.gmra.mxu0 %vm9925_vm3, %v10771_v8 }
 0xbe2   : > { %v10156_v11 = vpop.f32.mrf.mxu2 }
 0xbe3   : > { %v10168_v38 = vadd.f32 %v10156_v11, %v19237_v44  ;;  %v11285_v44 = vsel %vm9246_vm1, %v11027_v5, %v11284_v59 }
 0xbe4   : > { %13403 = vmatmul.msk.f32.gmra.mxu3 %vm9925_vm3, %v11028_v42  ;;  %v10487_v31 = vpop.f32.mrf.mxu0  ;;  %v10539_v12 = vpop.f32.mrf.mxu1 }
 0xbe5   : > { %v10230_v20 = vadd.f32 %v10218_v55, %v10168_v38 }
 0xbe7   : > { %v10224_v50 = vpop.f32.mrf.mxu3  ;;  %13386 = vmatmul.msk.f32.gmra.mxu2 %vm9925_vm3, %v18936_v58  ;;  %13482 = vmatmul.msk.f32.gmra.mxu0 %vm9925_vm3, %v11028_v42  ;;  %v10291_v21 = vadd.f32 %v19197_v22, %v10230_v20 }
 0xbe9   : > { %v10340_v48 = vadd.f32 %v10328_v41, %v10291_v21 }
 0xbea   : > { %v10159_v37 = vpop.f32.mrf.mxu2 }
 0xbeb   : > { %v10169_v16 = vadd.f32 %v10159_v37, %v19271_v36 }
 0xbec   : > { %13404 = vmatmul.msk.f32.gmra.mxu3 %vm9925_vm3, %v11027_v5  ;;  %v10490_v13 = vpop.f32.mrf.mxu0  ;;  %v10542_v62 = vpop.f32.mrf.mxu1 }
 0xbed   : > { %v10231_v60 = vadd.f32 %v10221_v10, %v10169_v16 }
 0xbef   : > { %v10227_v34 = vpop.f32.mrf.mxu3  ;;  %13387 = vmatmul.msk.f32.gmra.mxu2 %vm9925_vm3, %v18715_v54  ;;  %13483 = vmatmul.msk.f32.gmra.mxu0 %vm9925_vm3, %v11285_v44  ;;  %v10292_v22 = vadd.f32 %v19242_v15, %v10231_v60 }
 0xbf1   : > { %v10341_v39 = vadd.f32 %v10331_v63, %v10292_v22 }
 0xbf2   : > { %v10162_v47 = vpop.f32.mrf.mxu2 }
 0xbf3   : > { %v10170_v28 = vadd.f32 %v10162_v47, %v10105_v18 }
 0xbf4   : > { %13465 = vmatmul.msk.f32.vlgmr.msra.gmra.mxu3 %vm9925_vm3, %v18936_v58  ;;  %v10493_v43 = vpop.f32.mrf.mxu0  ;;  %v11232_v58 = vrot.slane %v19235_v56, 3  ;;  %v10545_v25 = vpop.f32.mrf.mxu1 }
 0xbf5   : > { %v10232_v0 = vadd.f32 %v10224_v50, %v10170_v28 }
 0xbf6   : > { %v11233_v32 = vsel %vm10185_vm5, %v18688_v6, %v11232_v58 }
 0xbf7   : > { %v10432_v46 = vpop.f32.mrf.mxu3  ;;  %13388 = vmatmul.msk.f32.gmra.mxu2 %vm9925_vm3, %v18688_v6  ;;  %13484 = vmatmul.msk.f32.gmra.mxu0 %vm9925_vm3, %v11284_v59  ;;  %v10293_v33 = vadd.f32 %v19275_v4, %v10232_v0  ;;  %v11181_v6 = vsel %vm10123_vm6, %v19093_v40, %v11180_v49 }
 0xbf9   : > { %v10342_v26 = vadd.f32 %v10334_v35, %v10293_v33 }
 0xbfa   : > { %v10165_v36 = vpop.f32.mrf.mxu2 }
 0xbfb   : > { %v10171_v15 = vadd.f32 %v10165_v36, %v10108_v61 }
 0xbfc   : > { %13466 = vmatmul.msk.f32.gmra.mxu3 %vm9925_vm3, %v18715_v54  ;;  %v10741_v35 = vpop.f32.mrf.mxu1 }
 0xbfd   : > { %v10233_v23 = vadd.f32 %v10227_v34, %v10171_v15 }
 0xbff   : > { %v10435_v1 = vpop.f32.mrf.mxu3  ;;  %13449 = vmatmul.msk.f32.vlgmr.msra.gmra.mxu2 %vm9925_vm3, %v18955_v3  ;;  %v10294_v8 = vadd.f32 %v19316_v45, %v10233_v23  ;;  %v10689_v3 = vpop.f32.mrf.mxu0 }
 0xc01   : > { %v10343_v17 = vadd.f32 %v10337_v51, %v10294_v8 }
 0xc02   : > { %v10380_v19 = vpop.f32.mrf.mxu2 }
 0xc03   : > { %v10392_v4 = vadd.f32 %v10380_v19, %v10340_v48 }
 0xc04   : > { %13467 = vmatmul.msk.f32.gmra.mxu3 %vm9925_vm3, %v11233_v32 }
 0xc05   : > { %v10444_v54 = vadd.f32 %v10432_v46, %v10392_v4 }
 0xc07   : > { %v10438_v53 = vpop.f32.mrf.mxu3  ;;  %13450 = vmatmul.msk.f32.gmra.mxu2 %vm9925_vm3, %v19119_v24  ;;  %v10496_v29 = vadd.f32 %v10484_v52, %v10444_v54  ;;  %v10692_v24 = vpop.f32.mrf.mxu0 }
 0xc09   : > { %v10548_v18 = vadd.f32 %v10536_v7, %v10496_v29 }
 0xc0a   : > { %v10383_v41 = vpop.f32.mrf.mxu2 }
 0xc0b   : > { %v10393_v14 = vadd.f32 %v10383_v41, %v10341_v39  ;;  %v10744_v39 = vpop.f32.mrf.mxu1 }
 0xc0c   : > { %13468 = vmatmul.msk.f32.gmra.mxu3 %vm9925_vm3, %v11232_v58 }
 0xc0d   : > { %v10445_v45 = vadd.f32 %v10435_v1, %v10393_v14 }
 0xc0f   : > { %v10441_v55 = vpop.f32.mrf.mxu3  ;;  %13451 = vmatmul.msk.f32.gmra.mxu2 %vm9925_vm3, %v11181_v6  ;;  %v10497_v57 = vadd.f32 %v10487_v31, %v10445_v45  ;;  %v10695_v52 = vpop.f32.mrf.mxu0 }
 0xc11   : > { %v10549_v9 = vadd.f32 %v10539_v12, %v10497_v57 }
 0xc12   : > { %v10386_v30 = vpop.f32.mrf.mxu2 }
 0xc13   : > { %v10394_v61 = vadd.f32 %v10386_v30, %v10342_v26  ;;  %v10747_v23 = vpop.f32.mrf.mxu1 }
 0xc15   : > { %v10446_v27 = vadd.f32 %v10438_v53, %v10394_v61 }
 0xc17   : > { %v10637_v2 = vpop.f32.mrf.mxu3  ;;  %13452 = vmatmul.msk.f32.gmra.mxu2 %vm9925_vm3, %v11180_v49  ;;  %v10498_v56 = vadd.f32 %v10490_v13, %v10446_v27  ;;  %v10698_v48 = vpop.f32.mrf.mxu0 }
 0xc19   : > { %v10550_v63 = vadd.f32 %v10542_v62, %v10498_v56 }
 0xc1a   : > { %v10389_v10 = vpop.f32.mrf.mxu2 }
 0xc1b   : > { %v10395_v5 = vadd.f32 %v10389_v10, %v10343_v17  ;;  %v10750_v54 = vpop.f32.mrf.mxu1 }
 0xc1d   : > { %v10447_v40 = vadd.f32 %v10441_v55, %v10395_v5 }
 0xc1f   : > { %v10640_v11 = vpop.f32.mrf.mxu3  ;;  %v10499_v38 = vadd.f32 %v10493_v43, %v10447_v40  ;;  %v10894_v47 = vpop.f32.mrf.mxu0 }
 0xc21   : > { %v10551_v42 = vadd.f32 %v10545_v25, %v10499_v38 }
 0xc22   : > { %v10585_v20 = vpop.f32.mrf.mxu2 }
 0xc23   : > { %v10597_v50 = vadd.f32 %v10585_v20, %v10548_v18  ;;  %v10946_v49 = vpop.f32.mrf.mxu1 }
 0xc25   : > { %v10649_v21 = vadd.f32 %v10637_v2, %v10597_v50 }
 0xc27   : > { %v10643_v31 = vpop.f32.mrf.mxu3  ;;  %v10701_v37 = vadd.f32 %v10689_v3, %v10649_v21  ;;  %v10897_v26 = vpop.f32.mrf.mxu0 }
 0xc29   : > { %v10753_v59 = vadd.f32 %v10741_v35, %v10701_v37 }
 0xc2a   : > { %v10588_v16 = vpop.f32.mrf.mxu2 }
 0xc2b   : > { %v10598_v60 = vadd.f32 %v10588_v16, %v10549_v9  ;;  %v10949_v57 = vpop.f32.mrf.mxu1 }
 0xc2d   : > { %v10650_v44 = vadd.f32 %v10640_v11, %v10598_v60 }
 0xc2f   : > { %v10646_v34 = vpop.f32.mrf.mxu3  ;;  %v10702_v22 = vadd.f32 %v10692_v24, %v10650_v44  ;;  %v10900_v17 = vpop.f32.mrf.mxu0 }
 0xc31   : > { %v10754_v51 = vadd.f32 %v10744_v39, %v10702_v22 }
 0xc32   : > { %v10591_v28 = vpop.f32.mrf.mxu2 }
 0xc33   : > { %v10599_v13 = vadd.f32 %v10591_v28, %v10550_v63  ;;  %v10952_v30 = vpop.f32.mrf.mxu1 }
 0xc35   : > { %v10651_v0 = vadd.f32 %v10643_v31, %v10599_v13 }
 0xc37   : > { %v10842_v46 = vpop.f32.mrf.mxu3  ;;  %v10703_v33 = vadd.f32 %v10695_v52, %v10651_v0  ;;  %v10903_v3 = vpop.f32.mrf.mxu0 }
 0xc39   : > { %v10755_v25 = vadd.f32 %v10747_v23, %v10703_v33 }
 0xc3a   : > { %v10594_v36 = vpop.f32.mrf.mxu2 }
 0xc3b   : > { %v10600_v15 = vadd.f32 %v10594_v36, %v10551_v42  ;;  %v10955_v56 = vpop.f32.mrf.mxu1 }
 0xc3d   : > { %v10652_v7 = vadd.f32 %v10646_v34, %v10600_v15 }
 0xc3f   : > { %v10845_v43 = vpop.f32.mrf.mxu3  ;;  %v10704_v1 = vadd.f32 %v10698_v48, %v10652_v7  ;;  %v11099_v6 = vpop.f32.mrf.mxu0 }
 0xc41   : > { %v10756_v42 = vadd.f32 %v10750_v54, %v10704_v1 }
 0xc42   : > { %v10793_v58 = vpop.f32.mrf.mxu2 }
 0xc43   : > { %v10805_v8 = vadd.f32 %v10793_v58, %v10753_v59  ;;  %v11151_v40 = vpop.f32.mrf.mxu1 }
 0xc45   : > { %v10854_v19 = vadd.f32 %v10842_v46, %v10805_v8 }
 0xc47   : > { %v10848_v4 = vpop.f32.mrf.mxu3  ;;  %v10906_v32 = vadd.f32 %v10894_v47, %v10854_v19  ;;  %v11102_v9 = vpop.f32.mrf.mxu0 }
 0xc49   : > { %v10958_v22 = vadd.f32 %v10946_v49, %v10906_v32 }
 0xc4a   : > { %v10796_v12 = vpop.f32.mrf.mxu2 }
 0xc4b   : > { %v10806_v53 = vadd.f32 %v10796_v12, %v10754_v51  ;;  %v11154_v37 = vpop.f32.mrf.mxu1 }
 0xc4d   : > { %v10855_v29 = vadd.f32 %v10845_v43, %v10806_v53 }
 0xc4f   : > { %v10851_v18 = vpop.f32.mrf.mxu3  ;;  %v10907_v41 = vadd.f32 %v10897_v26, %v10855_v29  ;;  %v11105_v2 = vpop.f32.mrf.mxu0 }
 0xc51   : > { %v10959_v16 = vadd.f32 %v10949_v57, %v10907_v41 }
 0xc52   : > { %v10799_v14 = vpop.f32.mrf.mxu2 }
 0xc53   : > { %v10807_v52 = vadd.f32 %v10799_v14, %v10755_v25  ;;  %v11157_v26 = vpop.f32.mrf.mxu1 }
 0xc55   : > { %v10856_v38 = vadd.f32 %v10848_v4, %v10807_v52 }
 0xc57   : > { %v11050_v45 = vpop.f32.mrf.mxu3  ;;  %v11108_v5 = vpop.f32.mrf.mxu0  ;;  %v10908_v35 = vadd.f32 %v10900_v17, %v10856_v38  ;;  %v13490_v38 = vld [vmem:[%s19635_s7 + $0x8] sm:$0xf] }
 0xc59   : > { %v10960_v59 = vadd.f32 %v10952_v30, %v10908_v35  ;;  %v11445_v35 = vld [vmem:[%s19636_s8 + $0x20] sm:$0xff] }
 0xc5a   : > { %v10802_v55 = vpop.f32.mrf.mxu2 }
 0xc5b   : > { %v10808_v50 = vadd.f32 %v10802_v55, %v10756_v42  ;;  %v11160_v53 = vpop.f32.mrf.mxu1  ;;  %v11448_v42 = vld [vmem:[%s19636_s8 + $0x38] sm:$0xff] }
 0xc5d   : > { %v10857_v31 = vadd.f32 %v10851_v18, %v10808_v50  ;;  %v13493_v50 = vld [vmem:[%s19635_s7 + $0xc] sm:$0xf] }
 0xc5f   : > { %v11053_v62 = vpop.f32.mrf.mxu3  ;;  %v11307_v21 = vpop.f32.mrf.mxu0  ;;  %v10909_v44 = vadd.f32 %v10903_v3, %v10857_v31  ;;  %v11443_v31 = vld [vmem:[%s19636_s8 + $0x10] sm:$0xff] }
 0xc61   : > { %v10961_v0 = vadd.f32 %v10955_v56, %v10909_v44  ;;  %v13523_v44 = vld [vmem:[%s19637_s9 + $0xf8] sm:$0xff] }
 0xc62   : > { %v10998_v24 = vpop.f32.mrf.mxu2 }
 0xc63   : > { %v11010_v28 = vadd.f32 %v10998_v24, %v10958_v22  ;;  %v13502_v22 = vld [vmem:[%s19637_s9 + $0x68] sm:$0xff] }
 0xc65   : > { %v11062_v36 = vadd.f32 %v11050_v45, %v11010_v28  ;;  %v13521_v28 = vld [vmem:[%s19637_s9 + $0xe8] sm:$0xff] }
 0xc67   : > { %v11056_v61 = vpop.f32.mrf.mxu3  ;;  %v11310_v47 = vpop.f32.mrf.mxu0  ;;  %v11111_v58 = vadd.f32 %v11099_v6, %v11062_v36  ;;  %v13540_v6 = vld [vmem:[%s19634_s6] ss:$0 sm:$0xff] }
 0xc69   : > { %v11163_v54 = vadd.f32 %v11151_v40, %v11111_v58  ;;  %v13487_v40 = vld [vmem:[%s19635_s7 + $0x4] sm:$0xf] }
 0xc6a   : > { %v11001_v27 = vpop.f32.mrf.mxu2  ;;  %v11478_v58 = vld [vmem:[%s19637_s9 + $0x20] sm:$0xff] }
 0xc6b   : > { %v11011_v39 = vadd.f32 %v11001_v27, %v10959_v16  ;;  %v13504_v16 = vld [vmem:[%s19637_s9 + $0x78] sm:$0xff] }
 0xc6d   : > { %v11063_v46 = vadd.f32 %v11053_v62, %v11011_v39  ;;  %v13522_v39 = vld [vmem:[%s19637_s9 + $0xf0] sm:$0xff] }
 0xc6f   : > { %v11059_v10 = vpop.f32.mrf.mxu3  ;;  %v11112_v23 = vadd.f32 %v11102_v9, %v11063_v46  ;;  %v11313_v17 = vpop.f32.mrf.mxu0 }
 0xc71   : > { %v11164_v19 = vadd.f32 %v11154_v37, %v11112_v23  ;;  %v11442_v37 = vld [vmem:[%s19636_s8 + $0x8] sm:$0xff] }
 0xc72   : > { %v11004_v63 = vpop.f32.mrf.mxu2 }
 0xc73   : > { %v11012_v60 = vadd.f32 %v11004_v63, %v10960_v59  ;;  %v11441_v59 = vld [vmem:[%s19636_s8] sm:$0xff] }
 0xc75   : > { %v11064_v13 = vadd.f32 %v11056_v61, %v11012_v60  ;;  %v13503_v60 = vld [vmem:[%s19637_s9 + $0x70] sm:$0xff] }
 0xc77   : > { %v11255_v20 = vpop.f32.mrf.mxu3  ;;  %v11113_v15 = vadd.f32 %v11105_v2, %v11064_v13  ;;  %v11316_v9 = vpop.f32.mrf.mxu0  ;;  %v13501_v13 = vld [vmem:[%s19637_s9 + $0x60] sm:$0xff] }
 0xc79   : > { %v11165_v8 = vadd.f32 %v11157_v26, %v11113_v15 }
 0xc7a   : > { %v11007_v11 = vpop.f32.mrf.mxu2 }
 0xc7b   : > { %v11013_v33 = vadd.f32 %v11007_v11, %v10961_v0  ;;  %v11335_v11 = vld [vmem:[%s19635_s7] sm:$0xf]  ;;  %v13500_v0 = vld [vmem:[%s19637_s9 + $0x58] sm:$0xff] }
 0xc7d   : > { %v11065_v7 = vadd.f32 %v11059_v10, %v11013_v33 }
 0xc7f   : > { %v11258_v34 = vpop.f32.mrf.mxu3  ;;  %v11114_v32 = vadd.f32 %v11108_v5, %v11065_v7 }
 0xc81   : > { %v11166_v18 = vadd.f32 %v11160_v53, %v11114_v32  ;;  %v13519_v32 = vld [vmem:[%s19637_s9 + $0xd8] sm:$0xff]  ;;  %v13499_v53 = vld [vmem:[%s19637_s9 + $0x50] sm:$0xff] }
 0xc82   : > { %v11203_v48 = vpop.f32.mrf.mxu2 }
 0xc83   : > { %v11215_v29 = vadd.f32 %v11203_v48, %v11163_v54  ;;  %v11444_v48 = vld [vmem:[%s19636_s8 + $0x18] sm:$0xff]  ;;  %v11476_v54 = vld [vmem:[%s19637_s9 + $0x10] sm:$0xff] }
 0xc85   : > { %v11267_v55 = vadd.f32 %v11255_v20, %v11215_v29  ;;  %v11447_v20 = vld [vmem:[%s19636_s8 + $0x30] sm:$0xff] }
 0xc86   : > { %v13518_v29 = vld [vmem:[%s19637_s9 + $0xd0] sm:$0xff] }
 0xc87   : > { %v11261_v43 = vpop.f32.mrf.mxu3  ;;  %v11319_v61 = vadd.f32 %v11307_v21, %v11267_v55  ;;  %v11446_v21 = vld [vmem:[%s19636_s8 + $0x28] sm:$0xff]  ;;  %v13497_v55 = vld [vmem:[%s19637_s9 + $0x40] sm:$0xff] }
 0xc89   : > { %v11327_v10 = vadd.f32 %v13540_v6, %v11319_v61  ;;  %v11616_v61 = vld [vmem:[%s19639_s11 + $0x50] sm:$0xff] }
 0xc8a   : > { %v11206_v51 = vpop.f32.mrf.mxu2 }
 0xc8b   : > { %v11216_v12 = vadd.f32 %v11206_v51, %v11164_v19  ;;  %v11331_v52 = vmax.f32 %v11327_v10, 0.0  ;;  %v13514_v51 = vld [vmem:[%s19637_s9 + $0xb8] sm:$0xff] }
 0xc8c   : > { %11557 = vmatpush.msrb.mxu0 %v13514_v51  ;;  %v11477_v19 = vld [vmem:[%s19637_s9 + $0x18] sm:$0xff] }
 0xc8d   : > { %v11268_v49 = vadd.f32 %v11258_v34, %v11216_v12  ;;  %v11481_v34 = vld [vmem:[%s19637_s9 + $0x38] sm:$0xff] }
 0xc8e   : > { %v13510_v12 = vld [vmem:[%s19637_s9 + $0x98] sm:$0xff] }
 0xc8f   : > { %v11264_v45 = vpop.f32.mrf.mxu3  ;;  %v11320_v24 = vadd.f32 %v11310_v47, %v11268_v49  ;;  %v11480_v47 = vld [vmem:[%s19637_s9 + $0x30] sm:$0xff]  ;;  %v13517_v49 = vld [vmem:[%s19637_s9 + $0xc8] sm:$0xff] }
 0xc91   : > { %v11328_v56 = vadd.f32 %v13540_v6, %v11320_v24  ;;  %v11618_v24 = vld [vmem:[%s19639_s11 + $0x60] sm:$0xff] }
 0xc92   : > { %v11209_v1 = vpop.f32.mrf.mxu2 }
 0xc93   : > { %v11217_v4 = vadd.f32 %v11209_v1, %v11165_v8  ;;  %v11332_v25 = vmax.f32 %v11328_v56, 0.0  ;;  %v13513_v1 = vld [vmem:[%s19637_s9 + $0xb0] sm:$0xff]  ;;  %v13512_v8 = vld [vmem:[%s19637_s9 + $0xa8] sm:$0xff]  ;;  %v11613_v56 = vld [vmem:[%s19639_s11 + $0x38] sm:$0xff] }
 0xc94   : > { %11558 = vmatpush.msrb.mxu0 %v13513_v1 }
 0xc95   : > { %v11269_v3 = vadd.f32 %v11261_v43, %v11217_v4  ;;  %v11479_v43 = vld [vmem:[%s19637_s9 + $0x28] sm:$0xff]  ;;  %v13511_v4 = vld [vmem:[%s19637_s9 + $0xa0] sm:$0xff] }
 0xc96   : > { %11559 = vmatpush.msrb.mxu0 %v13512_v8 }
 0xc97   : > { %v11321_v57 = vadd.f32 %v11313_v17, %v11269_v3  ;;  %v13520_v17 = vld [vmem:[%s19637_s9 + $0xe0] sm:$0xff]  ;;  %v11475_v3 = vld [vmem:[%s19637_s9 + $0x8] sm:$0xff] }
 0xc98   : > { %11560 = vmatpush.msrb.mxu0 %v13511_v4 }
 0xc99   : > { %v11329_v27 = vadd.f32 %v13540_v6, %v11321_v57  ;;  %v13516_v57 = vld [vmem:[%s19637_s9 + $0xc0] sm:$0xff] }
 0xc9a   : > { %v11212_v41 = vpop.f32.mrf.mxu2  ;;  %11561 = vmatpush.msrb.mxu0 %v13510_v12 }
 0xc9b   : > { %v11218_v14 = vadd.f32 %v11212_v41, %v11166_v18  ;;  %v11333_v5 = vmax.f32 %v11329_v27, 0.0  ;;  %v13509_v18 = vld [vmem:[%s19637_s9 + $0x90] sm:$0xff]  ;;  %v13498_v41 = vld [vmem:[%s19637_s9 + $0x48] sm:$0xff] }
 0xc9c   : > { %11562 = vmatpush.msrb.mxu0 %v13509_v18  ;;  %v11615_v27 = vld [vmem:[%s19639_s11 + $0x48] sm:$0xff] }
 0xc9d   : > { %v11270_v62 = vadd.f32 %v11264_v45, %v11218_v14  ;;  %v11474_v14 = vld [vmem:[%s19637_s9] sm:$0xff]  ;;  %v13508_v45 = vld [vmem:[%s19637_s9 + $0x88] sm:$0xff] }
 0xc9e   : > { %11563 = vmatpush.msrb.mxu0 %v13508_v45 }
 0xc9f   : > { %v11322_v30 = vadd.f32 %v11316_v9, %v11270_v62  ;;  %v13507_v62 = vld [vmem:[%s19637_s9 + $0x80] sm:$0xff]  ;;  %v11620_v9 = vld [vmem:[%s19639_s11 + $0x70] sm:$0xff] }
 0xca0   : > { %11564 = vmatpush.msrb.mxu0 %v13507_v62 }
 0xca1   : > { %v11330_v2 = vadd.f32 %v13540_v6, %v11322_v30  ;;  %v11619_v6 = vld [vmem:[%s19639_s11 + $0x68] sm:$0xff]  ;;  %v11617_v30 = vld [vmem:[%s19639_s11 + $0x58] sm:$0xff] }
 0xca3   : > { %v11334_v63 = vmax.f32 %v11330_v2, 0.0  ;;  %v11614_v2 = vld [vmem:[%s19639_s11 + $0x40] sm:$0xff] }
 0xca5   : > { %13485 = vmatpush.msk.msra.mxu1 %vm9246_vm1, %v11334_v63  ;;  %13488 = vmatpush.msk.msrb.mxu2 %vm9246_vm1, %v11334_v63 }
 0xca6   : > { %13491 = vmatpush.msk.msrb.mxu3 %vm9246_vm1, %v11334_v63 }
 0xca7   : > { %11356 = vmatpush.msra.mxu1 %v11333_v5  ;;  %11381 = vmatpush.msrb.mxu2 %v11333_v5 }
 0xca8   : > { %11407 = vmatpush.msrb.mxu3 %v11333_v5 }
 0xca9   : > { %11357 = vmatpush.msra.mxu1 %v11332_v25  ;;  %11382 = vmatpush.msrb.mxu2 %v11332_v25 }
 0xcaa   : > { %11408 = vmatpush.msrb.mxu3 %v11332_v25 }
 0xcab   : > { %11358 = vmatpush.msra.mxu1 %v11331_v52  ;;  %11383 = vmatpush.msrb.mxu2 %v11331_v52 }
 0xcac   : > { %11409 = vmatpush.msrb.mxu3 %v11331_v52  ;;  %13489 = vmatmul.msk.f32.vlgmr.msrb.gmra.mxu2 %vm11336_vm7, %v13487_v40 }
 0xcad   : > { %13494 = vmatpush.msk.msrb.mxu1 %vm9246_vm1, %v11334_v63  ;;  %13492 = vmatmul.msk.f32.vlgmr.msrb.gmra.mxu3 %vm11336_vm7, %v13490_v38  ;;  %v11612_v63 = vld [vmem:[%s19639_s11 + $0x30] sm:$0xff]  ;;  %v11610_v38 = vld [vmem:[%s19639_s11 + $0x20] sm:$0xff] }
 0xcae   : > { %13486 = vmatmul.msk.f32.vlgmr.msra.gmra.mxu1 %vm11336_vm7, %v11335_v11  ;;  %11461 = vmatpush.msra.mxu2 %v11448_v42  ;;  %v11611_v11 = vld [vmem:[%s19639_s11 + $0x28] sm:$0xff]  ;;  %v11609_v42 = vld [vmem:[%s19639_s11 + $0x18] sm:$0xff] }
 0xcaf   : > { %11433 = vmatpush.msrb.mxu1 %v11333_v5  ;;  %11503 = vmatpush.msra.mxu3 %v13504_v16  ;;  %v11652_v16 = vld [vmem:[%s19641_s13 + $0x28] sm:$0xff] }
 0xcb0   : > { %11462 = vmatpush.msra.mxu2 %v11447_v20  ;;  %v11608_v20 = vld [vmem:[%s19639_s11 + $0x10] sm:$0xff] }
 0xcb1   : > { %11434 = vmatpush.msrb.mxu1 %v11332_v25  ;;  %11504 = vmatpush.msra.mxu3 %v13503_v60  ;;  %v11651_v60 = vld [vmem:[%s19641_s13 + $0x20] sm:$0xff] }
 0xcb2   : > { %11463 = vmatpush.msra.mxu2 %v11446_v21  ;;  %v11606_v21 = vld [vmem:[%s19639_s11] sm:$0xff] }
 0xcb3   : > { %11435 = vmatpush.msrb.mxu1 %v11331_v52  ;;  %11505 = vmatpush.msra.mxu3 %v13502_v22 }
 0xcb4   : > { %11464 = vmatpush.msra.mxu2 %v11445_v35  ;;  %v11657_v35 = vld [vmem:[%s19641_s13 + $0x50] sm:$0xf] }
 0xcb5   : > { %11525 = vmatpush.msra.mxu1 %v11481_v34  ;;  %11506 = vmatpush.msra.mxu3 %v13501_v13  ;;  %v11603_v13 = vld [vmem:[%s19638_s10] sm:$0x1] }
 0xcb6   : > { %13495 = vmatmul.msk.f32.vlgmr.msrb.gmra.mxu1 %vm11336_vm7, %v13493_v50  ;;  %11465 = vmatpush.msra.mxu2 %v11444_v48  ;;  %v11607_v50 = vld [vmem:[%s19639_s11 + $0x8] sm:$0xff] }
 0xcb7   : > { %11526 = vmatpush.msra.mxu1 %v11480_v47  ;;  %11507 = vmatpush.msra.mxu3 %v13500_v0  ;;  %v11656_v48 = vld [vmem:[%s19641_s13 + $0x48] sm:$0xff] }
 0xcb8   : > { %11466 = vmatpush.msra.mxu2 %v11443_v31  ;;  %v11655_v31 = vld [vmem:[%s19641_s13 + $0x40] sm:$0xff] }
 0xcb9   : > { %11527 = vmatpush.msra.mxu1 %v11479_v43  ;;  %11508 = vmatpush.msra.mxu3 %v13499_v53 }
 0xcba   : > { %11467 = vmatpush.msra.mxu2 %v11442_v37  ;;  %v11654_v37 = vld [vmem:[%s19641_s13 + $0x38] sm:$0xff] }
 0xcbb   : > { %11528 = vmatpush.msra.mxu1 %v11478_v58  ;;  %11509 = vmatpush.msra.mxu3 %v13498_v41  ;;  %v11658_v58 = vld [vmem:[#allocation2] sm:$0x1] }
 0xcbc   : > { %11468 = vmatpush.msra.mxu2 %v11441_v59  ;;  %v11653_v59 = vld [vmem:[%s19641_s13 + $0x30] sm:$0xff] }
 0xcbd   : > { %11529 = vmatpush.msra.mxu1 %v11477_v19  ;;  %11510 = vmatpush.msra.mxu3 %v13497_v55 }
 0xcbe   : > { %11590 = vmatpush.msrb.mxu2 %v13523_v44  ;;  %v11650_v44 = vld [vmem:[%s19641_s13 + $0x18] sm:$0xff] }
 0xcbf   : > { %11530 = vmatpush.msra.mxu1 %v11476_v54  ;;  %11627 = vmatpush.msrb.mxu3 %v11620_v9 }
 0xcc0   : > { %11591 = vmatpush.msrb.mxu2 %v13522_v39 }
 0xcc1   : > { %11531 = vmatpush.msra.mxu1 %v11475_v3  ;;  %11628 = vmatpush.msrb.mxu3 %v11619_v6 }
 0xcc2   : > { %11592 = vmatpush.msrb.mxu2 %v13521_v28 }
 0xcc3   : > { %11532 = vmatpush.msra.mxu1 %v11474_v14  ;;  %11629 = vmatpush.msrb.mxu3 %v11618_v24 }
 0xcc4   : > { %11593 = vmatpush.msrb.mxu2 %v13520_v17 }
 0xcc5   : > { %11630 = vmatpush.msrb.mxu3 %v11617_v30  ;;  %13526 = vmatpush.msk.msrb.mxu1 %vm9246_vm1, %v11657_v35 }
 0xcc6   : > { %11594 = vmatpush.msrb.mxu2 %v13519_v32 }
 0xcc7   : > { %11631 = vmatpush.msrb.mxu3 %v11616_v61  ;;  %11672 = vmatpush.msrb.mxu1 %v11656_v48 }
 0xcc8   : > { %11595 = vmatpush.msrb.mxu2 %v13518_v29 }
 0xcc9   : > { %11632 = vmatpush.msrb.mxu3 %v11615_v27  ;;  %11673 = vmatpush.msrb.mxu1 %v11655_v31 }
 0xcca   : > { %11596 = vmatpush.msrb.mxu2 %v13517_v49 }
 0xccb   : > { %11633 = vmatpush.msrb.mxu3 %v11614_v2  ;;  %11674 = vmatpush.msrb.mxu1 %v11654_v37 }
 0xccc   : > { %11597 = vmatpush.msrb.mxu2 %v13516_v57 }
 0xccd   : > { %11634 = vmatpush.msrb.mxu3 %v11613_v56  ;;  %11675 = vmatpush.msrb.mxu1 %v11653_v59 }
 0xccf   : > { %11635 = vmatpush.msrb.mxu3 %v11612_v63  ;;  %11676 = vmatpush.msrb.mxu1 %v11652_v16 }
 0xcd1   : > { %11636 = vmatpush.msrb.mxu3 %v11611_v11  ;;  %11677 = vmatpush.msrb.mxu1 %v11651_v60 }
 0xcd3   : > { %11637 = vmatpush.msrb.mxu3 %v11610_v38  ;;  %11678 = vmatpush.msrb.mxu1 %v11650_v44 }
 0xcd5   : > { %11638 = vmatpush.msrb.mxu3 %v11609_v42 }
 0xcd7   : > { %11639 = vmatpush.msrb.mxu3 %v11608_v20 }
 0xcd9   : > { %11640 = vmatpush.msrb.mxu3 %v11607_v50 }
 0xcdb   : > { %11641 = vmatpush.msrb.mxu3 %v11606_v21 }
 0xd2b   : > { %v11360_v46 = vpop.f32.mrf.mxu1 }
 0xd2f   : > { %v11385_v33 = vpop.f32.mrf.mxu2 }
 0xd30   : > { %v11388_v26 = vmax.f32 %v11360_v46, %v11385_v33  ;;  %v11411_v36 = vpop.f32.mrf.mxu3 }
 0xd32   : > { %v11414_v7 = vmax.f32 %v11388_v26, %v11411_v36  ;;  %v11649_v26 = vld [vmem:[%s19641_s13 + $0x10] sm:$0xff]  ;;  %v11648_v36 = vld [vmem:[%s19641_s13 + $0x8] sm:$0xff] }
 0xd33   : > { %v11437_v15 = vpop.f32.mrf.mxu1  ;;  %11679 = vmatpush.msrb.mxu1 %v11649_v26 }
 0xd34   : > { %v19464_v23 = vmax.f32 %v11414_v7, %v11437_v15  ;;  %v11647_v15 = vld [vmem:[%s19641_s13] sm:$0xff] }
 0xd35   : > { %11680 = vmatpush.msrb.mxu1 %v11648_v36  ;;  %v11621_v7 = vld [vmem:[%s19640_s12] sm:$0x1] }
 0xd36   : > { %13496 = vmatmul.msk.f32.vlgmr.msra.gmra.mxu2 %vm11449_vm8, %v19464_v23 }
 0xd37   : > { %11681 = vmatpush.msrb.mxu1 %v11647_v15 }
 0xdb9   : > { %v11470_v10 = vpop.f32.mrf.mxu2 }
 0xdba   : > { %v11473_v5 = vmax.f32 %v19464_v23, %v11470_v10 }
 0xdbc   : > { %v11492_v25 = vrot.slane %v11473_v5, 1  ;;  %v11546_v52 = vrot.slane %v11473_v5, 2  ;;  %v11579_v40 = vrot.slane %v11473_v5, 3  ;;  %13506 = vmatmul.msk.f32.vlgmr.msra.gmra.mxu1 %vm11449_vm8, %v11473_v5 }
 0xdbe   : > { %13505 = vmatmul.msk.f32.vlgmr.msra.gmra.mxu3 %vm11449_vm8, %v11492_v25  ;;  %13524 = vmatmul.msk.f32.vlgmr.msrb.gmra.mxu2 %vm11449_vm8, %v11579_v40 }
 0xdbf   : > { %13515 = vmatmul.msk.f32.vlgmr.msrb.gmra.mxu0 %vm11449_vm8, %v11546_v52 }
 0xe39   : > { %v11534_v22 = vpop.f32.mrf.mxu1 }
 0xe3c   : > { %v11566_v47 = vpop.f32.mrf.mxu0 }
 0xe41   : > { %v11512_v34 = vpop.f32.mrf.mxu3  ;;  %v11599_v28 = vpop.f32.mrf.mxu2 }
 0xe42   : > { %v11535_v39 = vadd.f32 %v11534_v22, %v11512_v34 }
 0xe44   : > { %v11569_v51 = vadd.f32 %v11566_v47, %v11535_v39 }
 0xe46   : > { %v11602_v0 = vadd.f32 %v11599_v28, %v11569_v51 }
 0xe48   : > { %v11604_v46 = vadd.f32 %v11603_v13, %v11602_v0 }
 0xe4a   : > { %v11605_v33 = vmax.f32 %v11604_v46, 0.0 }
 0xe4c   : > { %13525 = vmatmul.msk.f32.vlgmr.msrb.gmra.mxu3 %vm11622_vm9, %v11605_v33 }
 0xecf   : > { %v11643_v23 = vpop.f32.mrf.mxu3 }
 0xed0   : > { %v11644_v43 = vadd.f32 %v11643_v23, %v11621_v7 }
 0xed2   : > { %v11646_v1 = vmax.f32 %v11644_v43, 0.0 }
 0xed4   : > { %13527 = vmatmul.msk.f32.vlgmr.msrb.gmra.mxu1 %vm11659_vm10, %v11646_v1 }
 0xf51   : > { %v11683_v8 = vpop.f32.mrf.mxu1 }
 0xf52   : > { %v11684_v17 = vadd.f32 %v11683_v8, %v11658_v58 }
 0xf54   : > { %11687 = vst.msk [vmem:[%s492_s28] sm:$0x1] %vm11686_vm11, %v11684_v17 }
 0xf55 PF: > { %s27_s20 = sadd.s32 1, %s13547_s20  }
 0xf56   : > { %p24_p4 = scmp.ge.s32.totalorder %s27_s20, 4  }
 0xf58   :  { %26 = sbr.rel (!%p24_p4) target bundleno = 3 (0x3), region = 167 }

</bundles_post_ra>
